<compile_context>
chip_gen: v7x
topology: tpu7x:2x2x1
jax: 0.10.0
libtpu: 0.0.40
codegen_flags: <defaults>
</compile_context>

<pallas_src>
import functools
import math

import jax
import jax.numpy as jnp
from jax.experimental import pallas as pl
from jax.experimental.pallas import tpu as pltpu


# ----------------------------- small helpers -----------------------------

def _round_up(x, m):
    return ((x + m - 1) // m) * m


@functools.lru_cache(maxsize=None)
def _vmem_limit_bytes():
    # Size the scoped VMEM limit so the fused layer's resident weights +
    # activation/bias blocks fit at real DLCT sizes:
    #   v5e/v6e (128 MiB physical) -> 96 MiB, v7x (64 MiB physical) -> 48 MiB.
    try:
        cap = pltpu.get_tpu_info().vmem_capacity_bytes
    except Exception:
        cap = 64 * 1024 * 1024  # conservative fallback
    return int(min(cap * 3 // 4, 96 * 1024 * 1024))


def _layernorm(x, gamma, beta, eps=1e-5):
    mean = jnp.mean(x, axis=-1, keepdims=True)
    var = jnp.mean((x - mean) ** 2, axis=-1, keepdims=True)
    return (x - mean) * jax.lax.rsqrt(var + eps) * gamma + beta


# ----------------------------- Pallas kernels -----------------------------

def proj_relu_ln_kernel(x_ref, w_ref, b_ref, g_ref, be_ref, o_ref):
    # relu(x @ w + b) -> LayerNorm over one row tile. bf16 MXU, f32 accumulate.
    y = jnp.dot(x_ref[...].astype(jnp.bfloat16), w_ref[...],
                preferred_element_type=jnp.float32) + b_ref[...]
    y = jnp.maximum(y, 0.0)
    o_ref[...] = _layernorm(y, g_ref[...], be_ref[...])


def encoder_layer_kernel(q_ref, posq_ref, kv_ref, poskv_ref, bias_ref,
                         wq_ref, bq_ref, wk_ref, bk_ref, wv_ref, bv_ref,
                         wo_ref, bo_ref, ln1g_ref, ln1b_ref,
                         w1_ref, b1_ref, w2_ref, b2_ref, ln2g_ref, ln2b_ref,
                         o_ref, *, h, d_k, d_v):
    """Fused: (q+pos) MHA with precomputed geometry+mask bias -> +res -> LN
    -> FFN -> +res -> LN.  Key axis is lane-dense (padded to 128 multiple)."""
    f32 = jnp.float32
    bf16 = jnp.bfloat16

    xq = q_ref[...] + posq_ref[...].astype(f32)          # (nq, d)  f32
    xkv = kv_ref[...] + poskv_ref[...].astype(f32)       # (nkp, d) f32
    nq, d = xq.shape
    nk = xkv.shape[0]

    xq_b = xq.astype(bf16)
    xkv_b = xkv.astype(bf16)

    # --- full-width packed projections (MXU-dense output width h*d_k / h*d_v) ---
    qf = jnp.dot(xq_b, wq_ref[...], preferred_element_type=f32) + bq_ref[...]   # (nq, h*d_k)
    kf = jnp.dot(xkv_b, wk_ref[...], preferred_element_type=f32) + bk_ref[...]  # (nkp, h*d_k)
    vf = jnp.dot(xkv_b, wv_ref[...], preferred_element_type=f32) + bv_ref[...]  # (nkp, h*d_v)

    # split heads to a leading batch axis for the score / P@V einsums
    qh = qf.reshape(nq, h, d_k).transpose(1, 0, 2).astype(bf16)    # (h, nq, d_k)
    kh = kf.reshape(nk, h, d_k).transpose(1, 0, 2).astype(bf16)    # (h, nkp, d_k)
    vh = vf.reshape(nk, h, d_v).transpose(1, 0, 2).astype(bf16)    # (h, nkp, d_v)

    scale = f32(1.0 / math.sqrt(d_k))
    # bias already contains log(relu(geom)), the -1e30 mask fill AND the key pad.
    att = jnp.einsum('hqc,hkc->hqk', qh, kh,
                     preferred_element_type=f32) * scale + bias_ref[...].astype(f32)
    att = att - jnp.max(att, axis=-1, keepdims=True)
    e = jnp.exp(att)
    p = e * pl.reciprocal(jnp.sum(e, axis=-1, keepdims=True), approx=True)   # (h, nq, nkp)

    oh = jnp.einsum('hqk,hkv->hqv', p.astype(bf16), vh,
                    preferred_element_type=f32)                              # (h, nq, d_v)
    # single output projection over the concatenated heads (full contraction depth h*d_v)
    o_cat = oh.transpose(1, 0, 2).reshape(nq, h * d_v).astype(bf16)          # (nq, h*d_v)
    mha = jnp.dot(o_cat, wo_ref[...], preferred_element_type=f32) + bo_ref[...]
    y1 = _layernorm(xq + mha, ln1g_ref[...], ln1b_ref[...])                  # residual + LN

    # --- position-wise FFN (stays in VMEM; no HBM round-trip) ---
    hdn = jnp.dot(y1.astype(bf16), w1_ref[...], preferred_element_type=f32) + b1_ref[...]
    hdn = jnp.maximum(hdn, 0.0)
    y2 = jnp.dot(hdn.astype(bf16), w2_ref[...], preferred_element_type=f32) + b2_ref[...]
    o_ref[...] = _layernorm(y1 + y2, ln2g_ref[...], ln2b_ref[...])           # residual + LN


# ----------------------------- Pallas wrappers -----------------------------

def _full_spec(shape):
    n = len(shape)
    return pl.BlockSpec(shape, lambda b, _n=n: (0,) * _n)


def proj_relu_ln(x, w, b, gamma, beta, block_rows=256):
    """relu(fc(x)) -> LayerNorm with a row-tiled, double-buffered pipeline."""
    B, n, d_in = x.shape
    d = w.shape[1]
    rows = B * n
    flat = x.reshape(rows, d_in)
    block_rows = min(block_rows, _round_up(rows, 8))
    rows_p = _round_up(rows, block_rows)
    if rows_p != rows:
        flat = jnp.pad(flat, ((0, rows_p - rows), (0, 0)))
    out = pl.pallas_call(
        proj_relu_ln_kernel,
        out_shape=jax.ShapeDtypeStruct((rows_p, d), jnp.float32),
        grid_spec=pltpu.PrefetchScalarGridSpec(
            num_scalar_prefetch=0, grid=(rows_p // block_rows,),
            in_specs=[
                pl.BlockSpec((block_rows, d_in), lambda r: (r, 0)),
                pl.BlockSpec((d_in, d), lambda r: (0, 0)),
                pl.BlockSpec((1, d), lambda r: (0, 0)),
                pl.BlockSpec((1, d), lambda r: (0, 0)),
                pl.BlockSpec((1, d), lambda r: (0, 0)),
            ],
            out_specs=pl.BlockSpec((block_rows, d), lambda r: (r, 0)),
        ),
        compiler_params=pltpu.CompilerParams(dimension_semantics=("parallel",)),
    )(flat, w, b, gamma, beta)
    return out[:rows].reshape(B, n, d)


def encoder_layer(p, q, pos_q, kv, pos_kv, bias, *, h, d_k, d_v):
    """Fused MHA+FFN encoder layer.
    q: (B,nq,d) f32; kv: (B,nkp,d) f32 (key axis padded to 128 multiple);
    pos_*: bf16; bias: (B,h,nq,nkp) bf16 (log-geom + mask + key pad)."""
    B, nq, d = q.shape
    nk = kv.shape[1]
    m, f = p['mha'], p['ffn']
    d_ff = f['w1'].shape[1]
    kernel = functools.partial(encoder_layer_kernel, h=h, d_k=d_k, d_v=d_v)
    return pl.pallas_call(
        kernel,
        out_shape=jax.ShapeDtypeStruct((B, nq, d), jnp.float32),
        grid_spec=pltpu.PrefetchScalarGridSpec(
            num_scalar_prefetch=0, grid=(B,),
            in_specs=[
                pl.BlockSpec((pl.Squeezed(), nq, d), lambda b: (b, 0, 0)),        # q
                pl.BlockSpec((pl.Squeezed(), nq, d), lambda b: (b, 0, 0)),        # pos_q
                pl.BlockSpec((pl.Squeezed(), nk, d), lambda b: (b, 0, 0)),        # kv
                pl.BlockSpec((pl.Squeezed(), nk, d), lambda b: (b, 0, 0)),        # pos_kv
                pl.BlockSpec((pl.Squeezed(), h, nq, nk), lambda b: (b, 0, 0, 0)), # bias
                # loop-invariant bf16/f32 weights (constant index map -> single DMA)
                _full_spec((d, h * d_k)), _full_spec((1, h * d_k)),   # wq, bq
                _full_spec((d, h * d_k)), _full_spec((1, h * d_k)),   # wk, bk
                _full_spec((d, h * d_v)), _full_spec((1, h * d_v)),   # wv, bv
                _full_spec((h * d_v, d)), _full_spec((1, d)),         # wo, bo
                _full_spec((1, d)), _full_spec((1, d)),               # ln1 g/b
                _full_spec((d, d_ff)), _full_spec((1, d_ff)),         # w1, b1
                _full_spec((d_ff, d)), _full_spec((1, d)),            # w2, b2
                _full_spec((1, d)), _full_spec((1, d)),               # ln2 g/b
            ],
            out_specs=pl.BlockSpec((pl.Squeezed(), nq, d), lambda b: (b, 0, 0)),
        ),
        compiler_params=pltpu.CompilerParams(
            dimension_semantics=("parallel",),
            vmem_limit_bytes=_vmem_limit_bytes()),
    )(q, pos_q, kv, pos_kv, bias,
      m['wq'], m['bq'], m['wk'], m['bk'], m['wv'], m['bv'],
      m['wo'], m['bo'], m['ln_g'], m['ln_b'],
      f['w1'], f['b1'], f['w2'], f['b2'], f['ln_g'], f['ln_b'])


# ----------------------------- JAX glue helpers -----------------------------

def box_relational_embedding(f_g, dim_g, wave_len=1000.0, trignometric=True):
    # Standard M2/DLCT BoxRelationalEmbedding.
    bs, n, _ = f_g.shape
    x_min, y_min, x_max, y_max = jnp.split(f_g, 4, axis=-1)
    cx = (x_min + x_max) * 0.5
    cy = (y_min + y_max) * 0.5
    w = (x_max - x_min) + 1.0
    h = (y_max - y_min) + 1.0
    delta_x = jnp.log(jnp.maximum(jnp.abs((cx - cx.reshape(bs, 1, n)) / w), 1e-3))
    delta_y = jnp.log(jnp.maximum(jnp.abs((cy - cy.reshape(bs, 1, n)) / h), 1e-3))
    delta_w = jnp.log(w / w.reshape(bs, 1, n))
    delta_h = jnp.log(h / h.reshape(bs, 1, n))
    position_mat = jnp.stack([delta_x, delta_y, delta_w, delta_h], axis=-1)   # (bs,n,n,4)
    if not trignometric:
        return position_mat
    feat_range = jnp.arange(dim_g / 8, dtype=jnp.float32)
    dim_mat = 1.0 / (wave_len ** (feat_range / (dim_g / 8)))
    mul_mat = (100.0 * position_mat[..., None]) * dim_mat.reshape(1, 1, 1, 1, -1)
    mul_mat = mul_mat.reshape(bs, n, n, -1)
    return jnp.concatenate([jnp.sin(mul_mat), jnp.cos(mul_mat)], axis=-1)     # (bs,n,n,dim_g)


def generate_padding_mask(features, padding_idx=0):
    return jnp.sum(jnp.abs(features), axis=-1) == float(padding_idx)          # (bs, n) bool


def get_combine_masks(region_boxes, grid_size):
    # TODO(synk): original get_combine_masks source unavailable; assume boxes are
    # normalized (x1,y1,x2,y2) in [0,1] and a grid cell is masked iff it does not
    # overlap the region box (True == masked).
    x1, y1, x2, y2 = jnp.split(region_boxes, 4, axis=-1)            # (bs, nr, 1)
    g = grid_size
    idx = jnp.arange(g * g)
    gy, gx = idx // g, idx % g
    gx1, gx2 = gx / g, (gx + 1) / g
    gy1, gy2 = gy / g, (gy + 1) / g
    iw = jnp.minimum(x2, gx2[None, None, :]) - jnp.maximum(x1, gx1[None, None, :])
    ih = jnp.minimum(y2, gy2[None, None, :]) - jnp.maximum(y1, gy1[None, None, :])
    overlap = (iw > 0) & (ih > 0)                                   # (bs, nr, ng)
    return ~overlap


def sinusoid_pos_embedding(x, d_model, temperature=10000.0, normalize=True):
    # TODO(synk): SinusoidPositionalEmbedding source unavailable; DETR-style 1-D sine.
    bs, n, _ = x.shape
    pos = jnp.cumsum(jnp.ones((bs, n), jnp.float32), axis=1)
    if normalize:
        pos = pos / (pos[:, -1:] + 1e-6) * (2 * math.pi)
    dim_t = jnp.arange(d_model)
    dim_t = temperature ** (2.0 * (dim_t // 2).astype(jnp.float32) / d_model)
    p = pos[:, :, None] / dim_t
    emb = jnp.stack([jnp.sin(p[:, :, 0::2]), jnp.cos(p[:, :, 1::2])], axis=3)
    return emb.reshape(bs, n, d_model)


# ----------------------------- Parameters -----------------------------

def _xavier(key, shape):
    limit = math.sqrt(6.0 / (shape[0] + shape[1]))
    return jax.random.uniform(key, shape, jnp.float32, -limit, limit)


def _init_encoder_layer(key, d_model, d_k, d_v, h, d_ff):
    ks = jax.random.split(key, 6)
    bf16 = jnp.bfloat16
    mha = {
        # fused full-width projections; bf16 storage halves DMA + VMEM residency
        'wq': _xavier(ks[0], (d_model, h * d_k)).astype(bf16),
        'bq': jnp.zeros((1, h * d_k), jnp.float32),
        'wk': _xavier(ks[1], (d_model, h * d_k)).astype(bf16),
        'bk': jnp.zeros((1, h * d_k), jnp.float32),
        'wv': _xavier(ks[2], (d_model, h * d_v)).astype(bf16),
        'bv': jnp.zeros((1, h * d_v), jnp.float32),
        'wo': _xavier(ks[3], (h * d_v, d_model)).astype(bf16),
        'bo': jnp.zeros((1, d_model), jnp.float32),
        'ln_g': jnp.ones((1, d_model), jnp.float32),
        'ln_b': jnp.zeros((1, d_model), jnp.float32),
    }
    ffn_p = {'w1': _xavier(ks[4], (d_model, d_ff)).astype(bf16),
             'b1': jnp.zeros((1, d_ff), jnp.float32),
             'w2': _xavier(ks[5], (d_ff, d_model)).astype(bf16),
             'b2': jnp.zeros((1, d_model), jnp.float32),
             'ln_g': jnp.ones((1, d_model), jnp.float32),
             'ln_b': jnp.zeros((1, d_model), jnp.float32)}
    return {'mha': mha, 'ffn': ffn_p}


def init_params(key, N, d_in, d_model, d_k, d_v, h, d_ff, d_g):
    keys = jax.random.split(key, 3 + N)
    params = {
        'fc_region': {'w': _xavier(keys[0], (d_in, d_model)).astype(jnp.bfloat16),
                      'b': jnp.zeros((1, d_model), jnp.float32)},
        'ln_region_g': jnp.ones((1, d_model), jnp.float32),
        'ln_region_b': jnp.zeros((1, d_model), jnp.float32),
        'fc_grid': {'w': _xavier(keys[1], (d_in, d_model)).astype(jnp.bfloat16),
                    'b': jnp.zeros((1, d_model), jnp.float32)},
        'ln_grid_g': jnp.ones((1, d_model), jnp.float32),
        'ln_grid_b': jnp.zeros((1, d_model), jnp.float32),
        # h separate Linear(d_g, 1) heads fused to one (d_g, h) matrix
        'fc_gs_w': _xavier(keys[2], (d_g, h)),
        'fc_gs_b': jnp.zeros((h,), jnp.float32),
        'layers': [],
    }
    for li in range(N):
        lk = jax.random.split(keys[3 + li], 4)
        params['layers'].append({
            'region': _init_encoder_layer(lk[0], d_model, d_k, d_v, h, d_ff),
            'grid':   _init_encoder_layer(lk[1], d_model, d_k, d_v, h, d_ff),
            'r2g':    _init_encoder_layer(lk[2], d_model, d_k, d_v, h, d_ff),
            'g2r':    _init_encoder_layer(lk[3], d_model, d_k, d_v, h, d_ff),
        })
    return params


# ----------------------------- Forward pass -----------------------------

def make_forward(N, d_model, d_k, d_v, h, d_g):

    def forward(params, region_features, region_boxes, grid_features, grid_boxes):
        B, nr, _ = region_features.shape
        ng = grid_features.shape[1]
        nall = nr + ng
        grid_size = int(round(ng ** 0.5))
        NEG = jnp.float32(-1e30)
        bf16 = jnp.bfloat16

        # lane-dense key lengths (padding folded into the -1e30 mask bias)
        nkp_r = _round_up(nr, 128)
        nkp_g = _round_up(ng, 128)
        nkp_all = _round_up(nall, 128)

        def pad_rows(x, n_to):
            pad = n_to - x.shape[1]
            return jnp.pad(x, ((0, 0), (0, pad), (0, 0))) if pad else x

        # input projections: relu(fc(x)) -> LayerNorm   (Pallas, row-tiled pipeline)
        out_region = proj_relu_ln(region_features, params['fc_region']['w'],
                                  params['fc_region']['b'],
                                  params['ln_region_g'], params['ln_region_b'])
        out_grid = proj_relu_ln(grid_features, params['fc_grid']['w'],
                                params['fc_grid']['b'],
                                params['ln_grid_g'], params['ln_grid_b'])

        # --- geometry bias, precomputed ONCE (constant across layers/branches) ---
        boxes = jnp.concatenate([region_boxes, grid_boxes], axis=1)
        rel_emb = box_relational_embedding(boxes, d_g)                       # (B, nall, nall, d_g)
        rel_w = (jnp.einsum('bqkg,gh->bhqk', rel_emb, params['fc_gs_w'])
                 + params['fc_gs_b'][None, :, None, None])                   # (B, h, nall, nall)
        log_geom = jnp.log(jnp.maximum(rel_w, 1e-6))                         # log(max(relu, 1e-6))

        # padding / alignment masks (True == masked), folded into the bias once.
        region_pad = generate_padding_mask(region_features, 0)               # (B, nr)
        grid_pad = generate_padding_mask(grid_features, 0)                   # (B, ng)
        r2g_mask = get_combine_masks(region_boxes, grid_size)                # (B, nr, ng)
        g2r_mask = jnp.transpose(r2g_mask, (0, 2, 1))                        # (B, ng, nr)
        mask_r2all = jnp.concatenate(
            [jnp.broadcast_to(region_pad[:, None, :], (B, nr, nr)), r2g_mask], axis=-1)
        mask_g2all = jnp.concatenate(
            [g2r_mask, jnp.broadcast_to(grid_pad[:, None, :], (B, ng, ng))], axis=-1)

        def make_bias(mask, geom, nkp):
            b = jnp.where(mask, NEG, geom)                                   # (B, h, nq, nk)
            pad = nkp - b.shape[-1]
            if pad:
                b = jnp.pad(b, ((0, 0), (0, 0), (0, 0), (0, pad)), constant_values=NEG)
            return b.astype(bf16)                                            # bf16 halves re-stream

        bias_region = make_bias(region_pad[:, None, None, :], log_geom[:, :, :nr, :nr], nkp_r)
        bias_grid = make_bias(grid_pad[:, None, None, :], log_geom[:, :, nr:, nr:], nkp_g)
        bias_r2all = make_bias(mask_r2all[:, None, :, :], log_geom[:, :, :nr, :], nkp_all)
        bias_g2all = make_bias(mask_g2all[:, None, :, :], log_geom[:, :, nr:, :], nkp_all)
        # NOTE: fully-masked rows give a uniform softmax (vs NaN in PyTorch masked_fill(-inf));
        # such rows are padding and discarded downstream.

        # positional embeddings (reference code uses `out` before assignment; we take the
        # intended out = cat([out_region, out_grid], dim=1))
        region_pos = sinusoid_pos_embedding(out_region, d_model)             # f32 (returned)
        grid_pos = sinusoid_pos_embedding(out_grid, d_model)
        rg_pos = sinusoid_pos_embedding(
            jnp.concatenate([out_region, out_grid], axis=1), d_model)

        # bf16 copies for the kernels; key-side copies padded to the lane-dense length
        region_pos_q = region_pos.astype(bf16)
        grid_pos_q = grid_pos.astype(bf16)
        region_pos_kv = pad_rows(region_pos_q, nkp_r)
        grid_pos_kv = pad_rows(grid_pos_q, nkp_g)
        rg_pos_kv = pad_rows(rg_pos.astype(bf16), nkp_all)

        for li in range(N):
            lp = params['layers'][li]
            # self attention (pos add folded into the fused kernel)
            out_region = encoder_layer(lp['region'], out_region, region_pos_q,
                                       pad_rows(out_region, nkp_r), region_pos_kv,
                                       bias_region, h=h, d_k=d_k, d_v=d_v)
            out_grid = encoder_layer(lp['grid'], out_grid, grid_pos_q,
                                     pad_rows(out_grid, nkp_g), grid_pos_kv,
                                     bias_grid, h=h, d_k=d_k, d_v=d_v)
            # cross attention over the combined (lane-dense padded) sequence
            out_combined = pad_rows(
                jnp.concatenate([out_region, out_grid], axis=1), nkp_all)
            out_region = encoder_layer(lp['r2g'], out_region, region_pos_q,
                                       out_combined, rg_pos_kv, bias_r2all,
                                       h=h, d_k=d_k, d_v=d_v)
            out_grid = encoder_layer(lp['g2r'], out_grid, grid_pos_q,
                                     out_combined, rg_pos_kv, bias_g2all,
                                     h=h, d_k=d_k, d_v=d_v)

        out = jnp.concatenate([out_region, out_grid], axis=1)
        padding_mask = jnp.concatenate([region_pad[:, None, None, :],
                                        grid_pad[:, None, None, :]], axis=-1)
        return out, padding_mask, region_pos

    return forward


# ----------------------------- Main -----------------------------

if __name__ == "__main__":
    B, n_regions, n_grids = 2, 8, 16
    d_in, d_model, d_k, d_v, h, d_ff, N = 32, 64, 16, 16, 4, 128, 2
    d_g = d_model // h      # trignometric_embedding=True

    key = jax.random.PRNGKey(0)
    k0, k1, k2, k3 = jax.random.split(key, 4)
    region_features = jax.random.normal(k0, (B, n_regions, d_in), jnp.float32)
    grid_features = jax.random.normal(k1, (B, n_grids, d_in), jnp.float32)
    # region boxes: random (x1,y1,x2,y2) in [0,1]
    r_xy = jax.random.uniform(k2, (B, n_regions, 2), jnp.float32, 0.0, 0.6)
    r_wh = jax.random.uniform(k3, (B, n_regions, 2), jnp.float32, 0.1, 0.4)
    region_boxes = jnp.concatenate([r_xy, r_xy + r_wh], axis=-1)
    # grid boxes: regular 4x4 cells
    gs = int(n_grids ** 0.5)
    gy, gx = jnp.meshgrid(jnp.arange(gs), jnp.arange(gs), indexing='ij')
    gb = jnp.stack([gx / gs, gy / gs, (gx + 1) / gs, (gy + 1) / gs],
                   axis=-1).reshape(1, n_grids, 4).astype(jnp.float32)
    grid_boxes = jnp.broadcast_to(gb, (B, n_grids, 4))

    params = init_params(jax.random.PRNGKey(42), N, d_in, d_model, d_k, d_v, h, d_ff, d_g)
    forward = jax.jit(make_forward(N, d_model, d_k, d_v, h, d_g))

    out, padding_mask, region_pos = forward(params, region_features, region_boxes,
                                            grid_features, grid_boxes)
    jax.block_until_ready((out, padding_mask, region_pos))

    assert out.shape == (B, n_regions + n_grids, d_model)
    assert padding_mask.shape == (B, 1, 1, n_regions + n_grids)
    assert region_pos.shape == (B, n_regions, d_model)
    assert bool(jnp.all(jnp.isfinite(out)))
    print("KERNEL_OK")
</pallas_src>

<mosaic_0001>
module attributes {stable_mosaic.version = 11 : i64} {
  func.func @proj_relu_ln_kernel(%arg0: i32, %arg1: memref<16x32xf32, #tpu.memory_space<vmem>>, %arg2: memref<32x64xbf16, #tpu.memory_space<vmem>>, %arg3: memref<1x64xf32, #tpu.memory_space<vmem>>, %arg4: memref<1x64xf32, #tpu.memory_space<vmem>>, %arg5: memref<1x64xf32, #tpu.memory_space<vmem>>, %arg6: memref<16x64xf32, #tpu.memory_space<vmem>>) attributes {dimension_semantics = [#tpu.dimension_semantics<parallel>], iteration_bounds = array<i64: 1>, scalar_prefetch = 0 : i64, scratch_operands = 0 : i64, tpu.core_type = #tpu.core_type<tc>, window_params = [{transform_indices = @transform_0, window_bounds = array<i64: 16, 32>}, {pipeline_mode = #tpu.pipeline_mode<synchronous>, transform_indices = @transform_1, window_bounds = array<i64: 32, 64>}, {pipeline_mode = #tpu.pipeline_mode<synchronous>, transform_indices = @transform_2, window_bounds = array<i64: 1, 64>}, {pipeline_mode = #tpu.pipeline_mode<synchronous>, transform_indices = @transform_3, window_bounds = array<i64: 1, 64>}, {pipeline_mode = #tpu.pipeline_mode<synchronous>, transform_indices = @transform_4, window_bounds = array<i64: 1, 64>}, {transform_indices = @transform_5, window_bounds = array<i64: 16, 64>}]} {
    %c0 = arith.constant 0 : index
    %c0_0 = arith.constant 0 : index
    %0 = vector.load %arg1[%c0, %c0_0] : memref<16x32xf32, #tpu.memory_space<vmem>>, vector<16x32xf32>
    %1 = arith.truncf %0 : vector<16x32xf32> to vector<16x32xbf16>
    %c0_1 = arith.constant 0 : index
    %c0_2 = arith.constant 0 : index
    %2 = vector.load %arg2[%c0_1, %c0_2] : memref<32x64xbf16, #tpu.memory_space<vmem>>, vector<32x64xbf16>
    %cst = arith.constant dense<0.000000e+00> : vector<16x64xf32>
    %3 = tpu.matmul %1, %2, %cst {dimension_numbers = #tpu.dot_dimension_numbers<[1], [0], [0], [1], [0, 0, 1, 1], [], []>} : vector<16x32xbf16>, vector<32x64xbf16>, vector<16x64xf32> -> vector<16x64xf32>
    %c0_3 = arith.constant 0 : index
    %c0_4 = arith.constant 0 : index
    %4 = vector.load %arg3[%c0_3, %c0_4] : memref<1x64xf32, #tpu.memory_space<vmem>>, vector<1x64xf32>
    %5 = vector.broadcast %4 : vector<1x64xf32> to vector<16x64xf32>
    %6 = arith.addf %3, %5 : vector<16x64xf32>
    %cst_5 = arith.constant 0.000000e+00 : f32
    %7 = vector.broadcast %cst_5 : f32 to vector<16x64xf32>
    %8 = arith.maximumf %6, %7 : vector<16x64xf32>
    %c0_6 = arith.constant 0 : index
    %c0_7 = arith.constant 0 : index
    %9 = vector.load %arg4[%c0_6, %c0_7] : memref<1x64xf32, #tpu.memory_space<vmem>>, vector<1x64xf32>
    %c0_8 = arith.constant 0 : index
    %c0_9 = arith.constant 0 : index
    %10 = vector.load %arg5[%c0_8, %c0_9] : memref<1x64xf32, #tpu.memory_space<vmem>>, vector<1x64xf32>
    %cst_10 = arith.constant dense<0.000000e+00> : vector<16xf32>
    %11 = vector.multi_reduction <add>, %8, %cst_10 [1] : vector<16x64xf32> to vector<16xf32>
    %12 = vector.shape_cast %11 : vector<16xf32> to vector<16x1xf32>
    %cst_11 = arith.constant 6.400000e+01 : f32
    %13 = vector.broadcast %cst_11 : f32 to vector<16x1xf32>
    %14 = arith.divf %12, %13 : vector<16x1xf32>
    %15 = vector.broadcast %14 : vector<16x1xf32> to vector<16x64xf32>
    %16 = arith.subf %8, %15 : vector<16x64xf32>
    %17 = arith.mulf %16, %16 : vector<16x64xf32>
    %cst_12 = arith.constant dense<0.000000e+00> : vector<16xf32>
    %18 = vector.multi_reduction <add>, %17, %cst_12 [1] : vector<16x64xf32> to vector<16xf32>
    %19 = vector.shape_cast %18 : vector<16xf32> to vector<16x1xf32>
    %cst_13 = arith.constant 6.400000e+01 : f32
    %20 = vector.broadcast %cst_13 : f32 to vector<16x1xf32>
    %21 = arith.divf %19, %20 : vector<16x1xf32>
    %22 = vector.broadcast %14 : vector<16x1xf32> to vector<16x64xf32>
    %23 = arith.subf %8, %22 : vector<16x64xf32>
    %cst_14 = arith.constant 9.99999974E-6 : f32
    %24 = vector.broadcast %cst_14 : f32 to vector<16x1xf32>
    %25 = arith.addf %21, %24 : vector<16x1xf32>
    %26 = math.rsqrt %25 : vector<16x1xf32>
    %27 = vector.broadcast %26 : vector<16x1xf32> to vector<16x64xf32>
    %28 = arith.mulf %23, %27 : vector<16x64xf32>
    %29 = vector.broadcast %9 : vector<1x64xf32> to vector<16x64xf32>
    %30 = arith.mulf %28, %29 : vector<16x64xf32>
    %31 = vector.broadcast %10 : vector<1x64xf32> to vector<16x64xf32>
    %32 = arith.addf %30, %31 : vector<16x64xf32>
    %c0_15 = arith.constant 0 : index
    %c0_16 = arith.constant 0 : index
    %33 = vector.load %arg6[%c0_15, %c0_16] : memref<16x64xf32, #tpu.memory_space<vmem>>, vector<16x64xf32>
    tpu.vector_store %arg6[%c0_15, %c0_16], %32 {strides = array<i32>} : memref<16x64xf32, #tpu.memory_space<vmem>>, vector<16x64xf32>,
    return
  }
  func.func @transform_0(%arg0: i32) -> (i32, i32) {
    %c0_i32 = arith.constant 0 : i32
    %c0_i32_0 = arith.constant 0 : i32
    return %arg0, %c0_i32 : i32, i32
  }
  func.func @transform_1(%arg0: i32) -> (i32, i32) {
    %c0_i32 = arith.constant 0 : i32
    %c0_i32_0 = arith.constant 0 : i32
    %c0_i32_1 = arith.constant 0 : i32
    return %c0_i32, %c0_i32_0 : i32, i32
  }
  func.func @transform_2(%arg0: i32) -> (i32, i32) {
    %c0_i32 = arith.constant 0 : i32
    %c0_i32_0 = arith.constant 0 : i32
    %c0_i32_1 = arith.constant 0 : i32
    return %c0_i32, %c0_i32_0 : i32, i32
  }
  func.func @transform_3(%arg0: i32) -> (i32, i32) {
    %c0_i32 = arith.constant 0 : i32
    %c0_i32_0 = arith.constant 0 : i32
    %c0_i32_1 = arith.constant 0 : i32
    return %c0_i32, %c0_i32_0 : i32, i32
  }
  func.func @transform_4(%arg0: i32) -> (i32, i32) {
    %c0_i32 = arith.constant 0 : i32
    %c0_i32_0 = arith.constant 0 : i32
    %c0_i32_1 = arith.constant 0 : i32
    return %c0_i32, %c0_i32_0 : i32, i32
  }
  func.func @transform_5(%arg0: i32) -> (i32, i32) {
    %c0_i32 = arith.constant 0 : i32
    %c0_i32_0 = arith.constant 0 : i32
    return %arg0, %c0_i32 : i32, i32
  }
}

module attributes {stable_mosaic.version = 11 : i64} {
  func.func @encoder_layer_kernel(%arg0: i32, %arg1: memref<1x8x64xf32, #tpu.memory_space<vmem>>, %arg2: memref<1x8x64xbf16, #tpu.memory_space<vmem>>, %arg3: memref<1x128x64xf32, #tpu.memory_space<vmem>>, %arg4: memref<1x128x64xbf16, #tpu.memory_space<vmem>>, %arg5: memref<1x4x8x128xbf16, #tpu.memory_space<vmem>>, %arg6: memref<64x64xbf16, #tpu.memory_space<vmem>>, %arg7: memref<1x64xf32, #tpu.memory_space<vmem>>, %arg8: memref<64x64xbf16, #tpu.memory_space<vmem>>, %arg9: memref<1x64xf32, #tpu.memory_space<vmem>>, %arg10: memref<64x64xbf16, #tpu.memory_space<vmem>>, %arg11: memref<1x64xf32, #tpu.memory_space<vmem>>, %arg12: memref<64x64xbf16, #tpu.memory_space<vmem>>, %arg13: memref<1x64xf32, #tpu.memory_space<vmem>>, %arg14: memref<1x64xf32, #tpu.memory_space<vmem>>, %arg15: memref<1x64xf32, #tpu.memory_space<vmem>>, %arg16: memref<64x128xbf16, #tpu.memory_space<vmem>>, %arg17: memref<1x128xf32, #tpu.memory_space<vmem>>, %arg18: memref<128x64xbf16, #tpu.memory_space<vmem>>, %arg19: memref<1x64xf32, #tpu.memory_space<vmem>>, %arg20: memref<1x64xf32, #tpu.memory_space<vmem>>, %arg21: memref<1x64xf32, #tpu.memory_space<vmem>>, %arg22: memref<1x8x64xf32, #tpu.memory_space<vmem>>) attributes {dimension_semantics = [#tpu.dimension_semantics<parallel>], iteration_bounds = array<i64: 2>, scalar_prefetch = 0 : i64, scratch_operands = 0 : i64, tpu.core_type = #tpu.core_type<tc>, window_params = [{transform_indices = @transform_0, window_bounds = array<i64: 1, 8, 64>}, {transform_indices = @transform_1, window_bounds = array<i64: 1, 8, 64>}, {transform_indices = @transform_2, window_bounds = array<i64: 1, 128, 64>}, {transform_indices = @transform_3, window_bounds = array<i64: 1, 128, 64>}, {transform_indices = @transform_4, window_bounds = array<i64: 1, 4, 8, 128>}, {pipeline_mode = #tpu.pipeline_mode<synchronous>, transform_indices = @transform_5, window_bounds = array<i64: 64, 64>}, {pipeline_mode = #tpu.pipeline_mode<synchronous>, transform_indices = @transform_6, window_bounds = array<i64: 1, 64>}, {pipeline_mode = #tpu.pipeline_mode<synchronous>, transform_indices = @transform_7, window_bounds = array<i64: 64, 64>}, {pipeline_mode = #tpu.pipeline_mode<synchronous>, transform_indices = @transform_8, window_bounds = array<i64: 1, 64>}, {pipeline_mode = #tpu.pipeline_mode<synchronous>, transform_indices = @transform_9, window_bounds = array<i64: 64, 64>}, {pipeline_mode = #tpu.pipeline_mode<synchronous>, transform_indices = @transform_10, window_bounds = array<i64: 1, 64>}, {pipeline_mode = #tpu.pipeline_mode<synchronous>, transform_indices = @transform_11, window_bounds = array<i64: 64, 64>}, {pipeline_mode = #tpu.pipeline_mode<synchronous>, transform_indices = @transform_12, window_bounds = array<i64: 1, 64>}, {pipeline_mode = #tpu.pipeline_mode<synchronous>, transform_indices = @transform_13, window_bounds = array<i64: 1, 64>}, {pipeline_mode = #tpu.pipeline_mode<synchronous>, transform_indices = @transform_14, window_bounds = array<i64: 1, 64>}, {pipeline_mode = #tpu.pipeline_mode<synchronous>, transform_indices = @transform_15, window_bounds = array<i64: 64, 128>}, {pipeline_mode = #tpu.pipeline_mode<synchronous>, transform_indices = @transform_16, window_bounds = array<i64: 1, 128>}, {pipeline_mode = #tpu.pipeline_mode<synchronous>, transform_indices = @transform_17, window_bounds = array<i64: 128, 64>}, {pipeline_mode = #tpu.pipeline_mode<synchronous>, transform_indices = @transform_18, window_bounds = array<i64: 1, 64>}, {pipeline_mode = #tpu.pipeline_mode<synchronous>, transform_indices = @transform_19, window_bounds = array<i64: 1, 64>}, {pipeline_mode = #tpu.pipeline_mode<synchronous>, transform_indices = @transform_20, window_bounds = array<i64: 1, 64>}, {transform_indices = @transform_21, window_bounds = array<i64: 1, 8, 64>}]} {
    %c0 = arith.constant 0 : index
    %c0_0 = arith.constant 0 : index
    %c0_1 = arith.constant 0 : index
    %0 = vector.load %arg1[%c0, %c0_0, %c0_1] : memref<1x8x64xf32, #tpu.memory_space<vmem>>, vector<1x8x64xf32>
    %1 = vector.shape_cast %0 : vector<1x8x64xf32> to vector<8x64xf32>
    %c0_2 = arith.constant 0 : index
    %c0_3 = arith.constant 0 : index
    %c0_4 = arith.constant 0 : index
    %2 = vector.load %arg2[%c0_2, %c0_3, %c0_4] : memref<1x8x64xbf16, #tpu.memory_space<vmem>>, vector<1x8x64xbf16>
    %3 = vector.shape_cast %2 : vector<1x8x64xbf16> to vector<8x64xbf16>
    %4 = arith.extf %3 : vector<8x64xbf16> to vector<8x64xf32>
    %5 = arith.addf %1, %4 : vector<8x64xf32>
    %c0_5 = arith.constant 0 : index
    %c0_6 = arith.constant 0 : index
    %c0_7 = arith.constant 0 : index
    %6 = vector.load %arg3[%c0_5, %c0_6, %c0_7] : memref<1x128x64xf32, #tpu.memory_space<vmem>>, vector<1x128x64xf32>
    %7 = vector.shape_cast %6 : vector<1x128x64xf32> to vector<128x64xf32>
    %c0_8 = arith.constant 0 : index
    %c0_9 = arith.constant 0 : index
    %c0_10 = arith.constant 0 : index
    %8 = vector.load %arg4[%c0_8, %c0_9, %c0_10] : memref<1x128x64xbf16, #tpu.memory_space<vmem>>, vector<1x128x64xbf16>
    %9 = vector.shape_cast %8 : vector<1x128x64xbf16> to vector<128x64xbf16>
    %10 = arith.extf %9 : vector<128x64xbf16> to vector<128x64xf32>
    %11 = arith.addf %7, %10 : vector<128x64xf32>
    %12 = arith.truncf %5 : vector<8x64xf32> to vector<8x64xbf16>
    %13 = arith.truncf %11 : vector<128x64xf32> to vector<128x64xbf16>
    %c0_11 = arith.constant 0 : index
    %c0_12 = arith.constant 0 : index
    %14 = vector.load %arg6[%c0_11, %c0_12] : memref<64x64xbf16, #tpu.memory_space<vmem>>, vector<64x64xbf16>
    %cst = arith.constant dense<0.000000e+00> : vector<8x64xf32>
    %15 = tpu.matmul %12, %14, %cst {dimension_numbers = #tpu.dot_dimension_numbers<[1], [0], [0], [1], [0, 0, 1, 1], [], []>} : vector<8x64xbf16>, vector<64x64xbf16>, vector<8x64xf32> -> vector<8x64xf32>
    %c0_13 = arith.constant 0 : index
    %c0_14 = arith.constant 0 : index
    %16 = vector.load %arg7[%c0_13, %c0_14] : memref<1x64xf32, #tpu.memory_space<vmem>>, vector<1x64xf32>
    %17 = vector.broadcast %16 : vector<1x64xf32> to vector<8x64xf32>
    %18 = arith.addf %15, %17 : vector<8x64xf32>
    %c0_15 = arith.constant 0 : index
    %c0_16 = arith.constant 0 : index
    %19 = vector.load %arg8[%c0_15, %c0_16] : memref<64x64xbf16, #tpu.memory_space<vmem>>, vector<64x64xbf16>
    %cst_17 = arith.constant dense<0.000000e+00> : vector<128x64xf32>
    %20 = tpu.matmul %13, %19, %cst_17 {dimension_numbers = #tpu.dot_dimension_numbers<[1], [0], [0], [1], [0, 0, 1, 1], [], []>} : vector<128x64xbf16>, vector<64x64xbf16>, vector<128x64xf32> -> vector<128x64xf32>
    %c0_18 = arith.constant 0 : index
    %c0_19 = arith.constant 0 : index
    %21 = vector.load %arg9[%c0_18, %c0_19] : memref<1x64xf32, #tpu.memory_space<vmem>>, vector<1x64xf32>
    %22 = vector.broadcast %21 : vector<1x64xf32> to vector<128x64xf32>
    %23 = arith.addf %20, %22 : vector<128x64xf32>
    %c0_20 = arith.constant 0 : index
    %c0_21 = arith.constant 0 : index
    %24 = vector.load %arg10[%c0_20, %c0_21] : memref<64x64xbf16, #tpu.memory_space<vmem>>, vector<64x64xbf16>
    %cst_22 = arith.constant dense<0.000000e+00> : vector<128x64xf32>
    %25 = tpu.matmul %13, %24, %cst_22 {dimension_numbers = #tpu.dot_dimension_numbers<[1], [0], [0], [1], [0, 0, 1, 1], [], []>} : vector<128x64xbf16>, vector<64x64xbf16>, vector<128x64xf32> -> vector<128x64xf32>
    %c0_23 = arith.constant 0 : index
    %c0_24 = arith.constant 0 : index
    %26 = vector.load %arg11[%c0_23, %c0_24] : memref<1x64xf32, #tpu.memory_space<vmem>>, vector<1x64xf32>
    %27 = vector.broadcast %26 : vector<1x64xf32> to vector<128x64xf32>
    %28 = arith.addf %25, %27 : vector<128x64xf32>
    %29 = vector.shape_cast %18 : vector<8x64xf32> to vector<8x4x16xf32>
    %30 = tpu.transpose %29, [1, 0, 2] : vector<8x4x16xf32> -> vector<4x8x16xf32>
    %31 = arith.truncf %30 : vector<4x8x16xf32> to vector<4x8x16xbf16>
    %32 = vector.shape_cast %23 : vector<128x64xf32> to vector<128x4x16xf32>
    %33 = tpu.transpose %32, [1, 0, 2] : vector<128x4x16xf32> -> vector<4x128x16xf32>
    %34 = arith.truncf %33 : vector<4x128x16xf32> to vector<4x128x16xbf16>
    %35 = vector.shape_cast %28 : vector<128x64xf32> to vector<128x4x16xf32>
    %36 = tpu.transpose %35, [1, 0, 2] : vector<128x4x16xf32> -> vector<4x128x16xf32>
    %37 = arith.truncf %36 : vector<4x128x16xf32> to vector<4x128x16xbf16>
    "tpu.trace_start"() <{level = 10 : i32, message = "hqc,hkc->hqk"}> : () -> ()
    %cst_25 = arith.constant dense<0.000000e+00> : vector<4x8x128xf32>
    %38 = tpu.matmul %31, %34, %cst_25 {dimension_numbers = #tpu.dot_dimension_numbers<[2], [2], [1], [1], [0, 0, 0, 1, 1, 1], [0], [0]>} : vector<4x8x16xbf16>, vector<4x128x16xbf16>, vector<4x8x128xf32> -> vector<4x8x128xf32>
    "tpu.trace_stop"() : () -> ()
    %cst_26 = arith.constant 2.500000e-01 : f32
    %39 = vector.broadcast %cst_26 : f32 to vector<4x8x128xf32>
    %40 = arith.mulf %38, %39 : vector<4x8x128xf32>
    %c0_27 = arith.constant 0 : index
    %c0_28 = arith.constant 0 : index
    %c0_29 = arith.constant 0 : index
    %c0_30 = arith.constant 0 : index
    %41 = vector.load %arg5[%c0_27, %c0_28, %c0_29, %c0_30] : memref<1x4x8x128xbf16, #tpu.memory_space<vmem>>, vector<1x4x8x128xbf16>
    %42 = vector.shape_cast %41 : vector<1x4x8x128xbf16> to vector<4x8x128xbf16>
    %43 = arith.extf %42 : vector<4x8x128xbf16> to vector<4x8x128xf32>
    %44 = arith.addf %40, %43 : vector<4x8x128xf32>
    %cst_31 = arith.constant dense<0xFF800000> : vector<4x8xf32>
    %45 = vector.multi_reduction <maximumf>, %44, %cst_31 [2] : vector<4x8x128xf32> to vector<4x8xf32>
    %46 = vector.shape_cast %45 : vector<4x8xf32> to vector<4x8x1xf32>
    %47 = vector.broadcast %46 : vector<4x8x1xf32> to vector<4x8x128xf32>
    %48 = arith.subf %44, %47 : vector<4x8x128xf32>
    %49 = math.exp %48 : vector<4x8x128xf32>
    %cst_32 = arith.constant dense<0.000000e+00> : vector<4x8xf32>
    %50 = vector.multi_reduction <add>, %49, %cst_32 [2] : vector<4x8x128xf32> to vector<4x8xf32>
    %51 = vector.shape_cast %50 : vector<4x8xf32> to vector<4x8x1xf32>
    %52 = tpu.reciprocal %51 {approx = true} : vector<4x8x1xf32> -> vector<4x8x1xf32>
    %53 = vector.broadcast %52 : vector<4x8x1xf32> to vector<4x8x128xf32>
    %54 = arith.mulf %49, %53 : vector<4x8x128xf32>
    %55 = arith.truncf %54 : vector<4x8x128xf32> to vector<4x8x128xbf16>
    "tpu.trace_start"() <{level = 10 : i32, message = "hqk,hkv->hqv"}> : () -> ()
    %cst_33 = arith.constant dense<0.000000e+00> : vector<4x8x16xf32>
    %56 = tpu.matmul %55, %37, %cst_33 {dimension_numbers = #tpu.dot_dimension_numbers<[2], [1], [1], [2], [0, 0, 0, 1, 1, 2], [0], [0]>} : vector<4x8x128xbf16>, vector<4x128x16xbf16>, vector<4x8x16xf32> -> vector<4x8x16xf32>
    "tpu.trace_stop"() : () -> ()
    %57 = tpu.transpose %56, [1, 0, 2] : vector<4x8x16xf32> -> vector<8x4x16xf32>
    %58 = vector.shape_cast %57 : vector<8x4x16xf32> to vector<8x64xf32>
    %59 = arith.truncf %58 : vector<8x64xf32> to vector<8x64xbf16>
    %c0_34 = arith.constant 0 : index
    %c0_35 = arith.constant 0 : index
    %60 = vector.load %arg12[%c0_34, %c0_35] : memref<64x64xbf16, #tpu.memory_space<vmem>>, vector<64x64xbf16>
    %cst_36 = arith.constant dense<0.000000e+00> : vector<8x64xf32>
    %61 = tpu.matmul %59, %60, %cst_36 {dimension_numbers = #tpu.dot_dimension_numbers<[1], [0], [0], [1], [0, 0, 1, 1], [], []>} : vector<8x64xbf16>, vector<64x64xbf16>, vector<8x64xf32> -> vector<8x64xf32>
    %c0_37 = arith.constant 0 : index
    %c0_38 = arith.constant 0 : index
    %62 = vector.load %arg13[%c0_37, %c0_38] : memref<1x64xf32, #tpu.memory_space<vmem>>, vector<1x64xf32>
    %63 = vector.broadcast %62 : vector<1x64xf32> to vector<8x64xf32>
    %64 = arith.addf %61, %63 : vector<8x64xf32>
    %65 = arith.addf %5, %64 : vector<8x64xf32>
    %c0_39 = arith.constant 0 : index
    %c0_40 = arith.constant 0 : index
    %66 = vector.load %arg14[%c0_39, %c0_40] : memref<1x64xf32, #tpu.memory_space<vmem>>, vector<1x64xf32>
    %c0_41 = arith.constant 0 : index
    %c0_42 = arith.constant 0 : index
    %67 = vector.load %arg15[%c0_41, %c0_42] : memref<1x64xf32, #tpu.memory_space<vmem>>, vector<1x64xf32>
    %cst_43 = arith.constant dense<0.000000e+00> : vector<8xf32>
    %68 = vector.multi_reduction <add>, %65, %cst_43 [1] : vector<8x64xf32> to vector<8xf32>
    %69 = vector.shape_cast %68 : vector<8xf32> to vector<8x1xf32>
    %cst_44 = arith.constant 6.400000e+01 : f32
    %70 = vector.broadcast %cst_44 : f32 to vector<8x1xf32>
    %71 = arith.divf %69, %70 : vector<8x1xf32>
    %72 = vector.broadcast %71 : vector<8x1xf32> to vector<8x64xf32>
    %73 = arith.subf %65, %72 : vector<8x64xf32>
    %74 = arith.mulf %73, %73 : vector<8x64xf32>
    %cst_45 = arith.constant dense<0.000000e+00> : vector<8xf32>
    %75 = vector.multi_reduction <add>, %74, %cst_45 [1] : vector<8x64xf32> to vector<8xf32>
    %76 = vector.shape_cast %75 : vector<8xf32> to vector<8x1xf32>
    %cst_46 = arith.constant 6.400000e+01 : f32
    %77 = vector.broadcast %cst_46 : f32 to vector<8x1xf32>
    %78 = arith.divf %76, %77 : vector<8x1xf32>
    %79 = vector.broadcast %71 : vector<8x1xf32> to vector<8x64xf32>
    %80 = arith.subf %65, %79 : vector<8x64xf32>
    %cst_47 = arith.constant 9.99999974E-6 : f32
    %81 = vector.broadcast %cst_47 : f32 to vector<8x1xf32>
    %82 = arith.addf %78, %81 : vector<8x1xf32>
    %83 = math.rsqrt %82 : vector<8x1xf32>
    %84 = vector.broadcast %83 : vector<8x1xf32> to vector<8x64xf32>
    %85 = arith.mulf %80, %84 : vector<8x64xf32>
    %86 = vector.broadcast %66 : vector<1x64xf32> to vector<8x64xf32>
    %87 = arith.mulf %85, %86 : vector<8x64xf32>
    %88 = vector.broadcast %67 : vector<1x64xf32> to vector<8x64xf32>
    %89 = arith.addf %87, %88 : vector<8x64xf32>
    %90 = arith.truncf %89 : vector<8x64xf32> to vector<8x64xbf16>
    %c0_48 = arith.constant 0 : index
    %c0_49 = arith.constant 0 : index
    %91 = vector.load %arg16[%c0_48, %c0_49] : memref<64x128xbf16, #tpu.memory_space<vmem>>, vector<64x128xbf16>
    %cst_50 = arith.constant dense<0.000000e+00> : vector<8x128xf32>
    %92 = tpu.matmul %90, %91, %cst_50 {dimension_numbers = #tpu.dot_dimension_numbers<[1], [0], [0], [1], [0, 0, 1, 1], [], []>} : vector<8x64xbf16>, vector<64x128xbf16>, vector<8x128xf32> -> vector<8x128xf32>
    %c0_51 = arith.constant 0 : index
    %c0_52 = arith.constant 0 : index
    %93 = vector.load %arg17[%c0_51, %c0_52] : memref<1x128xf32, #tpu.memory_space<vmem>>, vector<1x128xf32>
    %94 = vector.broadcast %93 : vector<1x128xf32> to vector<8x128xf32>
    %95 = arith.addf %92, %94 : vector<8x128xf32>
    %cst_53 = arith.constant 0.000000e+00 : f32
    %96 = vector.broadcast %cst_53 : f32 to vector<8x128xf32>
    %97 = arith.maximumf %95, %96 : vector<8x128xf32>
    %98 = arith.truncf %97 : vector<8x128xf32> to vector<8x128xbf16>
    %c0_54 = arith.constant 0 : index
    %c0_55 = arith.constant 0 : index
    %99 = vector.load %arg18[%c0_54, %c0_55] : memref<128x64xbf16, #tpu.memory_space<vmem>>, vector<128x64xbf16>
    %cst_56 = arith.constant dense<0.000000e+00> : vector<8x64xf32>
    %100 = tpu.matmul %98, %99, %cst_56 {dimension_numbers = #tpu.dot_dimension_numbers<[1], [0], [0], [1], [0, 0, 1, 1], [], []>} : vector<8x128xbf16>, vector<128x64xbf16>, vector<8x64xf32> -> vector<8x64xf32>
    %c0_57 = arith.constant 0 : index
    %c0_58 = arith.constant 0 : index
    %101 = vector.load %arg19[%c0_57, %c0_58] : memref<1x64xf32, #tpu.memory_space<vmem>>, vector<1x64xf32>
    %102 = vector.broadcast %101 : vector<1x64xf32> to vector<8x64xf32>
    %103 = arith.addf %100, %102 : vector<8x64xf32>
    %104 = arith.addf %89, %103 : vector<8x64xf32>
    %c0_59 = arith.constant 0 : index
    %c0_60 = arith.constant 0 : index
    %105 = vector.load %arg20[%c0_59, %c0_60] : memref<1x64xf32, #tpu.memory_space<vmem>>, vector<1x64xf32>
    %c0_61 = arith.constant 0 : index
    %c0_62 = arith.constant 0 : index
    %106 = vector.load %arg21[%c0_61, %c0_62] : memref<1x64xf32, #tpu.memory_space<vmem>>, vector<1x64xf32>
    %cst_63 = arith.constant dense<0.000000e+00> : vector<8xf32>
    %107 = vector.multi_reduction <add>, %104, %cst_63 [1] : vector<8x64xf32> to vector<8xf32>
    %108 = vector.shape_cast %107 : vector<8xf32> to vector<8x1xf32>
    %cst_64 = arith.constant 6.400000e+01 : f32
    %109 = vector.broadcast %cst_64 : f32 to vector<8x1xf32>
    %110 = arith.divf %108, %109 : vector<8x1xf32>
    %111 = vector.broadcast %110 : vector<8x1xf32> to vector<8x64xf32>
    %112 = arith.subf %104, %111 : vector<8x64xf32>
    %113 = arith.mulf %112, %112 : vector<8x64xf32>
    %cst_65 = arith.constant dense<0.000000e+00> : vector<8xf32>
    %114 = vector.multi_reduction <add>, %113, %cst_65 [1] : vector<8x64xf32> to vector<8xf32>
    %115 = vector.shape_cast %114 : vector<8xf32> to vector<8x1xf32>
    %cst_66 = arith.constant 6.400000e+01 : f32
    %116 = vector.broadcast %cst_66 : f32 to vector<8x1xf32>
    %117 = arith.divf %115, %116 : vector<8x1xf32>
    %118 = vector.broadcast %110 : vector<8x1xf32> to vector<8x64xf32>
    %119 = arith.subf %104, %118 : vector<8x64xf32>
    %cst_67 = arith.constant 9.99999974E-6 : f32
    %120 = vector.broadcast %cst_67 : f32 to vector<8x1xf32>
    %121 = arith.addf %117, %120 : vector<8x1xf32>
    %122 = math.rsqrt %121 : vector<8x1xf32>
    %123 = vector.broadcast %122 : vector<8x1xf32> to vector<8x64xf32>
    %124 = arith.mulf %119, %123 : vector<8x64xf32>
    %125 = vector.broadcast %105 : vector<1x64xf32> to vector<8x64xf32>
    %126 = arith.mulf %124, %125 : vector<8x64xf32>
    %127 = vector.broadcast %106 : vector<1x64xf32> to vector<8x64xf32>
    %128 = arith.addf %126, %127 : vector<8x64xf32>
    %c0_68 = arith.constant 0 : index
    %c0_69 = arith.constant 0 : index
    %c0_70 = arith.constant 0 : index
    %129 = vector.load %arg22[%c0_68, %c0_69, %c0_70] : memref<1x8x64xf32, #tpu.memory_space<vmem>>, vector<1x8x64xf32>
    %130 = vector.shape_cast %129 : vector<1x8x64xf32> to vector<8x64xf32>
    %131 = vector.shape_cast %128 : vector<8x64xf32> to vector<1x8x64xf32>
    tpu.vector_store %arg22[%c0_68, %c0_69, %c0_70], %131 {strides = array<i32>} : memref<1x8x64xf32, #tpu.memory_space<vmem>>, vector<1x8x64xf32>,
    return
  }
  func.func @transform_0(%arg0: i32) -> (i32, i32, i32) {
    %c0_i32 = arith.constant 0 : i32
    %c0_i32_0 = arith.constant 0 : i32
    %c0_i32_1 = arith.constant 0 : i32
    return %arg0, %c0_i32, %c0_i32_0 : i32, i32, i32
  }
  func.func @transform_1(%arg0: i32) -> (i32, i32, i32) {
    %c0_i32 = arith.constant 0 : i32
    %c0_i32_0 = arith.constant 0 : i32
    %c0_i32_1 = arith.constant 0 : i32
    return %arg0, %c0_i32, %c0_i32_0 : i32, i32, i32
  }
  func.func @transform_2(%arg0: i32) -> (i32, i32, i32) {
    %c0_i32 = arith.constant 0 : i32
    %c0_i32_0 = arith.constant 0 : i32
    %c0_i32_1 = arith.constant 0 : i32
    return %arg0, %c0_i32, %c0_i32_0 : i32, i32, i32
  }
  func.func @transform_3(%arg0: i32) -> (i32, i32, i32) {
    %c0_i32 = arith.constant 0 : i32
    %c0_i32_0 = arith.constant 0 : i32
    %c0_i32_1 = arith.constant 0 : i32
    return %arg0, %c0_i32, %c0_i32_0 : i32, i32, i32
  }
  func.func @transform_4(%arg0: i32) -> (i32, i32, i32, i32) {
    %c0_i32 = arith.constant 0 : i32
    %c0_i32_0 = arith.constant 0 : i32
    %c0_i32_1 = arith.constant 0 : i32
    %c0_i32_2 = arith.constant 0 : i32
    return %arg0, %c0_i32, %c0_i32_0, %c0_i32_1 : i32, i32, i32, i32
  }
  func.func @transform_5(%arg0: i32) -> (i32, i32) {
    %c0_i32 = arith.constant 0 : i32
    %c0_i32_0 = arith.constant 0 : i32
    %c0_i32_1 = arith.constant 0 : i32
    return %c0_i32, %c0_i32_0 : i32, i32
  }
  func.func @transform_6(%arg0: i32) -> (i32, i32) {
    %c0_i32 = arith.constant 0 : i32
    %c0_i32_0 = arith.constant 0 : i32
    %c0_i32_1 = arith.constant 0 : i32
    return %c0_i32, %c0_i32_0 : i32, i32
  }
  func.func @transform_7(%arg0: i32) -> (i32, i32) {
    %c0_i32 = arith.constant 0 : i32
    %c0_i32_0 = arith.constant 0 : i32
    %c0_i32_1 = arith.constant 0 : i32
    return %c0_i32, %c0_i32_0 : i32, i32
  }
  func.func @transform_8(%arg0: i32) -> (i32, i32) {
    %c0_i32 = arith.constant 0 : i32
    %c0_i32_0 = arith.constant 0 : i32
    %c0_i32_1 = arith.constant 0 : i32
    return %c0_i32, %c0_i32_0 : i32, i32
  }
  func.func @transform_9(%arg0: i32) -> (i32, i32) {
    %c0_i32 = arith.constant 0 : i32
    %c0_i32_0 = arith.constant 0 : i32
    %c0_i32_1 = arith.constant 0 : i32
    return %c0_i32, %c0_i32_0 : i32, i32
  }
  func.func @transform_10(%arg0: i32) -> (i32, i32) {
    %c0_i32 = arith.constant 0 : i32
    %c0_i32_0 = arith.constant 0 : i32
    %c0_i32_1 = arith.constant 0 : i32
    return %c0_i32, %c0_i32_0 : i32, i32
  }
  func.func @transform_11(%arg0: i32) -> (i32, i32) {
    %c0_i32 = arith.constant 0 : i32
    %c0_i32_0 = arith.constant 0 : i32
    %c0_i32_1 = arith.constant 0 : i32
    return %c0_i32, %c0_i32_0 : i32, i32
  }
  func.func @transform_12(%arg0: i32) -> (i32, i32) {
    %c0_i32 = arith.constant 0 : i32
    %c0_i32_0 = arith.constant 0 : i32
    %c0_i32_1 = arith.constant 0 : i32
    return %c0_i32, %c0_i32_0 : i32, i32
  }
  func.func @transform_13(%arg0: i32) -> (i32, i32) {
    %c0_i32 = arith.constant 0 : i32
    %c0_i32_0 = arith.constant 0 : i32
    %c0_i32_1 = arith.constant 0 : i32
    return %c0_i32, %c0_i32_0 : i32, i32
  }
  func.func @transform_14(%arg0: i32) -> (i32, i32) {
    %c0_i32 = arith.constant 0 : i32
    %c0_i32_0 = arith.constant 0 : i32
    %c0_i32_1 = arith.constant 0 : i32
    return %c0_i32, %c0_i32_0 : i32, i32
  }
  func.func @transform_15(%arg0: i32) -> (i32, i32) {
    %c0_i32 = arith.constant 0 : i32
    %c0_i32_0 = arith.constant 0 : i32
    %c0_i32_1 = arith.constant 0 : i32
    return %c0_i32, %c0_i32_0 : i32, i32
  }
  func.func @transform_16(%arg0: i32) -> (i32, i32) {
    %c0_i32 = arith.constant 0 : i32
    %c0_i32_0 = arith.constant 0 : i32
    %c0_i32_1 = arith.constant 0 : i32
    return %c0_i32, %c0_i32_0 : i32, i32
  }
  func.func @transform_17(%arg0: i32) -> (i32, i32) {
    %c0_i32 = arith.constant 0 : i32
    %c0_i32_0 = arith.constant 0 : i32
    %c0_i32_1 = arith.constant 0 : i32
    return %c0_i32, %c0_i32_0 : i32, i32
  }
  func.func @transform_18(%arg0: i32) -> (i32, i32) {
    %c0_i32 = arith.constant 0 : i32
    %c0_i32_0 = arith.constant 0 : i32
    %c0_i32_1 = arith.constant 0 : i32
    return %c0_i32, %c0_i32_0 : i32, i32
  }
  func.func @transform_19(%arg0: i32) -> (i32, i32) {
    %c0_i32 = arith.constant 0 : i32
    %c0_i32_0 = arith.constant 0 : i32
    %c0_i32_1 = arith.constant 0 : i32
    return %c0_i32, %c0_i32_0 : i32, i32
  }
  func.func @transform_20(%arg0: i32) -> (i32, i32) {
    %c0_i32 = arith.constant 0 : i32
    %c0_i32_0 = arith.constant 0 : i32
    %c0_i32_1 = arith.constant 0 : i32
    return %c0_i32, %c0_i32_0 : i32, i32
  }
  func.func @transform_21(%arg0: i32) -> (i32, i32, i32) {
    %c0_i32 = arith.constant 0 : i32
    %c0_i32_0 = arith.constant 0 : i32
    %c0_i32_1 = arith.constant 0 : i32
    return %arg0, %c0_i32, %c0_i32_0 : i32, i32, i32
  }
}

module attributes {stable_mosaic.version = 11 : i64} {
  func.func @proj_relu_ln_kernel(%arg0: i32, %arg1: memref<32x32xf32, #tpu.memory_space<vmem>>, %arg2: memref<32x64xbf16, #tpu.memory_space<vmem>>, %arg3: memref<1x64xf32, #tpu.memory_space<vmem>>, %arg4: memref<1x64xf32, #tpu.memory_space<vmem>>, %arg5: memref<1x64xf32, #tpu.memory_space<vmem>>, %arg6: memref<32x64xf32, #tpu.memory_space<vmem>>) attributes {dimension_semantics = [#tpu.dimension_semantics<parallel>], iteration_bounds = array<i64: 1>, scalar_prefetch = 0 : i64, scratch_operands = 0 : i64, tpu.core_type = #tpu.core_type<tc>, window_params = [{transform_indices = @transform_0, window_bounds = array<i64: 32, 32>}, {pipeline_mode = #tpu.pipeline_mode<synchronous>, transform_indices = @transform_1, window_bounds = array<i64: 32, 64>}, {pipeline_mode = #tpu.pipeline_mode<synchronous>, transform_indices = @transform_2, window_bounds = array<i64: 1, 64>}, {pipeline_mode = #tpu.pipeline_mode<synchronous>, transform_indices = @transform_3, window_bounds = array<i64: 1, 64>}, {pipeline_mode = #tpu.pipeline_mode<synchronous>, transform_indices = @transform_4, window_bounds = array<i64: 1, 64>}, {transform_indices = @transform_5, window_bounds = array<i64: 32, 64>}]} {
    %c0 = arith.constant 0 : index
    %c0_0 = arith.constant 0 : index
    %0 = vector.load %arg1[%c0, %c0_0] : memref<32x32xf32, #tpu.memory_space<vmem>>, vector<32x32xf32>
    %1 = arith.truncf %0 : vector<32x32xf32> to vector<32x32xbf16>
    %c0_1 = arith.constant 0 : index
    %c0_2 = arith.constant 0 : index
    %2 = vector.load %arg2[%c0_1, %c0_2] : memref<32x64xbf16, #tpu.memory_space<vmem>>, vector<32x64xbf16>
    %cst = arith.constant dense<0.000000e+00> : vector<32x64xf32>
    %3 = tpu.matmul %1, %2, %cst {dimension_numbers = #tpu.dot_dimension_numbers<[1], [0], [0], [1], [0, 0, 1, 1], [], []>} : vector<32x32xbf16>, vector<32x64xbf16>, vector<32x64xf32> -> vector<32x64xf32>
    %c0_3 = arith.constant 0 : index
    %c0_4 = arith.constant 0 : index
    %4 = vector.load %arg3[%c0_3, %c0_4] : memref<1x64xf32, #tpu.memory_space<vmem>>, vector<1x64xf32>
    %5 = vector.broadcast %4 : vector<1x64xf32> to vector<32x64xf32>
    %6 = arith.addf %3, %5 : vector<32x64xf32>
    %cst_5 = arith.constant 0.000000e+00 : f32
    %7 = vector.broadcast %cst_5 : f32 to vector<32x64xf32>
    %8 = arith.maximumf %6, %7 : vector<32x64xf32>
    %c0_6 = arith.constant 0 : index
    %c0_7 = arith.constant 0 : index
    %9 = vector.load %arg4[%c0_6, %c0_7] : memref<1x64xf32, #tpu.memory_space<vmem>>, vector<1x64xf32>
    %c0_8 = arith.constant 0 : index
    %c0_9 = arith.constant 0 : index
    %10 = vector.load %arg5[%c0_8, %c0_9] : memref<1x64xf32, #tpu.memory_space<vmem>>, vector<1x64xf32>
    %cst_10 = arith.constant dense<0.000000e+00> : vector<32xf32>
    %11 = vector.multi_reduction <add>, %8, %cst_10 [1] : vector<32x64xf32> to vector<32xf32>
    %12 = vector.shape_cast %11 : vector<32xf32> to vector<32x1xf32>
    %cst_11 = arith.constant 6.400000e+01 : f32
    %13 = vector.broadcast %cst_11 : f32 to vector<32x1xf32>
    %14 = arith.divf %12, %13 : vector<32x1xf32>
    %15 = vector.broadcast %14 : vector<32x1xf32> to vector<32x64xf32>
    %16 = arith.subf %8, %15 : vector<32x64xf32>
    %17 = arith.mulf %16, %16 : vector<32x64xf32>
    %cst_12 = arith.constant dense<0.000000e+00> : vector<32xf32>
    %18 = vector.multi_reduction <add>, %17, %cst_12 [1] : vector<32x64xf32> to vector<32xf32>
    %19 = vector.shape_cast %18 : vector<32xf32> to vector<32x1xf32>
    %cst_13 = arith.constant 6.400000e+01 : f32
    %20 = vector.broadcast %cst_13 : f32 to vector<32x1xf32>
    %21 = arith.divf %19, %20 : vector<32x1xf32>
    %22 = vector.broadcast %14 : vector<32x1xf32> to vector<32x64xf32>
    %23 = arith.subf %8, %22 : vector<32x64xf32>
    %cst_14 = arith.constant 9.99999974E-6 : f32
    %24 = vector.broadcast %cst_14 : f32 to vector<32x1xf32>
    %25 = arith.addf %21, %24 : vector<32x1xf32>
    %26 = math.rsqrt %25 : vector<32x1xf32>
    %27 = vector.broadcast %26 : vector<32x1xf32> to vector<32x64xf32>
    %28 = arith.mulf %23, %27 : vector<32x64xf32>
    %29 = vector.broadcast %9 : vector<1x64xf32> to vector<32x64xf32>
    %30 = arith.mulf %28, %29 : vector<32x64xf32>
    %31 = vector.broadcast %10 : vector<1x64xf32> to vector<32x64xf32>
    %32 = arith.addf %30, %31 : vector<32x64xf32>
    %c0_15 = arith.constant 0 : index
    %c0_16 = arith.constant 0 : index
    %33 = vector.load %arg6[%c0_15, %c0_16] : memref<32x64xf32, #tpu.memory_space<vmem>>, vector<32x64xf32>
    tpu.vector_store %arg6[%c0_15, %c0_16], %32 {strides = array<i32>} : memref<32x64xf32, #tpu.memory_space<vmem>>, vector<32x64xf32>,
    return
  }
  func.func @transform_0(%arg0: i32) -> (i32, i32) {
    %c0_i32 = arith.constant 0 : i32
    %c0_i32_0 = arith.constant 0 : i32
    return %arg0, %c0_i32 : i32, i32
  }
  func.func @transform_1(%arg0: i32) -> (i32, i32) {
    %c0_i32 = arith.constant 0 : i32
    %c0_i32_0 = arith.constant 0 : i32
    %c0_i32_1 = arith.constant 0 : i32
    return %c0_i32, %c0_i32_0 : i32, i32
  }
  func.func @transform_2(%arg0: i32) -> (i32, i32) {
    %c0_i32 = arith.constant 0 : i32
    %c0_i32_0 = arith.constant 0 : i32
    %c0_i32_1 = arith.constant 0 : i32
    return %c0_i32, %c0_i32_0 : i32, i32
  }
  func.func @transform_3(%arg0: i32) -> (i32, i32) {
    %c0_i32 = arith.constant 0 : i32
    %c0_i32_0 = arith.constant 0 : i32
    %c0_i32_1 = arith.constant 0 : i32
    return %c0_i32, %c0_i32_0 : i32, i32
  }
  func.func @transform_4(%arg0: i32) -> (i32, i32) {
    %c0_i32 = arith.constant 0 : i32
    %c0_i32_0 = arith.constant 0 : i32
    %c0_i32_1 = arith.constant 0 : i32
    return %c0_i32, %c0_i32_0 : i32, i32
  }
  func.func @transform_5(%arg0: i32) -> (i32, i32) {
    %c0_i32 = arith.constant 0 : i32
    %c0_i32_0 = arith.constant 0 : i32
    return %arg0, %c0_i32 : i32, i32
  }
}

module attributes {stable_mosaic.version = 11 : i64} {
  func.func @encoder_layer_kernel(%arg0: i32, %arg1: memref<1x16x64xf32, #tpu.memory_space<vmem>>, %arg2: memref<1x16x64xbf16, #tpu.memory_space<vmem>>, %arg3: memref<1x128x64xf32, #tpu.memory_space<vmem>>, %arg4: memref<1x128x64xbf16, #tpu.memory_space<vmem>>, %arg5: memref<1x4x16x128xbf16, #tpu.memory_space<vmem>>, %arg6: memref<64x64xbf16, #tpu.memory_space<vmem>>, %arg7: memref<1x64xf32, #tpu.memory_space<vmem>>, %arg8: memref<64x64xbf16, #tpu.memory_space<vmem>>, %arg9: memref<1x64xf32, #tpu.memory_space<vmem>>, %arg10: memref<64x64xbf16, #tpu.memory_space<vmem>>, %arg11: memref<1x64xf32, #tpu.memory_space<vmem>>, %arg12: memref<64x64xbf16, #tpu.memory_space<vmem>>, %arg13: memref<1x64xf32, #tpu.memory_space<vmem>>, %arg14: memref<1x64xf32, #tpu.memory_space<vmem>>, %arg15: memref<1x64xf32, #tpu.memory_space<vmem>>, %arg16: memref<64x128xbf16, #tpu.memory_space<vmem>>, %arg17: memref<1x128xf32, #tpu.memory_space<vmem>>, %arg18: memref<128x64xbf16, #tpu.memory_space<vmem>>, %arg19: memref<1x64xf32, #tpu.memory_space<vmem>>, %arg20: memref<1x64xf32, #tpu.memory_space<vmem>>, %arg21: memref<1x64xf32, #tpu.memory_space<vmem>>, %arg22: memref<1x16x64xf32, #tpu.memory_space<vmem>>) attributes {dimension_semantics = [#tpu.dimension_semantics<parallel>], iteration_bounds = array<i64: 2>, scalar_prefetch = 0 : i64, scratch_operands = 0 : i64, tpu.core_type = #tpu.core_type<tc>, window_params = [{transform_indices = @transform_0, window_bounds = array<i64: 1, 16, 64>}, {transform_indices = @transform_1, window_bounds = array<i64: 1, 16, 64>}, {transform_indices = @transform_2, window_bounds = array<i64: 1, 128, 64>}, {transform_indices = @transform_3, window_bounds = array<i64: 1, 128, 64>}, {transform_indices = @transform_4, window_bounds = array<i64: 1, 4, 16, 128>}, {pipeline_mode = #tpu.pipeline_mode<synchronous>, transform_indices = @transform_5, window_bounds = array<i64: 64, 64>}, {pipeline_mode = #tpu.pipeline_mode<synchronous>, transform_indices = @transform_6, window_bounds = array<i64: 1, 64>}, {pipeline_mode = #tpu.pipeline_mode<synchronous>, transform_indices = @transform_7, window_bounds = array<i64: 64, 64>}, {pipeline_mode = #tpu.pipeline_mode<synchronous>, transform_indices = @transform_8, window_bounds = array<i64: 1, 64>}, {pipeline_mode = #tpu.pipeline_mode<synchronous>, transform_indices = @transform_9, window_bounds = array<i64: 64, 64>}, {pipeline_mode = #tpu.pipeline_mode<synchronous>, transform_indices = @transform_10, window_bounds = array<i64: 1, 64>}, {pipeline_mode = #tpu.pipeline_mode<synchronous>, transform_indices = @transform_11, window_bounds = array<i64: 64, 64>}, {pipeline_mode = #tpu.pipeline_mode<synchronous>, transform_indices = @transform_12, window_bounds = array<i64: 1, 64>}, {pipeline_mode = #tpu.pipeline_mode<synchronous>, transform_indices = @transform_13, window_bounds = array<i64: 1, 64>}, {pipeline_mode = #tpu.pipeline_mode<synchronous>, transform_indices = @transform_14, window_bounds = array<i64: 1, 64>}, {pipeline_mode = #tpu.pipeline_mode<synchronous>, transform_indices = @transform_15, window_bounds = array<i64: 64, 128>}, {pipeline_mode = #tpu.pipeline_mode<synchronous>, transform_indices = @transform_16, window_bounds = array<i64: 1, 128>}, {pipeline_mode = #tpu.pipeline_mode<synchronous>, transform_indices = @transform_17, window_bounds = array<i64: 128, 64>}, {pipeline_mode = #tpu.pipeline_mode<synchronous>, transform_indices = @transform_18, window_bounds = array<i64: 1, 64>}, {pipeline_mode = #tpu.pipeline_mode<synchronous>, transform_indices = @transform_19, window_bounds = array<i64: 1, 64>}, {pipeline_mode = #tpu.pipeline_mode<synchronous>, transform_indices = @transform_20, window_bounds = array<i64: 1, 64>}, {transform_indices = @transform_21, window_bounds = array<i64: 1, 16, 64>}]} {
    %c0 = arith.constant 0 : index
    %c0_0 = arith.constant 0 : index
    %c0_1 = arith.constant 0 : index
    %0 = vector.load %arg1[%c0, %c0_0, %c0_1] : memref<1x16x64xf32, #tpu.memory_space<vmem>>, vector<1x16x64xf32>
    %1 = vector.shape_cast %0 : vector<1x16x64xf32> to vector<16x64xf32>
    %c0_2 = arith.constant 0 : index
    %c0_3 = arith.constant 0 : index
    %c0_4 = arith.constant 0 : index
    %2 = vector.load %arg2[%c0_2, %c0_3, %c0_4] : memref<1x16x64xbf16, #tpu.memory_space<vmem>>, vector<1x16x64xbf16>
    %3 = vector.shape_cast %2 : vector<1x16x64xbf16> to vector<16x64xbf16>
    %4 = arith.extf %3 : vector<16x64xbf16> to vector<16x64xf32>
    %5 = arith.addf %1, %4 : vector<16x64xf32>
    %c0_5 = arith.constant 0 : index
    %c0_6 = arith.constant 0 : index
    %c0_7 = arith.constant 0 : index
    %6 = vector.load %arg3[%c0_5, %c0_6, %c0_7] : memref<1x128x64xf32, #tpu.memory_space<vmem>>, vector<1x128x64xf32>
    %7 = vector.shape_cast %6 : vector<1x128x64xf32> to vector<128x64xf32>
    %c0_8 = arith.constant 0 : index
    %c0_9 = arith.constant 0 : index
    %c0_10 = arith.constant 0 : index
    %8 = vector.load %arg4[%c0_8, %c0_9, %c0_10] : memref<1x128x64xbf16, #tpu.memory_space<vmem>>, vector<1x128x64xbf16>
    %9 = vector.shape_cast %8 : vector<1x128x64xbf16> to vector<128x64xbf16>
    %10 = arith.extf %9 : vector<128x64xbf16> to vector<128x64xf32>
    %11 = arith.addf %7, %10 : vector<128x64xf32>
    %12 = arith.truncf %5 : vector<16x64xf32> to vector<16x64xbf16>
    %13 = arith.truncf %11 : vector<128x64xf32> to vector<128x64xbf16>
    %c0_11 = arith.constant 0 : index
    %c0_12 = arith.constant 0 : index
    %14 = vector.load %arg6[%c0_11, %c0_12] : memref<64x64xbf16, #tpu.memory_space<vmem>>, vector<64x64xbf16>
    %cst = arith.constant dense<0.000000e+00> : vector<16x64xf32>
    %15 = tpu.matmul %12, %14, %cst {dimension_numbers = #tpu.dot_dimension_numbers<[1], [0], [0], [1], [0, 0, 1, 1], [], []>} : vector<16x64xbf16>, vector<64x64xbf16>, vector<16x64xf32> -> vector<16x64xf32>
    %c0_13 = arith.constant 0 : index
    %c0_14 = arith.constant 0 : index
    %16 = vector.load %arg7[%c0_13, %c0_14] : memref<1x64xf32, #tpu.memory_space<vmem>>, vector<1x64xf32>
    %17 = vector.broadcast %16 : vector<1x64xf32> to vector<16x64xf32>
    %18 = arith.addf %15, %17 : vector<16x64xf32>
    %c0_15 = arith.constant 0 : index
    %c0_16 = arith.constant 0 : index
    %19 = vector.load %arg8[%c0_15, %c0_16] : memref<64x64xbf16, #tpu.memory_space<vmem>>, vector<64x64xbf16>
    %cst_17 = arith.constant dense<0.000000e+00> : vector<128x64xf32>
    %20 = tpu.matmul %13, %19, %cst_17 {dimension_numbers = #tpu.dot_dimension_numbers<[1], [0], [0], [1], [0, 0, 1, 1], [], []>} : vector<128x64xbf16>, vector<64x64xbf16>, vector<128x64xf32> -> vector<128x64xf32>
    %c0_18 = arith.constant 0 : index
    %c0_19 = arith.constant 0 : index
    %21 = vector.load %arg9[%c0_18, %c0_19] : memref<1x64xf32, #tpu.memory_space<vmem>>, vector<1x64xf32>
    %22 = vector.broadcast %21 : vector<1x64xf32> to vector<128x64xf32>
    %23 = arith.addf %20, %22 : vector<128x64xf32>
    %c0_20 = arith.constant 0 : index
    %c0_21 = arith.constant 0 : index
    %24 = vector.load %arg10[%c0_20, %c0_21] : memref<64x64xbf16, #tpu.memory_space<vmem>>, vector<64x64xbf16>
    %cst_22 = arith.constant dense<0.000000e+00> : vector<128x64xf32>
    %25 = tpu.matmul %13, %24, %cst_22 {dimension_numbers = #tpu.dot_dimension_numbers<[1], [0], [0], [1], [0, 0, 1, 1], [], []>} : vector<128x64xbf16>, vector<64x64xbf16>, vector<128x64xf32> -> vector<128x64xf32>
    %c0_23 = arith.constant 0 : index
    %c0_24 = arith.constant 0 : index
    %26 = vector.load %arg11[%c0_23, %c0_24] : memref<1x64xf32, #tpu.memory_space<vmem>>, vector<1x64xf32>
    %27 = vector.broadcast %26 : vector<1x64xf32> to vector<128x64xf32>
    %28 = arith.addf %25, %27 : vector<128x64xf32>
    %29 = vector.shape_cast %18 : vector<16x64xf32> to vector<16x4x16xf32>
    %30 = tpu.transpose %29, [1, 0, 2] : vector<16x4x16xf32> -> vector<4x16x16xf32>
    %31 = arith.truncf %30 : vector<4x16x16xf32> to vector<4x16x16xbf16>
    %32 = vector.shape_cast %23 : vector<128x64xf32> to vector<128x4x16xf32>
    %33 = tpu.transpose %32, [1, 0, 2] : vector<128x4x16xf32> -> vector<4x128x16xf32>
    %34 = arith.truncf %33 : vector<4x128x16xf32> to vector<4x128x16xbf16>
    %35 = vector.shape_cast %28 : vector<128x64xf32> to vector<128x4x16xf32>
    %36 = tpu.transpose %35, [1, 0, 2] : vector<128x4x16xf32> -> vector<4x128x16xf32>
    %37 = arith.truncf %36 : vector<4x128x16xf32> to vector<4x128x16xbf16>
    "tpu.trace_start"() <{level = 10 : i32, message = "hqc,hkc->hqk"}> : () -> ()
    %cst_25 = arith.constant dense<0.000000e+00> : vector<4x16x128xf32>
    %38 = tpu.matmul %31, %34, %cst_25 {dimension_numbers = #tpu.dot_dimension_numbers<[2], [2], [1], [1], [0, 0, 0, 1, 1, 1], [0], [0]>} : vector<4x16x16xbf16>, vector<4x128x16xbf16>, vector<4x16x128xf32> -> vector<4x16x128xf32>
    "tpu.trace_stop"() : () -> ()
    %cst_26 = arith.constant 2.500000e-01 : f32
    %39 = vector.broadcast %cst_26 : f32 to vector<4x16x128xf32>
    %40 = arith.mulf %38, %39 : vector<4x16x128xf32>
    %c0_27 = arith.constant 0 : index
    %c0_28 = arith.constant 0 : index
    %c0_29 = arith.constant 0 : index
    %c0_30 = arith.constant 0 : index
    %41 = vector.load %arg5[%c0_27, %c0_28, %c0_29, %c0_30] : memref<1x4x16x128xbf16, #tpu.memory_space<vmem>>, vector<1x4x16x128xbf16>
    %42 = vector.shape_cast %41 : vector<1x4x16x128xbf16> to vector<4x16x128xbf16>
    %43 = arith.extf %42 : vector<4x16x128xbf16> to vector<4x16x128xf32>
    %44 = arith.addf %40, %43 : vector<4x16x128xf32>
    %cst_31 = arith.constant dense<0xFF800000> : vector<4x16xf32>
    %45 = vector.multi_reduction <maximumf>, %44, %cst_31 [2] : vector<4x16x128xf32> to vector<4x16xf32>
    %46 = vector.shape_cast %45 : vector<4x16xf32> to vector<4x16x1xf32>
    %47 = vector.broadcast %46 : vector<4x16x1xf32> to vector<4x16x128xf32>
    %48 = arith.subf %44, %47 : vector<4x16x128xf32>
    %49 = math.exp %48 : vector<4x16x128xf32>
    %cst_32 = arith.constant dense<0.000000e+00> : vector<4x16xf32>
    %50 = vector.multi_reduction <add>, %49, %cst_32 [2] : vector<4x16x128xf32> to vector<4x16xf32>
    %51 = vector.shape_cast %50 : vector<4x16xf32> to vector<4x16x1xf32>
    %52 = tpu.reciprocal %51 {approx = true} : vector<4x16x1xf32> -> vector<4x16x1xf32>
    %53 = vector.broadcast %52 : vector<4x16x1xf32> to vector<4x16x128xf32>
    %54 = arith.mulf %49, %53 : vector<4x16x128xf32>
    %55 = arith.truncf %54 : vector<4x16x128xf32> to vector<4x16x128xbf16>
    "tpu.trace_start"() <{level = 10 : i32, message = "hqk,hkv->hqv"}> : () -> ()
    %cst_33 = arith.constant dense<0.000000e+00> : vector<4x16x16xf32>
    %56 = tpu.matmul %55, %37, %cst_33 {dimension_numbers = #tpu.dot_dimension_numbers<[2], [1], [1], [2], [0, 0, 0, 1, 1, 2], [0], [0]>} : vector<4x16x128xbf16>, vector<4x128x16xbf16>, vector<4x16x16xf32> -> vector<4x16x16xf32>
    "tpu.trace_stop"() : () -> ()
    %57 = tpu.transpose %56, [1, 0, 2] : vector<4x16x16xf32> -> vector<16x4x16xf32>
    %58 = vector.shape_cast %57 : vector<16x4x16xf32> to vector<16x64xf32>
    %59 = arith.truncf %58 : vector<16x64xf32> to vector<16x64xbf16>
    %c0_34 = arith.constant 0 : index
    %c0_35 = arith.constant 0 : index
    %60 = vector.load %arg12[%c0_34, %c0_35] : memref<64x64xbf16, #tpu.memory_space<vmem>>, vector<64x64xbf16>
    %cst_36 = arith.constant dense<0.000000e+00> : vector<16x64xf32>
    %61 = tpu.matmul %59, %60, %cst_36 {dimension_numbers = #tpu.dot_dimension_numbers<[1], [0], [0], [1], [0, 0, 1, 1], [], []>} : vector<16x64xbf16>, vector<64x64xbf16>, vector<16x64xf32> -> vector<16x64xf32>
    %c0_37 = arith.constant 0 : index
    %c0_38 = arith.constant 0 : index
    %62 = vector.load %arg13[%c0_37, %c0_38] : memref<1x64xf32, #tpu.memory_space<vmem>>, vector<1x64xf32>
    %63 = vector.broadcast %62 : vector<1x64xf32> to vector<16x64xf32>
    %64 = arith.addf %61, %63 : vector<16x64xf32>
    %65 = arith.addf %5, %64 : vector<16x64xf32>
    %c0_39 = arith.constant 0 : index
    %c0_40 = arith.constant 0 : index
    %66 = vector.load %arg14[%c0_39, %c0_40] : memref<1x64xf32, #tpu.memory_space<vmem>>, vector<1x64xf32>
    %c0_41 = arith.constant 0 : index
    %c0_42 = arith.constant 0 : index
    %67 = vector.load %arg15[%c0_41, %c0_42] : memref<1x64xf32, #tpu.memory_space<vmem>>, vector<1x64xf32>
    %cst_43 = arith.constant dense<0.000000e+00> : vector<16xf32>
    %68 = vector.multi_reduction <add>, %65, %cst_43 [1] : vector<16x64xf32> to vector<16xf32>
    %69 = vector.shape_cast %68 : vector<16xf32> to vector<16x1xf32>
    %cst_44 = arith.constant 6.400000e+01 : f32
    %70 = vector.broadcast %cst_44 : f32 to vector<16x1xf32>
    %71 = arith.divf %69, %70 : vector<16x1xf32>
    %72 = vector.broadcast %71 : vector<16x1xf32> to vector<16x64xf32>
    %73 = arith.subf %65, %72 : vector<16x64xf32>
    %74 = arith.mulf %73, %73 : vector<16x64xf32>
    %cst_45 = arith.constant dense<0.000000e+00> : vector<16xf32>
    %75 = vector.multi_reduction <add>, %74, %cst_45 [1] : vector<16x64xf32> to vector<16xf32>
    %76 = vector.shape_cast %75 : vector<16xf32> to vector<16x1xf32>
    %cst_46 = arith.constant 6.400000e+01 : f32
    %77 = vector.broadcast %cst_46 : f32 to vector<16x1xf32>
    %78 = arith.divf %76, %77 : vector<16x1xf32>
    %79 = vector.broadcast %71 : vector<16x1xf32> to vector<16x64xf32>
    %80 = arith.subf %65, %79 : vector<16x64xf32>
    %cst_47 = arith.constant 9.99999974E-6 : f32
    %81 = vector.broadcast %cst_47 : f32 to vector<16x1xf32>
    %82 = arith.addf %78, %81 : vector<16x1xf32>
    %83 = math.rsqrt %82 : vector<16x1xf32>
    %84 = vector.broadcast %83 : vector<16x1xf32> to vector<16x64xf32>
    %85 = arith.mulf %80, %84 : vector<16x64xf32>
    %86 = vector.broadcast %66 : vector<1x64xf32> to vector<16x64xf32>
    %87 = arith.mulf %85, %86 : vector<16x64xf32>
    %88 = vector.broadcast %67 : vector<1x64xf32> to vector<16x64xf32>
    %89 = arith.addf %87, %88 : vector<16x64xf32>
    %90 = arith.truncf %89 : vector<16x64xf32> to vector<16x64xbf16>
    %c0_48 = arith.constant 0 : index
    %c0_49 = arith.constant 0 : index
    %91 = vector.load %arg16[%c0_48, %c0_49] : memref<64x128xbf16, #tpu.memory_space<vmem>>, vector<64x128xbf16>
    %cst_50 = arith.constant dense<0.000000e+00> : vector<16x128xf32>
    %92 = tpu.matmul %90, %91, %cst_50 {dimension_numbers = #tpu.dot_dimension_numbers<[1], [0], [0], [1], [0, 0, 1, 1], [], []>} : vector<16x64xbf16>, vector<64x128xbf16>, vector<16x128xf32> -> vector<16x128xf32>
    %c0_51 = arith.constant 0 : index
    %c0_52 = arith.constant 0 : index
    %93 = vector.load %arg17[%c0_51, %c0_52] : memref<1x128xf32, #tpu.memory_space<vmem>>, vector<1x128xf32>
    %94 = vector.broadcast %93 : vector<1x128xf32> to vector<16x128xf32>
    %95 = arith.addf %92, %94 : vector<16x128xf32>
    %cst_53 = arith.constant 0.000000e+00 : f32
    %96 = vector.broadcast %cst_53 : f32 to vector<16x128xf32>
    %97 = arith.maximumf %95, %96 : vector<16x128xf32>
    %98 = arith.truncf %97 : vector<16x128xf32> to vector<16x128xbf16>
    %c0_54 = arith.constant 0 : index
    %c0_55 = arith.constant 0 : index
    %99 = vector.load %arg18[%c0_54, %c0_55] : memref<128x64xbf16, #tpu.memory_space<vmem>>, vector<128x64xbf16>
    %cst_56 = arith.constant dense<0.000000e+00> : vector<16x64xf32>
    %100 = tpu.matmul %98, %99, %cst_56 {dimension_numbers = #tpu.dot_dimension_numbers<[1], [0], [0], [1], [0, 0, 1, 1], [], []>} : vector<16x128xbf16>, vector<128x64xbf16>, vector<16x64xf32> -> vector<16x64xf32>
    %c0_57 = arith.constant 0 : index
    %c0_58 = arith.constant 0 : index
    %101 = vector.load %arg19[%c0_57, %c0_58] : memref<1x64xf32, #tpu.memory_space<vmem>>, vector<1x64xf32>
    %102 = vector.broadcast %101 : vector<1x64xf32> to vector<16x64xf32>
    %103 = arith.addf %100, %102 : vector<16x64xf32>
    %104 = arith.addf %89, %103 : vector<16x64xf32>
    %c0_59 = arith.constant 0 : index
    %c0_60 = arith.constant 0 : index
    %105 = vector.load %arg20[%c0_59, %c0_60] : memref<1x64xf32, #tpu.memory_space<vmem>>, vector<1x64xf32>
    %c0_61 = arith.constant 0 : index
    %c0_62 = arith.constant 0 : index
    %106 = vector.load %arg21[%c0_61, %c0_62] : memref<1x64xf32, #tpu.memory_space<vmem>>, vector<1x64xf32>
    %cst_63 = arith.constant dense<0.000000e+00> : vector<16xf32>
    %107 = vector.multi_reduction <add>, %104, %cst_63 [1] : vector<16x64xf32> to vector<16xf32>
    %108 = vector.shape_cast %107 : vector<16xf32> to vector<16x1xf32>
    %cst_64 = arith.constant 6.400000e+01 : f32
    %109 = vector.broadcast %cst_64 : f32 to vector<16x1xf32>
    %110 = arith.divf %108, %109 : vector<16x1xf32>
    %111 = vector.broadcast %110 : vector<16x1xf32> to vector<16x64xf32>
    %112 = arith.subf %104, %111 : vector<16x64xf32>
    %113 = arith.mulf %112, %112 : vector<16x64xf32>
    %cst_65 = arith.constant dense<0.000000e+00> : vector<16xf32>
    %114 = vector.multi_reduction <add>, %113, %cst_65 [1] : vector<16x64xf32> to vector<16xf32>
    %115 = vector.shape_cast %114 : vector<16xf32> to vector<16x1xf32>
    %cst_66 = arith.constant 6.400000e+01 : f32
    %116 = vector.broadcast %cst_66 : f32 to vector<16x1xf32>
    %117 = arith.divf %115, %116 : vector<16x1xf32>
    %118 = vector.broadcast %110 : vector<16x1xf32> to vector<16x64xf32>
    %119 = arith.subf %104, %118 : vector<16x64xf32>
    %cst_67 = arith.constant 9.99999974E-6 : f32
    %120 = vector.broadcast %cst_67 : f32 to vector<16x1xf32>
    %121 = arith.addf %117, %120 : vector<16x1xf32>
    %122 = math.rsqrt %121 : vector<16x1xf32>
    %123 = vector.broadcast %122 : vector<16x1xf32> to vector<16x64xf32>
    %124 = arith.mulf %119, %123 : vector<16x64xf32>
    %125 = vector.broadcast %105 : vector<1x64xf32> to vector<16x64xf32>
    %126 = arith.mulf %124, %125 : vector<16x64xf32>
    %127 = vector.broadcast %106 : vector<1x64xf32> to vector<16x64xf32>
    %128 = arith.addf %126, %127 : vector<16x64xf32>
    %c0_68 = arith.constant 0 : index
    %c0_69 = arith.constant 0 : index
    %c0_70 = arith.constant 0 : index
    %129 = vector.load %arg22[%c0_68, %c0_69, %c0_70] : memref<1x16x64xf32, #tpu.memory_space<vmem>>, vector<1x16x64xf32>
    %130 = vector.shape_cast %129 : vector<1x16x64xf32> to vector<16x64xf32>
    %131 = vector.shape_cast %128 : vector<16x64xf32> to vector<1x16x64xf32>
    tpu.vector_store %arg22[%c0_68, %c0_69, %c0_70], %131 {strides = array<i32>} : memref<1x16x64xf32, #tpu.memory_space<vmem>>, vector<1x16x64xf32>,
    return
  }
  func.func @transform_0(%arg0: i32) -> (i32, i32, i32) {
    %c0_i32 = arith.constant 0 : i32
    %c0_i32_0 = arith.constant 0 : i32
    %c0_i32_1 = arith.constant 0 : i32
    return %arg0, %c0_i32, %c0_i32_0 : i32, i32, i32
  }
  func.func @transform_1(%arg0: i32) -> (i32, i32, i32) {
    %c0_i32 = arith.constant 0 : i32
    %c0_i32_0 = arith.constant 0 : i32
    %c0_i32_1 = arith.constant 0 : i32
    return %arg0, %c0_i32, %c0_i32_0 : i32, i32, i32
  }
  func.func @transform_2(%arg0: i32) -> (i32, i32, i32) {
    %c0_i32 = arith.constant 0 : i32
    %c0_i32_0 = arith.constant 0 : i32
    %c0_i32_1 = arith.constant 0 : i32
    return %arg0, %c0_i32, %c0_i32_0 : i32, i32, i32
  }
  func.func @transform_3(%arg0: i32) -> (i32, i32, i32) {
    %c0_i32 = arith.constant 0 : i32
    %c0_i32_0 = arith.constant 0 : i32
    %c0_i32_1 = arith.constant 0 : i32
    return %arg0, %c0_i32, %c0_i32_0 : i32, i32, i32
  }
  func.func @transform_4(%arg0: i32) -> (i32, i32, i32, i32) {
    %c0_i32 = arith.constant 0 : i32
    %c0_i32_0 = arith.constant 0 : i32
    %c0_i32_1 = arith.constant 0 : i32
    %c0_i32_2 = arith.constant 0 : i32
    return %arg0, %c0_i32, %c0_i32_0, %c0_i32_1 : i32, i32, i32, i32
  }
  func.func @transform_5(%arg0: i32) -> (i32, i32) {
    %c0_i32 = arith.constant 0 : i32
    %c0_i32_0 = arith.constant 0 : i32
    %c0_i32_1 = arith.constant 0 : i32
    return %c0_i32, %c0_i32_0 : i32, i32
  }
  func.func @transform_6(%arg0: i32) -> (i32, i32) {
    %c0_i32 = arith.constant 0 : i32
    %c0_i32_0 = arith.constant 0 : i32
    %c0_i32_1 = arith.constant 0 : i32
    return %c0_i32, %c0_i32_0 : i32, i32
  }
  func.func @transform_7(%arg0: i32) -> (i32, i32) {
    %c0_i32 = arith.constant 0 : i32
    %c0_i32_0 = arith.constant 0 : i32
    %c0_i32_1 = arith.constant 0 : i32
    return %c0_i32, %c0_i32_0 : i32, i32
  }
  func.func @transform_8(%arg0: i32) -> (i32, i32) {
    %c0_i32 = arith.constant 0 : i32
    %c0_i32_0 = arith.constant 0 : i32
    %c0_i32_1 = arith.constant 0 : i32
    return %c0_i32, %c0_i32_0 : i32, i32
  }
  func.func @transform_9(%arg0: i32) -> (i32, i32) {
    %c0_i32 = arith.constant 0 : i32
    %c0_i32_0 = arith.constant 0 : i32
    %c0_i32_1 = arith.constant 0 : i32
    return %c0_i32, %c0_i32_0 : i32, i32
  }
  func.func @transform_10(%arg0: i32) -> (i32, i32) {
    %c0_i32 = arith.constant 0 : i32
    %c0_i32_0 = arith.constant 0 : i32
    %c0_i32_1 = arith.constant 0 : i32
    return %c0_i32, %c0_i32_0 : i32, i32
  }
  func.func @transform_11(%arg0: i32) -> (i32, i32) {
    %c0_i32 = arith.constant 0 : i32
    %c0_i32_0 = arith.constant 0 : i32
    %c0_i32_1 = arith.constant 0 : i32
    return %c0_i32, %c0_i32_0 : i32, i32
  }
  func.func @transform_12(%arg0: i32) -> (i32, i32) {
    %c0_i32 = arith.constant 0 : i32
    %c0_i32_0 = arith.constant 0 : i32
    %c0_i32_1 = arith.constant 0 : i32
    return %c0_i32, %c0_i32_0 : i32, i32
  }
  func.func @transform_13(%arg0: i32) -> (i32, i32) {
    %c0_i32 = arith.constant 0 : i32
    %c0_i32_0 = arith.constant 0 : i32
    %c0_i32_1 = arith.constant 0 : i32
    return %c0_i32, %c0_i32_0 : i32, i32
  }
  func.func @transform_14(%arg0: i32) -> (i32, i32) {
    %c0_i32 = arith.constant 0 : i32
    %c0_i32_0 = arith.constant 0 : i32
    %c0_i32_1 = arith.constant 0 : i32
    return %c0_i32, %c0_i32_0 : i32, i32
  }
  func.func @transform_15(%arg0: i32) -> (i32, i32) {
    %c0_i32 = arith.constant 0 : i32
    %c0_i32_0 = arith.constant 0 : i32
    %c0_i32_1 = arith.constant 0 : i32
    return %c0_i32, %c0_i32_0 : i32, i32
  }
  func.func @transform_16(%arg0: i32) -> (i32, i32) {
    %c0_i32 = arith.constant 0 : i32
    %c0_i32_0 = arith.constant 0 : i32
    %c0_i32_1 = arith.constant 0 : i32
    return %c0_i32, %c0_i32_0 : i32, i32
  }
  func.func @transform_17(%arg0: i32) -> (i32, i32) {
    %c0_i32 = arith.constant 0 : i32
    %c0_i32_0 = arith.constant 0 : i32
    %c0_i32_1 = arith.constant 0 : i32
    return %c0_i32, %c0_i32_0 : i32, i32
  }
  func.func @transform_18(%arg0: i32) -> (i32, i32) {
    %c0_i32 = arith.constant 0 : i32
    %c0_i32_0 = arith.constant 0 : i32
    %c0_i32_1 = arith.constant 0 : i32
    return %c0_i32, %c0_i32_0 : i32, i32
  }
  func.func @transform_19(%arg0: i32) -> (i32, i32) {
    %c0_i32 = arith.constant 0 : i32
    %c0_i32_0 = arith.constant 0 : i32
    %c0_i32_1 = arith.constant 0 : i32
    return %c0_i32, %c0_i32_0 : i32, i32
  }
  func.func @transform_20(%arg0: i32) -> (i32, i32) {
    %c0_i32 = arith.constant 0 : i32
    %c0_i32_0 = arith.constant 0 : i32
    %c0_i32_1 = arith.constant 0 : i32
    return %c0_i32, %c0_i32_0 : i32, i32
  }
  func.func @transform_21(%arg0: i32) -> (i32, i32, i32) {
    %c0_i32 = arith.constant 0 : i32
    %c0_i32_0 = arith.constant 0 : i32
    %c0_i32_1 = arith.constant 0 : i32
    return %arg0, %c0_i32, %c0_i32_0 : i32, i32, i32
  }
}

</mosaic_0001>

<bundles_post_ra>
// kernel: forward.10
= control target key start
LH: loop header
LB: loop body
LE: loop exit
PB: predicated region body
PF: predicated region fallthrough
CT: control target
= control target key end

     0   :  { %v171_v0 = vmov 0.0   ;;  %vm172_vm0 = vmmov 0   ;;  %vm47_vm1 = vcmask 261120   ;;  %vm96_vm2 = vcmask 523264   ;;  %s236_s1 = inlined_call_operand.vmem [shape: bf16[32,64], index: 1, kind: input, shape index: {}]   ;;  %s237_s0 = inlined_call_operand.vmem [shape: f32[16,32], index: 0, kind: input, shape index: {}]   ;;  %s238_s2 = inlined_call_operand.vmem [shape: f32[1,64], index: 2, kind: input, shape index: {}]   ;;  %s239_s3 = inlined_call_operand.vmem [shape: f32[1,64], index: 3, kind: input, shape index: {}]   ;;  %s240_s4 = inlined_call_operand.vmem [shape: f32[1,64], index: 4, kind: input, shape index: {}]   ;;  %s241_s5 = inlined_call_operand.vmem [shape: f32[16,64], index: 5, kind: output, shape index: {}]  }
   0x1   :  { %155 = vmatprep.subr.bf16.mxu0 %v171_v0  ;;  %v165_v1 = vld [vmem:[%s236_s1] sm:$0xff]   ;;  %159 = vmatprep.mubr.msk.bf16.mxu0 %vm172_vm0, %v171_v0  ;;  %v166_v2 = vld [vmem:[%s236_s1 + $0x8] sm:$0xff]  }
   0x2   :  { %156 = vmatpush3.bf16.msra.mxu0 %v165_v1  ;;  %v21_v3 = vld [vmem:[%s237_s0] sm:$0xff]  ;;  %v22_v4 = vld [vmem:[%s237_s0 + $0x8] sm:$0xff] }
   0x3   :  { %157 = vmatprep.subr.bf16.mxu0 %v171_v0  ;;  %v23_v5 = vpack.c.bf16 %v22_v4, %v21_v3  ;;  %v146_v6 = vld [vmem:[%s238_s2] ss:$0 sm:$0xff] }
   0x4   :  { %v150_v34 = vld [vmem:[%s239_s3] ss:$0 sm:$0xff] }
   0x5   :  { %v151_v36 = vld [vmem:[%s240_s4] ss:$0 sm:$0xff] }
   0x6   :  { %158 = vmatpush3.bf16.msra.mxu0 %v166_v2 }
   0x9   :  { %160 = vmatmul.mubr.msk.bf16.vlgmr.msra.gmra.mrb[0].mxu0 %vm47_vm1, %v23_v5 }
  0xdc   :  { %v85_v7 = vpop.f32.mrb[0].mxu0 }
  0xdd   :  { %v86_v8 = vadd.f32 %v146_v6, %v85_v7  ;;  %v161_v9 = vpop.f32.mrb[1].mxu0 }
  0xde   :  { %v88_v10 = vpop.f32.mrb[2].mxu0 }
  0xdf   :  { %v92_v11 = vmax.f32 %v86_v8, 0.0  ;;  %v89_v12 = vadd.f32 %v146_v6, %v88_v10  ;;  %v162_v13 = vpop.f32.mrb[3].mxu0 }
  0xe1   :  { %v93_v14 = vmax.f32 %v89_v12, 0.0  ;;  %v97_v15 = vsel %vm96_vm2, %v92_v11, 0.0 }
  0xe2   :  { %98 = vadd.xlane.f32.xlu0 %v97_v15 }
  0xe3   :  { %v100_v16 = vsel %vm96_vm2, %v93_v14, 0.0 }
  0xe6   :  { %101 = vadd.xlane.f32.xlu0 %v100_v16 }
 0x16f   :  { %v99_v17 = vpop.xlane.xlu0 %98 }
 0x170   :  { %v104_v18 = vmul.f32 0.015625, %v99_v17 }
 0x172   :  { %v106_v19 = vsub.f32 %v92_v11, %v104_v18 }
 0x173   :  { %v102_v20 = vpop.xlane.xlu0 %101 }
 0x174   :  { %v105_v21 = vmul.f32 0.015625, %v102_v20  ;;  %v108_v22 = vmul.f32 %v106_v19, %v106_v19 }
 0x176   :  { %v107_v23 = vsub.f32 %v93_v14, %v105_v21  ;;  %v110_v24 = vsel %vm96_vm2, %v108_v22, 0.0 }
 0x177   :  { %111 = vadd.xlane.f32.xlu1 %v110_v24 }
 0x178   :  { %v109_v25 = vmul.f32 %v107_v23, %v107_v23 }
 0x17a   :  { %v113_v26 = vsel %vm96_vm2, %v109_v25, 0.0 }
 0x17b   :  { %114 = vadd.xlane.f32.xlu1 %v113_v26 }
 0x204   :  { %v112_v27 = vpop.xlane.xlu1 %111 }
 0x205   :  { %v116_v28 = vmul.f32 0.015625, %v112_v27 }
 0x207   :  { %v118_v29 = vadd.f32 1e-05, %v116_v28 }
 0x208   :  { %v115_v30 = vpop.xlane.xlu1 %114 }
 0x209   :  { %167 = vrsqrt.f32 %v118_v29  ;;  %v117_v31 = vmul.f32 0.015625, %v115_v30 }
 0x20b   :  { %v119_v32 = vadd.f32 1e-05, %v117_v31 }
 0x20d   :  { %169 = vrsqrt.f32 %v119_v32 }
 0x213   :  { %v168_v33 = vpop.eup %167 }
 0x214   :  { %v122_v35 = vmul.f32 %v168_v33, %v106_v19 }
 0x216   :  { %v130_v37 = vmul.f32 %v150_v34, %v122_v35 }
 0x217   :  { %v170_v38 = vpop.eup %169 }
 0x218   :  { %v138_v39 = vadd.f32 %v151_v36, %v130_v37  ;;  %v123_v40 = vmul.f32 %v170_v38, %v107_v23 }
 0x21a   :  { %140 = vst.msk [vmem:[%s241_s5] sm:$0xff] %vm96_vm2, %v138_v39  ;;  %v131_v41 = vmul.f32 %v150_v34, %v123_v40 }
 0x21c   :  { %v139_v42 = vadd.f32 %v151_v36, %v131_v41 }
 0x21e   :  { %141 = vst.msk [vmem:[%s241_s5 + $0x8] sm:$0xff] %vm96_vm2, %v139_v42 }

// kernel: forward.11
= control target key start
LH: loop header
LB: loop body
LE: loop exit
PB: predicated region body
PF: predicated region fallthrough
CT: control target
= control target key end

     0   :  { %vm50_vm0 = vcmask 261120   ;;  %vm112_vm1 = vcmask 523264   ;;  %s304_s1 = inlined_call_operand.vmem [shape: bf16[32,64], index: 1, kind: input, shape index: {}]   ;;  %s305_s0 = inlined_call_operand.vmem [shape: f32[32,32], index: 0, kind: input, shape index: {}]   ;;  %s306_s2 = inlined_call_operand.vmem [shape: f32[1,64], index: 2, kind: input, shape index: {}]   ;;  %s307_s3 = inlined_call_operand.vmem [shape: f32[1,64], index: 3, kind: input, shape index: {}]   ;;  %s308_s4 = inlined_call_operand.vmem [shape: f32[1,64], index: 4, kind: input, shape index: {}]   ;;  %s309_s5 = inlined_call_operand.vmem [shape: f32[32,64], index: 5, kind: output, shape index: {}]  }
   0x1   :  { %v213_v0 = vld [vmem:[%s304_s1] sm:$0xff]   ;;  %v214_v1 = vld [vmem:[%s304_s1 + $0x8] sm:$0xff]   ;;  %v23_v5 = vld [vmem:[%s305_s0 + $0x10] sm:$0xff] }
   0x2   :  { %205 = vmatprep.subr.bf16.mxu0 %v213_v0  ;;  %v21_v2 = vld [vmem:[%s305_s0] sm:$0xff]  ;;  %v22_v3 = vld [vmem:[%s305_s0 + $0x8] sm:$0xff]  ;;  %v24_v6 = vld [vmem:[%s305_s0 + $0x18] sm:$0xff] }
   0x3   :  { %206 = vmatpush3.bf16.msra.mxu0 %v213_v0  ;;  %v25_v4 = vpack.c.bf16 %v22_v3, %v21_v2  ;;  %v26_v7 = vpack.c.bf16 %v24_v6, %v23_v5  ;;  %v194_v8 = vld [vmem:[%s306_s2] ss:$0 sm:$0xff] }
   0x4   :  { %207 = vmatprep.subr.bf16.mxu0 %v214_v1  ;;  %v199_v58 = vld [vmem:[%s307_s3] ss:$0 sm:$0xff] }
   0x5   :  { %209 = vmatprep.mubr.msk.bf16.mxu0 %vm50_vm0, %v25_v4  ;;  %v200_v60 = vld [vmem:[%s308_s4] ss:$0 sm:$0xff] }
   0x7   :  { %208 = vmatpush3.bf16.msra.mxu0 %v214_v1 }
   0xa   :  { %210 = vmatmul.mubr.msk.bf16.vlgmr.msra.gmra.mrb[0].mxu0 %vm50_vm0, %v26_v7 }
  0xdd   :  { %v211_v9 = vpop.f32.mrb[0].mxu0 }
  0xde   :  { %v100_v10 = vadd.f32 %v211_v9, %v194_v8  ;;  %v91_v11 = vpop.f32.mrb[1].mxu0 }
  0xdf   :  { %v92_v12 = vadd.f32 %v194_v8, %v91_v11  ;;  %v212_v13 = vpop.f32.mrb[2].mxu0 }
  0xe0   :  { %v108_v14 = vmax.f32 %v100_v10, 0.0  ;;  %v103_v15 = vadd.f32 %v212_v13, %v194_v8  ;;  %v94_v16 = vpop.f32.mrb[3].mxu0 }
  0xe1   :  { %v106_v17 = vmax.f32 %v92_v12, 0.0  ;;  %v95_v18 = vadd.f32 %v194_v8, %v94_v16 }
  0xe2   :  { %v109_v19 = vmax.f32 %v103_v15, 0.0  ;;  %v119_v20 = vsel %vm112_vm1, %v108_v14, 0.0 }
  0xe3   :  { %v107_v21 = vmax.f32 %v95_v18, 0.0  ;;  %120 = vadd.xlane.f32.xlu1 %v119_v20  ;;  %v113_v22 = vsel %vm112_vm1, %v106_v17, 0.0 }
  0xe4   :  { %114 = vadd.xlane.f32.xlu0 %v113_v22  ;;  %v122_v23 = vsel %vm112_vm1, %v109_v19, 0.0 }
  0xe5   :  { %v116_v24 = vsel %vm112_vm1, %v107_v21, 0.0 }
  0xe7   :  { %123 = vadd.xlane.f32.xlu1 %v122_v23 }
  0xe8   :  { %117 = vadd.xlane.f32.xlu0 %v116_v24 }
 0x170   :  { %v121_v25 = vpop.xlane.xlu1 %120 }
 0x171   :  { %v128_v26 = vmul.f32 0.015625, %v121_v25  ;;  %v115_v27 = vpop.xlane.xlu0 %114 }
 0x172   :  { %v126_v28 = vmul.f32 0.015625, %v115_v27 }
 0x173   :  { %v132_v29 = vsub.f32 %v108_v14, %v128_v26 }
 0x174   :  { %v130_v30 = vsub.f32 %v106_v17, %v126_v28  ;;  %v124_v31 = vpop.xlane.xlu1 %123 }
 0x175   :  { %v129_v32 = vmul.f32 0.015625, %v124_v31  ;;  %v118_v33 = vpop.xlane.xlu0 %117  ;;  %v136_v39 = vmul.f32 %v132_v29, %v132_v29 }
 0x176   :  { %v127_v34 = vmul.f32 0.015625, %v118_v33  ;;  %v134_v35 = vmul.f32 %v130_v30, %v130_v30 }
 0x177   :  { %v133_v36 = vsub.f32 %v109_v19, %v129_v32  ;;  %v144_v41 = vsel %vm112_vm1, %v136_v39, 0.0 }
 0x178   :  { %v131_v37 = vsub.f32 %v107_v21, %v127_v34  ;;  %v138_v38 = vsel %vm112_vm1, %v134_v35, 0.0 }
 0x179   :  { %139 = vadd.xlane.f32.xlu0 %v138_v38  ;;  %v137_v43 = vmul.f32 %v133_v36, %v133_v36 }
 0x17a   :  { %v135_v40 = vmul.f32 %v131_v37, %v131_v37 }
 0x17b   :  { %v147_v44 = vsel %vm112_vm1, %v137_v43, 0.0 }
 0x17c   :  { %v141_v42 = vsel %vm112_vm1, %v135_v40, 0.0 }
 0x17d   :  { %145 = vadd.xlane.f32.xlu0 %v144_v41  ;;  %142 = vadd.xlane.f32.xlu1 %v141_v42 }
 0x181   :  { %148 = vadd.xlane.f32.xlu1 %v147_v44 }
 0x206   :  { %v140_v45 = vpop.xlane.xlu0 %139 }
 0x207   :  { %v150_v46 = vmul.f32 0.015625, %v140_v45 }
 0x209   :  { %v154_v47 = vadd.f32 1e-05, %v150_v46 }
 0x20a   :  { %v143_v48 = vpop.xlane.xlu1 %142  ;;  %v146_v49 = vpop.xlane.xlu0 %145 }
 0x20b   :  { %215 = vrsqrt.f32 %v154_v47  ;;  %v151_v50 = vmul.f32 0.015625, %v143_v48  ;;  %v152_v51 = vmul.f32 0.015625, %v146_v49 }
 0x20d   :  { %v155_v52 = vadd.f32 1e-05, %v151_v50  ;;  %v156_v53 = vadd.f32 1e-05, %v152_v51 }
 0x20e   :  { %v149_v54 = vpop.xlane.xlu1 %148 }
 0x20f   :  { %217 = vrsqrt.f32 %v155_v52  ;;  %v153_v55 = vmul.f32 0.015625, %v149_v54 }
 0x210   :  { %219 = vrsqrt.f32 %v156_v53 }
 0x211   :  { %v157_v56 = vadd.f32 1e-05, %v153_v55 }
 0x213   :  { %221 = vrsqrt.f32 %v157_v56 }
 0x215   :  { %v216_v57 = vpop.eup %215 }
 0x216   :  { %v162_v59 = vmul.f32 %v216_v57, %v130_v30 }
 0x218   :  { %v172_v61 = vmul.f32 %v199_v58, %v162_v59 }
 0x219   :  { %v218_v62 = vpop.eup %217 }
 0x21a   :  { %v220_v63 = vpop.eup %219  ;;  %v182_v0 = vadd.f32 %v200_v60, %v172_v61  ;;  %v163_v1 = vmul.f32 %v218_v62, %v131_v37 }
 0x21b   :  { %v164_v2 = vmul.f32 %v220_v63, %v132_v29 }
 0x21c   :  { %186 = vst.msk [vmem:[%s309_s5] sm:$0xff] %vm112_vm1, %v182_v0  ;;  %v173_v3 = vmul.f32 %v199_v58, %v163_v1 }
 0x21d   :  { %v222_v4 = vpop.eup %221  ;;  %v174_v5 = vmul.f32 %v199_v58, %v164_v2 }
 0x21e   :  { %v183_v6 = vadd.f32 %v200_v60, %v173_v3  ;;  %v165_v7 = vmul.f32 %v222_v4, %v133_v36 }
 0x21f   :  { %v184_v8 = vadd.f32 %v200_v60, %v174_v5 }
 0x220   :  { %187 = vst.msk [vmem:[%s309_s5 + $0x8] sm:$0xff] %vm112_vm1, %v183_v6  ;;  %v175_v9 = vmul.f32 %v199_v58, %v165_v7 }
 0x221   :  { %188 = vst.msk [vmem:[%s309_s5 + $0x10] sm:$0xff] %vm112_vm1, %v184_v8 }
 0x222   :  { %v185_v10 = vadd.f32 %v200_v60, %v175_v9 }
 0x224   :  { %189 = vst.msk [vmem:[%s309_s5 + $0x18] sm:$0xff] %vm112_vm1, %v185_v10 }

// kernel: forward.12
= control target key start
LH: loop header
LB: loop body
LE: loop exit
PB: predicated region body
PF: predicated region fallthrough
CT: control target
= control target key end

     0   :  { %s10051_s0 = inlined_call_operand.vmem [shape: f32[2,8,64], index: 0, kind: input, shape index: {}]   ;;  %s10052_s1 = inlined_call_operand.vmem [shape: bf16[2,8,64], index: 1, kind: input, shape index: {}]   ;;  %s10053_s2 = inlined_call_operand.vmem [shape: f32[2,128,64], index: 2, kind: input, shape index: {}]   ;;  %s10054_s3 = inlined_call_operand.vmem [shape: bf16[2,128,64], index: 3, kind: input, shape index: {}]   ;;  %s10055_s4 = inlined_call_operand.vmem [shape: bf16[2,4,8,128], index: 4, kind: input, shape index: {}]   ;;  %s10056_s5 = inlined_call_operand.vmem [shape: bf16[64,64], index: 5, kind: input, shape index: {}]   ;;  %s10057_s6 = inlined_call_operand.vmem [shape: f32[1,64], index: 6, kind: input, shape index: {}]   ;;  %s10058_s7 = inlined_call_operand.vmem [shape: bf16[64,64], index: 7, kind: input, shape index: {}]   ;;  %s10059_s8 = inlined_call_operand.vmem [shape: f32[1,64], index: 8, kind: input, shape index: {}]   ;;  %s10060_s9 = inlined_call_operand.vmem [shape: bf16[64,64], index: 9, kind: input, shape index: {}]   ;;  %s10061_s10 = inlined_call_operand.vmem [shape: f32[1,64], index: 10, kind: input, shape index: {}]   ;;  %s10062_s11 = inlined_call_operand.vmem [shape: bf16[64,64], index: 11, kind: input, shape index: {}]   ;;  %s10063_s12 = inlined_call_operand.vmem [shape: f32[1,64], index: 12, kind: input, shape index: {}]   ;;  %s10064_s13 = inlined_call_operand.vmem [shape: f32[1,64], index: 13, kind: input, shape index: {}]   ;;  %s10065_s14 = inlined_call_operand.vmem [shape: f32[1,64], index: 14, kind: input, shape index: {}]   ;;  %s10066_s15 = inlined_call_operand.vmem [shape: bf16[64,128], index: 15, kind: input, shape index: {}]   ;;  %s10067_s16 = inlined_call_operand.vmem [shape: f32[1,128], index: 16, kind: input, shape index: {}]   ;;  %s10068_s17 = inlined_call_operand.vmem [shape: bf16[128,64], index: 17, kind: input, shape index: {}]   ;;  %s10069_s18 = inlined_call_operand.vmem [shape: f32[1,64], index: 18, kind: input, shape index: {}]   ;;  %s10070_s19 = inlined_call_operand.vmem [shape: f32[1,64], index: 19, kind: input, shape index: {}]   ;;  %s10071_s20 = inlined_call_operand.vmem [shape: f32[1,64], index: 20, kind: input, shape index: {}]   ;;  %s10072_s21 = inlined_call_operand.vmem [shape: f32[2,8,64], index: 21, kind: output, shape index: {}]  }
   0x1   :  { %10121 = sst [smem:[#allocation50_spill]] %s10051_s0 }
   0x2   :  { %10122 = sst [smem:[#allocation51_spill]] %s10052_s1 }
   0x3   :  { %10123 = sst [smem:[#allocation52_spill]] %s10053_s2  ;;  %s7928_s2 = smov 0  }
   0x4   :  { %10124 = sst [smem:[#allocation53_spill]] %s10054_s3 }
   0x5   :  { %10125 = sst [smem:[#allocation54_spill]] %s10055_s4 }
   0x6   :  { %10126 = sst [smem:[#allocation55_spill]] %s10056_s5 }
   0x7   :  { %10127 = sst [smem:[#allocation56_spill]] %s10072_s21 }
   0x8 LB: > { %10128 = sst [smem:[#allocation2_spill]] %s7806_s2  ;;  %s7152_s25 = sadd.s32 4294967295, %s7806_s2   ;;  %s7806_s2 = sphi %s7928_s2, %s31_s2  }
   0x9   : > { %p7156_p0 = scmp.ge.s32.totalorder %s7806_s2, 1  ;;  %p625_p1 = scmp.lt.s32.totalorder %s7806_s2, 3 }
   0xb   : > { %p626_p2 = pnand %p7156_p0, %p625_p1 }
   0xd   : > { %629 = sbr.rel (%p626_p2) target bundleno = 2755 (0xac3), region = 104 }
  0x14   : > { %v7750_v0 = vld [vmem:[%s10058_s7] sm:$0xff]   ;;  %p702_p3 = scmp.lt.s32.totalorder %s7152_s25, 1  ;;  %v7751_v1 = vld [vmem:[%s10058_s7 + $0x8] sm:$0xff]   ;;  %v7752_v2 = vld [vmem:[%s10058_s7 + $0x10] sm:$0xff]   ;;  %v10075_v3 = vmov 0.0   ;;  %s10129_s23 = sld [smem:[#allocation52_spill]] }
  0x15   : > { %7480 = vmatprep.subr.bf16.mxu1 %v7750_v0  ;;  %7468 = vmatprep.subr.bf16.mxu0 %v10075_v3  ;;  %s10130_s27 = sld [smem:[#allocation53_spill]]  ;;  %s10131_s0 = sld [smem:[#allocation55_spill]]  ;;  %v7753_v5 = vld [vmem:[%s10058_s7 + $0x18] sm:$0xff]   ;;  %vm7809_vm0 = vmmov 0   ;;  %vm846_vm1 = vcmask 523264   ;;  %v7758_v53 = vld [vmem:[%s10060_s9] sm:$0xff]  }
  0x16   : > { %s10251_s25 = smov (!%p702_p3, %s7152_s25), 1  ;;  %7481 = vmatpush3.bf16.msra.mxu1 %v7750_v0  ;;  %7476 = vmatprep.mubr.msk.bf16.mxu0 %vm7809_vm0, %v10075_v3  ;;  %s10132_s5 = sld [smem:[#allocation50_spill]]  ;;  %vm6072_vm2 = vcmask 130048   ;;  %vm6706_vm3 = vcmask 261120   ;;  %vm6708_vm4 = vcmask 392192  }
  0x17   : > { %7482 = vmatprep.subr.bf16.mxu1 %v7751_v1  ;;  %s7297_s4 = sshll.u32 %s10251_s25, 7  ;;  %s7298_s30 = sshll.u32 %s10251_s25, 6 }
  0x18   : > { %s7157_s21 = sshll.u32 %s10251_s25, 3  ;;  %s7158_s2 = sshll.u32 %s10251_s25, 2 }
  0x19   : > { %s10133_s26 = sld [smem:[#allocation51_spill]]  ;;  %s10248_s24 = sld [smem:[#allocation56_spill]] }
  0x1a   : > { %s7953_s1 = scalar_lea.vmem %s10129_s23, %s7297_s4  ;;  %7483 = vmatpush3.bf16.msra.mxu1 %v7751_v1  ;;  %v7759_v1 = vld [vmem:[%s10060_s9 + $0x8] sm:$0xff]   ;;  %s10242_s4 = sld [smem:[#allocation54_spill]] }
  0x1b   : > { %s7958_s3 = scalar_lea.vmem %s10130_s27, %s7298_s30  ;;  %v7754_v4 = vld [vmem:[%s10131_s0] sm:$0xff]   ;;  %v735_v7 = vld [vmem:[%s7953_s1 + $0x8] sm:$0xff]  ;;  %v736_v11 = vld [vmem:[%s7953_s1 + $0x10] sm:$0xff]  ;;  %7484 = vmatprep.subr.bf16.mxu1 %v7752_v2  ;;  %s7811_s30 = smov 96  }
  0x1c   : > { %v734_v6 = vld [vmem:[%s7953_s1] sm:$0xff]  ;;  %v737_v12 = vld [vmem:[%s7953_s1 + $0x18] sm:$0xff]  ;;  %v7340_v13 = vld [vmem:[%s7958_s3 + $0x8] sm:$0xff]   ;;  %7469 = vmatpush3.bf16.msra.mxu0 %v7754_v4  ;;  %s705_s22 = scalar_lea.vmem %s10132_s5, %s7157_s21  ;;  %s7812_s5 = smov 80  }
  0x1d   : > { %v7301_v8 = vld [vmem:[%s7958_s3] sm:$0xff]   ;;  %v7306_v14 = vunpack.c.l.bf16 %v7340_v13  ;;  %v7307_v15 = vunpack.c.h.bf16 %v7340_v13  ;;  %v739_v17 = vld [vmem:[%s7953_s1 + $0x28] sm:$0xff]  ;;  %v7341_v18 = vld [vmem:[%s7958_s3 + $0x10] sm:$0xff]   ;;  %7470 = vmatprep.subr.bf16.mxu0 %v10075_v3 }
  0x1e   : > { %v7302_v9 = vunpack.c.l.bf16 %v7301_v8  ;;  %v7303_v10 = vunpack.c.h.bf16 %v7301_v8  ;;  %v738_v16 = vld [vmem:[%s7953_s1 + $0x20] sm:$0xff]  ;;  %v7310_v21 = vunpack.c.l.bf16 %v7341_v18  ;;  %v7311_v22 = vunpack.c.h.bf16 %v7341_v18  ;;  %7485 = vmatpush3.bf16.msra.mxu1 %v7752_v2  ;;  %v7342_v28 = vld [vmem:[%s7958_s3 + $0x18] sm:$0xff]   ;;  %v740_v30 = vld [vmem:[%s7953_s1 + $0x30] sm:$0xff] }
  0x1f   : > { %v784_v23 = vadd.f32 %v7306_v14, %v736_v11  ;;  %v785_v24 = vadd.f32 %v7307_v15, %v737_v12  ;;  %7486 = vmatprep.subr.bf16.mxu1 %v7753_v5  ;;  %v7343_v29 = vld [vmem:[%s7958_s3 + $0x20] sm:$0xff]   ;;  %v741_v31 = vld [vmem:[%s7953_s1 + $0x38] sm:$0xff]  ;;  %s709_s27 = scalar_lea.vmem %s10133_s26, %s7158_s2  ;;  %v7314_v33 = vunpack.c.l.bf16 %v7342_v28  ;;  %v7315_v34 = vunpack.c.h.bf16 %v7342_v28  ;;  %v7755_v36 = vld [vmem:[%s10131_s0 + $0x8] sm:$0xff]   ;;  %s7810_s2 = smov 112  }
  0x20   : > { %v782_v19 = vadd.f32 %v7302_v9, %v734_v6  ;;  %v783_v20 = vadd.f32 %v7303_v10, %v735_v7  ;;  %v786_v26 = vadd.f32 %v7310_v21, %v738_v16  ;;  %v787_v27 = vadd.f32 %v7311_v22, %v739_v17  ;;  %v742_v35 = vld [vmem:[%s7953_s1 + $0x40] sm:$0xff]  ;;  %v743_v38 = vld [vmem:[%s7953_s1 + $0x48] sm:$0xff]  ;;  %7471 = vmatpush3.bf16.msra.mxu0 %v7755_v36  ;;  %v7756_v41 = vld [vmem:[%s10131_s0 + $0x10] sm:$0xff]  }
  0x21   : > { %v7996_v32 = vpack.c.bf16 %v785_v24, %v784_v23  ;;  %v7318_v39 = vunpack.c.l.bf16 %v7343_v29  ;;  %v7319_v40 = vunpack.c.h.bf16 %v7343_v29  ;;  %v730_v42 = vld [vmem:[%s705_s22] sm:$0xff]  ;;  %v7344_v44 = vld [vmem:[%s7958_s3 + $0x28] sm:$0xff]   ;;  %7472 = vmatprep.subr.bf16.mxu0 %v10075_v3  ;;  %v788_v46 = vadd.f32 %v7314_v33, %v740_v30  ;;  %v7345_v48 = vld [vmem:[%s7958_s3 + $0x30] sm:$0xff]  }
  0x22   : > { %v7980_v25 = vpack.c.bf16 %v783_v20, %v782_v19  ;;  %7487 = vmatpush3.bf16.msra.mxu1 %v7753_v5  ;;  %v8002_v37 = vpack.c.bf16 %v787_v27, %v786_v26  ;;  %v731_v43 = vld [vmem:[%s709_s27] sm:$0xf]  ;;  %v789_v47 = vadd.f32 %v7315_v34, %v741_v31  ;;  %v7757_v51 = vld [vmem:[%s10131_s0 + $0x18] sm:$0xff]   ;;  %v744_v54 = vld [vmem:[%s7953_s1 + $0x50] sm:$0xff]  ;;  %v7322_v57 = vunpack.c.l.bf16 %v7344_v44 }
  0x23   : > { %7528 = vmatprep.subr.bf16.mxu1 %v10075_v3  ;;  %v732_v45 = vunpack.c.l.bf16 %v731_v43  ;;  %v790_v49 = vadd.f32 %v7318_v39, %v742_v35  ;;  %v791_v50 = vadd.f32 %v7319_v40, %v743_v38  ;;  %v745_v55 = vld [vmem:[%s7953_s1 + $0x58] sm:$0xff]  ;;  %v7323_v58 = vunpack.c.h.bf16 %v7344_v44  ;;  %v746_v59 = vld [vmem:[%s7953_s1 + $0x60] sm:$0xff]  ;;  %v747_v60 = vld [vmem:[%s7953_s1 + $0x68] sm:$0xff] }
  0x24   : > { %7488 = vmatprep.mubr.msk.bf16.mxu1 %vm846_vm1, %v7980_v25  ;;  %7473 = vmatpush3.bf16.msra.mxu0 %v7756_v41  ;;  %v802_v56 = vpack.c.bf16 %v789_v47, %v788_v46  ;;  %v7326_v62 = vunpack.c.l.bf16 %v7345_v48  ;;  %v7327_v63 = vunpack.c.h.bf16 %v7345_v48  ;;  %v7346_v2 = vld [vmem:[%s7958_s3 + $0x38] sm:$0xff]   ;;  %v792_v4 = vadd.f32 %v7322_v57, %v744_v54  ;;  %v7760_v8 = vld [vmem:[%s10060_s9 + $0x10] sm:$0xff]   ;;  %v8068_v19 = vld [vmem:[%s10059_s8] ss:$0 sm:$0xff]  ;;  %s7299_s3 = sshll.u32 %s10251_s25, 4 }
  0x25   : > { %7489 = vmatmul.mubr.msk.bf16.vlgmr.msra.gmra.mrb[0].mxu1 %vm846_vm1, %v7996_v32  ;;  %v8019_v52 = vadd.f32 %v732_v45, %v730_v42  ;;  %7474 = vmatprep.subr.bf16.mxu0 %v10075_v3  ;;  %v803_v61 = vpack.c.bf16 %v791_v50, %v790_v49  ;;  %v793_v5 = vadd.f32 %v7323_v58, %v745_v55  ;;  %v748_v9 = vld [vmem:[%s7953_s1 + $0x70] sm:$0xff]  ;;  %v7330_v11 = vunpack.c.l.bf16 %v7346_v2  ;;  %v749_v14 = vld [vmem:[%s7953_s1 + $0x78] sm:$0xff]  ;;  %v7166_v57 = vld [vmem:[%s10057_s6] ss:$0 sm:$0xff]  ;;  %s724_s22 = scalar_lea.vmem %s10242_s4, %s7299_s3  ;;  %s7815_s1 = smov 32  }
  0x26   : > { %7492 = vmatprep.mubr.msk.bf16.mxu1 %vm846_vm1, %v8002_v37  ;;  %v794_v6 = vadd.f32 %v7326_v62, %v746_v59  ;;  %v795_v7 = vadd.f32 %v7327_v63, %v747_v60  ;;  %v7331_v12 = vunpack.c.h.bf16 %v7346_v2  ;;  %v7761_v15 = vld [vmem:[%s10060_s9 + $0x18] sm:$0xff]   ;;  %v7185_v60 = vld [vmem:[%s10061_s10] ss:$0 sm:$0xff]  ;;  %s7816_s4 = smov 16  }
  0x27   : > { %10134 = vst [vmem:[#allocation3_spill] sm:$0xff] %v8019_v52  ;;  %v798_v0 = vpack.c.bf16 %v8019_v52, %v8019_v52  ;;  %v804_v10 = vpack.c.bf16 %v793_v5, %v792_v4  ;;  %v796_v16 = vadd.f32 %v7330_v11, %v748_v9 }
  0x28   : > { %7475 = vmatpush3.bf16.msra.mxu0 %v7757_v51  ;;  %v805_v13 = vpack.c.bf16 %v795_v7, %v794_v6  ;;  %v797_v17 = vadd.f32 %v7331_v12, %v749_v14  ;;  %v7813_v6 = vmov 1983009808  }
  0x29   : > { %7504 = vmatprep.subr.bf16.mxu0 %v7758_v53  ;;  %v1199_v7 = vunpack.c.l.s4 %v7813_v6 }
  0x2a   : > { %v806_v18 = vpack.c.bf16 %v797_v17, %v796_v16 }
  0x2b   : > { %7477 = vmatmul.mubr.msk.bf16.vlgmr.msra.gmra.mrb[0].mxu0 %vm846_vm1, %v798_v0 }
  0x2c   : > { %7505 = vmatpush3.bf16.msra.mxu0 %v7758_v53  ;;  %7512 = vmatprep.mubr.msk.bf16.mxu0 %vm846_vm1, %v7980_v25 }
  0x2d   : > { %7493 = vmatmul.mubr.msk.bf16.gmra.mrb[4].mxu1 %vm846_vm1, %v802_v56  ;;  %7506 = vmatprep.subr.bf16.mxu0 %v7759_v1 }
  0x2e   : > { %7496 = vmatprep.mubr.msk.bf16.mxu1 %vm846_vm1, %v803_v61 }
  0x30   : > { %7507 = vmatpush3.bf16.msra.mxu0 %v7759_v1 }
  0x31   : > { %7508 = vmatprep.subr.bf16.mxu0 %v7760_v8 }
  0x34   : > { %7509 = vmatpush3.bf16.msra.mxu0 %v7760_v8  ;;  %v1201_v8 = vlaneseq }
  0x35   : > { %7497 = vmatmul.mubr.msk.bf16.gmra.mrb[8].mxu1 %vm846_vm1, %v804_v10  ;;  %7510 = vmatprep.subr.bf16.mxu0 %v7761_v15 }
  0x36   : > { %7500 = vmatprep.mubr.msk.bf16.mxu1 %vm846_vm1, %v805_v13  ;;  %v1202_v14 = vshrl.u32 %v1201_v8, 7 }
  0x38   : > { %7511 = vmatpush3.bf16.msra.mxu0 %v7761_v15 }
  0x39   : > { %7548 = vmatprep.subr.bf16.mxu0 %v10075_v3 }
  0x3b   : > { %7513 = vmatmul.mubr.msk.bf16.vlgmr.msra.gmra.mrb[4].mxu0 %vm846_vm1, %v7996_v32 }
  0x3c   : > { %7516 = vmatprep.mubr.msk.bf16.mxu0 %vm846_vm1, %v8002_v37 }
  0x3d   : > { %7501 = vmatmul.mubr.msk.bf16.gmra.mrb[12].mxu1 %vm846_vm1, %v806_v18 }
  0x3e   : > { %7544 = vmatprep.mubr.msk.bf16.mxu1 %vm7809_vm0, %v10075_v3 }
  0x43   : > { %7517 = vmatmul.mubr.msk.bf16.gmra.mrb[8].mxu0 %vm846_vm1, %v802_v56 }
  0x44   : > { %7520 = vmatprep.mubr.msk.bf16.mxu0 %vm846_vm1, %v803_v61 }
  0x4b   : > { %7521 = vmatmul.mubr.msk.bf16.gmra.mrb[12].mxu0 %vm846_vm1, %v804_v10  ;;  %v7814_v10 = vmov 1934713408  }
  0x4c   : > { %7524 = vmatprep.mubr.msk.bf16.mxu0 %vm846_vm1, %v805_v13  ;;  %v1231_v11 = vunpack.c.l.s4 %v7814_v10  ;;  %v1200_v13 = vunpack.c.0.s8 %v1199_v7 }
  0x4e   : > { %v1232_v16 = vunpack.c.0.s8 %v1231_v11 }
  0x53   : > { %7525 = vmatmul.mubr.msk.bf16.gmra.mrb[16].mxu0 %vm846_vm1, %v806_v18 }
  0x54   : > { %7564 = vmatprep.mubr.msk.bf16.mxu0 %vm7809_vm0, %v10075_v3 }
  0xf8   : > { %v7490_v20 = vpop.f32.mrb[0].mxu1 }
  0xf9   : > { %v8071_v21 = vadd.f32 %v7490_v20, %v8068_v19  ;;  %v987_v22 = vpop.f32.mrb[1].mxu1  ;;  %v8261_v20 = vsub.s32 %v1200_v13, %v1202_v14 }
  0xfa   : > { %v8074_v23 = vadd.f32 %v8068_v19, %v987_v22  ;;  %v7491_v24 = vpop.f32.mrb[2].mxu1 }
  0xfb   : > { %1356 = vrot.lane.b32.xlu0 %v8071_v21, %s7810_s2  ;;  %v990_v25 = vpop.f32.mrb[3].mxu1  ;;  %v8081_v26 = vadd.f32 %v7491_v24, %v8068_v19 }
  0xfc   : > { %1400 = vrot.lane.b32.xlu1 %v8074_v23, %s7811_s30  ;;  %v8098_v37 = vadd.f32 %v8068_v19, %v990_v25 }
  0xfe   : > { %v8087_v29 = vpop.f32.mrb[0].mxu0 }
  0xff   : > { %1404 = vrot.lane.b32.xlu0 %v8071_v21, %s7811_s30  ;;  %v7478_v31 = vpop.f32.mrb[1].mxu0  ;;  %v8218_v58 = vadd.f32 %v7166_v57, %v8087_v29 }
 0x100   : > { %1358 = vrot.lane.b32.xlu1 %v8081_v26, %s7810_s2  ;;  %v7494_v27 = vpop.f32.mrb[4].mxu1  ;;  %v887_v33 = vpop.f32.mrb[2].mxu0 }
 0x101   : > { %v1003_v28 = vpop.f32.mrb[5].mxu1  ;;  %v7479_v34 = vpop.f32.mrb[3].mxu0  ;;  %v8105_v40 = vadd.f32 %v7494_v27, %v8068_v19 }
 0x102   : > { %v7495_v30 = vpop.f32.mrb[6].mxu1  ;;  %v8139_v50 = vadd.f32 %v8068_v19, %v1003_v28  ;;  %v8266_v28 = vsub.s32 %v1232_v16, %v1202_v14 }
 0x103   : > { %1452 = vrot.lane.b32.xlu0 %v8071_v21, %s7812_s5  ;;  %v1006_v32 = vpop.f32.mrb[7].mxu1  ;;  %v8115_v44 = vadd.f32 %v7495_v30, %v8068_v19 }
 0x104   : > { %1406 = vrot.lane.b32.xlu1 %v8081_v26, %s7811_s30  ;;  %v8142_v51 = vadd.f32 %v8068_v19, %v1006_v32 }
 0x107   : > { %1352 = vrot.lane.b32.xlu0 %v8074_v23, %s7810_s2 }
 0x108   : > { %1454 = vrot.lane.b32.xlu1 %v8081_v26, %s7812_s5  ;;  %v7498_v35 = vpop.f32.mrb[8].mxu1 }
 0x109   : > { %v1019_v36 = vpop.f32.mrb[9].mxu1  ;;  %v8153_v53 = vadd.f32 %v7498_v35, %v8068_v19 }
 0x10a   : > { %v7499_v38 = vpop.f32.mrb[10].mxu1  ;;  %v8175_v55 = vadd.f32 %v8068_v19, %v1019_v36 }
 0x10b   : > { %1448 = vrot.lane.b32.xlu0 %v8074_v23, %s7812_s5  ;;  %v1022_v39 = vpop.f32.mrb[11].mxu1  ;;  %v8160_v54 = vadd.f32 %v7499_v38, %v8068_v19 }
 0x10c   : > { %1402 = vrot.lane.b32.xlu1 %v8098_v37, %s7811_s30  ;;  %v8178_v56 = vadd.f32 %v8068_v19, %v1022_v39 }
 0x10e   : > { %v7514_v59 = vpop.f32.mrb[4].mxu0 }
 0x10f   : > { %1354 = vrot.lane.b32.xlu0 %v8098_v37, %s7810_s2  ;;  %v1123_v61 = vpop.f32.mrb[5].mxu0  ;;  %v8243_v2 = vadd.f32 %v7514_v59, %v7185_v60 }
 0x110   : > { %1450 = vrot.lane.b32.xlu1 %v8098_v37, %s7812_s5  ;;  %v7502_v41 = vpop.f32.mrb[12].mxu1  ;;  %v7515_v62 = vpop.f32.mrb[6].mxu0  ;;  %v8231_v63 = vadd.f32 %v7185_v60, %v1123_v61 }
 0x111   : > { %v8112_v42 = vadd.f32 %v7502_v41, %v8068_v19  ;;  %v1035_v43 = vpop.f32.mrb[13].mxu1  ;;  %v1126_v0 = vpop.f32.mrb[7].mxu0  ;;  %10137 = vst [vmem:[#allocation6_spill] sm:$0xff] %v8243_v2  ;;  %v8247_v4 = vadd.f32 %v7515_v62, %v7185_v60 }
 0x112   : > { %v8118_v45 = vadd.f32 %v8068_v19, %v1035_v43  ;;  %v7503_v46 = vpop.f32.mrb[14].mxu1  ;;  %10135 = vst [vmem:[#allocation4_spill] sm:$0xff] %v8231_v63  ;;  %v8233_v1 = vadd.f32 %v7185_v60, %v1126_v0 }
 0x113   : > { %1364 = vrot.lane.b32.xlu0 %v8105_v40, %s7810_s2  ;;  %v8123_v47 = vadd.f32 %v7503_v46, %v8068_v19  ;;  %v1038_v48 = vpop.f32.mrb[15].mxu1  ;;  %10138 = vst [vmem:[#allocation7_spill] sm:$0xff] %v8247_v4 }
 0x114   : > { %1366 = vrot.lane.b32.xlu1 %v8115_v44, %s7810_s2  ;;  %v8128_v49 = vadd.f32 %v8068_v19, %v1038_v48  ;;  %10136 = vst [vmem:[#allocation5_spill] sm:$0xff] %v8233_v1 }
 0x117   : > { %1412 = vrot.lane.b32.xlu0 %v8105_v40, %s7811_s30 }
 0x118   : > { %1414 = vrot.lane.b32.xlu1 %v8115_v44, %s7811_s30 }
 0x11b   : > { %1460 = vrot.lane.b32.xlu0 %v8105_v40, %s7812_s5 }
 0x11c   : > { %1462 = vrot.lane.b32.xlu1 %v8115_v44, %s7812_s5 }
 0x11f   : > { %1360 = vrot.lane.b32.xlu0 %v8139_v50, %s7810_s2 }
 0x120   : > { %1362 = vrot.lane.b32.xlu1 %v8142_v51, %s7810_s2 }
 0x123   : > { %1408 = vrot.lane.b32.xlu0 %v8139_v50, %s7811_s30 }
 0x124   : > { %1410 = vrot.lane.b32.xlu1 %v8142_v51, %s7811_s30 }
 0x127   : > { %1456 = vrot.lane.b32.xlu0 %v8139_v50, %s7812_s5 }
 0x128   : > { %1458 = vrot.lane.b32.xlu1 %v8142_v51, %s7812_s5 }
 0x12b   : > { %1372 = vrot.lane.b32.xlu0 %v8153_v53, %s7810_s2 }
 0x12c   : > { %1374 = vrot.lane.b32.xlu1 %v8160_v54, %s7810_s2 }
 0x12f   : > { %1420 = vrot.lane.b32.xlu0 %v8153_v53, %s7811_s30 }
 0x130   : > { %1422 = vrot.lane.b32.xlu1 %v8160_v54, %s7811_s30 }
 0x133   : > { %1468 = vrot.lane.b32.xlu0 %v8153_v53, %s7812_s5 }
 0x134   : > { %1470 = vrot.lane.b32.xlu1 %v8160_v54, %s7812_s5 }
 0x137   : > { %1368 = vrot.lane.b32.xlu0 %v8175_v55, %s7810_s2 }
 0x138   : > { %1370 = vrot.lane.b32.xlu1 %v8178_v56, %s7810_s2 }
 0x13b   : > { %1416 = vrot.lane.b32.xlu0 %v8175_v55, %s7811_s30 }
 0x13c   : > { %1418 = vrot.lane.b32.xlu1 %v8178_v56, %s7811_s30 }
 0x13f   : > { %1464 = vrot.lane.b32.xlu0 %v8175_v55, %s7812_s5 }
 0x140   : > { %1466 = vrot.lane.b32.xlu1 %v8178_v56, %s7812_s5 }
 0x143   : > { %1380 = vrot.lane.b32.xlu0 %v8112_v42, %s7810_s2 }
 0x144   : > { %1382 = vrot.lane.b32.xlu1 %v8123_v47, %s7810_s2 }
 0x147   : > { %1376 = vrot.lane.b32.xlu0 %v8118_v45, %s7810_s2 }
 0x148   : > { %1378 = vrot.lane.b32.xlu1 %v8128_v49, %s7810_s2 }
 0x14b   : > { %1424 = vrot.lane.b32.xlu0 %v8118_v45, %s7811_s30 }
 0x14c   : > { %1426 = vrot.lane.b32.xlu1 %v8128_v49, %s7811_s30 }
 0x14f   : > { %1472 = vrot.lane.b32.xlu0 %v8118_v45, %s7812_s5 }
 0x150   : > { %1474 = vrot.lane.b32.xlu1 %v8128_v49, %s7812_s5 }
 0x153   : > { %1428 = vrot.lane.b32.xlu0 %v8112_v42, %s7811_s30 }
 0x154   : > { %1430 = vrot.lane.b32.xlu1 %v8123_v47, %s7811_s30 }
 0x157   : > { %1476 = vrot.lane.b32.xlu0 %v8112_v42, %s7812_s5 }
 0x158   : > { %1478 = vrot.lane.b32.xlu1 %v8123_v47, %s7812_s5 }
 0x15b   : > { %1187 = vrot.lane.b32.xlu0 %v8218_v58, %s7810_s2 }
 0x15c   : > { %1190 = vrot.lane.b32.xlu1 %v8218_v58, %s7811_s30 }
 0x15f   : > { %1193 = vrot.lane.b32.xlu0 %v8218_v58, %s7812_s5 }
 0x160   : > { %3722 = vrot.lane.b32.xlu1 %v8233_v1, %s7810_s2 }
 0x163   : > { %3720 = vrot.lane.b32.xlu0 %v8231_v63, %s7810_s2 }
 0x164   : > { %3768 = vrot.lane.b32.xlu1 %v8231_v63, %s7811_s30 }
 0x167   : > { %3770 = vrot.lane.b32.xlu0 %v8233_v1, %s7811_s30 }
 0x168   : > { %3816 = vrot.lane.b32.xlu1 %v8231_v63, %s7812_s5 }
 0x16b   : > { %3818 = vrot.lane.b32.xlu0 %v8233_v1, %s7812_s5 }
 0x16c   : > { %3724 = vrot.lane.b32.xlu1 %v8243_v2, %s7810_s2 }
 0x16d   : > { %v1357_v5 = vpop.permute.xlu0 %1356 }
 0x16e   : > { %v1401_v9 = vpop.permute.xlu1 %1400 }
 0x16f   : > { %3726 = vrot.lane.b32.xlu0 %v8247_v4, %s7810_s2  ;;  %v1496_v27 = vcombine.low %v8074_v23, %v1401_v9  ;;  %v1497_v32 = vcombine.high %v8074_v23, %v1401_v9 }
 0x170   : > { %3772 = vrot.lane.b32.xlu1 %v8243_v2, %s7811_s30 }
 0x171   : > { %v1405_v12 = vpop.permute.xlu0 %1404  ;;  %v1504_v46 = vrot.slane %v1496_v27, %v8261_v20  ;;  %v1511_v7 = vrot.slane %v1497_v32, %v8261_v20 }
 0x172   : > { %v1359_v15 = vpop.permute.xlu1 %1358  ;;  %v1632_v17 = vcombine.low %v8071_v21, %v1405_v12  ;;  %v1633_v18 = vcombine.high %v8071_v21, %v1405_v12 }
 0x173   : > { %3774 = vrot.lane.b32.xlu0 %v8247_v4, %s7811_s30 }
 0x174   : > { %3820 = vrot.lane.b32.xlu1 %v8243_v2, %s7812_s5  ;;  %v1640_v29 = vrot.slane %v1632_v17, %v8261_v20  ;;  %v1647_v21 = vrot.slane %v1633_v18, %v8261_v20 }
 0x175   : > { %v1453_v19 = vpop.permute.xlu0 %1452 }
 0x176   : > { %v1648_v22 = vcombine.low %v1357_v5, %v1453_v19  ;;  %v1649_v24 = vcombine.high %v1357_v5, %v1453_v19  ;;  %v1407_v25 = vpop.permute.xlu1 %1406 }
 0x177   : > { %3822 = vrot.lane.b32.xlu0 %v8247_v4, %s7812_s5  ;;  %v1700_v33 = vcombine.low %v8081_v26, %v1407_v25  ;;  %v1701_v34 = vcombine.high %v8081_v26, %v1407_v25 }
 0x178   : > { %v1656_v30 = vrot.slane %v1648_v22, %v8261_v20  ;;  %v1663_v31 = vrot.slane %v1649_v24, %v8261_v20  ;;  %v8289_v22 = vpop.f32.mrb[8].mxu0 }
 0x179   : > { %v1353_v35 = vpop.permute.xlu0 %1352  ;;  %v1708_v26 = vrot.slane %v1700_v33, %v8261_v20  ;;  %v1715_v62 = vrot.slane %v1701_v34, %v8261_v20 }
 0x17a   : > { %v1664_v36 = vcombine.low %v1640_v29, %v1656_v30  ;;  %v1665_v38 = vcombine.high %v1640_v29, %v1656_v30  ;;  %v1680_v39 = vcombine.low %v1647_v21, %v1663_v31  ;;  %v1681_v41 = vcombine.high %v1647_v21, %v1663_v31  ;;  %v1455_v43 = vpop.permute.xlu1 %1454  ;;  %v8303_v30 = vpop.f32.mrb[9].mxu0 }
 0x17b   : > { %v1716_v48 = vcombine.low %v1359_v15, %v1455_v43  ;;  %v1717_v57 = vcombine.high %v1359_v15, %v1455_v43 }
 0x17c   : > { %v1672_v59 = vrot.slane %v1664_v36, %v8266_v28  ;;  %v1679_v60 = vrot.slane %v1665_v38, %v8266_v28  ;;  %v1688_v23 = vrot.slane %v1680_v39, %v8266_v28  ;;  %v1695_v61 = vrot.slane %v1681_v41, %v8266_v28 }
 0x17d   : > { %v1724_v0 = vrot.slane %v1716_v48, %v8261_v20  ;;  %v1731_v5 = vrot.slane %v1717_v57, %v8261_v20  ;;  %v1449_v6 = vpop.permute.xlu0 %1448 }
 0x17e   : > { %v2720_v8 = vcombine.low %v1672_v59, %v1679_v60  ;;  %v7204_v9 = vcombine.high %v1672_v59, %v1679_v60  ;;  %v2736_v10 = vcombine.low %v1688_v23, %v1695_v61  ;;  %v1403_v11 = vpop.permute.xlu1 %1402  ;;  %v1512_v16 = vcombine.low %v1353_v35, %v1449_v6 }
 0x17f   : > { %v1732_v12 = vcombine.low %v1708_v26, %v1724_v0  ;;  %v1733_v13 = vcombine.high %v1708_v26, %v1724_v0  ;;  %v1748_v14 = vcombine.low %v1715_v62, %v1731_v5  ;;  %v1749_v15 = vcombine.high %v1715_v62, %v1731_v5 }
 0x180   : > { %v1513_v17 = vcombine.high %v1353_v35, %v1449_v6  ;;  %v1564_v18 = vcombine.low %v8098_v37, %v1403_v11  ;;  %v1565_v19 = vcombine.high %v8098_v37, %v1403_v11  ;;  %v7205_v31 = vcombine.high %v1688_v23, %v1695_v61  ;;  %v8308_v35 = vpop.f32.mrb[10].mxu0 }
 0x181   : > { %v8292_v24 = vrot.slane %v1732_v12, %v8266_v28  ;;  %v8295_v25 = vrot.slane %v1733_v13, %v8266_v28  ;;  %v8298_v27 = vrot.slane %v1748_v14, %v8266_v28  ;;  %v8301_v29 = vrot.slane %v1749_v15, %v8266_v28  ;;  %v1355_v21 = vpop.permute.xlu0 %1354  ;;  %10139 = vst [vmem:[#allocation8_spill] sm:$0xff] %v8308_v35  ;;  %v8317_v43 = vpop.f32.mrb[11].mxu0 }
 0x182   : > { %v1520_v37 = vrot.slane %v1512_v16, %v8261_v20  ;;  %v1527_v32 = vrot.slane %v1513_v17, %v8261_v20  ;;  %v1572_v33 = vrot.slane %v1564_v18, %v8261_v20  ;;  %v1451_v34 = vpop.permute.xlu1 %1450  ;;  %v1579_v41 = vrot.slane %v1565_v19, %v8261_v20 }
 0x183   : > { %v1580_v61 = vcombine.low %v1355_v21, %v1451_v34  ;;  %v1581_v26 = vcombine.high %v1355_v21, %v1451_v34  ;;  %v8322_v0 = vrot.slane %v2720_v8, %v8261_v20  ;;  %v8331_v14 = vrot.slane %v7204_v9, %v8261_v20 }
 0x184   : > { %v1528_v48 = vcombine.low %v1504_v46, %v1520_v37  ;;  %v1529_v57 = vcombine.high %v1504_v46, %v1520_v37  ;;  %v1544_v59 = vcombine.low %v1511_v7, %v1527_v32  ;;  %v1545_v60 = vcombine.high %v1511_v7, %v1527_v32 }
 0x185   : > { %v1365_v62 = vpop.permute.xlu0 %1364  ;;  %10140 = vst [vmem:[#allocation9_spill] sm:$0xff] %v8322_v0  ;;  %v1588_v7 = vrot.slane %v1580_v61, %v8261_v20  ;;  %v1595_v13 = vrot.slane %v1581_v26, %v8261_v20  ;;  %10141 = vst [vmem:[#allocation10_spill] sm:$0xff] %v8331_v14  ;;  %v8334_v15 = vrot.slane %v2736_v10, %v8261_v20 }
 0x186   : > { %v1536_v5 = vrot.slane %v1528_v48, %v8266_v28  ;;  %v1543_v6 = vrot.slane %v1529_v57, %v8266_v28  ;;  %v1552_v11 = vrot.slane %v1544_v59, %v8266_v28  ;;  %v1559_v12 = vrot.slane %v1545_v60, %v8266_v28  ;;  %v1367_v46 = vpop.permute.xlu1 %1366 }
 0x187   : > { %10142 = vst [vmem:[#allocation11_spill] sm:$0xff] %v8334_v15  ;;  %v8337_v18 = vrot.slane %v7205_v31, %v8261_v20  ;;  %v1596_v19 = vcombine.low %v1572_v33, %v1588_v7  ;;  %v1597_v21 = vcombine.high %v1572_v33, %v1588_v7  ;;  %v1612_v37 = vcombine.low %v1579_v41, %v1595_v13 }
 0x188   : > { %v2584_v8 = vcombine.low %v1536_v5, %v1543_v6  ;;  %v7200_v16 = vcombine.high %v1536_v5, %v1543_v6  ;;  %v2600_v17 = vcombine.low %v1552_v11, %v1559_v12  ;;  %v1613_v32 = vcombine.high %v1579_v41, %v1595_v13 }
 0x189   : > { %10143 = vst [vmem:[#allocation12_spill] sm:$0xff] %v8337_v18  ;;  %v1413_v34 = vpop.permute.xlu0 %1412  ;;  %v7201_v48 = vcombine.high %v1552_v11, %v1559_v12  ;;  %v1604_v60 = vrot.slane %v1596_v19, %v8266_v28  ;;  %v1611_v61 = vrot.slane %v1597_v21, %v8266_v28  ;;  %v8347_v31 = vrot.slane %v1612_v37, %v8266_v28 }
 0x18a   : > { %v1904_v57 = vcombine.low %v8105_v40, %v1413_v34  ;;  %v1905_v9 = vcombine.high %v8105_v40, %v1413_v34  ;;  %v1415_v59 = vpop.permute.xlu1 %1414  ;;  %v8342_v10 = vrot.slane %v2584_v8, %v8261_v20  ;;  %v8350_v33 = vrot.slane %v1613_v32, %v8266_v28 }
 0x18b   : > { %v1972_v26 = vcombine.low %v8115_v44, %v1415_v59  ;;  %v1973_v40 = vcombine.high %v8115_v44, %v1415_v59  ;;  %v8356_v5 = vrot.slane %v7200_v16, %v8261_v20  ;;  %v2652_v6 = vcombine.low %v1604_v60, %v1611_v61 }
 0x18c   : > { %v1912_v41 = vrot.slane %v1904_v57, %v8261_v20  ;;  %v7202_v11 = vcombine.high %v1604_v60, %v1611_v61  ;;  %v1919_v7 = vrot.slane %v1905_v9, %v8261_v20  ;;  %v8365_v16 = vrot.slane %v2600_v17, %v8261_v20 }
 0x18d   : > { %v1461_v13 = vpop.permute.xlu0 %1460  ;;  %v1980_v19 = vrot.slane %v1972_v26, %v8261_v20  ;;  %v8368_v57 = vrot.slane %v7201_v48, %v8261_v20  ;;  %v1987_v59 = vrot.slane %v1973_v40, %v8261_v20  ;;  %v2616_v61 = vcombine.low %v8342_v10, %v8356_v5 }
 0x18e   : > { %v1920_v21 = vcombine.low %v1365_v62, %v1461_v13  ;;  %v1921_v37 = vcombine.high %v1365_v62, %v1461_v13  ;;  %v1463_v32 = vpop.permute.xlu1 %1462  ;;  %v8382_v48 = vrot.slane %v2652_v6, %v8261_v20 }
 0x18f   : > { %v1988_v44 = vcombine.low %v1367_v46, %v1463_v32  ;;  %v1989_v34 = vcombine.high %v1367_v46, %v1463_v32  ;;  %v2632_v17 = vcombine.low %v8365_v16, %v8368_v57  ;;  %v2624_v4 = vrot.slane %v2616_v61, %v8266_v28 }
 0x190   : > { %v1928_v9 = vrot.slane %v1920_v21, %v8261_v20  ;;  %v1935_v60 = vrot.slane %v1921_v37, %v8261_v20  ;;  %10144 = vst [vmem:[#allocation13_spill] sm:$0xff] %v8382_v48 }
 0x191   : > { %v1996_v62 = vrot.slane %v1988_v44, %v8261_v20  ;;  %v2003_v26 = vrot.slane %v1989_v34, %v8261_v20  ;;  %v8377_v46 = vpop.permute.xlu0 %1360 }
 0x192   : > { %v1936_v40 = vcombine.low %v1912_v41, %v1928_v9  ;;  %v1937_v13 = vcombine.high %v1912_v41, %v1928_v9  ;;  %v1952_v21 = vcombine.low %v1919_v7, %v1935_v60  ;;  %v1953_v32 = vcombine.high %v1919_v7, %v1935_v60  ;;  %v1363_v37 = vpop.permute.xlu1 %1362 }
 0x193   : > { %v2004_v23 = vcombine.low %v1980_v19, %v1996_v62  ;;  %v2005_v39 = vcombine.high %v1980_v19, %v1996_v62  ;;  %v2020_v38 = vcombine.low %v1987_v59, %v2003_v26  ;;  %v2021_v36 = vcombine.high %v1987_v59, %v2003_v26 }
 0x194   : > { %v8385_v44 = vrot.slane %v1936_v40, %v8266_v28  ;;  %v8388_v34 = vrot.slane %v1937_v13, %v8266_v28  ;;  %v8391_v3 = vrot.slane %v1952_v21, %v8266_v28  ;;  %v8394_v6 = vrot.slane %v1953_v32, %v8266_v28 }
 0x195   : > { %v2012_v41 = vrot.slane %v2004_v23, %v8266_v28  ;;  %v2019_v7 = vrot.slane %v2005_v39, %v8266_v28  ;;  %v8399_v19 = vrot.slane %v2020_v38, %v8266_v28  ;;  %v8402_v59 = vrot.slane %v2021_v36, %v8266_v28  ;;  %v1409_v9 = vpop.permute.xlu0 %1408  ;;  %v8413_v39 = vpop.f32.mrb[12].mxu0 }
 0x196   : > { %v1411_v40 = vpop.permute.xlu1 %1410  ;;  %v8411_v23 = vrot.slane %v7202_v11, %v8261_v20  ;;  %10145 = vst [vmem:[#allocation14_spill] sm:$0xff] %v8413_v39  ;;  %v8419_v32 = vpop.f32.mrb[13].mxu0  ;;  %v1768_v62 = vcombine.low %v8139_v50, %v1409_v9  ;;  %v1769_v26 = vcombine.high %v8139_v50, %v1409_v9 }
 0x197   : > { %v3060_v38 = vcombine.low %v2012_v41, %v2019_v7  ;;  %v7214_v13 = vcombine.high %v2012_v41, %v2019_v7  ;;  %v3076_v21 = vcombine.low %v8399_v19, %v8402_v59  ;;  %10146 = vst [vmem:[#allocation15_spill] sm:$0xff] %v8419_v32  ;;  %v1836_v60 = vcombine.low %v8142_v51, %v1411_v40  ;;  %v8425_v8 = vpop.f32.mrb[14].mxu0 }
 0x198   : > { %v1837_v11 = vcombine.high %v8142_v51, %v1411_v40  ;;  %10147 = vst [vmem:[#allocation16_spill] sm:$0xff] %v8425_v8  ;;  %v7215_v36 = vcombine.high %v8399_v19, %v8402_v59  ;;  %v1776_v50 = vrot.slane %v1768_v62, %v8261_v20  ;;  %v1783_v9 = vrot.slane %v1769_v26, %v8261_v20  ;;  %v8476_v39 = vpop.f32.mrb[15].mxu0 }
 0x199   : > { %v8428_v12 = vrot.slane %v3060_v38, %v8261_v20  ;;  %v8431_v41 = vrot.slane %v7214_v13, %v8261_v20  ;;  %v8434_v7 = vrot.slane %v3076_v21, %v8261_v20  ;;  %v1457_v52 = vpop.permute.xlu0 %1456  ;;  %v1844_v51 = vrot.slane %v1836_v60, %v8261_v20  ;;  %10155 = vst [vmem:[#allocation22_spill] sm:$0xff] %v8476_v39 }
 0x19a   : > { %v1851_v40 = vrot.slane %v1837_v11, %v8261_v20  ;;  %v1459_v38 = vpop.permute.xlu1 %1458  ;;  %v2640_v13 = vrot.slane %v2632_v17, %v8266_v28  ;;  %v10151_v21 = vcombine.low %v8347_v31, %v8350_v33  ;;  %v10153_v19 = vcombine.high %v8347_v31, %v8350_v33 }
 0x19b   : > { %10148 = vst [vmem:[#allocation17_spill] sm:$0xff] %v8428_v12  ;;  %10149 = vst [vmem:[#allocation18_spill] sm:$0xff] %v8431_v41  ;;  %v2684_v60 = vcombine.low %v8382_v48, %v8411_v23  ;;  %v1784_v61 = vcombine.low %v8377_v46, %v1457_v52  ;;  %v1785_v17 = vcombine.high %v8377_v46, %v1457_v52 }
 0x19c   : > { %10150 = vst [vmem:[#allocation19_spill] sm:$0xff] %v8434_v7  ;;  %v8448_v2 = vrot.slane %v10151_v21, %v8261_v20  ;;  %v8454_v59 = vrot.slane %v10153_v19, %v8261_v20  ;;  %v1852_v62 = vcombine.low %v1363_v37, %v1459_v38  ;;  %v2648_v26 = vcombine.low %v2624_v4, %v2640_v13 }
 0x19d   : > { %v2649_v21 = vcombine.high %v2624_v4, %v2640_v13  ;;  %v1853_v1 = vcombine.high %v1363_v37, %v1459_v38  ;;  %v8462_v63 = vpop.permute.xlu0 %1372  ;;  %v2692_v31 = vrot.slane %v2684_v60, %v8266_v28  ;;  %v1792_v33 = vrot.slane %v1784_v61, %v8261_v20 }
 0x19e   : > { %10152 = vst [vmem:[#allocation20_spill] sm:$0xff] %v8448_v2  ;;  %10154 = vst [vmem:[#allocation21_spill] sm:$0xff] %v8454_v59  ;;  %v2700_v11 = vcombine.low %v8448_v2, %v8454_v59  ;;  %v1799_v19 = vrot.slane %v1785_v17, %v8261_v20  ;;  %v1860_v8 = vrot.slane %v1852_v62, %v8261_v20  ;;  %v8468_v32 = vpop.permute.xlu1 %1374 }
 0x19f   : > { %v1867_v46 = vrot.slane %v1853_v1, %v8261_v20  ;;  %v2752_v4 = vcombine.low %v8322_v0, %v8331_v14  ;;  %v2768_v37 = vcombine.low %v8334_v15, %v8337_v18  ;;  %v1800_v38 = vcombine.low %v1776_v50, %v1792_v33 }
 0x1a0   : > { %v2708_v52 = vrot.slane %v2700_v11, %v8266_v28  ;;  %v1801_v13 = vcombine.high %v1776_v50, %v1792_v33  ;;  %v1816_v60 = vcombine.low %v1783_v9, %v1799_v19  ;;  %v1817_v61 = vcombine.high %v1783_v9, %v1799_v19 }
 0x1a1   : > { %v1868_v2 = vcombine.low %v1844_v51, %v1860_v8  ;;  %v1869_v59 = vcombine.high %v1844_v51, %v1860_v8  ;;  %v1421_v35 = vpop.permute.xlu0 %1420  ;;  %v1808_v11 = vrot.slane %v1800_v38, %v8266_v28  ;;  %v1885_v39 = vcombine.high %v1851_v40, %v1867_v46 }
 0x1a2   : > { %v2716_v17 = vcombine.low %v2692_v31, %v2708_v52  ;;  %v2717_v62 = vcombine.high %v2692_v31, %v2708_v52  ;;  %v1815_v1 = vrot.slane %v1801_v13, %v8266_v28  ;;  %v1824_v0 = vrot.slane %v1816_v60, %v8266_v28  ;;  %v1423_v15 = vpop.permute.xlu1 %1422 }
 0x1a3   : > { %v1831_v14 = vrot.slane %v1817_v61, %v8266_v28  ;;  %v1876_v9 = vrot.slane %v1868_v2, %v8266_v28  ;;  %v1883_v33 = vrot.slane %v1869_v59, %v8266_v28  ;;  %v1884_v13 = vcombine.low %v1851_v40, %v1867_v46 }
 0x1a4   : > { %v3672_v18 = vpack.c.bf16 %v2716_v17, %v2648_v26  ;;  %v3680_v50 = vpack.c.bf16 %v2717_v62, %v2649_v21  ;;  %v2856_v19 = vcombine.low %v1808_v11, %v1815_v1  ;;  %v7208_v31 = vcombine.high %v1808_v11, %v1815_v1 }
 0x1a5   : > { %v2872_v52 = vcombine.low %v1824_v0, %v1831_v14  ;;  %v7209_v8 = vcombine.high %v1824_v0, %v1831_v14  ;;  %v1469_v60 = vpop.permute.xlu0 %1468  ;;  %v8487_v61 = vrot.slane %v7215_v36, %v8261_v20  ;;  %v8499_v14 = vrot.slane %v1884_v13, %v8266_v28 }
 0x1a6   : > { %v6077_v51 = vsel %vm6072_vm2, %v3672_v18, 0  ;;  %v6144_v38 = vsel %vm6072_vm2, %v3680_v50, 0  ;;  %v8490_v2 = vrot.slane %v2856_v19, %v8261_v20  ;;  %v8493_v59 = vrot.slane %v7208_v31, %v8261_v20  ;;  %v1471_v26 = vpop.permute.xlu1 %1470 }
 0x1a7   : > { %10156 = vst [vmem:[#allocation23_spill] sm:$0xff] %v8487_v61  ;;  %7529 = vmatpush3.bf16.xpose.msra.mxu1 %v6077_v51  ;;  %7549 = vmatpush3.bf16.xpose.msra.mxu0 %v6144_v38  ;;  %v8496_v0 = vrot.slane %v2872_v52, %v8261_v20  ;;  %v8502_v18 = vrot.slane %v1885_v39, %v8266_v28  ;;  %v10159_v40 = vmov 0.0  }
 0x1a8   : > { %10157 = vst [vmem:[#allocation24_spill] sm:$0xff] %v8490_v2  ;;  %v2924_v36 = vcombine.low %v1876_v9, %v1883_v33  ;;  %7530 = vmatprep.subr.bf16.mxu1 %v10159_v40  ;;  %v7210_v21 = vcombine.high %v1876_v9, %v1883_v33  ;;  %7550 = vmatprep.subr.bf16.mxu0 %v10159_v40 }
 0x1a9   : > { %10158 = vst [vmem:[#allocation25_spill] sm:$0xff] %v8496_v0  ;;  %v2760_v46 = vrot.slane %v2752_v4, %v8266_v28  ;;  %v2776_v17 = vrot.slane %v2768_v37, %v8266_v28  ;;  %v10160_v62 = vcombine.low %v8292_v24, %v8295_v25  ;;  %v8515_v1 = vrot.slane %v7209_v8, %v8261_v20  ;;  %v8528_v9 = vpop.permute.xlu0 %1368 }
 0x1aa   : > { %v8518_v39 = vrot.slane %v2924_v36, %v8261_v20  ;;  %v2940_v50 = vcombine.low %v8499_v14, %v8502_v18  ;;  %v10164_v4 = vcombine.high %v8292_v24, %v8295_v25  ;;  %v8531_v33 = vrot.slane %v7210_v21, %v8261_v20  ;;  %v8547_v8 = vpop.permute.xlu1 %1370 }
 0x1ab   : > { %v8512_v11 = vrot.slane %v10160_v62, %v8261_v20  ;;  %10162 = vst [vmem:[#allocation27_spill] sm:$0xff] %v8515_v1  ;;  %v7211_v19 = vcombine.high %v8499_v14, %v8502_v18  ;;  %v10167_v31 = vcombine.low %v8298_v27, %v8301_v29  ;;  %v10169_v24 = vcombine.high %v8298_v27, %v8301_v29 }
 0x1ac   : > { %10163 = vst [vmem:[#allocation28_spill] sm:$0xff] %v8518_v39  ;;  %v8526_v37 = vrot.slane %v10164_v4, %v8261_v20  ;;  %10166 = vst [vmem:[#allocation30_spill] sm:$0xff] %v8531_v33  ;;  %v8550_v51 = vrot.slane %v2940_v50, %v8261_v20  ;;  %v2784_v38 = vcombine.low %v2760_v46, %v2776_v17 }
 0x1ad   : > { %10161 = vst [vmem:[#allocation26_spill] sm:$0xff] %v8512_v11  ;;  %v8539_v52 = vrot.slane %v10167_v31, %v8261_v20  ;;  %v8545_v25 = vrot.slane %v10169_v24, %v8261_v20  ;;  %v2785_v14 = vcombine.high %v2760_v46, %v2776_v17  ;;  %v2176_v36 = vcombine.low %v8153_v53, %v1421_v35  ;;  %v8563_v31 = vpop.permute.xlu0 %1416 }
 0x1ae   : > { %10165 = vst [vmem:[#allocation29_spill] sm:$0xff] %v8526_v37  ;;  %10171 = vst [vmem:[#allocation33_spill] sm:$0xff] %v8550_v51  ;;  %v2820_v13 = vcombine.low %v8512_v11, %v8526_v37  ;;  %v2177_v21 = vcombine.high %v8153_v53, %v1421_v35  ;;  %v2244_v27 = vcombine.low %v8160_v54, %v1423_v15 }
 0x1af   : > { %10168 = vst [vmem:[#allocation31_spill] sm:$0xff] %v8539_v52  ;;  %10170 = vst [vmem:[#allocation32_spill] sm:$0xff] %v8545_v25  ;;  %v2836_v18 = vcombine.low %v8539_v52, %v8545_v25  ;;  %v2245_v62 = vcombine.high %v8160_v54, %v1423_v15  ;;  %v2192_v50 = vcombine.low %v8462_v63, %v1469_v60 }
 0x1b0   : > { %v2828_v29 = vrot.slane %v2820_v13, %v8266_v28  ;;  %v2193_v4 = vcombine.high %v8462_v63, %v1469_v60  ;;  %v2184_v17 = vrot.slane %v2176_v36, %v8261_v20  ;;  %v2191_v24 = vrot.slane %v2177_v21, %v8261_v20  ;;  %v1419_v36 = vpop.permute.xlu1 %1418 }
 0x1b1   : > { %v2844_v46 = vrot.slane %v2836_v18, %v8266_v28  ;;  %v2252_v53 = vrot.slane %v2244_v27, %v8261_v20  ;;  %v2259_v35 = vrot.slane %v2245_v62, %v8261_v20  ;;  %v2200_v13 = vrot.slane %v2192_v50, %v8261_v20  ;;  %v8576_v37 = vpop.permute.xlu0 %1464 }
 0x1b2   : > { %v2207_v54 = vrot.slane %v2193_v4, %v8261_v20  ;;  %v2260_v15 = vcombine.low %v8468_v32, %v1471_v26  ;;  %v2261_v60 = vcombine.high %v8468_v32, %v1471_v26  ;;  %v2040_v18 = vcombine.low %v8175_v55, %v8563_v31 }
 0x1b3   : > { %v2852_v52 = vcombine.low %v2828_v29, %v2844_v46  ;;  %v2853_v63 = vcombine.high %v2828_v29, %v2844_v46  ;;  %v2208_v25 = vcombine.low %v2184_v17, %v2200_v13  ;;  %v2209_v21 = vcombine.high %v2184_v17, %v2200_v13 }
 0x1b4   : > { %v2224_v11 = vcombine.low %v2191_v24, %v2207_v54  ;;  %v2225_v27 = vcombine.high %v2191_v24, %v2207_v54  ;;  %v2268_v4 = vrot.slane %v2260_v15, %v8261_v20  ;;  %v2275_v48 = vrot.slane %v2261_v60, %v8261_v20 }
 0x1b5   : > { %v3673_v62 = vpack.c.bf16 %v2852_v52, %v2784_v38  ;;  %v3681_v50 = vpack.c.bf16 %v2853_v63, %v2785_v14  ;;  %v2216_v29 = vrot.slane %v2208_v25, %v8266_v28  ;;  %v2223_v32 = vrot.slane %v2209_v21, %v8266_v28 }
 0x1b6   : > { %v2232_v26 = vrot.slane %v2224_v11, %v8266_v28  ;;  %v2239_v46 = vrot.slane %v2225_v27, %v8266_v28  ;;  %v2276_v13 = vcombine.low %v2252_v53, %v2268_v4  ;;  %v2277_v54 = vcombine.high %v2252_v53, %v2268_v4  ;;  %v1467_v11 = vpop.permute.xlu1 %1466  ;;  %v8601_v4 = vpop.f32.mrb[16].mxu0 }
 0x1b7   : > { %v6080_v17 = vsel %vm6072_vm2, %v3673_v62, 0  ;;  %v6147_v24 = vsel %vm6072_vm2, %v3681_v50, 0  ;;  %v3264_v52 = vcombine.low %v2216_v29, %v2223_v32  ;;  %v7220_v38 = vcombine.high %v2216_v29, %v2223_v32  ;;  %v8599_v50 = vpop.permute.xlu0 %1380  ;;  %10173 = vst [vmem:[#allocation35_spill] sm:$0xff] %v8601_v4 }
 0x1b8   : > { %7531 = vmatpush3.bf16.xpose.msra.mxu1 %v6080_v17  ;;  %7551 = vmatpush3.bf16.xpose.msra.mxu0 %v6147_v24  ;;  %v3280_v14 = vcombine.low %v2232_v26, %v2239_v46  ;;  %v7221_v15 = vcombine.high %v2232_v26, %v2239_v46  ;;  %v2284_v25 = vrot.slane %v2276_v13, %v8266_v28 }
 0x1b9   : > { %v2291_v63 = vrot.slane %v2277_v54, %v8266_v28  ;;  %v2292_v60 = vcombine.low %v2259_v35, %v2275_v48  ;;  %7532 = vmatprep.subr.bf16.mxu1 %v10159_v40  ;;  %v8590_v21 = vrot.slane %v7211_v19, %v8261_v20  ;;  %v8593_v27 = vrot.slane %v3264_v52, %v8261_v20 }
 0x1ba   : > { %v8596_v53 = vrot.slane %v7220_v38, %v8261_v20  ;;  %v2293_v62 = vcombine.high %v2259_v35, %v2275_v48  ;;  %7552 = vmatprep.subr.bf16.mxu0 %v10159_v40  ;;  %v8604_v29 = vrot.slane %v3280_v14, %v8261_v20  ;;  %v8608_v46 = vrot.slane %v7221_v15, %v8261_v20 }
 0x1bb   : > { %10172 = vst [vmem:[#allocation34_spill] sm:$0xff] %v8590_v21  ;;  %v2300_v32 = vrot.slane %v2292_v60, %v8266_v28  ;;  %v3332_v19 = vcombine.low %v2284_v25, %v2291_v63  ;;  %v7222_v26 = vcombine.high %v2284_v25, %v2291_v63  ;;  %v2041_v48 = vcombine.high %v8175_v55, %v8563_v31 }
 0x1bc   : > { %v2307_v17 = vrot.slane %v2293_v62, %v8266_v28  ;;  %v2108_v35 = vcombine.low %v8178_v56, %v1419_v36  ;;  %v2048_v13 = vrot.slane %v2040_v18, %v8261_v20  ;;  %v2109_v54 = vcombine.high %v8178_v56, %v1419_v36  ;;  %v8631_v18 = vpop.permute.xlu1 %1382 }
 0x1bd   : > { %v8615_v24 = vrot.slane %v3332_v19, %v8261_v20  ;;  %v2888_v52 = vcombine.low %v8490_v2, %v8493_v59  ;;  %v8622_v38 = vrot.slane %v7222_v26, %v8261_v20  ;;  %v2055_v25 = vrot.slane %v2041_v48, %v8261_v20  ;;  %v8641_v19 = vpop.permute.xlu0 %1376 }
 0x1be   : > { %v3348_v14 = vcombine.low %v2300_v32, %v2307_v17  ;;  %v7223_v15 = vcombine.high %v2300_v32, %v2307_v17  ;;  %v2116_v55 = vrot.slane %v2108_v35, %v8261_v20  ;;  %v2904_v63 = vcombine.low %v8496_v0, %v8515_v1 }
 0x1bf   : > { %v2896_v31 = vrot.slane %v2888_v52, %v8266_v28  ;;  %v2956_v56 = vcombine.low %v8518_v39, %v8531_v33  ;;  %v2123_v60 = vrot.slane %v2109_v54, %v8261_v20  ;;  %v2972_v62 = vcombine.low %v8550_v51, %v8590_v21  ;;  %v8648_v52 = vpop.f32.mrb[17].mxu0 }
 0x1c0   : > { %v8634_v36 = vrot.slane %v3348_v14, %v8261_v20  ;;  %v2056_v32 = vcombine.low %v8528_v9, %v8576_v37  ;;  %v2912_v26 = vrot.slane %v2904_v63, %v8266_v28  ;;  %v2057_v48 = vcombine.high %v8528_v9, %v8576_v37  ;;  %10174 = vst [vmem:[#allocation36_spill] sm:$0xff] %v8648_v52  ;;  %v8656_v21 = vpop.f32.mrb[18].mxu0 }
 0x1c1   : > { %v2964_v17 = vrot.slane %v2956_v56, %v8266_v28  ;;  %v2124_v35 = vcombine.low %v8547_v8, %v1467_v11  ;;  %v8651_v54 = vrot.slane %v7223_v15, %v8261_v20  ;;  %v2980_v14 = vrot.slane %v2972_v62, %v8266_v28  ;;  %10175 = vst [vmem:[#allocation37_spill] sm:$0xff] %v8656_v21  ;;  %v8660_v9 = vpop.f32.mrb[19].mxu0 }
 0x1c2   : > { %v2064_v4 = vrot.slane %v2056_v32, %v8261_v20  ;;  %v2125_v51 = vcombine.high %v8547_v8, %v1467_v11  ;;  %v2920_v63 = vcombine.low %v2896_v31, %v2912_v26  ;;  %v2921_v56 = vcombine.high %v2896_v31, %v2912_v26  ;;  %10176 = vst [vmem:[#allocation38_spill] sm:$0xff] %v8660_v9  ;;  %v8663_v8 = vpop.permute.xlu1 %1378 }
 0x1c3   : > { %v2071_v39 = vrot.slane %v2057_v48, %v8261_v20  ;;  %v2132_v37 = vrot.slane %v2124_v35, %v8261_v20  ;;  %v2988_v52 = vcombine.low %v2964_v17, %v2980_v14  ;;  %v2989_v33 = vcombine.high %v2964_v17, %v2980_v14  ;;  %v1425_v48 = vpop.permute.xlu0 %1424 }
 0x1c4   : > { %v2072_v15 = vcombine.low %v2048_v13, %v2064_v4  ;;  %v2073_v0 = vcombine.high %v2048_v13, %v2064_v4  ;;  %v2139_v32 = vrot.slane %v2125_v51, %v8261_v20 }
 0x1c5   : > { %v2088_v1 = vcombine.low %v2055_v25, %v2071_v39  ;;  %v2089_v62 = vcombine.high %v2055_v25, %v2071_v39  ;;  %v2140_v2 = vcombine.low %v2116_v55, %v2132_v37  ;;  %v3674_v11 = vpack.c.bf16 %v2988_v52, %v2920_v63 }
 0x1c6   : > { %v3682_v21 = vpack.c.bf16 %v2989_v33, %v2921_v56  ;;  %v2080_v31 = vrot.slane %v2072_v15, %v8266_v28  ;;  %v2087_v26 = vrot.slane %v2073_v0, %v8266_v28  ;;  %v2141_v14 = vcombine.high %v2116_v55, %v2132_v37 }
 0x1c7   : > { %v2096_v35 = vrot.slane %v2088_v1, %v8266_v28  ;;  %v2103_v17 = vrot.slane %v2089_v62, %v8266_v28  ;;  %v2148_v4 = vrot.slane %v2140_v2, %v8266_v28  ;;  %v6083_v39 = vsel %vm6072_vm2, %v3674_v11, 0  ;;  %v1427_v11 = vpop.permute.xlu1 %1426 }
 0x1c8   : > { %v6150_v51 = vsel %vm6072_vm2, %v3682_v21, 0  ;;  %v3128_v13 = vcombine.low %v2080_v31, %v2087_v26  ;;  %v7216_v25 = vcombine.high %v2080_v31, %v2087_v26  ;;  %7533 = vmatpush3.bf16.xpose.msra.mxu1 %v6083_v39  ;;  %v2155_v0 = vrot.slane %v2141_v14, %v8266_v28  ;;  %v1473_v14 = vpop.permute.xlu0 %1472 }
 0x1c9   : > { %7553 = vmatpush3.bf16.xpose.msra.mxu0 %v6150_v51  ;;  %v3144_v33 = vcombine.low %v2096_v35, %v2103_v17  ;;  %v7217_v52 = vcombine.high %v2096_v35, %v2103_v17  ;;  %v2156_v1 = vcombine.low %v2123_v60, %v2139_v32  ;;  %v2157_v56 = vcombine.high %v2123_v60, %v2139_v32 }
 0x1ca   : > { %v8674_v63 = vrot.slane %v3128_v13, %v8261_v20  ;;  %7534 = vmatprep.subr.bf16.mxu1 %v10159_v40  ;;  %v10177_v2 = vcombine.low %v8385_v44, %v8388_v34  ;;  %v8684_v55 = vrot.slane %v7216_v25, %v8261_v20  ;;  %v3196_v15 = vcombine.low %v2148_v4, %v2155_v0 }
 0x1cb   : > { %v8687_v37 = vrot.slane %v3144_v33, %v8261_v20  ;;  %v7218_v62 = vcombine.high %v2148_v4, %v2155_v0  ;;  %7554 = vmatprep.subr.bf16.mxu0 %v10159_v40  ;;  %v8691_v60 = vrot.slane %v2156_v1, %v8266_v28  ;;  %v8694_v32 = vrot.slane %v2157_v56, %v8266_v28  ;;  %v1475_v9 = vpop.permute.xlu1 %1474 }
 0x1cc   : > { %v8681_v21 = vrot.slane %v10177_v2, %v8261_v20  ;;  %v10179_v31 = vcombine.high %v8385_v44, %v8388_v34  ;;  %v10180_v35 = vcombine.low %v8391_v3, %v8394_v6  ;;  %v8709_v4 = vrot.slane %v7217_v52, %v8261_v20 }
 0x1cd   : > { %10178 = vst [vmem:[#allocation39_spill] sm:$0xff] %v8687_v37  ;;  %v8712_v39 = vrot.slane %v3196_v15, %v8261_v20  ;;  %v10183_v51 = vcombine.high %v8391_v3, %v8394_v6  ;;  %v3092_v34 = vcombine.low %v8428_v12, %v8431_v41  ;;  %v8723_v13 = vrot.slane %v7218_v62, %v8261_v20 }
 0x1ce   : > { %v8700_v26 = vrot.slane %v10179_v31, %v8261_v20  ;;  %v8706_v17 = vrot.slane %v10180_v35, %v8261_v20  ;;  %10181 = vst [vmem:[#allocation40_spill] sm:$0xff] %v8709_v4  ;;  %v3212_v25 = vcombine.low %v8691_v60, %v8694_v32  ;;  %v3108_v52 = vcombine.low %v8434_v7, %v8487_v61 }
 0x1cf   : > { %10182 = vst [vmem:[#allocation41_spill] sm:$0xff] %v8712_v39  ;;  %v8718_v44 = vrot.slane %v10183_v51, %v8261_v20  ;;  %10184 = vst [vmem:[#allocation42_spill] sm:$0xff] %v8723_v13  ;;  %v3100_v6 = vrot.slane %v3092_v34, %v8266_v28  ;;  %v2312_v0 = vcombine.low %v8118_v45, %v1425_v48 }
 0x1d0   : > { %v3024_v33 = vcombine.low %v8681_v21, %v8700_v26  ;;  %v2313_v1 = vcombine.high %v8118_v45, %v1425_v48  ;;  %v8737_v56 = vrot.slane %v3212_v25, %v8261_v20  ;;  %v7219_v2 = vcombine.high %v8691_v60, %v8694_v32  ;;  %v1429_v60 = vpop.permute.xlu0 %1428 }
 0x1d1   : > { %v3040_v3 = vcombine.low %v8706_v17, %v8718_v44  ;;  %v3116_v62 = vrot.slane %v3108_v52, %v8266_v28  ;;  %v2320_v35 = vrot.slane %v2312_v0, %v8261_v20  ;;  %v2380_v34 = vcombine.low %v8128_v49, %v1427_v11 }
 0x1d2   : > { %10185 = vst [vmem:[#allocation43_spill] sm:$0xff] %v8737_v56  ;;  %v3032_v15 = vrot.slane %v3024_v33, %v8266_v28  ;;  %v2327_v51 = vrot.slane %v2313_v1, %v8261_v20  ;;  %v2381_v25 = vcombine.high %v8128_v49, %v1427_v11  ;;  %v2328_v7 = vcombine.low %v8641_v19, %v1473_v14 }
 0x1d3   : > { %v3048_v31 = vrot.slane %v3040_v3, %v8266_v28  ;;  %v3124_v45 = vcombine.low %v3100_v6, %v3116_v62  ;;  %v3125_v48 = vcombine.high %v3100_v6, %v3116_v62  ;;  %v2388_v52 = vrot.slane %v2380_v34, %v8261_v20 }
 0x1d4   : > { %v2329_v3 = vcombine.high %v8641_v19, %v1473_v14  ;;  %v2395_v0 = vrot.slane %v2381_v25, %v8261_v20  ;;  %v2336_v1 = vrot.slane %v2328_v7, %v8261_v20  ;;  %v2396_v61 = vcombine.low %v8663_v8, %v1475_v9 }
 0x1d5   : > { %v3056_v32 = vcombine.low %v3032_v15, %v3048_v31  ;;  %v3057_v33 = vcombine.high %v3032_v15, %v3048_v31  ;;  %v2397_v12 = vcombine.high %v8663_v8, %v1475_v9  ;;  %v2448_v11 = vcombine.low %v8112_v42, %v1429_v60 }
 0x1d6   : > { %v2343_v49 = vrot.slane %v2329_v3, %v8261_v20  ;;  %v2344_v41 = vcombine.low %v2320_v35, %v2336_v1  ;;  %v2345_v15 = vcombine.high %v2320_v35, %v2336_v1  ;;  %v2404_v31 = vrot.slane %v2396_v61, %v8261_v20  ;;  %v1431_v1 = vpop.permute.xlu1 %1430 }
 0x1d7   : > { %v3675_v6 = vpack.c.bf16 %v3124_v45, %v3056_v32  ;;  %v3683_v62 = vpack.c.bf16 %v3125_v48, %v3057_v33  ;;  %v2411_v19 = vrot.slane %v2397_v12, %v8261_v20 }
 0x1d8   : > { %v2360_v34 = vcombine.low %v2327_v51, %v2343_v49  ;;  %v2361_v25 = vcombine.high %v2327_v51, %v2343_v49  ;;  %v2352_v9 = vrot.slane %v2344_v41, %v8266_v28  ;;  %v2359_v8 = vrot.slane %v2345_v15, %v8266_v28 }
 0x1d9   : > { %v6086_v14 = vsel %vm6072_vm2, %v3675_v6, 0  ;;  %v6153_v7 = vsel %vm6072_vm2, %v3683_v62, 0  ;;  %v2412_v45 = vcombine.low %v2388_v52, %v2404_v31  ;;  %v2413_v61 = vcombine.high %v2388_v52, %v2404_v31 }
 0x1da   : > { %7535 = vmatpush3.bf16.xpose.msra.mxu1 %v6086_v14  ;;  %7555 = vmatpush3.bf16.xpose.msra.mxu0 %v6153_v7  ;;  %v2368_v48 = vrot.slane %v2360_v34, %v8266_v28  ;;  %v2375_v35 = vrot.slane %v2361_v25, %v8266_v28  ;;  %v2428_v32 = vcombine.low %v2395_v0, %v2411_v19 }
 0x1db   : > { %7536 = vmatprep.subr.bf16.mxu1 %v10159_v40  ;;  %v3400_v12 = vcombine.low %v2352_v9, %v2359_v8  ;;  %v7224_v33 = vcombine.high %v2352_v9, %v2359_v8  ;;  %v2420_v3 = vrot.slane %v2412_v45, %v8266_v28  ;;  %v2429_v51 = vcombine.high %v2395_v0, %v2411_v19 }
 0x1dc   : > { %7556 = vmatprep.subr.bf16.mxu0 %v10159_v40  ;;  %v3416_v41 = vcombine.low %v2368_v48, %v2375_v35  ;;  %v7225_v6 = vcombine.high %v2368_v48, %v2375_v35  ;;  %v2427_v62 = vrot.slane %v2413_v61, %v8266_v28  ;;  %v8770_v49 = vrot.slane %v2428_v32, %v8266_v28  ;;  %v1477_v35 = vpop.permute.xlu0 %1476 }
 0x1dd   : > { %v8773_v52 = vrot.slane %v7219_v2, %v8261_v20  ;;  %v8776_v15 = vrot.slane %v3400_v12, %v8261_v20  ;;  %v8779_v31 = vrot.slane %v2429_v51, %v8266_v28  ;;  %v2449_v0 = vcombine.high %v8112_v42, %v1429_v60 }
 0x1de   : > { %v8783_v19 = vrot.slane %v7224_v33, %v8261_v20  ;;  %v8786_v14 = vrot.slane %v3416_v41, %v8261_v20  ;;  %v3468_v7 = vcombine.low %v2420_v3, %v2427_v62  ;;  %v7226_v34 = vcombine.high %v2420_v3, %v2427_v62  ;;  %v1479_v33 = vpop.permute.xlu1 %1478 }
 0x1df   : > { %10186 = vst [vmem:[#allocation44_spill] sm:$0xff] %v8773_v52  ;;  %v8789_v25 = vrot.slane %v7225_v6, %v8261_v20  ;;  %v3484_v2 = vcombine.low %v8770_v49, %v8779_v31  ;;  %v7227_v9 = vcombine.high %v8770_v49, %v8779_v31  ;;  %v2456_v8 = vrot.slane %v2448_v11, %v8261_v20 }
 0x1e0   : > { %10187 = vst [vmem:[#allocation45_spill] sm:$0xff] %v8786_v14  ;;  %v8797_v42 = vrot.slane %v3468_v7, %v8261_v20  ;;  %v2463_v60 = vrot.slane %v2449_v0, %v8261_v20  ;;  %v2516_v45 = vcombine.low %v8123_v47, %v1431_v1  ;;  %v2517_v48 = vcombine.high %v8123_v47, %v1431_v1 }
 0x1e1   : > { %v8803_v61 = vrot.slane %v7226_v34, %v8261_v20  ;;  %v8806_v32 = vrot.slane %v3484_v2, %v8261_v20  ;;  %v3160_v12 = vcombine.low %v8674_v63, %v8684_v55  ;;  %v3176_v11 = vcombine.low %v8687_v37, %v8709_v4 }
 0x1e2   : > { %10188 = vst [vmem:[#allocation46_spill] sm:$0xff] %v8797_v42  ;;  %v2524_v3 = vrot.slane %v2516_v45, %v8261_v20  ;;  %v2531_v51 = vrot.slane %v2517_v48, %v8261_v20  ;;  %v3228_v47 = vcombine.low %v8712_v39, %v8723_v13  ;;  %v3244_v1 = vcombine.low %v8737_v56, %v8773_v52 }
 0x1e3   : > { %10189 = vst [vmem:[#allocation47_spill] sm:$0xff] %v8803_v61  ;;  %v3168_v41 = vrot.slane %v3160_v12, %v8266_v28  ;;  %v3184_v6 = vrot.slane %v3176_v11, %v8266_v28  ;;  %v2464_v62 = vcombine.low %v8599_v50, %v1477_v35  ;;  %v2465_v49 = vcombine.high %v8599_v50, %v1477_v35 }
 0x1e4   : > { %v3236_v31 = vrot.slane %v3228_v47, %v8266_v28  ;;  %v3252_v0 = vrot.slane %v3244_v1, %v8266_v28  ;;  %v2532_v7 = vcombine.low %v8631_v18, %v1479_v33  ;;  %v2533_v34 = vcombine.high %v8631_v18, %v1479_v33 }
 0x1e5   : > { %v3192_v2 = vcombine.low %v3168_v41, %v3184_v6  ;;  %v3193_v45 = vcombine.high %v3168_v41, %v3184_v6  ;;  %v2472_v48 = vrot.slane %v2464_v62, %v8261_v20  ;;  %v2479_v12 = vrot.slane %v2465_v49, %v8261_v20 }
 0x1e6   : > { %v3260_v56 = vcombine.low %v3236_v31, %v3252_v0  ;;  %v3261_v11 = vcombine.high %v3236_v31, %v3252_v0  ;;  %v2540_v52 = vrot.slane %v2532_v7, %v8261_v20  ;;  %v2547_v50 = vrot.slane %v2533_v34, %v8261_v20 }
 0x1e7   : > { %v2480_v35 = vcombine.low %v2456_v8, %v2472_v48  ;;  %v2481_v47 = vcombine.high %v2456_v8, %v2472_v48  ;;  %v2496_v39 = vcombine.low %v2463_v60, %v2479_v12  ;;  %v2497_v1 = vcombine.high %v2463_v60, %v2479_v12 }
 0x1e8   : > { %v3676_v13 = vpack.c.bf16 %v3260_v56, %v3192_v2  ;;  %v3684_v37 = vpack.c.bf16 %v3261_v11, %v3193_v45  ;;  %v2548_v4 = vcombine.low %v2524_v3, %v2540_v52  ;;  %v2549_v18 = vcombine.high %v2524_v3, %v2540_v52  ;;  %v1188_v56 = vpop.permute.xlu0 %1187  ;;  %v1191_v45 = vpop.permute.xlu1 %1190 }
 0x1e9   : > { %v2488_v33 = vrot.slane %v2480_v35, %v8266_v28  ;;  %v2495_v41 = vrot.slane %v2481_v47, %v8266_v28  ;;  %v2504_v6 = vrot.slane %v2496_v39, %v8266_v28  ;;  %v2511_v62 = vrot.slane %v2497_v1, %v8266_v28 }
 0x1ea   : > { %v6089_v49 = vsel %vm6072_vm2, %v3676_v13, 0  ;;  %v6156_v31 = vsel %vm6072_vm2, %v3684_v37, 0  ;;  %v2556_v8 = vrot.slane %v2548_v4, %v8266_v28  ;;  %v2563_v60 = vrot.slane %v2549_v18, %v8266_v28 }
 0x1eb   : > { %7537 = vmatpush3.bf16.xpose.msra.mxu1 %v6089_v49  ;;  %7557 = vmatpush3.bf16.xpose.msra.mxu0 %v6156_v31  ;;  %v3536_v52 = vcombine.low %v2488_v33, %v2495_v41  ;;  %v7228_v3 = vcombine.high %v2488_v33, %v2495_v41  ;;  %v3552_v0 = vcombine.low %v2504_v6, %v2511_v62 }
 0x1ec   : > { %v7229_v7 = vcombine.high %v2504_v6, %v2511_v62  ;;  %v2564_v34 = vcombine.low %v2531_v51, %v2547_v50  ;;  %v2565_v2 = vcombine.high %v2531_v51, %v2547_v50  ;;  %v3604_v39 = vcombine.low %v2556_v8, %v2563_v60  ;;  %7538 = vmatprep.subr.bf16.mxu1 %v10159_v40  ;;  %v1194_v62 = vpop.permute.xlu0 %1193 }
 0x1ed   : > { %v8840_v13 = vrot.slane %v7227_v9, %v8261_v20  ;;  %v8843_v37 = vrot.slane %v3536_v52, %v8261_v20  ;;  %v8846_v4 = vrot.slane %v7228_v3, %v8261_v20  ;;  %v7230_v48 = vcombine.high %v2556_v8, %v2563_v60  ;;  %7558 = vmatprep.subr.bf16.mxu0 %v10159_v40 }
 0x1ee   : > { %v8850_v12 = vrot.slane %v3552_v0, %v8261_v20  ;;  %v8853_v51 = vrot.slane %v7229_v7, %v8261_v20  ;;  %v2572_v11 = vrot.slane %v2564_v34, %v8266_v28  ;;  %v2579_v9 = vrot.slane %v2565_v2, %v8266_v28 }
 0x1ef   : > { %v8858_v50 = vrot.slane %v3604_v39, %v8261_v20  ;;  %v1196_v35 = vcombine.low %v8218_v58, %v1191_v45  ;;  %v1197_v47 = vcombine.high %v8218_v58, %v1191_v45  ;;  %v3296_v1 = vcombine.low %v8593_v27, %v8596_v53 }
 0x1f0   : > { %v8865_v18 = vrot.slane %v7230_v48, %v8261_v20  ;;  %v3620_v33 = vcombine.low %v2572_v11, %v2579_v9  ;;  %v3312_v41 = vcombine.low %v8604_v29, %v8608_v46  ;;  %v3364_v6 = vcombine.low %v8615_v24, %v8622_v38 }
 0x1f1   : > { %v7231_v49 = vcombine.high %v2572_v11, %v2579_v9  ;;  %v1204_v31 = vrot.slane %v1196_v35, %v8261_v20  ;;  %v3304_v8 = vrot.slane %v3296_v1, %v8266_v28  ;;  %v3380_v58 = vcombine.low %v8634_v36, %v8651_v54 }
 0x1f2   : > { %v8876_v60 = vrot.slane %v3620_v33, %v8261_v20  ;;  %v1211_v52 = vrot.slane %v1197_v47, %v8261_v20  ;;  %v3320_v3 = vrot.slane %v3312_v41, %v8266_v28  ;;  %v3372_v0 = vrot.slane %v3364_v6, %v8266_v28 }
 0x1f3   : > { %v3388_v7 = vrot.slane %v3380_v58, %v8266_v28  ;;  %v1212_v34 = vcombine.low %v1188_v56, %v1194_v62  ;;  %v1213_v2 = vcombine.high %v1188_v56, %v1194_v62  ;;  %v3432_v39 = vcombine.low %v8776_v15, %v8783_v19 }
 0x1f4   : > { %v3328_v45 = vcombine.low %v3304_v8, %v3320_v3  ;;  %v3329_v48 = vcombine.high %v3304_v8, %v3320_v3  ;;  %v3448_v11 = vcombine.low %v8786_v14, %v8789_v25  ;;  %v3500_v9 = vcombine.low %v8797_v42, %v8803_v61 }
 0x1f5   : > { %v3396_v35 = vcombine.low %v3372_v0, %v3388_v7  ;;  %v3397_v47 = vcombine.high %v3372_v0, %v3388_v7  ;;  %v1220_v1 = vrot.slane %v1212_v34, %v8261_v20  ;;  %v1227_v33 = vrot.slane %v1213_v2, %v8261_v20 }
 0x1f6   : > { %v3440_v41 = vrot.slane %v3432_v39, %v8266_v28  ;;  %v3456_v56 = vrot.slane %v3448_v11, %v8266_v28  ;;  %v3508_v6 = vrot.slane %v3500_v9, %v8266_v28  ;;  %v3516_v62 = vcombine.low %v8806_v32, %v8840_v13 }
 0x1f7   : > { %v3677_v8 = vpack.c.bf16 %v3396_v35, %v3328_v45  ;;  %v3685_v58 = vpack.c.bf16 %v3397_v47, %v3329_v48  ;;  %v1228_v3 = vcombine.low %v1204_v31, %v1220_v1  ;;  %v1229_v14 = vcombine.high %v1204_v31, %v1220_v1 }
 0x1f8   : > { %v1244_v42 = vcombine.low %v1211_v52, %v1227_v33  ;;  %v1245_v61 = vcombine.high %v1211_v52, %v1227_v33  ;;  %v3464_v0 = vcombine.low %v3440_v41, %v3456_v56  ;;  %v3524_v7 = vrot.slane %v3516_v62, %v8266_v28 }
 0x1f9   : > { %v6092_v34 = vsel %vm6072_vm2, %v3677_v8, 0  ;;  %v6159_v2 = vsel %vm6072_vm2, %v3685_v58, 0  ;;  %v1236_v39 = vrot.slane %v1228_v3, %v8266_v28  ;;  %v1243_v11 = vrot.slane %v1229_v14, %v8266_v28 }
 0x1fa   : > { %7539 = vmatpush3.bf16.xpose.msra.mxu1 %v6092_v34  ;;  %7559 = vmatpush3.bf16.xpose.msra.mxu0 %v6159_v2  ;;  %v1252_v45 = vrot.slane %v1244_v42, %v8266_v28  ;;  %v1259_v48 = vrot.slane %v1245_v61, %v8266_v28  ;;  %v3532_v31 = vcombine.low %v3508_v6, %v3524_v7  ;;  %v8916_v61 = vld [vmem:[%s10061_s10] ss:$0 sm:$0xff]  ;;  %v10198_v34 = vld [vmem:[#allocation12_spill] sm:$0xff] }
 0x1fb   : > { %v1264_v9 = vcombine.low %v1236_v39, %v1243_v11  ;;  %v7198_v52 = vcombine.high %v1236_v39, %v1243_v11  ;;  %7540 = vmatprep.subr.bf16.mxu1 %v10159_v40  ;;  %7560 = vmatprep.subr.bf16.mxu0 %v10159_v40  ;;  %v3465_v35 = vcombine.high %v3440_v41, %v3456_v56 }
 0x1fc   : > { %v1280_v47 = vcombine.low %v1252_v45, %v1259_v48  ;;  %v7199_v1 = vcombine.high %v1252_v45, %v1259_v48  ;;  %v3678_v33 = vpack.c.bf16 %v3532_v31, %v3464_v0  ;;  %v3533_v62 = vcombine.high %v3508_v6, %v3524_v7 }
 0x1fd   : > { %v8905_v14 = vrot.slane %v7231_v49, %v8261_v20  ;;  %v8908_v8 = vrot.slane %v1264_v9, %v8261_v20  ;;  %v8911_v42 = vrot.slane %v7198_v52, %v8261_v20  ;;  %v8920_v41 = vadd.f32 %v8916_v61, %v8303_v30 }
 0x1fe   : > { %v8923_v56 = vrot.slane %v1280_v47, %v8261_v20  ;;  %v8926_v49 = vrot.slane %v7199_v1, %v8261_v20  ;;  %v3686_v6 = vpack.c.bf16 %v3533_v62, %v3465_v35  ;;  %v6095_v0 = vsel %vm6072_vm2, %v3678_v33, 0 }
 0x1ff   : > { %10190 = vst [vmem:[#allocation48_spill] sm:$0xff] %v8920_v41  ;;  %v1296_v58 = vcombine.low %v8908_v8, %v8911_v42  ;;  %v8935_v7 = vadd.f32 %v8916_v61, %v8317_v43  ;;  %3728 = vrot.lane.b32.xlu1 %v8920_v41, %s7810_s2  ;;  %v3568_v39 = vcombine.low %v8843_v37, %v8846_v4 }
 0x200   : > { %v1312_v30 = vcombine.low %v8923_v56, %v8926_v49  ;;  %v6162_v2 = vsel %vm6072_vm2, %v3686_v6, 0  ;;  %v3584_v43 = vcombine.low %v8850_v12, %v8853_v51  ;;  %v3636_v11 = vcombine.low %v8858_v50, %v8865_v18 }
 0x201   : > { %10191 = vst [vmem:[#allocation49_spill] sm:$0xff] %v8935_v7  ;;  %3730 = vrot.lane.b32.xlu0 %v8935_v7, %s7810_s2  ;;  %v3652_v45 = vcombine.low %v8876_v60, %v8905_v14  ;;  %v3576_v48 = vrot.slane %v3568_v39, %v8266_v28  ;;  %v2617_v31 = vcombine.high %v8342_v10, %v8356_v5 }
 0x202   : > { %7541 = vmatpush3.bf16.xpose.msra.mxu1 %v6095_v0  ;;  %7561 = vmatpush3.bf16.xpose.msra.mxu0 %v6162_v2  ;;  %v3592_v9 = vrot.slane %v3584_v43, %v8266_v28  ;;  %v3644_v52 = vrot.slane %v3636_v11, %v8266_v28  ;;  %v1304_v47 = vrot.slane %v1296_v58, %v8266_v28  ;;  %v10192_v2 = vld [vmem:[#allocation13_spill] sm:$0xff]  ;;  %v10193_v43 = vld [vmem:[#allocation8_spill] sm:$0xff] }
 0x203   : > { %7542 = vmatprep.subr.bf16.mxu1 %v10159_v40  ;;  %7562 = vmatprep.subr.bf16.mxu0 %v10159_v40  ;;  %v3660_v35 = vrot.slane %v3652_v45, %v8266_v28  ;;  %v1320_v1 = vrot.slane %v1312_v30, %v8266_v28  ;;  %v2633_v10 = vcombine.high %v8365_v16, %v8368_v57  ;;  %v10194_v45 = vld [vmem:[#allocation21_spill] sm:$0xff] }
 0x204   : > { %3776 = vrot.lane.b32.xlu1 %v8920_v41, %s7811_s30  ;;  %v3600_v5 = vcombine.low %v3576_v48, %v3592_v9  ;;  %v3601_v62 = vcombine.high %v3576_v48, %v3592_v9  ;;  %v8972_v0 = vadd.f32 %v8916_v61, %v8289_v22  ;;  %v2631_v58 = vrot.slane %v2617_v31, %v8266_v28  ;;  %v10195_v48 = vld [vmem:[#allocation20_spill] sm:$0xff]  ;;  %v10196_v31 = vld [vmem:[#allocation10_spill] sm:$0xff] }
 0x205   : > { %v3668_v33 = vcombine.low %v3644_v52, %v3660_v35  ;;  %v3669_v6 = vcombine.high %v3644_v52, %v3660_v35  ;;  %3778 = vrot.lane.b32.xlu0 %v8935_v7, %s7811_s30  ;;  %v2647_v30 = vrot.slane %v2633_v10, %v8266_v28  ;;  %v2685_v39 = vcombine.high %v10192_v2, %v8411_v23  ;;  %v10197_v35 = vld [vmem:[#allocation9_spill] sm:$0xff]  ;;  %v10199_v23 = vld [vmem:[#allocation11_spill] sm:$0xff] }
 0x206   : > { %v8980_v16 = vadd.f32 %v8916_v61, %v10193_v43  ;;  %v2701_v9 = vcombine.high %v10195_v48, %v10194_v45  ;;  %v1328_v52 = vcombine.low %v1304_v47, %v1320_v1  ;;  %v2753_v10 = vcombine.high %v10197_v35, %v10196_v31  ;;  %v10202_v48 = vld [vmem:[#allocation32_spill] sm:$0xff]  ;;  %v10203_v31 = vld [vmem:[#allocation31_spill] sm:$0xff] }
 0x207   : > { %v3679_v57 = vpack.c.bf16 %v3668_v33, %v3600_v5  ;;  %v3687_v11 = vpack.c.bf16 %v3669_v6, %v3601_v62  ;;  %v2699_v22 = vrot.slane %v2685_v39, %v8266_v28  ;;  %v2769_v2 = vcombine.high %v10199_v23, %v10198_v34  ;;  %v10200_v6 = vld [vmem:[#allocation29_spill] sm:$0xff]  ;;  %v10201_v39 = vld [vmem:[#allocation26_spill] sm:$0xff] }
 0x208   : > { %3824 = vrot.lane.b32.xlu1 %v8920_v41, %s7812_s5  ;;  %v1329_v3 = vcombine.high %v1304_v47, %v1320_v1  ;;  %v2715_v33 = vrot.slane %v2701_v9, %v8266_v28  ;;  %v2650_v62 = vcombine.low %v2631_v58, %v2647_v30  ;;  %v2821_v45 = vcombine.high %v10201_v39, %v10200_v6  ;;  %v10209_v41 = vld [vmem:[#allocation34_spill] sm:$0xff] }
 0x209   : > { %v6098_v43 = vsel %vm6072_vm2, %v3679_v57, 0  ;;  %v6165_v5 = vsel %vm6072_vm2, %v3687_v11, 0  ;;  %3826 = vrot.lane.b32.xlu0 %v8935_v7, %s7812_s5  ;;  %v2837_v35 = vcombine.high %v10203_v31, %v10202_v48  ;;  %v2651_v47 = vcombine.high %v2631_v58, %v2647_v30  ;;  %v10204_v30 = vld [vmem:[#allocation24_spill] sm:$0xff]  ;;  %v10206_v48 = vld [vmem:[#allocation25_spill] sm:$0xff] }
 0x20a   : > { %7543 = vmatpush3.bf16.xpose.msra.mxu1 %v6098_v43  ;;  %7563 = vmatpush3.bf16.xpose.msra.mxu0 %v6165_v5  ;;  %v2718_v34 = vcombine.low %v2699_v22, %v2715_v33  ;;  %v2719_v1 = vcombine.high %v2699_v22, %v2715_v33  ;;  %v2767_v57 = vrot.slane %v2753_v10, %v8266_v28  ;;  %v10205_v33 = vld [vmem:[#allocation27_spill] sm:$0xff]  ;;  %v10208_v7 = vld [vmem:[#allocation28_spill] sm:$0xff] }
 0x20b   : > { %7568 = vmatprep.subr.bf16.mxu1 %v10159_v40  ;;  %7588 = vmatprep.subr.bf16.mxu0 %v10159_v40  ;;  %v2783_v11 = vrot.slane %v2769_v2, %v8266_v28  ;;  %v2835_v9 = vrot.slane %v2821_v45, %v8266_v28  ;;  %v2851_v23 = vrot.slane %v2837_v35, %v8266_v28  ;;  %v10207_v2 = vld [vmem:[#allocation30_spill] sm:$0xff]  ;;  %v10210_v35 = vld [vmem:[#allocation33_spill] sm:$0xff] }
 0x20c   : > { %3732 = vrot.lane.b32.xlu1 %v8972_v0, %s7810_s2  ;;  %v1332_v43 = vpack.c.bf16 %v1328_v52, %v1328_v52  ;;  %v1333_v5 = vpack.c.bf16 %v1329_v3, %v1329_v3  ;;  %v3688_v6 = vpack.c.bf16 %v2718_v34, %v2650_v62  ;;  %v3696_v39 = vpack.c.bf16 %v2719_v1, %v2651_v47 }
 0x20d   : > { %3734 = vrot.lane.b32.xlu0 %v8980_v16, %s7810_s2  ;;  %v2854_v58 = vcombine.low %v2835_v9, %v2851_v23  ;;  %v2889_v22 = vcombine.high %v10204_v30, %v8493_v59  ;;  %v2905_v10 = vcombine.high %v10206_v48, %v10205_v33  ;;  %v2855_v31 = vcombine.high %v2835_v9, %v2851_v23  ;;  %v10214_v48 = vld [vmem:[#allocation18_spill] sm:$0xff] }
 0x20e   : > { %v2957_v45 = vcombine.high %v10208_v7, %v10207_v2  ;;  %v2973_v52 = vcombine.high %v10210_v35, %v10209_v41  ;;  %v2786_v3 = vcombine.low %v2767_v57, %v2783_v11  ;;  %v2787_v62 = vcombine.high %v2767_v57, %v2783_v11  ;;  %v10211_v11 = vld [vmem:[#allocation14_spill] sm:$0xff] }
 0x20f   : > { %v2903_v34 = vrot.slane %v2889_v22, %v8266_v28  ;;  %v2919_v47 = vrot.slane %v2905_v10, %v8266_v28  ;;  %v6211_v59 = vsel %vm6072_vm2, %v3688_v6, 0  ;;  %v6278_v7 = vsel %vm6072_vm2, %v3696_v39, 0  ;;  %v10213_v22 = vld [vmem:[#allocation16_spill] sm:$0xff]  ;;  %v10215_v10 = vld [vmem:[#allocation17_spill] sm:$0xff] }
 0x210   : > { %3780 = vrot.lane.b32.xlu1 %v8972_v0, %s7811_s30  ;;  %v2971_v1 = vrot.slane %v2957_v45, %v8266_v28  ;;  %v2987_v41 = vrot.slane %v2973_v52, %v8266_v28  ;;  %v3689_v9 = vpack.c.bf16 %v2854_v58, %v2786_v3  ;;  %v3697_v57 = vpack.c.bf16 %v2855_v31, %v2787_v62  ;;  %v10212_v58 = vld [vmem:[#allocation15_spill] sm:$0xff]  ;;  %v10219_v52 = vld [vmem:[#allocation40_spill] sm:$0xff] }
 0x211   : > { %7545 = vmatmul.mubr.msk.bf16.vlgmr.msra.gmra.mrb[16].mxu1 %vm6072_vm2, %v1332_v43  ;;  %7565 = vmatmul.mubr.msk.bf16.vlgmr.msra.gmra.mrb[20].mxu0 %vm6072_vm2, %v1333_v5  ;;  %v9032_v23 = vadd.f32 %v8916_v61, %v10211_v11  ;;  %v2922_v43 = vcombine.low %v2903_v34, %v2919_v47  ;;  %v3025_v6 = vcombine.high %v8681_v21, %v8700_v26  ;;  %v10216_v26 = vld [vmem:[#allocation22_spill] sm:$0xff]  ;;  %v10218_v45 = vld [vmem:[#allocation19_spill] sm:$0xff]  ;;  %v10222_v11 = vld [vmem:[#allocation41_spill] sm:$0xff] }
 0x212   : > { %7569 = vmatpush3.bf16.xpose.msra.mxu1 %v6211_v59  ;;  %7589 = vmatpush3.bf16.xpose.msra.mxu0 %v6278_v7  ;;  %v2990_v5 = vcombine.low %v2971_v1, %v2987_v41  ;;  %v3041_v39 = vcombine.high %v8706_v17, %v8718_v44  ;;  %v9044_v30 = vadd.f32 %v8916_v61, %v10212_v58  ;;  %v6214_v21 = vsel %vm6072_vm2, %v3689_v9, 0  ;;  %v10217_v44 = vld [vmem:[#allocation23_spill] sm:$0xff]  ;;  %v10221_v7 = vld [vmem:[#allocation42_spill] sm:$0xff] }
 0x213   : > { %7570 = vmatprep.subr.bf16.mxu1 %v10159_v40  ;;  %7590 = vmatprep.subr.bf16.mxu0 %v10159_v40  ;;  %v9048_v33 = vadd.f32 %v8916_v61, %v10213_v22  ;;  %v3093_v31 = vcombine.high %v10215_v10, %v10214_v48  ;;  %v3161_v2 = vcombine.high %v8674_v63, %v8684_v55  ;;  %v10220_v3 = vld [vmem:[#allocation39_spill] sm:$0xff]  ;;  %v6281_v58 = vsel %vm6072_vm2, %v3697_v57, 0  ;;  %v10223_v10 = vld [vmem:[#allocation44_spill] sm:$0xff] }
 0x214   : > { %3782 = vrot.lane.b32.xlu0 %v8980_v16, %s7811_s30  ;;  %3828 = vrot.lane.b32.xlu1 %v8972_v0, %s7812_s5  ;;  %v9059_v17 = vadd.f32 %v8916_v61, %v10216_v26  ;;  %v3109_v35 = vcombine.high %v10218_v45, %v10217_v44  ;;  %v3177_v62 = vcombine.high %v10220_v3, %v10219_v52  ;;  %v9088_v44 = vpop.permute.xlu0 %3720 }
 0x215   : > { %7584 = vmatprep.mubr.msk.bf16.mxu1 %vm7809_vm0, %v10159_v40  ;;  %7604 = vmatprep.mubr.msk.bf16.mxu0 %vm7809_vm0, %v10159_v40  ;;  %v2923_v59 = vcombine.high %v2903_v34, %v2919_v47  ;;  %v2991_v63 = vcombine.high %v2971_v1, %v2987_v41  ;;  %v3175_v55 = vrot.slane %v3161_v2, %v8266_v28  ;;  %v9081_v47 = vpop.permute.xlu1 %3722  ;;  %v10224_v2 = vld [vmem:[#allocation43_spill] sm:$0xff] }
 0x216   : > { %v3229_v9 = vcombine.high %v10222_v11, %v10221_v7  ;;  %v3690_v22 = vpack.c.bf16 %v2990_v5, %v2922_v43  ;;  %v9076_v48 = vrot.slane %v3025_v6, %v8266_v28  ;;  %v9079_v34 = vrot.slane %v3041_v39, %v8266_v28 }
 0x217   : > { %v3107_v1 = vrot.slane %v3093_v31, %v8266_v28  ;;  %v3191_v41 = vrot.slane %v3177_v62, %v8266_v28  ;;  %v3245_v26 = vcombine.high %v10224_v2, %v10223_v10  ;;  %v3123_v43 = vrot.slane %v3109_v35, %v8266_v28  ;;  %v10227_v10 = vld [vmem:[#allocation46_spill] sm:$0xff] }
 0x218   : > { %3830 = vrot.lane.b32.xlu0 %v8980_v16, %s7812_s5  ;;  %3740 = vrot.lane.b32.xlu1 %v9032_v23, %s7810_s2  ;;  %v3243_v57 = vrot.slane %v3229_v9, %v8266_v28  ;;  %v3297_v5 = vcombine.high %v8593_v27, %v8596_v53  ;;  %v3313_v6 = vcombine.high %v8604_v29, %v8608_v46 }
 0x219   : > { %v3698_v39 = vpack.c.bf16 %v2991_v63, %v2923_v59  ;;  %v3194_v31 = vcombine.low %v3175_v55, %v3191_v41  ;;  %v3259_v45 = vrot.slane %v3245_v26, %v8266_v28  ;;  %v3195_v27 = vcombine.high %v3175_v55, %v3191_v41  ;;  %v9111_v11 = vpop.permute.xlu1 %3768  ;;  %v9120_v41 = vpop.permute.xlu0 %3770 }
 0x21a   : > { %7571 = vmatpush3.bf16.xpose.msra.mxu1 %v6214_v21  ;;  %7591 = vmatpush3.bf16.xpose.msra.mxu0 %v6281_v58  ;;  %v6217_v21 = vsel %vm6072_vm2, %v3690_v22, 0  ;;  %v3311_v53 = vrot.slane %v3297_v5, %v8266_v28  ;;  %v3327_v29 = vrot.slane %v3313_v6, %v8266_v28  ;;  %v3058_v46 = vcombine.low %v9076_v48, %v9079_v34 }
 0x21b   : > { %7572 = vmatprep.subr.bf16.mxu1 %v10159_v40  ;;  %7592 = vmatprep.subr.bf16.mxu0 %v10159_v40  ;;  %v3262_v35 = vcombine.low %v3243_v57, %v3259_v45  ;;  %v3263_v52 = vcombine.high %v3243_v57, %v3259_v45  ;;  %v3365_v3 = vcombine.high %v8615_v24, %v8622_v38  ;;  %v6284_v24 = vsel %vm6072_vm2, %v3698_v39, 0  ;;  %v10226_v57 = vld [vmem:[#allocation47_spill] sm:$0xff] }
 0x21c   : > { %3742 = vrot.lane.b32.xlu0 %v9048_v33, %s7810_s2  ;;  %3788 = vrot.lane.b32.xlu1 %v9032_v23, %s7811_s30  ;;  %v3126_v62 = vcombine.low %v3107_v1, %v3123_v43  ;;  %v3330_v59 = vcombine.low %v3311_v53, %v3327_v29  ;;  %v3381_v63 = vcombine.high %v8634_v36, %v8651_v54  ;;  %v10225_v36 = vld [vmem:[#allocation45_spill] sm:$0xff] }
 0x21d   : > { %v3331_v7 = vcombine.high %v3311_v53, %v3327_v29  ;;  %v9113_v55 = vpack.c.bf16 %v3262_v35, %v3194_v31  ;;  %v9115_v9 = vpack.c.bf16 %v3263_v52, %v3195_v27  ;;  %v3379_v58 = vrot.slane %v3365_v3, %v8266_v28  ;;  %v9150_v29 = vpop.permute.xlu0 %3818 }
 0x21e   : > { %v3433_v22 = vcombine.high %v8776_v15, %v8783_v19  ;;  %v3395_v38 = vrot.slane %v3381_v63, %v8266_v28  ;;  %v3449_v54 = vcombine.high %v10225_v36, %v8789_v25  ;;  %v3501_v2 = vcombine.high %v10227_v10, %v10226_v57 }
 0x21f   : > { %v3059_v15 = vcombine.high %v9076_v48, %v9079_v34  ;;  %v3127_v19 = vcombine.high %v3107_v1, %v3123_v43  ;;  %v3517_v5 = vcombine.high %v8806_v32, %v8840_v13  ;;  %v3691_v25 = vpack.c.bf16 %v3126_v62, %v3058_v46  ;;  %v3817_v1 = vpop.permute.xlu1 %3816 }
 0x220   : > { %3790 = vrot.lane.b32.xlu0 %v9048_v33, %s7811_s30  ;;  %3836 = vrot.lane.b32.xlu1 %v9032_v23, %s7812_s5  ;;  %v3447_v26 = vrot.slane %v3433_v22, %v8266_v28  ;;  %v3398_v6 = vcombine.low %v3379_v58, %v3395_v38  ;;  %v3399_v39 = vcombine.high %v3379_v58, %v3395_v38 }
 0x221   : > { %v3463_v31 = vrot.slane %v3449_v54, %v8266_v28  ;;  %v3515_v45 = vrot.slane %v3501_v2, %v8266_v28  ;;  %v3531_v48 = vrot.slane %v3517_v5, %v8266_v28  ;;  %v3699_v43 = vpack.c.bf16 %v3127_v19, %v3059_v15  ;;  %v9194_v57 = vpop.permute.xlu0 %3726  ;;  %v10232_v15 = vld [vmem:[#allocation36_spill] sm:$0xff] }
 0x222   : > { %7573 = vmatpush3.bf16.xpose.msra.mxu1 %v6217_v21  ;;  %7593 = vmatpush3.bf16.xpose.msra.mxu0 %v6284_v24  ;;  %v9146_v32 = vpack.c.bf16 %v3398_v6, %v3330_v59  ;;  %v9148_v13 = vpack.c.bf16 %v3399_v39, %v3331_v7  ;;  %v3569_v46 = vcombine.high %v8843_v37, %v8846_v4  ;;  %v6220_v59 = vsel %vm6072_vm2, %v3691_v25, 0  ;;  %v10234_v6 = vld [vmem:[#allocation38_spill] sm:$0xff] }
 0x223   : > { %7574 = vmatprep.subr.bf16.mxu1 %v10159_v40  ;;  %7594 = vmatprep.subr.bf16.mxu0 %v10159_v40  ;;  %v3466_v34 = vcombine.low %v3447_v26, %v3463_v31  ;;  %v3534_v21 = vcombine.low %v3515_v45, %v3531_v48  ;;  %v3467_v27 = vcombine.high %v3447_v26, %v3463_v31  ;;  %v9188_v24 = vpop.permute.xlu1 %3724  ;;  %v6223_v2 = vsel %vm6072_vm2, %v9113_v55, 0  ;;  %v10233_v26 = vld [vmem:[#allocation5_spill] sm:$0xff] }
 0x224   : > { %3838 = vrot.lane.b32.xlu0 %v9048_v33, %s7812_s5  ;;  %3736 = vrot.lane.b32.xlu1 %v9044_v30, %s7810_s2  ;;  %v3535_v53 = vcombine.high %v3515_v45, %v3531_v48  ;;  %v3585_v3 = vcombine.high %v8850_v12, %v8853_v51  ;;  %v3637_v62 = vcombine.high %v8858_v50, %v8865_v18  ;;  %v6287_v50 = vsel %vm6072_vm2, %v3699_v43, 0  ;;  %v10229_v18 = vld [vmem:[#allocation35_spill] sm:$0xff] }
 0x225   : > { %v9154_v35 = vpack.c.bf16 %v3534_v21, %v3466_v34  ;;  %v3583_v37 = vrot.slane %v3569_v46, %v8266_v28  ;;  %v3653_v4 = vcombine.high %v8876_v60, %v8905_v14  ;;  %v10228_v12 = vcombine.high %v8908_v8, %v8911_v42  ;;  %v10231_v8 = vld [vmem:[#allocation4_spill] sm:$0xff] }
 0x226   : > { %v9156_v52 = vpack.c.bf16 %v3535_v53, %v3467_v27  ;;  %v9177_v63 = vadd.f32 %v8916_v61, %v10229_v18  ;;  %v3599_v7 = vrot.slane %v3585_v3, %v8266_v28  ;;  %v3651_v58 = vrot.slane %v3637_v62, %v8266_v28  ;;  %v9241_v62 = vpop.permute.xlu0 %3774 }
 0x227   : > { %v1311_v51 = vrot.slane %v10228_v12, %v8266_v28  ;;  %v3667_v22 = vrot.slane %v3653_v4, %v8266_v28  ;;  %v10230_v60 = vcombine.high %v8923_v56, %v8926_v49  ;;  %v3864_v42 = vcombine.low %v10231_v8, %v9111_v11  ;;  %v3773_v53 = vpop.permute.xlu1 %3772  ;;  %v10236_v4 = vld [vmem:[#allocation7_spill] sm:$0xff] }
 0x228   : > { %3738 = vrot.lane.b32.xlu0 %v9059_v17, %s7810_s2  ;;  %3784 = vrot.lane.b32.xlu1 %v9044_v30, %s7811_s30  ;;  %v3602_v38 = vcombine.low %v3583_v37, %v3599_v7  ;;  %v3603_v36 = vcombine.high %v3583_v37, %v3599_v7  ;;  %v3865_v54 = vcombine.high %v10231_v8, %v9111_v11  ;;  %v6290_v21 = vsel %vm6072_vm2, %v9115_v9, 0 }
 0x229   : > { %v1327_v14 = vrot.slane %v10230_v60, %v8266_v28  ;;  %v3670_v56 = vcombine.low %v3651_v58, %v3667_v22  ;;  %v3671_v49 = vcombine.high %v3651_v58, %v3667_v22  ;;  %v9206_v19 = vadd.f32 %v8916_v61, %v10232_v15 }
 0x22a   : > { %7575 = vmatpush3.bf16.xpose.msra.mxu1 %v6220_v59  ;;  %7595 = vmatpush3.bf16.xpose.msra.mxu0 %v6287_v50  ;;  %v3932_v5 = vcombine.low %v10233_v26, %v9120_v41  ;;  %v9214_v39 = vadd.f32 %v8916_v61, %v10234_v6  ;;  %v3933_v55 = vcombine.high %v10233_v26, %v9120_v41  ;;  %v6293_v15 = vsel %vm6072_vm2, %v9148_v13, 0 }
 0x22b   : > { %7576 = vmatprep.subr.bf16.mxu1 %v10159_v40  ;;  %7596 = vmatprep.subr.bf16.mxu0 %v10159_v40  ;;  %v9200_v10 = vcombine.low %v1311_v51, %v1327_v14  ;;  %v9208_v11 = vcombine.high %v1311_v51, %v1327_v14  ;;  %v9216_v31 = vpack.c.bf16 %v3670_v56, %v3602_v38 }
 0x22c   : > { %3786 = vrot.lane.b32.xlu0 %v9059_v17, %s7811_s30  ;;  %3832 = vrot.lane.b32.xlu1 %v9044_v30, %s7812_s5  ;;  %v9218_v25 = vpack.c.bf16 %v3671_v49, %v3603_v36  ;;  %v3872_v45 = vrot.slane %v3864_v42, %v8261_v20  ;;  %v3879_v48 = vrot.slane %v3865_v54, %v8261_v20 }
 0x22d   : > { %v3880_v34 = vcombine.low %v9088_v44, %v3817_v1  ;;  %v3881_v43 = vcombine.high %v9088_v44, %v3817_v1  ;;  %v3940_v61 = vrot.slane %v3932_v5, %v8261_v20  ;;  %v3947_v41 = vrot.slane %v3933_v55, %v8261_v20  ;;  %v10235_v1 = vld [vmem:[#allocation6_spill] sm:$0xff] }
 0x22e   : > { %v3948_v27 = vcombine.low %v9081_v47, %v9150_v29  ;;  %v3949_v9 = vcombine.high %v9081_v47, %v9150_v29  ;;  %v4000_v3 = vcombine.low %v10235_v1, %v3773_v53  ;;  %v4001_v37 = vcombine.high %v10235_v1, %v3773_v53 }
 0x22f   : > { %v3888_v46 = vrot.slane %v3880_v34, %v8261_v20  ;;  %v3895_v44 = vrot.slane %v3881_v43, %v8261_v20  ;;  %v4068_v12 = vcombine.low %v10236_v4, %v9241_v62  ;;  %v6226_v29 = vsel %vm6072_vm2, %v9146_v32, 0 }
 0x230   : > { %3834 = vrot.lane.b32.xlu0 %v9059_v17, %s7812_s5  ;;  %3748 = vrot.lane.b32.xlu1 %v9177_v63, %s7810_s2  ;;  %v3956_v59 = vrot.slane %v3948_v27, %v8261_v20  ;;  %v3963_v7 = vrot.slane %v3949_v9, %v8261_v20  ;;  %v6296_v9 = vsel %vm6072_vm2, %v9156_v52, 0 }
 0x231   : > { %v3896_v51 = vcombine.low %v3872_v45, %v3888_v46  ;;  %v3897_v50 = vcombine.high %v3872_v45, %v3888_v46  ;;  %v3912_v47 = vcombine.low %v3879_v48, %v3895_v44  ;;  %v3913_v18 = vcombine.high %v3879_v48, %v3895_v44  ;;  %v3823_v44 = vpop.permute.xlu0 %3822 }
 0x232   : > { %7577 = vmatpush3.bf16.xpose.msra.mxu1 %v6223_v2  ;;  %7597 = vmatpush3.bf16.xpose.msra.mxu0 %v6290_v21  ;;  %v3964_v58 = vcombine.low %v3940_v61, %v3956_v59  ;;  %v3965_v8 = vcombine.high %v3940_v61, %v3956_v59  ;;  %v3980_v38 = vcombine.low %v3947_v41, %v3963_v7  ;;  %v3821_v61 = vpop.permute.xlu1 %3820 }
 0x233   : > { %7578 = vmatprep.subr.bf16.mxu1 %v10159_v40  ;;  %7598 = vmatprep.subr.bf16.mxu0 %v10159_v40  ;;  %v3904_v22 = vrot.slane %v3896_v51, %v8266_v28  ;;  %v3911_v60 = vrot.slane %v3897_v50, %v8266_v28  ;;  %v3920_v14 = vrot.slane %v3912_v47, %v8266_v28 }
 0x234   : > { %3792 = vrot.lane.b32.xlu1 %v9206_v19, %s7811_s30  ;;  %3744 = vrot.lane.b32.xlu0 %v9206_v19, %s7810_s2  ;;  %v3927_v42 = vrot.slane %v3913_v18, %v8266_v28  ;;  %v3972_v32 = vrot.slane %v3964_v58, %v8266_v28  ;;  %v3981_v36 = vcombine.high %v3947_v41, %v3963_v7  ;;  %v6229_v41 = vsel %vm6072_vm2, %v9154_v35, 0 }
 0x235   : > { %v4952_v54 = vcombine.low %v3904_v22, %v3911_v60  ;;  %v7232_v56 = vcombine.high %v3904_v22, %v3911_v60  ;;  %v3979_v49 = vrot.slane %v3965_v8, %v8266_v28  ;;  %v4008_v2 = vrot.slane %v4000_v3, %v8261_v20 }
 0x236   : > { %v4968_v26 = vcombine.low %v3920_v14, %v3927_v42  ;;  %v7233_v5 = vcombine.high %v3920_v14, %v3927_v42  ;;  %v3988_v6 = vrot.slane %v3980_v38, %v8266_v28  ;;  %v3995_v48 = vrot.slane %v3981_v36, %v8266_v28 }
 0x237   : > { %v9271_v55 = vrot.slane %v4952_v54, %v8261_v20  ;;  %v9274_v45 = vrot.slane %v7232_v56, %v8261_v20  ;;  %v5020_v34 = vcombine.low %v3972_v32, %v3979_v49  ;;  %v7234_v21 = vcombine.high %v3972_v32, %v3979_v49 }
 0x238   : > { %3840 = vrot.lane.b32.xlu1 %v9206_v19, %s7812_s5  ;;  %3794 = vrot.lane.b32.xlu0 %v9214_v39, %s7811_s30  ;;  %v9278_v13 = vrot.slane %v4968_v26, %v8261_v20  ;;  %v9281_v43 = vrot.slane %v7233_v5, %v8261_v20  ;;  %v5036_v53 = vcombine.low %v3988_v6, %v3995_v48  ;;  %v6232_v32 = vsel %vm6072_vm2, %v9216_v31, 0 }
 0x239   : > { %v9288_v27 = vrot.slane %v5020_v34, %v8261_v20  ;;  %v7235_v46 = vcombine.high %v3988_v6, %v3995_v48  ;;  %v9297_v1 = vrot.slane %v7234_v21, %v8261_v20  ;;  %v4015_v35 = vrot.slane %v4001_v37, %v8261_v20 }
 0x23a   : > { %7579 = vmatpush3.bf16.xpose.msra.mxu1 %v6226_v29  ;;  %7599 = vmatpush3.bf16.xpose.msra.mxu0 %v6293_v15  ;;  %v4069_v3 = vcombine.high %v10236_v4, %v9241_v62  ;;  %v9303_v59 = vrot.slane %v5036_v53, %v8261_v20  ;;  %v4076_v52 = vrot.slane %v4068_v12, %v8261_v20  ;;  %v6299_v56 = vsel %vm6072_vm2, %v9218_v25, 0 }
 0x23b   : > { %7580 = vmatprep.subr.bf16.mxu1 %v10159_v40  ;;  %7600 = vmatprep.subr.bf16.mxu0 %v10159_v40  ;;  %v9306_v51 = vrot.slane %v7235_v46, %v8261_v20  ;;  %v4016_v50 = vcombine.low %v9188_v24, %v3821_v61  ;;  %v4017_v29 = vcombine.high %v9188_v24, %v3821_v61 }
 0x23c   : > { %3746 = vrot.lane.b32.xlu1 %v9214_v39, %s7810_s2  ;;  %3842 = vrot.lane.b32.xlu0 %v9214_v39, %s7812_s5  ;;  %v4083_v47 = vrot.slane %v4069_v3, %v8261_v20  ;;  %v4084_v18 = vcombine.low %v9194_v57, %v3823_v44  ;;  %v4085_v37 = vcombine.high %v9194_v57, %v3823_v44 }
 0x23d   : > { %v4024_v62 = vrot.slane %v4016_v50, %v8261_v20  ;;  %v4984_v4 = vcombine.low %v9271_v55, %v9274_v45  ;;  %v5000_v7 = vcombine.low %v9278_v13, %v9281_v43  ;;  %v5052_v12 = vcombine.low %v9288_v27, %v9297_v1 }
 0x23e   : > { %v4031_v58 = vrot.slane %v4017_v29, %v8261_v20  ;;  %v4092_v22 = vrot.slane %v4084_v18, %v8261_v20  ;;  %v4099_v24 = vrot.slane %v4085_v37, %v8261_v20  ;;  %v5068_v57 = vcombine.low %v9303_v59, %v9306_v51 }
 0x23f   : > { %v4032_v60 = vcombine.low %v4008_v2, %v4024_v62  ;;  %v4033_v14 = vcombine.high %v4008_v2, %v4024_v62  ;;  %v4992_v8 = vrot.slane %v4984_v4, %v8266_v28  ;;  %v5008_v42 = vrot.slane %v5000_v7, %v8266_v28 }
 0x240   : > { %v4048_v38 = vcombine.low %v4015_v35, %v4031_v58  ;;  %v4049_v36 = vcombine.high %v4015_v35, %v4031_v58  ;;  %v4100_v54 = vcombine.low %v4076_v52, %v4092_v22  ;;  %v4101_v15 = vcombine.high %v4076_v52, %v4092_v22 }
 0x241   : > { %v4040_v49 = vrot.slane %v4032_v60, %v8266_v28  ;;  %v4047_v2 = vrot.slane %v4033_v14, %v8266_v28  ;;  %v4116_v6 = vcombine.low %v4083_v47, %v4099_v24  ;;  %v4117_v61 = vcombine.high %v4083_v47, %v4099_v24 }
 0x242   : > { %7581 = vmatpush3.bf16.xpose.msra.mxu1 %v6229_v41  ;;  %7601 = vmatpush3.bf16.xpose.msra.mxu0 %v6296_v9  ;;  %v4056_v26 = vrot.slane %v4048_v38, %v8266_v28  ;;  %v4063_v5 = vrot.slane %v4049_v36, %v8266_v28  ;;  %v4108_v31 = vrot.slane %v4100_v54, %v8266_v28 }
 0x243   : > { %7582 = vmatprep.subr.bf16.mxu1 %v10159_v40  ;;  %7602 = vmatprep.subr.bf16.mxu0 %v10159_v40  ;;  %v5088_v48 = vcombine.low %v4040_v49, %v4047_v2  ;;  %v7236_v34 = vcombine.high %v4040_v49, %v4047_v2  ;;  %v4115_v21 = vrot.slane %v4101_v15, %v8266_v28 }
 0x244   : > { %v5104_v41 = vcombine.low %v4056_v26, %v4063_v5  ;;  %v7237_v53 = vcombine.high %v4056_v26, %v4063_v5  ;;  %v4124_v25 = vrot.slane %v4116_v6, %v8266_v28  ;;  %v5016_v46 = vcombine.low %v4992_v8, %v5008_v42 }
 0x245   : > { %v9342_v44 = vrot.slane %v5088_v48, %v8261_v20  ;;  %v9345_v9 = vrot.slane %v7236_v34, %v8261_v20  ;;  %v4131_v35 = vrot.slane %v4117_v61, %v8266_v28  ;;  %v5156_v3 = vcombine.low %v4108_v31, %v4115_v21 }
 0x246   : > { %v5111_v52 = vrot.slane %v5104_v41, %v8261_v20  ;;  %v5119_v50 = vrot.slane %v7237_v53, %v8261_v20  ;;  %v7238_v29 = vcombine.high %v4108_v31, %v4115_v21  ;;  %v5060_v47 = vrot.slane %v5052_v12, %v8266_v28 }
 0x247   : > { %v5163_v18 = vrot.slane %v5156_v3, %v8261_v20  ;;  %v5172_v37 = vcombine.low %v4124_v25, %v4131_v35  ;;  %v7239_v62 = vcombine.high %v4124_v25, %v4131_v35  ;;  %v5076_v4 = vrot.slane %v5068_v57, %v8266_v28 }
 0x248   : > { %v5171_v7 = vrot.slane %v7238_v29, %v8261_v20  ;;  %v5017_v58 = vcombine.high %v4992_v8, %v5008_v42  ;;  %v5120_v22 = vcombine.low %v9342_v44, %v9345_v9  ;;  %v1334_v49 = vpack.c.bf16 %v9200_v10, %v9200_v10 }
 0x249   : > { %v5179_v24 = vrot.slane %v5172_v37, %v8261_v20  ;;  %v5187_v60 = vrot.slane %v7239_v62, %v8261_v20  ;;  %v5084_v12 = vcombine.low %v5060_v47, %v5076_v4  ;;  %v5085_v14 = vcombine.high %v5060_v47, %v5076_v4 }
 0x24a   : > { %7583 = vmatpush3.bf16.xpose.msra.mxu1 %v6232_v32  ;;  %7603 = vmatpush3.bf16.xpose.msra.mxu0 %v6299_v56  ;;  %v5128_v57 = vrot.slane %v5120_v22, %v8266_v28  ;;  %v5136_v32 = vcombine.low %v5111_v52, %v5119_v50  ;;  %v5188_v38 = vcombine.low %v5163_v18, %v5171_v7 }
 0x24b   : > { %7608 = vmatprep.subr.bf16.mxu1 %v10159_v40  ;;  %7628 = vmatprep.subr.bf16.mxu0 %v10159_v40  ;;  %v5204_v36 = vcombine.low %v5179_v24, %v5187_v60  ;;  %v6040_v54 = vpack.c.bf16 %v5084_v12, %v5016_v46  ;;  %v6048_v8 = vpack.c.bf16 %v5085_v14, %v5017_v58 }
 0x24c   : > { %v5144_v42 = vrot.slane %v5136_v32, %v8266_v28  ;;  %v5196_v56 = vrot.slane %v5188_v38, %v8266_v28  ;;  %v1335_v2 = vpack.c.bf16 %v9208_v11, %v9208_v11  ;;  %v4985_v11 = vcombine.high %v9271_v55, %v9274_v45 }
 0x24d   : > { %v5212_v15 = vrot.slane %v5204_v36, %v8266_v28  ;;  %v5001_v34 = vcombine.high %v9278_v13, %v9281_v43  ;;  %v5053_v21 = vcombine.high %v9288_v27, %v9297_v1  ;;  %v5069_v61 = vcombine.high %v9303_v59, %v9306_v51 }
 0x24e   : > { %v5152_v26 = vcombine.low %v5128_v57, %v5144_v42  ;;  %v5153_v5 = vcombine.high %v5128_v57, %v5144_v42  ;;  %v5121_v41 = vcombine.high %v9342_v44, %v9345_v9  ;;  %v5137_v53 = vcombine.high %v5111_v52, %v5119_v50  ;;  %v10241_v57 = vld [vmem:[#allocation49_spill] sm:$0xff] }
 0x24f   : > { %v5220_v31 = vcombine.low %v5196_v56, %v5212_v15  ;;  %v5221_v6 = vcombine.high %v5196_v56, %v5212_v15  ;;  %v5189_v25 = vcombine.high %v5163_v18, %v5171_v7  ;;  %v5205_v46 = vcombine.high %v5179_v24, %v5187_v60  ;;  %v10240_v24 = vld [vmem:[#allocation48_spill] sm:$0xff] }
 0x250   : > { %v4999_v35 = vrot.slane %v4985_v11, %v8266_v28  ;;  %v5015_v3 = vrot.slane %v5001_v34, %v8266_v28  ;;  %v5067_v55 = vrot.slane %v5053_v21, %v8266_v28  ;;  %v5083_v45 = vrot.slane %v5069_v61, %v8266_v28 }
 0x251   : > { %7585 = vmatmul.mubr.msk.bf16.vlgmr.msra.gmra.mrb[20].mxu1 %vm6072_vm2, %v1334_v49  ;;  %7605 = vmatmul.mubr.msk.bf16.vlgmr.msra.gmra.mrb[24].mxu0 %vm6072_vm2, %v1335_v2  ;;  %v6041_v10 = vpack.c.bf16 %v5220_v31, %v5152_v26  ;;  %v6049_v48 = vpack.c.bf16 %v5221_v6, %v5153_v5  ;;  %v5135_v13 = vrot.slane %v5121_v41, %v8266_v28 }
 0x252   : > { %7609 = vmatpush3.bf16.msra.mxu1 %v6040_v54  ;;  %7629 = vmatpush3.bf16.msra.mxu0 %v6048_v8  ;;  %v5151_v43 = vrot.slane %v5137_v53, %v8266_v28  ;;  %v5203_v27 = vrot.slane %v5189_v25, %v8266_v28  ;;  %v5219_v1 = vrot.slane %v5205_v46, %v8266_v28 }
 0x253   : > { %7610 = vmatprep.subr.bf16.mxu1 %v10159_v40  ;;  %7630 = vmatprep.subr.bf16.mxu0 %v10159_v40  ;;  %v5018_v59 = vcombine.low %v4999_v35, %v5015_v3  ;;  %v5086_v51 = vcombine.low %v5067_v55, %v5083_v45  ;;  %v5019_v44 = vcombine.high %v4999_v35, %v5015_v3 }
 0x254   : > { %7624 = vmatprep.mubr.msk.bf16.mxu1 %vm7809_vm0, %v10159_v40  ;;  %7644 = vmatprep.mubr.msk.bf16.mxu0 %vm7809_vm0, %v10159_v40  ;;  %v5087_v9 = vcombine.high %v5067_v55, %v5083_v45  ;;  %v5154_v52 = vcombine.low %v5135_v13, %v5151_v43  ;;  %v5222_v50 = vcombine.low %v5203_v27, %v5219_v1 }
 0x255   : > { %v5155_v29 = vcombine.high %v5135_v13, %v5151_v43  ;;  %v5223_v47 = vcombine.high %v5203_v27, %v5219_v1  ;;  %v9396_v18 = vpack.c.bf16 %v5086_v51, %v5018_v59 }
 0x256   : > { %7611 = vmatpush3.bf16.msra.mxu1 %v6041_v10  ;;  %7631 = vmatpush3.bf16.msra.mxu0 %v6049_v48  ;;  %v9398_v37 = vpack.c.bf16 %v5087_v9, %v5019_v44  ;;  %v9400_v62 = vpack.c.bf16 %v5222_v50, %v5154_v52 }
 0x257   : > { %7612 = vmatprep.subr.bf16.mxu1 %v10159_v40  ;;  %7632 = vmatprep.subr.bf16.mxu0 %v10159_v40  ;;  %v9402_v4 = vpack.c.bf16 %v5223_v47, %v5155_v29 }
 0x258   : > { %10237 = vst [vmem:[#allocation13_spill] sm:$0xff] %v9398_v37  ;;  %10238 = vst [vmem:[#allocation8_spill] sm:$0xff] %v9400_v62 }
 0x259   : > { %10239 = vst [vmem:[#allocation21_spill] sm:$0xff] %v9402_v4 }
 0x271   : > { %v3729_v7 = vpop.permute.xlu1 %3728 }
 0x273   : > { %v3731_v58 = vpop.permute.xlu0 %3730 }
 0x276   : > { %v3777_v22 = vpop.permute.xlu1 %3776 }
 0x277   : > { %v4136_v60 = vcombine.low %v10240_v24, %v3777_v22  ;;  %v4137_v12 = vcombine.high %v10240_v24, %v3777_v22  ;;  %v3779_v14 = vpop.permute.xlu0 %3778 }
 0x278   : > { %v4204_v32 = vcombine.low %v10241_v57, %v3779_v14  ;;  %v4205_v38 = vcombine.high %v10241_v57, %v3779_v14 }
 0x279   : > { %v4144_v54 = vrot.slane %v4136_v60, %v8261_v20  ;;  %v4151_v8 = vrot.slane %v4137_v12, %v8261_v20 }
 0x27a   : > { %v3825_v36 = vpop.permute.xlu1 %3824  ;;  %v4212_v2 = vrot.slane %v4204_v32, %v8261_v20  ;;  %v4219_v15 = vrot.slane %v4205_v38, %v8261_v20 }
 0x27b   : > { %v4152_v42 = vcombine.low %v3729_v7, %v3825_v36  ;;  %v4153_v56 = vcombine.high %v3729_v7, %v3825_v36  ;;  %v3827_v49 = vpop.permute.xlu0 %3826 }
 0x27c   : > { %v4220_v26 = vcombine.low %v3731_v58, %v3827_v49  ;;  %v4221_v5 = vcombine.high %v3731_v58, %v3827_v49 }
 0x27d   : > { %v4160_v31 = vrot.slane %v4152_v42, %v8261_v20  ;;  %v4167_v6 = vrot.slane %v4153_v56, %v8261_v20 }
 0x27e   : > { %v4228_v10 = vrot.slane %v4220_v26, %v8261_v20  ;;  %v4235_v48 = vrot.slane %v4221_v5, %v8261_v20  ;;  %v3733_v11 = vpop.permute.xlu1 %3732 }
 0x27f   : > { %v4168_v34 = vcombine.low %v4144_v54, %v4160_v31  ;;  %v4169_v21 = vcombine.high %v4144_v54, %v4160_v31  ;;  %v4184_v61 = vcombine.low %v4151_v8, %v4167_v6  ;;  %v4185_v41 = vcombine.high %v4151_v8, %v4167_v6  ;;  %v3735_v3 = vpop.permute.xlu0 %3734 }
 0x280   : > { %v4236_v53 = vcombine.low %v4212_v2, %v4228_v10  ;;  %v4237_v25 = vcombine.high %v4212_v2, %v4228_v10  ;;  %v4252_v46 = vcombine.low %v4219_v15, %v4235_v48  ;;  %v4253_v35 = vcombine.high %v4219_v15, %v4235_v48 }
 0x281   : > { %v4176_v55 = vrot.slane %v4168_v34, %v8266_v28  ;;  %v4183_v45 = vrot.slane %v4169_v21, %v8266_v28  ;;  %v4192_v13 = vrot.slane %v4184_v61, %v8266_v28  ;;  %v4199_v43 = vrot.slane %v4185_v41, %v8266_v28 }
 0x282   : > { %v4244_v27 = vrot.slane %v4236_v53, %v8266_v28  ;;  %v4251_v1 = vrot.slane %v4237_v25, %v8266_v28  ;;  %v4260_v59 = vrot.slane %v4252_v46, %v8266_v28  ;;  %v4267_v51 = vrot.slane %v4253_v35, %v8266_v28  ;;  %v3781_v44 = vpop.permute.xlu1 %3780 }
 0x283   : > { %v5224_v9 = vcombine.low %v4176_v55, %v4183_v45  ;;  %v7240_v52 = vcombine.high %v4176_v55, %v4183_v45  ;;  %v5240_v50 = vcombine.low %v4192_v13, %v4199_v43  ;;  %v7241_v29 = vcombine.high %v4192_v13, %v4199_v43 }
 0x284   : > { %v5292_v47 = vcombine.low %v4244_v27, %v4251_v1  ;;  %v7242_v7 = vcombine.high %v4244_v27, %v4251_v1  ;;  %v5308_v58 = vcombine.low %v4260_v59, %v4267_v51  ;;  %v7243_v22 = vcombine.high %v4260_v59, %v4267_v51 }
 0x285   : > { %v9425_v24 = vrot.slane %v5224_v9, %v8261_v20  ;;  %v9428_v60 = vrot.slane %v7240_v52, %v8261_v20  ;;  %v9431_v12 = vrot.slane %v5240_v50, %v8261_v20  ;;  %v9434_v14 = vrot.slane %v7241_v29, %v8261_v20 }
 0x286   : > { %v9437_v57 = vrot.slane %v5292_v47, %v8261_v20  ;;  %v9440_v32 = vrot.slane %v7242_v7, %v8261_v20  ;;  %v9443_v38 = vrot.slane %v5308_v58, %v8261_v20  ;;  %v9446_v36 = vrot.slane %v7243_v22, %v8261_v20  ;;  %v3783_v54 = vpop.permute.xlu0 %3782  ;;  %v3829_v8 = vpop.permute.xlu1 %3828 }
 0x287   : > { %v4272_v42 = vcombine.low %v8972_v0, %v3781_v44  ;;  %v4273_v56 = vcombine.high %v8972_v0, %v3781_v44  ;;  %v4340_v49 = vcombine.low %v8980_v16, %v3783_v54  ;;  %v4341_v2 = vcombine.high %v8980_v16, %v3783_v54 }
 0x288   : > { %v4288_v15 = vcombine.low %v3733_v11, %v3829_v8  ;;  %v4289_v26 = vcombine.high %v3733_v11, %v3829_v8  ;;  %v5256_v5 = vcombine.low %v9425_v24, %v9428_v60  ;;  %v5272_v31 = vcombine.low %v9431_v12, %v9434_v14 }
 0x289   : > { %v4280_v6 = vrot.slane %v4272_v42, %v8261_v20  ;;  %v4287_v10 = vrot.slane %v4273_v56, %v8261_v20  ;;  %v4348_v48 = vrot.slane %v4340_v49, %v8261_v20  ;;  %v4355_v0 = vrot.slane %v4341_v2, %v8261_v20 }
 0x28a   : > { %v4296_v34 = vrot.slane %v4288_v15, %v8261_v20  ;;  %v4303_v16 = vrot.slane %v4289_v26, %v8261_v20  ;;  %v3831_v21 = vpop.permute.xlu0 %3830  ;;  %v9462_v11 = vpop.permute.xlu1 %3740  ;;  %v9465_v61 = vrot.slane %v5256_v5, %v8266_v28  ;;  %v9468_v41 = vrot.slane %v5272_v31, %v8266_v28 }
 0x28b   : > { %v4356_v53 = vcombine.low %v3735_v3, %v3831_v21  ;;  %v4357_v25 = vcombine.high %v3735_v3, %v3831_v21  ;;  %v5324_v46 = vcombine.low %v9437_v57, %v9440_v32  ;;  %v5340_v35 = vcombine.low %v9443_v38, %v9446_v36 }
 0x28c   : > { %v4304_v55 = vcombine.low %v4280_v6, %v4296_v34  ;;  %v4305_v45 = vcombine.high %v4280_v6, %v4296_v34  ;;  %v4320_v13 = vcombine.low %v4287_v10, %v4303_v16  ;;  %v4321_v43 = vcombine.high %v4287_v10, %v4303_v16 }
 0x28d   : > { %v4364_v27 = vrot.slane %v4356_v53, %v8261_v20  ;;  %v4371_v1 = vrot.slane %v4357_v25, %v8261_v20  ;;  %v5288_v59 = vcombine.low %v9465_v61, %v9468_v41  ;;  %v9479_v51 = vrot.slane %v5324_v46, %v8266_v28 }
 0x28e   : > { %v4312_v3 = vrot.slane %v4304_v55, %v8266_v28  ;;  %v4319_v44 = vrot.slane %v4305_v45, %v8266_v28  ;;  %v4328_v9 = vrot.slane %v4320_v13, %v8266_v28  ;;  %v4335_v52 = vrot.slane %v4321_v43, %v8266_v28  ;;  %v3743_v50 = vpop.permute.xlu0 %3742  ;;  %v3789_v29 = vpop.permute.xlu1 %3788 }
 0x28f   : > { %v4372_v47 = vcombine.low %v4348_v48, %v4364_v27  ;;  %v4373_v7 = vcombine.high %v4348_v48, %v4364_v27  ;;  %v4388_v58 = vcombine.low %v4355_v0, %v4371_v1  ;;  %v4389_v22 = vcombine.high %v4355_v0, %v4371_v1 }
 0x290   : > { %v5360_v54 = vcombine.low %v4312_v3, %v4319_v44  ;;  %v7244_v8 = vcombine.high %v4312_v3, %v4319_v44  ;;  %v5376_v42 = vcombine.low %v4328_v9, %v4335_v52  ;;  %v7245_v56 = vcombine.high %v4328_v9, %v4335_v52 }
 0x291   : > { %v4380_v49 = vrot.slane %v4372_v47, %v8266_v28  ;;  %v4387_v2 = vrot.slane %v4373_v7, %v8266_v28  ;;  %v4396_v15 = vrot.slane %v4388_v58, %v8266_v28  ;;  %v4403_v26 = vrot.slane %v4389_v22, %v8266_v28 }
 0x292   : > { %v9490_v5 = vrot.slane %v5360_v54, %v8261_v20  ;;  %v9493_v31 = vrot.slane %v7244_v8, %v8261_v20  ;;  %v9496_v6 = vrot.slane %v5376_v42, %v8261_v20  ;;  %v9499_v10 = vrot.slane %v7245_v56, %v8261_v20  ;;  %v3791_v48 = vpop.permute.xlu0 %3790  ;;  %v3837_v0 = vpop.permute.xlu1 %3836 }
 0x293   : > { %v5428_v34 = vcombine.low %v4380_v49, %v4387_v2  ;;  %v7246_v16 = vcombine.high %v4380_v49, %v4387_v2  ;;  %v5444_v21 = vcombine.low %v4396_v15, %v4403_v26  ;;  %v7247_v53 = vcombine.high %v4396_v15, %v4403_v26 }
 0x294   : > { %v4544_v25 = vcombine.low %v9032_v23, %v3789_v29  ;;  %v4545_v46 = vcombine.high %v9032_v23, %v3789_v29  ;;  %v4612_v55 = vcombine.low %v9048_v33, %v3791_v48  ;;  %v4613_v45 = vcombine.high %v9048_v33, %v3791_v48 }
 0x295   : > { %v9506_v13 = vrot.slane %v5428_v34, %v8261_v20  ;;  %v9509_v43 = vrot.slane %v7246_v16, %v8261_v20  ;;  %v9512_v27 = vrot.slane %v5444_v21, %v8261_v20  ;;  %v9515_v1 = vrot.slane %v7247_v53, %v8261_v20 }
 0x296   : > { %v4552_v3 = vrot.slane %v4544_v25, %v8261_v20  ;;  %v4559_v23 = vrot.slane %v4545_v46, %v8261_v20  ;;  %v4620_v44 = vrot.slane %v4612_v55, %v8261_v20  ;;  %v4627_v33 = vrot.slane %v4613_v45, %v8261_v20  ;;  %v3839_v9 = vpop.permute.xlu0 %3838  ;;  %v9521_v52 = vpop.permute.xlu1 %3736 }
 0x297   : > { %v4560_v29 = vcombine.low %v9462_v11, %v3837_v0  ;;  %v4561_v47 = vcombine.high %v9462_v11, %v3837_v0  ;;  %v4628_v7 = vcombine.low %v3743_v50, %v3839_v9  ;;  %v4629_v58 = vcombine.high %v3743_v50, %v3839_v9 }
 0x298   : > { %v5348_v22 = vrot.slane %v5340_v35, %v8266_v28  ;;  %v5289_v54 = vcombine.high %v9465_v61, %v9468_v41  ;;  %v5392_v8 = vcombine.low %v9490_v5, %v9493_v31  ;;  %v5408_v42 = vcombine.low %v9496_v6, %v9499_v10 }
 0x299   : > { %v4568_v56 = vrot.slane %v4560_v29, %v8261_v20  ;;  %v4575_v49 = vrot.slane %v4561_v47, %v8261_v20  ;;  %v4636_v2 = vrot.slane %v4628_v7, %v8261_v20  ;;  %v4643_v11 = vrot.slane %v4629_v58, %v8261_v20 }
 0x29a   : > { %v9536_v50 = vpop.permute.xlu0 %3738  ;;  %v5356_v35 = vcombine.low %v9479_v51, %v5348_v22  ;;  %v5357_v15 = vcombine.high %v9479_v51, %v5348_v22  ;;  %v9541_v26 = vrot.slane %v5392_v8, %v8266_v28  ;;  %v9544_v48 = vrot.slane %v5408_v42, %v8266_v28  ;;  %v3785_v53 = vpop.permute.xlu1 %3784 }
 0x29b   : > { %v4576_v0 = vcombine.low %v4552_v3, %v4568_v56  ;;  %v4577_v34 = vcombine.high %v4552_v3, %v4568_v56  ;;  %v4592_v16 = vcombine.low %v4559_v23, %v4575_v49  ;;  %v4593_v21 = vcombine.high %v4559_v23, %v4575_v49 }
 0x29c   : > { %v4644_v25 = vcombine.low %v4620_v44, %v4636_v2  ;;  %v4645_v46 = vcombine.high %v4620_v44, %v4636_v2  ;;  %v4660_v55 = vcombine.low %v4627_v33, %v4643_v11  ;;  %v4661_v45 = vcombine.high %v4627_v33, %v4643_v11 }
 0x29d   : > { %v4584_v9 = vrot.slane %v4576_v0, %v8266_v28  ;;  %v4591_v29 = vrot.slane %v4577_v34, %v8266_v28  ;;  %v4600_v51 = vrot.slane %v4592_v16, %v8266_v28  ;;  %v4607_v47 = vrot.slane %v4593_v21, %v8266_v28 }
 0x29e   : > { %v4652_v7 = vrot.slane %v4644_v25, %v8266_v28  ;;  %v4659_v58 = vrot.slane %v4645_v46, %v8266_v28  ;;  %v4668_v3 = vrot.slane %v4660_v55, %v8266_v28  ;;  %v4675_v23 = vrot.slane %v4661_v45, %v8266_v28  ;;  %v3787_v42 = vpop.permute.xlu0 %3786  ;;  %v3833_v25 = vpop.permute.xlu1 %3832 }
 0x29f   : > { %v5632_v22 = vcombine.low %v4584_v9, %v4591_v29  ;;  %v7252_v44 = vcombine.high %v4584_v9, %v4591_v29  ;;  %v5648_v8 = vcombine.low %v4600_v51, %v4607_v47  ;;  %v7253_v33 = vcombine.high %v4600_v51, %v4607_v47 }
 0x2a0   : > { %v5700_v56 = vcombine.low %v4652_v7, %v4659_v58  ;;  %v7254_v49 = vcombine.high %v4652_v7, %v4659_v58  ;;  %v5716_v2 = vcombine.low %v4668_v3, %v4675_v23  ;;  %v7255_v11 = vcombine.high %v4668_v3, %v4675_v23 }
 0x2a1   : > { %v9555_v0 = vrot.slane %v5632_v22, %v8261_v20  ;;  %v9558_v34 = vrot.slane %v7252_v44, %v8261_v20  ;;  %v9561_v16 = vrot.slane %v5648_v8, %v8261_v20  ;;  %v9564_v21 = vrot.slane %v7253_v33, %v8261_v20 }
 0x2a2   : > { %v9567_v46 = vrot.slane %v5700_v56, %v8261_v20  ;;  %v9570_v55 = vrot.slane %v7254_v49, %v8261_v20  ;;  %v9573_v45 = vrot.slane %v5716_v2, %v8261_v20  ;;  %v9576_v9 = vrot.slane %v7255_v11, %v8261_v20  ;;  %v3835_v61 = vpop.permute.xlu0 %3834 }
 0x2a3   : > { %v4408_v29 = vcombine.low %v9044_v30, %v3785_v53  ;;  %v4409_v51 = vcombine.high %v9044_v30, %v3785_v53  ;;  %v6042_v47 = vpack.c.bf16 %v5356_v35, %v5288_v59  ;;  %v6050_v7 = vpack.c.bf16 %v5357_v15, %v5289_v54 }
 0x2a4   : > { %v4476_v58 = vcombine.low %v9059_v17, %v3787_v42  ;;  %v4477_v3 = vcombine.high %v9059_v17, %v3787_v42  ;;  %v4424_v23 = vcombine.low %v9521_v52, %v3833_v25  ;;  %v4425_v22 = vcombine.high %v9521_v52, %v3833_v25  ;;  %v9596_v52 = vpop.permute.xlu1 %3748 }
 0x2a5   : > { %v4416_v44 = vrot.slane %v4408_v29, %v8261_v20  ;;  %v4423_v8 = vrot.slane %v4409_v51, %v8261_v20  ;;  %7613 = vmatpush3.bf16.msra.mxu1 %v6042_v47  ;;  %7633 = vmatpush3.bf16.msra.mxu0 %v6050_v7  ;;  %v5424_v30 = vcombine.low %v9541_v26, %v9544_v48 }
 0x2a6   : > { %v4484_v41 = vrot.slane %v4476_v58, %v8261_v20  ;;  %v4491_v59 = vrot.slane %v4477_v3, %v8261_v20  ;;  %7614 = vmatprep.subr.bf16.mxu1 %v10159_v40  ;;  %7634 = vmatprep.subr.bf16.mxu0 %v10159_v40  ;;  %v4432_v17 = vrot.slane %v4424_v23, %v8261_v20 }
 0x2a7   : > { %v4439_v54 = vrot.slane %v4425_v22, %v8261_v20  ;;  %v5460_v35 = vcombine.low %v9506_v13, %v9509_v43  ;;  %v5476_v15 = vcombine.low %v9512_v27, %v9515_v1  ;;  %v5425_v53 = vcombine.high %v9541_v26, %v9544_v48 }
 0x2a8   : > { %v4440_v33 = vcombine.low %v4416_v44, %v4432_v17  ;;  %v4441_v42 = vcombine.high %v4416_v44, %v4432_v17  ;;  %v4492_v56 = vcombine.low %v9536_v50, %v3835_v61  ;;  %v4493_v49 = vcombine.high %v9536_v50, %v3835_v61  ;;  %v3793_v61 = vpop.permute.xlu1 %3792 }
 0x2a9   : > { %v4456_v2 = vcombine.low %v4423_v8, %v4439_v54  ;;  %v4457_v11 = vcombine.high %v4423_v8, %v4439_v54  ;;  %v5468_v25 = vrot.slane %v5460_v35, %v8266_v28  ;;  %v5484_v29 = vrot.slane %v5476_v15, %v8266_v28 }
 0x2aa   : > { %v4448_v51 = vrot.slane %v4440_v33, %v8266_v28  ;;  %v4455_v47 = vrot.slane %v4441_v42, %v8266_v28  ;;  %v4500_v7 = vrot.slane %v4492_v56, %v8261_v20  ;;  %v4507_v26 = vrot.slane %v4493_v49, %v8261_v20 }
 0x2ab   : > { %v4464_v48 = vrot.slane %v4456_v2, %v8266_v28  ;;  %v4471_v58 = vrot.slane %v4457_v11, %v8266_v28  ;;  %v5492_v3 = vcombine.low %v5468_v25, %v5484_v29  ;;  %v5493_v50 = vcombine.high %v5468_v25, %v5484_v29  ;;  %v3745_v2 = vpop.permute.xlu0 %3744 }
 0x2ac   : > { %v5496_v23 = vcombine.low %v4448_v51, %v4455_v47  ;;  %v7248_v22 = vcombine.high %v4448_v51, %v4455_v47  ;;  %v4508_v44 = vcombine.low %v4484_v41, %v4500_v7  ;;  %v4509_v8 = vcombine.high %v4484_v41, %v4500_v7 }
 0x2ad   : > { %v5512_v17 = vcombine.low %v4464_v48, %v4471_v58  ;;  %v7249_v54 = vcombine.high %v4464_v48, %v4471_v58  ;;  %v6043_v35 = vpack.c.bf16 %v5492_v3, %v5424_v30  ;;  %v6051_v15 = vpack.c.bf16 %v5493_v50, %v5425_v53 }
 0x2ae   : > { %v9616_v33 = vrot.slane %v5496_v23, %v8261_v20  ;;  %v9619_v42 = vrot.slane %v7248_v22, %v8261_v20  ;;  %v4516_v56 = vrot.slane %v4508_v44, %v8266_v28  ;;  %v4523_v49 = vrot.slane %v4509_v8, %v8266_v28  ;;  %v3841_v23 = vpop.permute.xlu1 %3840 }
 0x2af   : > { %v9624_v11 = vrot.slane %v5512_v17, %v8261_v20  ;;  %v9627_v41 = vrot.slane %v7249_v54, %v8261_v20  ;;  %7615 = vmatpush3.bf16.msra.mxu1 %v6043_v35  ;;  %7635 = vmatpush3.bf16.msra.mxu0 %v6051_v15  ;;  %v4524_v30 = vcombine.low %v4491_v59, %v4507_v26  ;;  %v3795_v15 = vpop.permute.xlu0 %3794 }
 0x2b0   : > { %v4525_v53 = vcombine.high %v4491_v59, %v4507_v26  ;;  %v5564_v25 = vcombine.low %v4516_v56, %v4523_v49  ;;  %v7250_v29 = vcombine.high %v4516_v56, %v4523_v49  ;;  %v4680_v51 = vcombine.low %v9206_v19, %v3793_v61  ;;  %7616 = vmatprep.subr.bf16.mxu1 %v10159_v40 }
 0x2b1   : > { %v4532_v47 = vrot.slane %v4524_v30, %v8266_v28  ;;  %v4681_v7 = vcombine.high %v9206_v19, %v3793_v61  ;;  %7636 = vmatprep.subr.bf16.mxu0 %v10159_v40  ;;  %v5528_v48 = vcombine.low %v9616_v33, %v9619_v42  ;;  %v5544_v58 = vcombine.low %v9624_v11, %v9627_v41 }
 0x2b2   : > { %v4539_v59 = vrot.slane %v4525_v53, %v8266_v28  ;;  %v9640_v26 = vrot.slane %v5564_v25, %v8261_v20  ;;  %v9643_v3 = vrot.slane %v7250_v29, %v8261_v20  ;;  %v4688_v50 = vrot.slane %v4680_v51, %v8261_v20  ;;  %v3747_v62 = vpop.permute.xlu1 %3746 }
 0x2b3   : > { %v4695_v19 = vrot.slane %v4681_v7, %v8261_v20  ;;  %v5536_v22 = vrot.slane %v5528_v48, %v8266_v28  ;;  %v5552_v44 = vrot.slane %v5544_v58, %v8266_v28  ;;  %v4696_v8 = vcombine.low %v3745_v2, %v3841_v23  ;;  %v3843_v37 = vpop.permute.xlu0 %3842 }
 0x2b4   : > { %v5580_v61 = vcombine.low %v4532_v47, %v4539_v59  ;;  %v7251_v17 = vcombine.high %v4532_v47, %v4539_v59  ;;  %v5596_v54 = vcombine.low %v9640_v26, %v9643_v3  ;;  %v4697_v35 = vcombine.high %v3745_v2, %v3841_v23 }
 0x2b5   : > { %v5560_v56 = vcombine.low %v5536_v22, %v5552_v44  ;;  %v5561_v49 = vcombine.high %v5536_v22, %v5552_v44  ;;  %v4704_v30 = vrot.slane %v4696_v8, %v8261_v20  ;;  %v4748_v53 = vcombine.low %v9214_v39, %v3795_v15 }
 0x2b6   : > { %v9654_v25 = vrot.slane %v5580_v61, %v8261_v20  ;;  %v9657_v29 = vrot.slane %v7251_v17, %v8261_v20  ;;  %v5604_v51 = vrot.slane %v5596_v54, %v8266_v28  ;;  %v4711_v47 = vrot.slane %v4697_v35, %v8261_v20 }
 0x2b7   : > { %v4712_v7 = vcombine.low %v4688_v50, %v4704_v30  ;;  %v4713_v48 = vcombine.high %v4688_v50, %v4704_v30  ;;  %v4749_v2 = vcombine.high %v9214_v39, %v3795_v15  ;;  %v4756_v58 = vrot.slane %v4748_v53, %v8261_v20 }
 0x2b8   : > { %v5612_v59 = vcombine.low %v9654_v25, %v9657_v29  ;;  %v4728_v23 = vcombine.low %v4695_v19, %v4711_v47  ;;  %v4729_v22 = vcombine.high %v4695_v19, %v4711_v47  ;;  %v5664_v44 = vcombine.low %v9555_v0, %v9558_v34 }
 0x2b9   : > { %v4720_v8 = vrot.slane %v4712_v7, %v8266_v28  ;;  %v4727_v61 = vrot.slane %v4713_v48, %v8266_v28  ;;  %v4763_v17 = vrot.slane %v4749_v2, %v8261_v20  ;;  %v5680_v50 = vcombine.low %v9561_v16, %v9564_v21 }
 0x2ba   : > { %v5620_v39 = vrot.slane %v5612_v59, %v8266_v28  ;;  %v4736_v54 = vrot.slane %v4728_v23, %v8266_v28  ;;  %v4743_v35 = vrot.slane %v4729_v22, %v8266_v28  ;;  %v5672_v19 = vrot.slane %v5664_v44, %v8266_v28 }
 0x2bb   : > { %v5768_v15 = vcombine.low %v4720_v8, %v4727_v61  ;;  %v7256_v30 = vcombine.high %v4720_v8, %v4727_v61  ;;  %v5688_v53 = vrot.slane %v5680_v50, %v8266_v28  ;;  %v5732_v47 = vcombine.low %v9567_v46, %v9570_v55 }
 0x2bc   : > { %v5628_v7 = vcombine.low %v5604_v51, %v5620_v39  ;;  %v5629_v48 = vcombine.high %v5604_v51, %v5620_v39  ;;  %v5784_v2 = vcombine.low %v4736_v54, %v4743_v35  ;;  %v7257_v4 = vcombine.high %v4736_v54, %v4743_v35 }
 0x2bd   : > { %v9680_v59 = vrot.slane %v5768_v15, %v8261_v20  ;;  %v9683_v23 = vrot.slane %v7256_v30, %v8261_v20  ;;  %v5696_v22 = vcombine.low %v5672_v19, %v5688_v53  ;;  %v5740_v44 = vrot.slane %v5732_v47, %v8266_v28 }
 0x2be   : > { %v6044_v8 = vpack.c.bf16 %v5628_v7, %v5560_v56  ;;  %v6052_v61 = vpack.c.bf16 %v5629_v48, %v5561_v49  ;;  %v9687_v50 = vrot.slane %v5784_v2, %v8261_v20  ;;  %v9690_v51 = vrot.slane %v7257_v4, %v8261_v20 }
 0x2bf   : > { %v5748_v39 = vcombine.low %v9573_v45, %v9576_v9  ;;  %v5697_v54 = vcombine.high %v5672_v19, %v5688_v53  ;;  %v4764_v35 = vcombine.low %v3747_v62, %v3843_v37  ;;  %v4765_v15 = vcombine.high %v3747_v62, %v3843_v37 }
 0x2c0   : > { %7617 = vmatpush3.bf16.msra.mxu1 %v6044_v8  ;;  %7637 = vmatpush3.bf16.msra.mxu0 %v6052_v61  ;;  %v5800_v30 = vcombine.low %v9680_v59, %v9683_v23  ;;  %v5816_v56 = vcombine.low %v9687_v50, %v9690_v51  ;;  %v5257_v49 = vcombine.high %v9425_v24, %v9428_v60 }
 0x2c1   : > { %7618 = vmatprep.subr.bf16.mxu1 %v10159_v40  ;;  %7638 = vmatprep.subr.bf16.mxu0 %v10159_v40  ;;  %v5756_v4 = vrot.slane %v5748_v39, %v8266_v28  ;;  %v4772_v19 = vrot.slane %v4764_v35, %v8261_v20  ;;  %v4779_v37 = vrot.slane %v4765_v15, %v8261_v20 }
 0x2c2   : > { %v9706_v62 = vrot.slane %v5800_v30, %v8266_v28  ;;  %v9709_v53 = vrot.slane %v5816_v56, %v8266_v28  ;;  %v5271_v47 = vrot.slane %v5257_v49, %v8266_v28  ;;  %v5273_v24 = vcombine.high %v9431_v12, %v9434_v14 }
 0x2c3   : > { %v5764_v60 = vcombine.low %v5740_v44, %v5756_v4  ;;  %v5765_v7 = vcombine.high %v5740_v44, %v5756_v4  ;;  %v4780_v48 = vcombine.low %v4756_v58, %v4772_v19  ;;  %v4781_v2 = vcombine.high %v4756_v58, %v4772_v19 }
 0x2c4   : > { %v4796_v8 = vcombine.low %v4763_v17, %v4779_v37  ;;  %v4797_v61 = vcombine.high %v4763_v17, %v4779_v37  ;;  %v5832_v39 = vcombine.low %v9706_v62, %v9709_v53  ;;  %v5833_v35 = vcombine.high %v9706_v62, %v9709_v53 }
 0x2c5   : > { %v6045_v15 = vpack.c.bf16 %v5764_v60, %v5696_v22  ;;  %v6053_v30 = vpack.c.bf16 %v5765_v7, %v5697_v54  ;;  %v4788_v56 = vrot.slane %v4780_v48, %v8266_v28  ;;  %v4795_v49 = vrot.slane %v4781_v2, %v8266_v28 }
 0x2c6   : > { %v4804_v12 = vrot.slane %v4796_v8, %v8266_v28  ;;  %v4811_v14 = vrot.slane %v4797_v61, %v8266_v28  ;;  %v5287_v58 = vrot.slane %v5273_v24, %v8266_v28  ;;  %v5325_v17 = vcombine.high %v9437_v57, %v9440_v32 }
 0x2c7   : > { %7619 = vmatpush3.bf16.msra.mxu1 %v6045_v15  ;;  %7639 = vmatpush3.bf16.msra.mxu0 %v6053_v30  ;;  %v5836_v44 = vcombine.low %v4788_v56, %v4795_v49  ;;  %v7258_v4 = vcombine.high %v4788_v56, %v4795_v49  ;;  %v5341_v22 = vcombine.high %v9443_v38, %v9446_v36 }
 0x2c8   : > { %v5852_v54 = vcombine.low %v4804_v12, %v4811_v14  ;;  %v7259_v19 = vcombine.high %v4804_v12, %v4811_v14  ;;  %7620 = vmatprep.subr.bf16.mxu1 %v10159_v40  ;;  %7640 = vmatprep.subr.bf16.mxu0 %v10159_v40  ;;  %v5290_v37 = vcombine.low %v5271_v47, %v5287_v58 }
 0x2c9   : > { %v9730_v62 = vrot.slane %v5836_v44, %v8261_v20  ;;  %v9733_v53 = vrot.slane %v7258_v4, %v8261_v20  ;;  %v5339_v57 = vrot.slane %v5325_v17, %v8266_v28  ;;  %v5355_v32 = vrot.slane %v5341_v22, %v8266_v28 }
 0x2ca   : > { %v9738_v24 = vrot.slane %v5852_v54, %v8261_v20  ;;  %v9741_v38 = vrot.slane %v7259_v19, %v8261_v20  ;;  %v5291_v36 = vcombine.high %v5271_v47, %v5287_v58  ;;  %v5393_v60 = vcombine.high %v9490_v5, %v9493_v31 }
 0x2cb   : > { %v5868_v7 = vcombine.low %v9730_v62, %v9733_v53  ;;  %v5358_v48 = vcombine.low %v5339_v57, %v5355_v32  ;;  %v5359_v2 = vcombine.high %v5339_v57, %v5355_v32  ;;  %v5409_v8 = vcombine.high %v9496_v6, %v9499_v10 }
 0x2cc   : > { %v5884_v61 = vcombine.low %v9738_v24, %v9741_v38  ;;  %v5407_v15 = vrot.slane %v5393_v60, %v8266_v28  ;;  %v5461_v30 = vcombine.high %v9506_v13, %v9509_v43  ;;  %v5477_v47 = vcombine.high %v9512_v27, %v9515_v1 }
 0x2cd   : > { %v5876_v5 = vrot.slane %v5868_v7, %v8266_v28  ;;  %v9757_v31 = vpack.c.bf16 %v5358_v48, %v5290_v37  ;;  %v9759_v56 = vpack.c.bf16 %v5359_v2, %v5291_v36  ;;  %v5423_v49 = vrot.slane %v5409_v8, %v8266_v28 }
 0x2ce   : > { %v5892_v6 = vrot.slane %v5884_v61, %v8266_v28  ;;  %v5475_v10 = vrot.slane %v5461_v30, %v8266_v28  ;;  %v5491_v12 = vrot.slane %v5477_v47, %v8266_v28  ;;  %v5529_v13 = vcombine.high %v9616_v33, %v9619_v42 }
 0x2cf   : > { %v5426_v43 = vcombine.low %v5407_v15, %v5423_v49  ;;  %v5427_v14 = vcombine.high %v5407_v15, %v5423_v49  ;;  %v5545_v27 = vcombine.high %v9624_v11, %v9627_v41  ;;  %v5597_v1 = vcombine.high %v9640_v26, %v9643_v3 }
 0x2d0   : > { %v5900_v58 = vcombine.low %v5876_v5, %v5892_v6  ;;  %v5901_v17 = vcombine.high %v5876_v5, %v5892_v6  ;;  %v5494_v44 = vcombine.low %v5475_v10, %v5491_v12  ;;  %v5495_v4 = vcombine.high %v5475_v10, %v5491_v12 }
 0x2d1   : > { %v5543_v22 = vrot.slane %v5529_v13, %v8266_v28  ;;  %v5559_v54 = vrot.slane %v5545_v27, %v8266_v28  ;;  %v5611_v19 = vrot.slane %v5597_v1, %v8266_v28  ;;  %v5613_v33 = vcombine.high %v9654_v25, %v9657_v29 }
 0x2d2   : > { %v6046_v42 = vpack.c.bf16 %v5900_v58, %v5832_v39  ;;  %v6054_v37 = vpack.c.bf16 %v5901_v17, %v5833_v35  ;;  %v9776_v57 = vpack.c.bf16 %v5494_v44, %v5426_v43  ;;  %v9778_v11 = vpack.c.bf16 %v5495_v4, %v5427_v14 }
 0x2d3   : > { %v5562_v41 = vcombine.low %v5543_v22, %v5559_v54  ;;  %v5627_v26 = vrot.slane %v5613_v33, %v8266_v28  ;;  %v5563_v3 = vcombine.high %v5543_v22, %v5559_v54  ;;  %v5665_v32 = vcombine.high %v9555_v0, %v9558_v34  ;;  %v10243_v33 = vld [vmem:[#allocation37_spill] sm:$0xff] }
 0x2d4   : > { %7621 = vmatpush3.bf16.msra.mxu1 %v6046_v42  ;;  %7641 = vmatpush3.bf16.msra.mxu0 %v6054_v37  ;;  %v5681_v36 = vcombine.high %v9561_v16, %v9564_v21  ;;  %v5733_v25 = vcombine.high %v9567_v46, %v9570_v55  ;;  %v5749_v29 = vcombine.high %v9573_v45, %v9576_v9  ;;  %v7347_v37 = vld [vmem:[%s724_s22 + $0x8] sm:$0xff]  }
 0x2d5   : > { %7622 = vmatprep.subr.bf16.mxu1 %v10159_v40  ;;  %7642 = vmatprep.subr.bf16.mxu0 %v10159_v40  ;;  %v5630_v39 = vcombine.low %v5611_v19, %v5627_v26  ;;  %v5631_v35 = vcombine.high %v5611_v19, %v5627_v26  ;;  %v5679_v60 = vrot.slane %v5665_v32, %v8266_v28  ;;  %v7799_v19 = vld [vmem:[%s10061_s10] ss:$0 sm:$0xff]  ;;  %v7339_v26 = vunpack.c.h.bf16 %v7347_v37 }
 0x2d6   : > { %v5695_v0 = vrot.slane %v5681_v36, %v8266_v28  ;;  %v5747_v34 = vrot.slane %v5733_v25, %v8266_v28  ;;  %v5763_v16 = vrot.slane %v5749_v29, %v8266_v28  ;;  %v5801_v21 = vcombine.high %v9680_v59, %v9683_v23 }
 0x2d7   : > { %v9797_v46 = vpack.c.bf16 %v5630_v39, %v5562_v41  ;;  %v9799_v55 = vpack.c.bf16 %v5631_v35, %v5563_v3  ;;  %v5817_v45 = vcombine.high %v9687_v50, %v9690_v51  ;;  %v5869_v9 = vcombine.high %v9730_v62, %v9733_v53 }
 0x2d8   : > { %v5698_v7 = vcombine.low %v5679_v60, %v5695_v0  ;;  %v5766_v48 = vcombine.low %v5747_v34, %v5763_v16  ;;  %v5699_v2 = vcombine.high %v5679_v60, %v5695_v0  ;;  %v5767_v8 = vcombine.high %v5747_v34, %v5763_v16 }
 0x2d9   : > { %v5815_v61 = vrot.slane %v5801_v21, %v8266_v28  ;;  %v5831_v15 = vrot.slane %v5817_v45, %v8266_v28  ;;  %v5883_v59 = vrot.slane %v5869_v9, %v8266_v28  ;;  %v5885_v23 = vcombine.high %v9738_v24, %v9741_v38  ;;  %v7333_v24 = vld [vmem:[%s724_s22] sm:$0xff]   ;;  %s7817_s22 = smov 48  }
 0x2da   : > { %v9811_v30 = vpack.c.bf16 %v5766_v48, %v5698_v7  ;;  %v9813_v50 = vpack.c.bf16 %v5767_v8, %v5699_v2  ;;  %v7334_v38 = vunpack.c.l.bf16 %v7333_v24  ;;  %v7335_v10 = vunpack.c.h.bf16 %v7333_v24 }
 0x2db   : > { %v5834_v51 = vcombine.low %v5815_v61, %v5831_v15  ;;  %v5899_v62 = vrot.slane %v5885_v23, %v8266_v28  ;;  %v5835_v53 = vcombine.high %v5815_v61, %v5831_v15  ;;  %v9827_v42 = vadd.f32 %v7799_v19, %v10243_v33 }
 0x2dc   : > { %v7338_v41 = vunpack.c.l.bf16 %v7347_v37 }
 0x2dd   : > { %v5902_v47 = vcombine.low %v5883_v59, %v5899_v62  ;;  %v5903_v5 = vcombine.high %v5883_v59, %v5899_v62 }
 0x2df   : > { %v9819_v49 = vpack.c.bf16 %v5902_v47, %v5834_v51  ;;  %v9821_v6 = vpack.c.bf16 %v5903_v5, %v5835_v53 }
 0x2e4   : > { %v6134_v12 = vpop.f32.mrb[16].mxu1  ;;  %v6201_v13 = vpop.f32.mrb[20].mxu0 }
 0x2e5   : > { %v6341_v43 = vmul.f32 0.25, %v6134_v12  ;;  %v6342_v14 = vmul.f32 0.25, %v6201_v13  ;;  %v7546_v27 = vpop.f32.mrb[17].mxu1  ;;  %v7566_v1 = vpop.f32.mrb[21].mxu0 }
 0x2e6   : > { %v6137_v58 = vpop.f32.mrb[18].mxu1  ;;  %v6204_v17 = vpop.f32.mrb[22].mxu0 }
 0x2e7   : > { %v7547_v44 = vpop.f32.mrb[19].mxu1  ;;  %v7567_v4 = vpop.f32.mrb[23].mxu0  ;;  %v6353_v22 = vadd.f32 %v7334_v38, %v6341_v43  ;;  %v6354_v54 = vadd.f32 %v7335_v10, %v6342_v14 }
 0x2e9   : > { %6357 = vmax.xlane.f32.xlu1 %v6353_v22  ;;  %6359 = vmax.xlane.f32.xlu0 %v6354_v54 }
 0x2ff   : > { %3750 = vrot.lane.b32.xlu0 %v9827_v42, %s7810_s2  ;;  %s728_s2 = scalar_lea.vmem %s10248_s24, %s7157_s21 }
 0x324   : > { %v6268_v3 = vpop.f32.mrb[20].mxu1  ;;  %v6335_v32 = vpop.f32.mrb[24].mxu0 }
 0x325   : > { %v6343_v36 = vmul.f32 0.25, %v6268_v3  ;;  %v6344_v25 = vmul.f32 0.25, %v6335_v32  ;;  %v7586_v29 = vpop.f32.mrb[21].mxu1  ;;  %v7606_v39 = vpop.f32.mrb[25].mxu0 }
 0x326   : > { %v6271_v35 = vpop.f32.mrb[22].mxu1  ;;  %v6338_v60 = vpop.f32.mrb[26].mxu0 }
 0x327   : > { %v6355_v0 = vadd.f32 %v7338_v41, %v6343_v36  ;;  %v7587_v34 = vpop.f32.mrb[23].mxu1  ;;  %v7607_v16 = vpop.f32.mrb[27].mxu0  ;;  %v6356_v21 = vadd.f32 %v7339_v26, %v6344_v25 }
 0x329   : > { %6363 = vmax.xlane.f32.xlu1 %v6356_v21  ;;  %6361 = vmax.xlane.f32.xlu0 %v6355_v0 }
 0x33a   : > { %3796 = vrot.lane.b32.xlu1 %v9177_v63, %s7811_s30 }
 0x33f   : > { %3798 = vrot.lane.b32.xlu0 %v9827_v42, %s7811_s30 }
 0x376   : > { %v6358_v45 = vpop.xlane.xlu1 %6357  ;;  %v6360_v9 = vpop.xlane.xlu0 %6359 }
 0x377   : > { %v6365_v7 = vsub.f32 %v6353_v22, %v6358_v45  ;;  %v6366_v48 = vsub.f32 %v6354_v54, %v6360_v9 }
 0x379   : > { %v6369_v2 = vmul.f32 1.442695, %v6365_v7  ;;  %v6371_v8 = vmul.f32 1.442695, %v6366_v48 }
 0x37a   : > { %v3751_v59 = vpop.permute.xlu0 %3750 }
 0x37b   : > { %7778 = vpow2.f32 %v6369_v2 }
 0x37c   : > { %7780 = vpow2.f32 %v6371_v8 }
 0x385   : > { %v9835_v61 = vpop.eup %7778 }
 0x386   : > { %v9837_v15 = vpop.eup %7780  ;;  %6377 = vadd.xlane.f32.xlu1 %v9835_v61 }
 0x387   : > { %6379 = vadd.xlane.f32.xlu0 %v9837_v15 }
 0x397   : > { %3844 = vrot.lane.b32.xlu1 %v9177_v63, %s7812_s5 }
 0x39d   : > { %3846 = vrot.lane.b32.xlu0 %v9827_v42, %s7812_s5 }
 0x3b6   : > { %v6364_v23 = vpop.xlane.xlu1 %6363  ;;  %v6362_v51 = vpop.xlane.xlu0 %6361 }
 0x3b7   : > { %v6368_v62 = vsub.f32 %v6356_v21, %v6364_v23  ;;  %v6367_v53 = vsub.f32 %v6355_v0, %v6362_v51 }
 0x3b9   : > { %v6375_v47 = vmul.f32 1.442695, %v6368_v62  ;;  %v6373_v5 = vmul.f32 1.442695, %v6367_v53 }
 0x3ba   : > { %v3797_v10 = vpop.permute.xlu1 %3796  ;;  %v3799_v12 = vpop.permute.xlu0 %3798 }
 0x3bb   : > { %7782 = vpow2.f32 %v6375_v47  ;;  %v4816_v14 = vcombine.low %v9177_v63, %v3797_v10  ;;  %v4817_v27 = vcombine.high %v9177_v63, %v3797_v10  ;;  %v4884_v1 = vcombine.low %v9827_v42, %v3799_v12 }
 0x3bc   : > { %7784 = vpow2.f32 %v6373_v5  ;;  %v4885_v58 = vcombine.high %v9827_v42, %v3799_v12 }
 0x3bd   : > { %v4824_v54 = vrot.slane %v4816_v14, %v8261_v20  ;;  %v4831_v19 = vrot.slane %v4817_v27, %v8261_v20  ;;  %v4892_v41 = vrot.slane %v4884_v1, %v8261_v20 }
 0x3be   : > { %v4899_v42 = vrot.slane %v4885_v58, %v8261_v20 }
 0x3c5   : > { %v9845_v24 = vpop.eup %7782 }
 0x3c6   : > { %v9847_v38 = vpop.eup %7784  ;;  %6383 = vadd.xlane.f32.xlu0 %v9845_v24 }
 0x3c7   : > { %6381 = vadd.xlane.f32.xlu1 %v9847_v38 }
 0x413   : > { %v6378_v13 = vpop.xlane.xlu1 %6377 }
 0x414   : > { %v6380_v43 = vpop.xlane.xlu0 %6379  ;;  %7786 = vrcp.f32 %v6378_v13 }
 0x415   : > { %7788 = vrcp.f32 %v6380_v43 }
 0x417   : > { %v3845_v17 = vpop.permute.xlu1 %3844 }
 0x418   : > { %v4832_v44 = vcombine.low %v9596_v52, %v3845_v17  ;;  %v4833_v4 = vcombine.high %v9596_v52, %v3845_v17  ;;  %v3847_v22 = vpop.permute.xlu0 %3846 }
 0x419   : > { %v4900_v33 = vcombine.low %v3751_v59, %v3847_v22  ;;  %v4901_v37 = vcombine.high %v3751_v59, %v3847_v22 }
 0x41a   : > { %v4840_v63 = vrot.slane %v4832_v44, %v8261_v20  ;;  %v4847_v26 = vrot.slane %v4833_v4, %v8261_v20 }
 0x41b   : > { %v4908_v3 = vrot.slane %v4900_v33, %v8261_v20  ;;  %v4915_v52 = vrot.slane %v4901_v37, %v8261_v20 }
 0x41c   : > { %v4848_v32 = vcombine.low %v4824_v54, %v4840_v63  ;;  %v4849_v36 = vcombine.high %v4824_v54, %v4840_v63  ;;  %v4864_v25 = vcombine.low %v4831_v19, %v4847_v26  ;;  %v4865_v29 = vcombine.high %v4831_v19, %v4847_v26 }
 0x41d   : > { %v4916_v39 = vcombine.low %v4892_v41, %v4908_v3  ;;  %v4917_v35 = vcombine.high %v4892_v41, %v4908_v3  ;;  %v4932_v60 = vcombine.low %v4899_v42, %v4915_v52  ;;  %v4933_v0 = vcombine.high %v4899_v42, %v4915_v52 }
 0x41e   : > { %v4856_v34 = vrot.slane %v4848_v32, %v8266_v28  ;;  %v4863_v16 = vrot.slane %v4849_v36, %v8266_v28  ;;  %v4872_v21 = vrot.slane %v4864_v25, %v8266_v28  ;;  %v4879_v45 = vrot.slane %v4865_v29, %v8266_v28  ;;  %v7787_v17 = vpop.eup %7786 }
 0x41f   : > { %v4924_v9 = vrot.slane %v4916_v39, %v8266_v28  ;;  %v4931_v7 = vrot.slane %v4917_v35, %v8266_v28  ;;  %v4940_v48 = vrot.slane %v4932_v60, %v8266_v28  ;;  %v4947_v2 = vrot.slane %v4933_v0, %v8266_v28  ;;  %v7789_v22 = vpop.eup %7788  ;;  %v10244_v60 = vld [vmem:[#allocation13_spill] sm:$0xff] }
 0x420   : > { %v5904_v8 = vcombine.low %v4856_v34, %v4863_v16  ;;  %v7260_v59 = vcombine.high %v4856_v34, %v4863_v16  ;;  %v5920_v23 = vcombine.low %v4872_v21, %v4879_v45  ;;  %v7261_v51 = vcombine.high %v4872_v21, %v4879_v45 }
 0x421   : > { %v5972_v62 = vcombine.low %v4924_v9, %v4931_v7  ;;  %v7262_v53 = vcombine.high %v4924_v9, %v4931_v7  ;;  %v5988_v47 = vcombine.low %v4940_v48, %v4947_v2  ;;  %v7263_v5 = vcombine.high %v4940_v48, %v4947_v2 }
 0x422   : > { %v5911_v10 = vrot.slane %v5904_v8, %v8261_v20  ;;  %v5919_v12 = vrot.slane %v7260_v59, %v8261_v20  ;;  %v5927_v13 = vrot.slane %v5920_v23, %v8261_v20  ;;  %v5935_v43 = vrot.slane %v7261_v51, %v8261_v20  ;;  %v7762_v23 = vld [vmem:[%s10062_s11] sm:$0xff]  }
 0x423   : > { %v5979_v14 = vrot.slane %v5972_v62, %v8261_v20  ;;  %v5987_v27 = vrot.slane %v7262_v53, %v8261_v20  ;;  %v5995_v1 = vrot.slane %v5988_v47, %v8261_v20  ;;  %v6003_v58 = vrot.slane %v7263_v5, %v8261_v20 }
 0x424   : > { %v5936_v44 = vcombine.low %v5911_v10, %v5919_v12  ;;  %v5952_v4 = vcombine.low %v5927_v13, %v5935_v43  ;;  %v6389_v32 = vmul.f32 %v7787_v17, %v9835_v61  ;;  %v6390_v36 = vmul.f32 %v7789_v22, %v9837_v15  ;;  %v10245_v61 = vld [vmem:[#allocation8_spill] sm:$0xff]  ;;  %v10246_v15 = vld [vmem:[#allocation21_spill] sm:$0xff] }
 0x425   : > { %v6004_v54 = vcombine.low %v5979_v14, %v5987_v27  ;;  %v6020_v19 = vcombine.low %v5995_v1, %v6003_v58  ;;  %v5953_v0 = vcombine.high %v5927_v13, %v5935_v43  ;;  %v6005_v34 = vcombine.high %v5979_v14, %v5987_v27 }
 0x426   : > { %v5944_v33 = vrot.slane %v5936_v44, %v8266_v28  ;;  %v5960_v37 = vrot.slane %v5952_v4, %v8266_v28  ;;  %v6393_v39 = vpack.c.bf16 %v6389_v32, %v6389_v32  ;;  %v6394_v35 = vpack.c.bf16 %v6390_v36, %v6390_v36  ;;  %v7764_v32 = vld [vmem:[%s10062_s11 + $0x10] sm:$0xff]  }
 0x427   : > { %v6012_v41 = vrot.slane %v6004_v54, %v8266_v28  ;;  %v6028_v63 = vrot.slane %v6020_v19, %v8266_v28  ;;  %v6021_v16 = vcombine.high %v5995_v1, %v6003_v58 }
 0x428   : > { %v5968_v26 = vcombine.low %v5944_v33, %v5960_v37  ;;  %v5969_v42 = vcombine.high %v5944_v33, %v5960_v37 }
 0x429   : > { %v6036_v3 = vcombine.low %v6012_v41, %v6028_v63  ;;  %v6037_v52 = vcombine.high %v6012_v41, %v6028_v63 }
 0x42b   : > { %v6047_v25 = vpack.c.bf16 %v6036_v3, %v5968_v26  ;;  %v6055_v29 = vpack.c.bf16 %v6037_v52, %v5969_v42 }
 0x42d   : > { %7623 = vmatpush3.bf16.msra.mxu1 %v6047_v25  ;;  %7643 = vmatpush3.bf16.msra.mxu0 %v6055_v29 }
 0x42e   : > { %7648 = vmatprep.subr.bf16.mxu1 %v10159_v40  ;;  %7668 = vmatprep.subr.bf16.mxu0 %v10159_v40 }
 0x430   : > { %7625 = vmatmul.mubr.bf16.vlgmr.msra.gmra.mrb[24].mxu1 %v6393_v39  ;;  %7645 = vmatmul.mubr.bf16.vlgmr.msra.gmra.mrb[28].mxu0 %v6394_v35 }
 0x431   : > { %7649 = vmatpush3.bf16.msra.mxu1 %v9396_v18  ;;  %7669 = vmatpush3.bf16.msra.mxu0 %v10244_v60  ;;  %v5937_v18 = vcombine.high %v5911_v10, %v5919_v12 }
 0x432   : > { %7650 = vmatprep.subr.bf16.mxu1 %v10159_v40  ;;  %7670 = vmatprep.subr.bf16.mxu0 %v10159_v40 }
 0x433   : > { %7664 = vmatprep.mubr.msk.bf16.mxu1 %vm7809_vm0, %v10159_v40  ;;  %7684 = vmatprep.mubr.msk.bf16.mxu0 %vm7809_vm0, %v10159_v40 }
 0x435   : > { %7651 = vmatpush3.bf16.msra.mxu1 %v10245_v61  ;;  %7671 = vmatpush3.bf16.msra.mxu0 %v10246_v15 }
 0x436   : > { %7652 = vmatprep.subr.bf16.mxu1 %v10159_v40  ;;  %7672 = vmatprep.subr.bf16.mxu0 %v10159_v40 }
 0x439   : > { %7653 = vmatpush3.bf16.msra.mxu1 %v9757_v31  ;;  %7673 = vmatpush3.bf16.msra.mxu0 %v9759_v56  ;;  %v5951_v31 = vrot.slane %v5937_v18, %v8266_v28  ;;  %v5967_v56 = vrot.slane %v5953_v0, %v8266_v28 }
 0x43a   : > { %7654 = vmatprep.subr.bf16.mxu1 %v10159_v40  ;;  %7674 = vmatprep.subr.bf16.mxu0 %v10159_v40 }
 0x43b   : > { %v5971_v21 = vcombine.high %v5951_v31, %v5967_v56 }
 0x43d   : > { %7655 = vmatpush3.bf16.msra.mxu1 %v9776_v57  ;;  %7675 = vmatpush3.bf16.msra.mxu0 %v9778_v11  ;;  %v6019_v57 = vrot.slane %v6005_v34, %v8266_v28  ;;  %v6035_v11 = vrot.slane %v6021_v16, %v8266_v28 }
 0x43e   : > { %7656 = vmatprep.subr.bf16.mxu1 %v10159_v40  ;;  %7676 = vmatprep.subr.bf16.mxu0 %v10159_v40 }
 0x43f   : > { %v6039_v45 = vcombine.high %v6019_v57, %v6035_v11 }
 0x441   : > { %7657 = vmatpush3.bf16.msra.mxu1 %v9797_v46  ;;  %7677 = vmatpush3.bf16.msra.mxu0 %v9799_v55  ;;  %v5970_v46 = vcombine.low %v5951_v31, %v5967_v56  ;;  %v6038_v55 = vcombine.low %v6019_v57, %v6035_v11  ;;  %v7765_v31 = vld [vmem:[%s10062_s11 + $0x18] sm:$0xff]  }
 0x442   : > { %7658 = vmatprep.subr.bf16.mxu1 %v10159_v40  ;;  %7678 = vmatprep.subr.bf16.mxu0 %v10159_v40 }
 0x443   : > { %v6063_v9 = vpack.c.bf16 %v6038_v55, %v5970_v46 }
 0x445   : > { %7659 = vmatpush3.bf16.msra.mxu1 %v9811_v30  ;;  %7679 = vmatpush3.bf16.msra.mxu0 %v9813_v50  ;;  %v6071_v30 = vpack.c.bf16 %v6039_v45, %v5971_v21 }
 0x446   : > { %7660 = vmatprep.subr.bf16.mxu1 %v10159_v40  ;;  %7680 = vmatprep.subr.bf16.mxu0 %v10159_v40 }
 0x449   : > { %7661 = vmatpush3.bf16.msra.mxu1 %v9819_v49  ;;  %7681 = vmatpush3.bf16.msra.mxu0 %v9821_v6 }
 0x44a   : > { %7662 = vmatprep.subr.bf16.mxu1 %v10159_v40  ;;  %7682 = vmatprep.subr.bf16.mxu0 %v10159_v40 }
 0x44d   : > { %7663 = vmatpush3.bf16.msra.mxu1 %v6063_v9  ;;  %7683 = vmatpush3.bf16.msra.mxu0 %v6071_v30 }
 0x44e   : > { %7688 = vmatprep.subr.bf16.mxu1 %v10159_v40  ;;  %7700 = vmatprep.subr.bf16.mxu0 %v10159_v40 }
 0x453   : > { %v6384_v50 = vpop.xlane.xlu0 %6383 }
 0x454   : > { %v6382_v7 = vpop.xlane.xlu1 %6381  ;;  %7790 = vrcp.f32 %v6384_v50 }
 0x455   : > { %7792 = vrcp.f32 %v6382_v7 }
 0x45e   : > { %v7791_v48 = vpop.eup %7790 }
 0x45f   : > { %v7793_v49 = vpop.eup %7792  ;;  %v6392_v6 = vmul.f32 %v7791_v48, %v9845_v24  ;;  %v7763_v24 = vld [vmem:[%s10062_s11 + $0x8] sm:$0xff]  }
 0x460   : > { %v6391_v2 = vmul.f32 %v7793_v49, %v9847_v38 }
 0x461   : > { %v6396_v8 = vpack.c.bf16 %v6392_v6, %v6392_v6 }
 0x462   : > { %v6395_v59 = vpack.c.bf16 %v6391_v2, %v6391_v2 }
 0x463   : > { %7685 = vmatmul.mubr.bf16.vlgmr.msra.gmra.mrb[32].mxu0 %v6396_v8 }
 0x464   : > { %7665 = vmatmul.mubr.bf16.vlgmr.msra.gmra.mrb[28].mxu1 %v6395_v59  ;;  %7708 = vmatprep.mubr.msk.bf16.mxu0 %vm7809_vm0, %v10159_v40 }
 0x465   : > { %7696 = vmatprep.mubr.msk.bf16.mxu1 %vm7809_vm0, %v10159_v40  ;;  %7689 = vmatpush3.bf16.msra.mxu1 %v7762_v23  ;;  %v7270_v23 = vld [vmem:[%s10063_s12] ss:$0 sm:$0xff] }
 0x466   : > { %7690 = vmatprep.subr.bf16.mxu1 %v10159_v40 }
 0x469   : > { %7691 = vmatpush3.bf16.msra.mxu1 %v7763_v24 }
 0x46a   : > { %7692 = vmatprep.subr.bf16.mxu1 %v10159_v40 }
 0x46d   : > { %7693 = vmatpush3.bf16.msra.mxu1 %v7764_v32  ;;  %v7277_v32 = vld [vmem:[%s10065_s14] ss:$0 sm:$0xff] }
 0x46e   : > { %7694 = vmatprep.subr.bf16.mxu1 %v10159_v40 }
 0x471   : > { %7695 = vmatpush3.bf16.msra.mxu1 %v7765_v31 }
 0x472   : > { %7712 = vmatprep.subr.bf16.mxu1 %v10159_v40 }
 0x503   : > { %v6431_v38 = vpop.f32.mrb[24].mxu1  ;;  %v6471_v51 = vpop.f32.mrb[28].mxu0 }
 0x504   : > { %v7626_v62 = vpop.f32.mrb[25].mxu1  ;;  %v7646_v53 = vpop.f32.mrb[29].mxu0 }
 0x505   : > { %v6434_v47 = vpop.f32.mrb[26].mxu1  ;;  %v6474_v5 = vpop.f32.mrb[30].mxu0  ;;  %v10247_v53 = vld [vmem:[#allocation3_spill] sm:$0xff] }
 0x506   : > { %v7627_v10 = vpop.f32.mrb[27].mxu1  ;;  %v7647_v12 = vpop.f32.mrb[31].mxu0 }
 0x536   : > { %v6551_v13 = vpop.f32.mrb[32].mxu0 }
 0x537   : > { %v6511_v43 = vpop.f32.mrb[28].mxu1  ;;  %v6573_v14 = vcombine.low %v6471_v51, %v6551_v13  ;;  %v6574_v27 = vcombine.high %v6471_v51, %v6551_v13  ;;  %v7686_v1 = vpop.f32.mrb[33].mxu0 }
 0x538   : > { %v6557_v58 = vcombine.low %v6431_v38, %v6511_v43  ;;  %v6558_v17 = vcombine.high %v6431_v38, %v6511_v43  ;;  %v7666_v44 = vpop.f32.mrb[29].mxu1  ;;  %v6554_v4 = vpop.f32.mrb[34].mxu0  ;;  %v7766_v1 = vld [vmem:[%s10066_s15] sm:$0xff]  }
 0x539   : > { %v6581_v22 = vrot.slane %v6573_v14, %v8261_v20  ;;  %v6588_v54 = vrot.slane %v6574_v27, %v8261_v20  ;;  %v6514_v19 = vpop.f32.mrb[30].mxu1  ;;  %v7687_v33 = vpop.f32.mrb[35].mxu0  ;;  %7701 = vmatpush3.bf16.msra.mxu0 %v7766_v1  ;;  %v7770_v44 = vld [vmem:[%s10068_s17] sm:$0xff]   ;;  %v7771_v4 = vld [vmem:[%s10068_s17 + $0x8] sm:$0xff]  }
 0x53a   : > { %v6565_v37 = vrot.slane %v6557_v58, %v8261_v20  ;;  %v6572_v41 = vrot.slane %v6558_v17, %v8261_v20  ;;  %v7667_v63 = vpop.f32.mrb[31].mxu1  ;;  %v7767_v58 = vld [vmem:[%s10066_s15 + $0x8] sm:$0xff]   ;;  %7702 = vmatprep.subr.bf16.mxu0 %v10159_v40  ;;  %v7768_v17 = vld [vmem:[%s10066_s15 + $0x10] sm:$0xff]   ;;  %v7773_v19 = vld [vmem:[%s10068_s17 + $0x18] sm:$0xff]  }
 0x53b   : > { %v7774_v33 = vld [vmem:[%s10068_s17 + $0x20] sm:$0xff]  }
 0x53c   : > { %v6589_v26 = vcombine.low %v6565_v37, %v6581_v22  ;;  %v6590_v42 = vcombine.high %v6565_v37, %v6581_v22  ;;  %v6605_v3 = vcombine.low %v6572_v41, %v6588_v54  ;;  %v6606_v52 = vcombine.high %v6572_v41, %v6588_v54  ;;  %v7769_v22 = vld [vmem:[%s10066_s15 + $0x18] sm:$0xff]   ;;  %v7772_v54 = vld [vmem:[%s10068_s17 + $0x10] sm:$0xff]   ;;  %v7775_v37 = vld [vmem:[%s10068_s17 + $0x28] sm:$0xff]  }
 0x53d   : > { %7703 = vmatpush3.bf16.msra.mxu0 %v7767_v58 }
 0x53e   : > { %v6597_v36 = vrot.slane %v6589_v26, %v8266_v28  ;;  %v6604_v25 = vrot.slane %v6590_v42, %v8266_v28  ;;  %v6613_v29 = vrot.slane %v6605_v3, %v8266_v28  ;;  %v6620_v39 = vrot.slane %v6606_v52, %v8266_v28  ;;  %7704 = vmatprep.subr.bf16.mxu0 %v10159_v40  ;;  %v7276_v3 = vld [vmem:[%s10064_s13] ss:$0 sm:$0xff] }
 0x540   : > { %v6625_v35 = vcombine.low %v6597_v36, %v6604_v25  ;;  %v7268_v60 = vcombine.high %v6597_v36, %v6604_v25  ;;  %v6641_v61 = vcombine.low %v6613_v29, %v6620_v39  ;;  %v7269_v15 = vcombine.high %v6613_v29, %v6620_v39  ;;  %v7776_v39 = vld [vmem:[%s10068_s17 + $0x30] sm:$0xff]  }
 0x541   : > { %7705 = vmatpush3.bf16.msra.mxu0 %v7768_v17 }
 0x542   : > { %v6632_v18 = vrot.slane %v6625_v35, %v8261_v20  ;;  %v6640_v0 = vrot.slane %v7268_v60, %v8261_v20  ;;  %v6648_v34 = vrot.slane %v6641_v61, %v8261_v20  ;;  %v6656_v16 = vrot.slane %v7269_v15, %v8261_v20  ;;  %7706 = vmatprep.subr.bf16.mxu0 %v10159_v40  ;;  %v7777_v35 = vld [vmem:[%s10068_s17 + $0x38] sm:$0xff]   ;;  %v7278_v60 = vld [vmem:[%s10067_s16] ss:$0 sm:$0xff] }
 0x544   : > { %v6658_v56 = vcombine.high %v6632_v18, %v6640_v0  ;;  %v6674_v57 = vcombine.high %v6648_v34, %v6656_v16  ;;  %v6657_v11 = vcombine.low %v6632_v18, %v6640_v0  ;;  %v6673_v46 = vcombine.low %v6648_v34, %v6656_v16 }
 0x545   : > { %7707 = vmatpush3.bf16.msra.mxu0 %v7769_v22 }
 0x546   : > { %v6672_v55 = vrot.slane %v6658_v56, %v8266_v28  ;;  %v6688_v21 = vrot.slane %v6674_v57, %v8266_v28  ;;  %v6665_v45 = vrot.slane %v6657_v11, %v8266_v28  ;;  %v6681_v9 = vrot.slane %v6673_v46, %v8266_v28  ;;  %v7284_v56 = vld [vmem:[%s10069_s18] ss:$0 sm:$0xff] }
 0x548   : > { %v6691_v20 = vcombine.low %v6672_v55, %v6688_v21  ;;  %v6690_v30 = vcombine.high %v6665_v45, %v6681_v9  ;;  %v6692_v50 = vcombine.high %v6672_v55, %v6688_v21  ;;  %v6689_v7 = vcombine.low %v6665_v45, %v6681_v9 }
 0x54a   : > { %6698 = vrot.lane.b32.xlu1 %v6691_v20, %s7815_s1  ;;  %6694 = vrot.lane.b32.xlu0 %v6690_v30, %s7816_s4 }
 0x54e   : > { %6702 = vrot.lane.b32.xlu1 %v6692_v50, %s7817_s22 }
 0x5bc   : > { %v6699_v48 = vpop.permute.xlu1 %6698  ;;  %v6695_v49 = vpop.permute.xlu0 %6694 }
 0x5bd   : > { %v6705_v6 = vsel %vm6072_vm2, %v6689_v7, %v6695_v49 }
 0x5be   : > { %v6707_v8 = vsel %vm6706_vm3, %v6705_v6, %v6699_v48 }
 0x5c0   : > { %v6703_v2 = vpop.permute.xlu1 %6702 }
 0x5c1   : > { %v6709_v59 = vsel %vm6708_vm4, %v6707_v8, %v6703_v2  ;;  %v7293_v8 = vld [vmem:[%s10070_s19] ss:$0 sm:$0xff] }
 0x5c2   : > { %v6710_v28 = vpack.c.bf16 %v6709_v59, %v6709_v59 }
 0x5c4   : > { %7697 = vmatmul.mubr.msk.bf16.vlgmr.msra.gmra.mrb[32].mxu1 %vm846_vm1, %v6710_v28  ;;  %v7294_v28 = vld [vmem:[%s10071_s20] ss:$0 sm:$0xff] }
 0x5c5   : > { %7728 = vmatprep.mubr.msk.bf16.mxu1 %vm7809_vm0, %v10159_v40  ;;  %7713 = vmatpush3.bf16.msra.mxu1 %v7770_v44 }
 0x5c6   : > { %7714 = vmatprep.subr.bf16.mxu1 %v10159_v40 }
 0x5c9   : > { %7715 = vmatpush3.bf16.msra.mxu1 %v7771_v4 }
 0x5ca   : > { %7716 = vmatprep.subr.bf16.mxu1 %v10159_v40 }
 0x5cd   : > { %7717 = vmatpush3.bf16.msra.mxu1 %v7772_v54 }
 0x5ce   : > { %7718 = vmatprep.subr.bf16.mxu1 %v10159_v40 }
 0x5d1   : > { %7719 = vmatpush3.bf16.msra.mxu1 %v7773_v19 }
 0x5d2   : > { %7720 = vmatprep.subr.bf16.mxu1 %v10159_v40 }
 0x5d5   : > { %7721 = vmatpush3.bf16.msra.mxu1 %v7774_v33 }
 0x5d6   : > { %7722 = vmatprep.subr.bf16.mxu1 %v10159_v40 }
 0x5d9   : > { %7723 = vmatpush3.bf16.msra.mxu1 %v7775_v37 }
 0x5da   : > { %7724 = vmatprep.subr.bf16.mxu1 %v10159_v40 }
 0x5dd   : > { %7725 = vmatpush3.bf16.msra.mxu1 %v7776_v39 }
 0x5de   : > { %7726 = vmatprep.subr.bf16.mxu1 %v10159_v40 }
 0x5e1   : > { %7727 = vmatpush3.bf16.msra.mxu1 %v7777_v35 }
 0x697   : > { %v6787_v24 = vpop.f32.mrb[32].mxu1 }
 0x698   : > { %v6788_v38 = vadd.f32 %v7270_v23, %v6787_v24  ;;  %v7698_v51 = vpop.f32.mrb[33].mxu1 }
 0x699   : > { %v6790_v62 = vpop.f32.mrb[34].mxu1 }
 0x69a   : > { %v6793_v47 = vadd.f32 %v6788_v38, %v10247_v53  ;;  %v7699_v5 = vpop.f32.mrb[35].mxu1 }
 0x69c   : > { %v6796_v10 = vsel %vm846_vm1, %v6793_v47, 0.0 }
 0x69d   : > { %6797 = vadd.xlane.f32.xlu0 %v6796_v10 }
 0x72a   : > { %v6798_v12 = vpop.xlane.xlu0 %6797 }
 0x72b   : > { %v6800_v13 = vmul.f32 0.015625, %v6798_v12 }
 0x72d   : > { %v6801_v43 = vsub.f32 %v6793_v47, %v6800_v13 }
 0x72f   : > { %v6802_v14 = vmul.f32 %v6801_v43, %v6801_v43 }
 0x731   : > { %v6803_v27 = vsel %vm846_vm1, %v6802_v14, 0.0 }
 0x732   : > { %6804 = vadd.xlane.f32.xlu1 %v6803_v27 }
 0x7bf   : > { %v6805_v41 = vpop.xlane.xlu1 %6804 }
 0x7c0   : > { %v6806_v63 = vmul.f32 0.015625, %v6805_v41 }
 0x7c2   : > { %v6807_v26 = vadd.f32 1e-05, %v6806_v63 }
 0x7c4   : > { %7794 = vrsqrt.f32 %v6807_v26 }
 0x7ce   : > { %v7795_v42 = vpop.eup %7794 }
 0x7cf   : > { %v6809_v52 = vmul.f32 %v7795_v42, %v6801_v43 }
 0x7d1   : > { %v6816_v36 = vmul.f32 %v7276_v3, %v6809_v52 }
 0x7d3   : > { %v6823_v25 = vadd.f32 %v7277_v32, %v6816_v36 }
 0x7d5   : > { %v6824_v29 = vpack.c.bf16 %v6823_v25, %v6823_v25 }
 0x7d7   : > { %7709 = vmatmul.mubr.msk.bf16.vlgmr.msra.gmra.mrb[36].mxu0 %vm846_vm1, %v6824_v29 }
 0x8aa   : > { %v6901_v61 = vpop.f32.mrb[36].mxu0 }
 0x8ab   : > { %v6902_v15 = vadd.f32 %v7278_v60, %v6901_v61  ;;  %v7710_v18 = vpop.f32.mrb[37].mxu0 }
 0x8ac   : > { %v6904_v0 = vpop.f32.mrb[38].mxu0 }
 0x8ad   : > { %v6907_v34 = vmax.f32 %v6902_v15, 0.0  ;;  %v7711_v16 = vpop.f32.mrb[39].mxu0 }
 0x8af   : > { %v6908_v31 = vpack.c.bf16 %v6907_v34, %v6907_v34 }
 0x8b1   : > { %7729 = vmatmul.mubr.bf16.vlgmr.msra.gmra.mrb[36].mxu1 %v6908_v31 }
 0x984   : > { %v7014_v57 = vpop.f32.mrb[36].mxu1 }
 0x985   : > { %v7015_v11 = vadd.f32 %v7284_v56, %v7014_v57  ;;  %v7730_v40 = vpop.f32.mrb[37].mxu1 }
 0x986   : > { %v7017_v46 = vpop.f32.mrb[38].mxu1 }
 0x987   : > { %v7020_v55 = vadd.f32 %v7015_v11, %v6823_v25  ;;  %v7731_v21 = vpop.f32.mrb[39].mxu1 }
 0x989   : > { %v7023_v45 = vsel %vm846_vm1, %v7020_v55, 0.0 }
 0x98a   : > { %7024 = vadd.xlane.f32.xlu0 %v7023_v45 }
 0xa17   : > { %v7025_v9 = vpop.xlane.xlu0 %7024 }
 0xa18   : > { %v7026_v20 = vmul.f32 0.015625, %v7025_v9 }
 0xa1a   : > { %v7027_v30 = vsub.f32 %v7020_v55, %v7026_v20 }
 0xa1c   : > { %v7028_v50 = vmul.f32 %v7027_v30, %v7027_v30 }
 0xa1e   : > { %v7029_v7 = vsel %vm846_vm1, %v7028_v50, 0.0 }
 0xa1f   : > { %7030 = vadd.xlane.f32.xlu0 %v7029_v7 }
 0xaac   : > { %v7031_v48 = vpop.xlane.xlu0 %7030 }
 0xaad   : > { %v7032_v49 = vmul.f32 0.015625, %v7031_v48 }
 0xaaf   : > { %v7033_v6 = vadd.f32 1e-05, %v7032_v49 }
 0xab1   : > { %7796 = vrsqrt.f32 %v7033_v6 }
 0xabb   : > { %v7797_v2 = vpop.eup %7796 }
 0xabc   : > { %v7035_v59 = vmul.f32 %v7797_v2, %v7027_v30 }
 0xabe   : > { %v7042_v23 = vmul.f32 %v7293_v8, %v7035_v59 }
 0xac0   : > { %v7049_v24 = vadd.f32 %v7294_v28, %v7042_v23 }
 0xac2   : > { %7050 = vst.msk [vmem:[%s728_s2] sm:$0xff] %vm846_vm1, %v7049_v24 }
 0xac3 PF: > { %s10249_s30 = sld [smem:[#allocation2_spill]] }
 0xac9   : > { %s31_s2 = sadd.s32 1, %s10249_s30  }
 0xaca   : > { %p28_p4 = scmp.ge.s32.totalorder %s31_s2, 4  }
 0xacc   :  { %30 = sbr.rel (!%p28_p4) target bundleno = 8 (0x8), region = 146 }

// kernel: forward.13
= control target key start
LH: loop header
LB: loop body
LE: loop exit
PB: predicated region body
PF: predicated region fallthrough
CT: control target
= control target key end

     0   :  { %s10873_s0 = inlined_call_operand.vmem [shape: f32[2,16,64], index: 0, kind: input, shape index: {}]   ;;  %s10874_s1 = inlined_call_operand.vmem [shape: bf16[2,16,64], index: 1, kind: input, shape index: {}]   ;;  %s10875_s2 = inlined_call_operand.vmem [shape: f32[2,128,64], index: 2, kind: input, shape index: {}]   ;;  %s10876_s3 = inlined_call_operand.vmem [shape: bf16[2,128,64], index: 3, kind: input, shape index: {}]   ;;  %s10877_s4 = inlined_call_operand.vmem [shape: bf16[2,4,16,128], index: 4, kind: input, shape index: {}]   ;;  %s10878_s5 = inlined_call_operand.vmem [shape: bf16[64,64], index: 5, kind: input, shape index: {}]   ;;  %s10879_s6 = inlined_call_operand.vmem [shape: f32[1,64], index: 6, kind: input, shape index: {}]   ;;  %s10880_s7 = inlined_call_operand.vmem [shape: bf16[64,64], index: 7, kind: input, shape index: {}]   ;;  %s10881_s8 = inlined_call_operand.vmem [shape: f32[1,64], index: 8, kind: input, shape index: {}]   ;;  %s10882_s9 = inlined_call_operand.vmem [shape: bf16[64,64], index: 9, kind: input, shape index: {}]   ;;  %s10883_s10 = inlined_call_operand.vmem [shape: f32[1,64], index: 10, kind: input, shape index: {}]   ;;  %s10884_s11 = inlined_call_operand.vmem [shape: bf16[64,64], index: 11, kind: input, shape index: {}]   ;;  %s10885_s12 = inlined_call_operand.vmem [shape: f32[1,64], index: 12, kind: input, shape index: {}]   ;;  %s10886_s13 = inlined_call_operand.vmem [shape: f32[1,64], index: 13, kind: input, shape index: {}]   ;;  %s10887_s14 = inlined_call_operand.vmem [shape: f32[1,64], index: 14, kind: input, shape index: {}]   ;;  %s10888_s15 = inlined_call_operand.vmem [shape: bf16[64,128], index: 15, kind: input, shape index: {}]   ;;  %s10889_s16 = inlined_call_operand.vmem [shape: f32[1,128], index: 16, kind: input, shape index: {}]   ;;  %s10890_s17 = inlined_call_operand.vmem [shape: bf16[128,64], index: 17, kind: input, shape index: {}]   ;;  %s10891_s18 = inlined_call_operand.vmem [shape: f32[1,64], index: 18, kind: input, shape index: {}]   ;;  %s10892_s19 = inlined_call_operand.vmem [shape: f32[1,64], index: 19, kind: input, shape index: {}]   ;;  %s10893_s20 = inlined_call_operand.vmem [shape: f32[1,64], index: 20, kind: input, shape index: {}]   ;;  %s10894_s21 = inlined_call_operand.vmem [shape: f32[2,16,64], index: 21, kind: output, shape index: {}]  }
   0x1   :  { %10951 = sst [smem:[#allocation57_spill]] %s10873_s0 }
   0x2   :  { %10952 = sst [smem:[#allocation58_spill]] %s10874_s1 }
   0x3   :  { %10953 = sst [smem:[#allocation59_spill]] %s10875_s2  ;;  %s8395_s2 = smov 0  }
   0x4   :  { %10954 = sst [smem:[#allocation60_spill]] %s10876_s3 }
   0x5   :  { %10955 = sst [smem:[#allocation61_spill]] %s10877_s4 }
   0x6   :  { %10956 = sst [smem:[#allocation62_spill]] %s10878_s5 }
   0x7   :  { %10957 = sst [smem:[#allocation63_spill]] %s10894_s21 }
   0x8 LB: > { %10958 = sst [smem:[#allocation2_spill]] %s8273_s2  ;;  %s7561_s25 = sadd.s32 4294967295, %s8273_s2   ;;  %s8273_s2 = sphi %s8395_s2, %s31_s2  }
   0x9   : > { %p7565_p0 = scmp.ge.s32.totalorder %s8273_s2, 1  ;;  %p627_p1 = scmp.lt.s32.totalorder %s8273_s2, 3 }
   0xb   : > { %p628_p2 = pnand %p7565_p0, %p627_p1 }
   0xd   : > { %631 = sbr.rel (%p628_p2) target bundleno = 2788 (0xae4), region = 104 }
  0x14   : > { %v8198_v0 = vld [vmem:[%s10880_s7] sm:$0xff]   ;;  %p707_p3 = scmp.lt.s32.totalorder %s7561_s25, 1  ;;  %v8199_v1 = vld [vmem:[%s10880_s7 + $0x8] sm:$0xff]   ;;  %v8200_v2 = vld [vmem:[%s10880_s7 + $0x10] sm:$0xff]   ;;  %v10897_v3 = vmov 0.0   ;;  %s10959_s23 = sld [smem:[#allocation59_spill]] }
  0x15   : > { %7913 = vmatprep.subr.bf16.mxu1 %v8198_v0  ;;  %7901 = vmatprep.subr.bf16.mxu0 %v10897_v3  ;;  %s10960_s27 = sld [smem:[#allocation60_spill]]  ;;  %s10961_s0 = sld [smem:[#allocation62_spill]]  ;;  %v8201_v5 = vld [vmem:[%s10880_s7 + $0x18] sm:$0xff]   ;;  %vm8276_vm0 = vmmov 0   ;;  %vm858_vm1 = vcmask 523264   ;;  %v8206_v58 = vld [vmem:[%s10882_s9] sm:$0xff]  }
  0x16   : > { %s11124_s25 = smov (!%p707_p3, %s7561_s25), 1  ;;  %7914 = vmatpush3.bf16.msra.mxu1 %v8198_v0  ;;  %7909 = vmatprep.mubr.msk.bf16.mxu0 %vm8276_vm0, %v10897_v3  ;;  %s10962_s5 = sld [smem:[#allocation57_spill]]  ;;  %vm6231_vm2 = vcmask 130048   ;;  %vm7074_vm3 = vcmask 261120   ;;  %vm7077_vm4 = vcmask 392192  }
  0x17   : > { %7915 = vmatprep.subr.bf16.mxu1 %v8199_v1  ;;  %s7715_s4 = sshll.u32 %s11124_s25, 7  ;;  %s7716_s30 = sshll.u32 %s11124_s25, 6 }
  0x18   : > { %s7713_s21 = sshll.u32 %s11124_s25, 4  ;;  %s7714_s2 = sshll.u32 %s11124_s25, 3 }
  0x19   : > { %s10963_s28 = sld [smem:[#allocation58_spill]] }
  0x1a   : > { %s8420_s1 = scalar_lea.vmem %s10959_s23, %s7715_s4  ;;  %7916 = vmatpush3.bf16.msra.mxu1 %v8199_v1  ;;  %s11112_s4 = sld [smem:[#allocation61_spill]] }
  0x1b   : > { %s8425_s3 = scalar_lea.vmem %s10960_s27, %s7716_s30  ;;  %v8202_v4 = vld [vmem:[%s10961_s0] sm:$0xff]   ;;  %v747_v7 = vld [vmem:[%s8420_s1 + $0x8] sm:$0xff]  ;;  %v748_v11 = vld [vmem:[%s8420_s1 + $0x10] sm:$0xff]  ;;  %7917 = vmatprep.subr.bf16.mxu1 %v8200_v2  ;;  %s8277_s30 = smov 112  }
  0x1c   : > { %v746_v6 = vld [vmem:[%s8420_s1] sm:$0xff]  ;;  %v749_v12 = vld [vmem:[%s8420_s1 + $0x18] sm:$0xff]  ;;  %v7771_v13 = vld [vmem:[%s8425_s3 + $0x8] sm:$0xff]   ;;  %7902 = vmatpush3.bf16.msra.mxu0 %v8202_v4  ;;  %s711_s22 = scalar_lea.vmem %s10962_s5, %s7713_s21  ;;  %s8279_s5 = smov 80  }
  0x1d   : > { %v7724_v8 = vld [vmem:[%s8425_s3] sm:$0xff]   ;;  %v7729_v14 = vunpack.c.l.bf16 %v7771_v13  ;;  %v7730_v15 = vunpack.c.h.bf16 %v7771_v13  ;;  %v751_v17 = vld [vmem:[%s8420_s1 + $0x28] sm:$0xff]  ;;  %v7772_v18 = vld [vmem:[%s8425_s3 + $0x10] sm:$0xff]   ;;  %7903 = vmatprep.subr.bf16.mxu0 %v10897_v3 }
  0x1e   : > { %v7725_v9 = vunpack.c.l.bf16 %v7724_v8  ;;  %v7726_v10 = vunpack.c.h.bf16 %v7724_v8  ;;  %v750_v16 = vld [vmem:[%s8420_s1 + $0x20] sm:$0xff]  ;;  %v7733_v21 = vunpack.c.l.bf16 %v7772_v18  ;;  %v7734_v22 = vunpack.c.h.bf16 %v7772_v18  ;;  %7918 = vmatpush3.bf16.msra.mxu1 %v8200_v2  ;;  %v7773_v28 = vld [vmem:[%s8425_s3 + $0x18] sm:$0xff]   ;;  %v752_v30 = vld [vmem:[%s8420_s1 + $0x30] sm:$0xff] }
  0x1f   : > { %v796_v23 = vadd.f32 %v7729_v14, %v748_v11  ;;  %v797_v24 = vadd.f32 %v7730_v15, %v749_v12  ;;  %7919 = vmatprep.subr.bf16.mxu1 %v8201_v5  ;;  %v7774_v29 = vld [vmem:[%s8425_s3 + $0x20] sm:$0xff]   ;;  %v753_v31 = vld [vmem:[%s8420_s1 + $0x38] sm:$0xff]  ;;  %v7737_v33 = vunpack.c.l.bf16 %v7773_v28  ;;  %v7738_v34 = vunpack.c.h.bf16 %v7773_v28  ;;  %v8203_v36 = vld [vmem:[%s10961_s0 + $0x8] sm:$0xff]   ;;  %s716_s29 = scalar_lea.vmem %s10963_s28, %s7714_s2  ;;  %s8278_s2 = smov 96  }
  0x20   : > { %v794_v19 = vadd.f32 %v7725_v9, %v746_v6  ;;  %v795_v20 = vadd.f32 %v7726_v10, %v747_v7  ;;  %v798_v26 = vadd.f32 %v7733_v21, %v750_v16  ;;  %v799_v27 = vadd.f32 %v7734_v22, %v751_v17  ;;  %v754_v35 = vld [vmem:[%s8420_s1 + $0x40] sm:$0xff]  ;;  %v755_v38 = vld [vmem:[%s8420_s1 + $0x48] sm:$0xff]  ;;  %7904 = vmatpush3.bf16.msra.mxu0 %v8203_v36  ;;  %v8204_v41 = vld [vmem:[%s10961_s0 + $0x10] sm:$0xff]  }
  0x21   : > { %v8460_v32 = vpack.c.bf16 %v797_v24, %v796_v23  ;;  %v7741_v39 = vunpack.c.l.bf16 %v7774_v29  ;;  %v7742_v40 = vunpack.c.h.bf16 %v7774_v29  ;;  %v738_v42 = vld [vmem:[%s711_s22] sm:$0xff]  ;;  %v739_v43 = vld [vmem:[%s711_s22 + $0x8] sm:$0xff]  ;;  %7905 = vmatprep.subr.bf16.mxu0 %v10897_v3  ;;  %v800_v45 = vadd.f32 %v7737_v33, %v752_v30  ;;  %v7776_v52 = vld [vmem:[%s8425_s3 + $0x30] sm:$0xff]  }
  0x22   : > { %v8446_v25 = vpack.c.bf16 %v795_v20, %v794_v19  ;;  %7920 = vmatpush3.bf16.msra.mxu1 %v8201_v5  ;;  %v8469_v37 = vpack.c.bf16 %v799_v27, %v798_v26  ;;  %v7720_v44 = vld [vmem:[%s716_s29] sm:$0xff]   ;;  %v801_v46 = vadd.f32 %v7738_v34, %v753_v31  ;;  %v7775_v47 = vld [vmem:[%s8425_s3 + $0x28] sm:$0xff]   ;;  %v8205_v53 = vld [vmem:[%s10961_s0 + $0x18] sm:$0xff]   ;;  %v7749_v1 = vunpack.c.l.bf16 %v7776_v52  ;;  %s8283_s29 = smov 16  }
  0x23   : > { %7961 = vmatprep.subr.bf16.mxu1 %v10897_v3  ;;  %v7721_v48 = vunpack.c.l.bf16 %v7720_v44  ;;  %v7722_v49 = vunpack.c.h.bf16 %v7720_v44  ;;  %v802_v50 = vadd.f32 %v7741_v39, %v754_v35  ;;  %v803_v51 = vadd.f32 %v7742_v40, %v755_v38  ;;  %v756_v56 = vld [vmem:[%s8420_s1 + $0x50] sm:$0xff]  ;;  %v757_v57 = vld [vmem:[%s8420_s1 + $0x58] sm:$0xff]  ;;  %v758_v62 = vld [vmem:[%s8420_s1 + $0x60] sm:$0xff] }
  0x24   : > { %7921 = vmatprep.mubr.msk.bf16.mxu1 %vm858_vm1, %v8446_v25  ;;  %7906 = vmatpush3.bf16.msra.mxu0 %v8204_v41  ;;  %v814_v59 = vpack.c.bf16 %v801_v46, %v800_v45  ;;  %v7745_v60 = vunpack.c.l.bf16 %v7775_v47  ;;  %v7746_v61 = vunpack.c.h.bf16 %v7775_v47  ;;  %v759_v63 = vld [vmem:[%s8420_s1 + $0x68] sm:$0xff]  ;;  %v7750_v2 = vunpack.c.h.bf16 %v7776_v52  ;;  %v7777_v6 = vld [vmem:[%s8425_s3 + $0x38] sm:$0xff]   ;;  %v8208_v11 = vld [vmem:[%s10882_s9 + $0x10] sm:$0xff]   ;;  %s7717_s3 = sshll.u32 %s11124_s25, 5 }
  0x25   : > { %7922 = vmatmul.mubr.msk.bf16.vlgmr.msra.gmra.mrb[0].mxu1 %vm858_vm1, %v8460_v32  ;;  %v8486_v54 = vadd.f32 %v7721_v48, %v738_v42  ;;  %v8488_v55 = vadd.f32 %v7722_v49, %v739_v43  ;;  %7907 = vmatprep.subr.bf16.mxu0 %v10897_v3  ;;  %v815_v0 = vpack.c.bf16 %v803_v51, %v802_v50  ;;  %v8207_v5 = vld [vmem:[%s10882_s9 + $0x8] sm:$0xff]   ;;  %v760_v12 = vld [vmem:[%s8420_s1 + $0x70] sm:$0xff]  ;;  %v761_v13 = vld [vmem:[%s8420_s1 + $0x78] sm:$0xff]  ;;  %v7753_v15 = vunpack.c.l.bf16 %v7777_v6  ;;  %s8284_s1 = smov 48  }
  0x26   : > { %7925 = vmatprep.mubr.msk.bf16.mxu1 %vm858_vm1, %v8469_v37  ;;  %v804_v7 = vadd.f32 %v7745_v60, %v756_v56  ;;  %v805_v8 = vadd.f32 %v7746_v61, %v757_v57  ;;  %v806_v9 = vadd.f32 %v7749_v1, %v758_v62  ;;  %v807_v10 = vadd.f32 %v7750_v2, %v759_v63  ;;  %v8209_v18 = vld [vmem:[%s10882_s9 + $0x18] sm:$0xff]   ;;  %v8537_v22 = vld [vmem:[%s10881_s8] ss:$0 sm:$0xff] }
  0x27   : > { %10964 = vst [vmem:[#allocation3_spill] sm:$0xff] %v8486_v54  ;;  %10965 = vst [vmem:[#allocation4_spill] sm:$0xff] %v8488_v55  ;;  %v810_v4 = vpack.c.bf16 %v8488_v55, %v8486_v54  ;;  %v7754_v16 = vunpack.c.h.bf16 %v7777_v6  ;;  %v808_v19 = vadd.f32 %v7753_v15, %v760_v12  ;;  %v7578_v61 = vld [vmem:[%s10879_s6] ss:$0 sm:$0xff] }
  0x28   : > { %7908 = vmatpush3.bf16.msra.mxu0 %v8205_v53  ;;  %v816_v14 = vpack.c.bf16 %v805_v8, %v804_v7  ;;  %v817_v17 = vpack.c.bf16 %v807_v10, %v806_v9  ;;  %v7597_v2 = vld [vmem:[%s10883_s10] ss:$0 sm:$0xff]  ;;  %v8280_v7 = vmov 1983009808   ;;  %v1224_v9 = vlaneseq }
  0x29   : > { %7937 = vmatprep.subr.bf16.mxu0 %v8206_v58  ;;  %v809_v20 = vadd.f32 %v7754_v16, %v761_v13  ;;  %v1222_v8 = vunpack.c.l.s4 %v8280_v7  ;;  %v8281_v16 = vmov 1934713408  }
  0x2b   : > { %7910 = vmatmul.mubr.msk.bf16.vlgmr.msra.gmra.mrb[0].mxu0 %vm858_vm1, %v810_v4  ;;  %v818_v21 = vpack.c.bf16 %v809_v20, %v808_v19  ;;  %v1223_v13 = vunpack.c.0.s8 %v1222_v8 }
  0x2c   : > { %7938 = vmatpush3.bf16.msra.mxu0 %v8206_v58  ;;  %7945 = vmatprep.mubr.msk.bf16.mxu0 %vm858_vm1, %v8446_v25 }
  0x2d   : > { %7926 = vmatmul.mubr.msk.bf16.gmra.mrb[4].mxu1 %vm858_vm1, %v814_v59  ;;  %7939 = vmatprep.subr.bf16.mxu0 %v8207_v5 }
  0x2e   : > { %7929 = vmatprep.mubr.msk.bf16.mxu1 %vm858_vm1, %v815_v0 }
  0x30   : > { %7940 = vmatpush3.bf16.msra.mxu0 %v8207_v5 }
  0x31   : > { %7941 = vmatprep.subr.bf16.mxu0 %v8208_v11 }
  0x34   : > { %7942 = vmatpush3.bf16.msra.mxu0 %v8208_v11 }
  0x35   : > { %7930 = vmatmul.mubr.msk.bf16.gmra.mrb[8].mxu1 %vm858_vm1, %v816_v14  ;;  %7943 = vmatprep.subr.bf16.mxu0 %v8209_v18 }
  0x36   : > { %7933 = vmatprep.mubr.msk.bf16.mxu1 %vm858_vm1, %v817_v17 }
  0x38   : > { %7944 = vmatpush3.bf16.msra.mxu0 %v8209_v18 }
  0x39   : > { %7981 = vmatprep.subr.bf16.mxu0 %v10897_v3 }
  0x3b   : > { %7946 = vmatmul.mubr.msk.bf16.vlgmr.msra.gmra.mrb[4].mxu0 %vm858_vm1, %v8460_v32 }
  0x3c   : > { %7949 = vmatprep.mubr.msk.bf16.mxu0 %vm858_vm1, %v8469_v37 }
  0x3d   : > { %7934 = vmatmul.mubr.msk.bf16.gmra.mrb[12].mxu1 %vm858_vm1, %v818_v21 }
  0x3e   : > { %7977 = vmatprep.mubr.msk.bf16.mxu1 %vm8276_vm0, %v10897_v3 }
  0x43   : > { %7950 = vmatmul.mubr.msk.bf16.gmra.mrb[8].mxu0 %vm858_vm1, %v814_v59 }
  0x44   : > { %7953 = vmatprep.mubr.msk.bf16.mxu0 %vm858_vm1, %v815_v0 }
  0x4b   : > { %7954 = vmatmul.mubr.msk.bf16.gmra.mrb[12].mxu0 %vm858_vm1, %v816_v14  ;;  %v1225_v14 = vshrl.u32 %v1224_v9, 7 }
  0x4c   : > { %7957 = vmatprep.mubr.msk.bf16.mxu0 %vm858_vm1, %v817_v17  ;;  %v1254_v17 = vunpack.c.l.s4 %v8281_v16 }
  0x53   : > { %7958 = vmatmul.mubr.msk.bf16.gmra.mrb[16].mxu0 %vm858_vm1, %v818_v21 }
  0x54   : > { %7997 = vmatprep.mubr.msk.bf16.mxu0 %vm8276_vm0, %v10897_v3 }
  0xf8   : > { %v7923_v23 = vpop.f32.mrb[0].mxu1 }
  0xf9   : > { %v8540_v24 = vadd.f32 %v7923_v23, %v8537_v22  ;;  %v1000_v25 = vpop.f32.mrb[1].mxu1 }
  0xfa   : > { %v8543_v26 = vadd.f32 %v8537_v22, %v1000_v25  ;;  %v7924_v27 = vpop.f32.mrb[2].mxu1  ;;  %v1255_v25 = vunpack.c.0.s8 %v1254_v17 }
  0xfb   : > { %1515 = vrot.lane.b32.xlu0 %v8540_v24, %s8277_s30  ;;  %v1003_v28 = vpop.f32.mrb[3].mxu1  ;;  %v8550_v29 = vadd.f32 %v7924_v27, %v8537_v22 }
  0xfc   : > { %1559 = vrot.lane.b32.xlu1 %v8543_v26, %s8278_s2  ;;  %v8569_v40 = vadd.f32 %v8537_v22, %v1003_v28 }
  0xfe   : > { %v8556_v32 = vpop.f32.mrb[0].mxu0 }
  0xff   : > { %1563 = vrot.lane.b32.xlu0 %v8540_v24, %s8278_s2  ;;  %v7911_v34 = vpop.f32.mrb[1].mxu0  ;;  %v8687_v62 = vadd.f32 %v7578_v61, %v8556_v32 }
 0x100   : > { %1517 = vrot.lane.b32.xlu1 %v8550_v29, %s8277_s30  ;;  %v7927_v30 = vpop.f32.mrb[4].mxu1  ;;  %v8560_v36 = vpop.f32.mrb[2].mxu0 }
 0x101   : > { %v1016_v31 = vpop.f32.mrb[5].mxu1  ;;  %v7912_v37 = vpop.f32.mrb[3].mxu0  ;;  %v8576_v43 = vadd.f32 %v7927_v30, %v8537_v22  ;;  %v8694_v63 = vadd.f32 %v7578_v61, %v8560_v36  ;;  %v8744_v36 = vsub.s32 %v1255_v25, %v1225_v14 }
 0x102   : > { %v7928_v33 = vpop.f32.mrb[6].mxu1  ;;  %v8610_v53 = vadd.f32 %v8537_v22, %v1016_v31 }
 0x103   : > { %1611 = vrot.lane.b32.xlu0 %v8540_v24, %s8279_s5  ;;  %v1019_v35 = vpop.f32.mrb[7].mxu1  ;;  %v8586_v47 = vadd.f32 %v7928_v33, %v8537_v22 }
 0x104   : > { %1565 = vrot.lane.b32.xlu1 %v8550_v29, %s8278_s2  ;;  %v8613_v56 = vadd.f32 %v8537_v22, %v1019_v35 }
 0x107   : > { %1511 = vrot.lane.b32.xlu0 %v8543_v26, %s8277_s30 }
 0x108   : > { %1613 = vrot.lane.b32.xlu1 %v8550_v29, %s8279_s5  ;;  %v7931_v38 = vpop.f32.mrb[8].mxu1 }
 0x109   : > { %v1032_v39 = vpop.f32.mrb[9].mxu1  ;;  %v8624_v57 = vadd.f32 %v7931_v38, %v8537_v22 }
 0x10a   : > { %v7932_v41 = vpop.f32.mrb[10].mxu1  ;;  %v8646_v59 = vadd.f32 %v8537_v22, %v1032_v39 }
 0x10b   : > { %1607 = vrot.lane.b32.xlu0 %v8543_v26, %s8279_s5  ;;  %v1035_v42 = vpop.f32.mrb[11].mxu1  ;;  %v8631_v58 = vadd.f32 %v7932_v41, %v8537_v22 }
 0x10c   : > { %1561 = vrot.lane.b32.xlu1 %v8569_v40, %s8278_s2  ;;  %v8649_v60 = vadd.f32 %v8537_v22, %v1035_v42 }
 0x10e   : > { %v7947_v0 = vpop.f32.mrb[4].mxu0 }
 0x10f   : > { %1513 = vrot.lane.b32.xlu0 %v8569_v40, %s8277_s30  ;;  %v1136_v1 = vpop.f32.mrb[5].mxu0  ;;  %v8724_v20 = vadd.f32 %v7947_v0, %v7597_v2 }
 0x110   : > { %1609 = vrot.lane.b32.xlu1 %v8569_v40, %s8279_s5  ;;  %v7935_v44 = vpop.f32.mrb[12].mxu1  ;;  %v8711_v4 = vadd.f32 %v7597_v2, %v1136_v1  ;;  %v7948_v5 = vpop.f32.mrb[6].mxu0 }
 0x111   : > { %v8583_v45 = vadd.f32 %v7935_v44, %v8537_v22  ;;  %v1048_v46 = vpop.f32.mrb[13].mxu1  ;;  %v1139_v10 = vpop.f32.mrb[7].mxu0  ;;  %10968 = vst [vmem:[#allocation7_spill] sm:$0xff] %v8724_v20  ;;  %v8726_v21 = vadd.f32 %v7948_v5, %v7597_v2 }
 0x112   : > { %v8589_v48 = vadd.f32 %v8537_v22, %v1048_v46  ;;  %v7936_v49 = vpop.f32.mrb[14].mxu1  ;;  %10966 = vst [vmem:[#allocation5_spill] sm:$0xff] %v8711_v4  ;;  %v8717_v12 = vadd.f32 %v7597_v2, %v1139_v10 }
 0x113   : > { %1523 = vrot.lane.b32.xlu0 %v8576_v43, %s8277_s30  ;;  %v8594_v50 = vadd.f32 %v7936_v49, %v8537_v22  ;;  %v1051_v51 = vpop.f32.mrb[15].mxu1  ;;  %10969 = vst [vmem:[#allocation8_spill] sm:$0xff] %v8726_v21 }
 0x114   : > { %1525 = vrot.lane.b32.xlu1 %v8586_v47, %s8277_s30  ;;  %v8599_v52 = vadd.f32 %v8537_v22, %v1051_v51  ;;  %10967 = vst [vmem:[#allocation6_spill] sm:$0xff] %v8717_v12  ;;  %v8732_v22 = vsub.s32 %v1223_v13, %v1225_v14 }
 0x116   : > { %10970 = vst [vmem:[#allocation9_spill] sm:$0xff] %v8732_v22 }
 0x117   : > { %1571 = vrot.lane.b32.xlu0 %v8576_v43, %s8278_s2 }
 0x118   : > { %1573 = vrot.lane.b32.xlu1 %v8586_v47, %s8278_s2 }
 0x11b   : > { %1619 = vrot.lane.b32.xlu0 %v8576_v43, %s8279_s5 }
 0x11c   : > { %1621 = vrot.lane.b32.xlu1 %v8586_v47, %s8279_s5 }
 0x11f   : > { %1519 = vrot.lane.b32.xlu0 %v8610_v53, %s8277_s30 }
 0x120   : > { %1521 = vrot.lane.b32.xlu1 %v8613_v56, %s8277_s30 }
 0x123   : > { %1567 = vrot.lane.b32.xlu0 %v8610_v53, %s8278_s2 }
 0x124   : > { %1569 = vrot.lane.b32.xlu1 %v8613_v56, %s8278_s2 }
 0x127   : > { %1615 = vrot.lane.b32.xlu0 %v8610_v53, %s8279_s5 }
 0x128   : > { %1617 = vrot.lane.b32.xlu1 %v8613_v56, %s8279_s5 }
 0x12b   : > { %1531 = vrot.lane.b32.xlu0 %v8624_v57, %s8277_s30 }
 0x12c   : > { %1533 = vrot.lane.b32.xlu1 %v8631_v58, %s8277_s30 }
 0x12f   : > { %1579 = vrot.lane.b32.xlu0 %v8624_v57, %s8278_s2 }
 0x130   : > { %1581 = vrot.lane.b32.xlu1 %v8631_v58, %s8278_s2 }
 0x133   : > { %1627 = vrot.lane.b32.xlu0 %v8624_v57, %s8279_s5 }
 0x134   : > { %1629 = vrot.lane.b32.xlu1 %v8631_v58, %s8279_s5 }
 0x137   : > { %1527 = vrot.lane.b32.xlu0 %v8646_v59, %s8277_s30 }
 0x138   : > { %1529 = vrot.lane.b32.xlu1 %v8649_v60, %s8277_s30 }
 0x13b   : > { %1575 = vrot.lane.b32.xlu0 %v8646_v59, %s8278_s2 }
 0x13c   : > { %1577 = vrot.lane.b32.xlu1 %v8649_v60, %s8278_s2 }
 0x13f   : > { %1623 = vrot.lane.b32.xlu0 %v8646_v59, %s8279_s5 }
 0x140   : > { %1625 = vrot.lane.b32.xlu1 %v8649_v60, %s8279_s5 }
 0x143   : > { %1539 = vrot.lane.b32.xlu0 %v8583_v45, %s8277_s30 }
 0x144   : > { %1541 = vrot.lane.b32.xlu1 %v8594_v50, %s8277_s30 }
 0x147   : > { %1535 = vrot.lane.b32.xlu0 %v8589_v48, %s8277_s30 }
 0x148   : > { %1537 = vrot.lane.b32.xlu1 %v8599_v52, %s8277_s30 }
 0x14b   : > { %1583 = vrot.lane.b32.xlu0 %v8589_v48, %s8278_s2 }
 0x14c   : > { %1585 = vrot.lane.b32.xlu1 %v8599_v52, %s8278_s2 }
 0x14f   : > { %1631 = vrot.lane.b32.xlu0 %v8589_v48, %s8279_s5 }
 0x150   : > { %1633 = vrot.lane.b32.xlu1 %v8599_v52, %s8279_s5 }
 0x153   : > { %1587 = vrot.lane.b32.xlu0 %v8583_v45, %s8278_s2 }
 0x154   : > { %1589 = vrot.lane.b32.xlu1 %v8594_v50, %s8278_s2 }
 0x157   : > { %1635 = vrot.lane.b32.xlu0 %v8583_v45, %s8279_s5 }
 0x158   : > { %1637 = vrot.lane.b32.xlu1 %v8594_v50, %s8279_s5 }
 0x15b   : > { %1201 = vrot.lane.b32.xlu0 %v8687_v62, %s8277_s30 }
 0x15c   : > { %1203 = vrot.lane.b32.xlu1 %v8694_v63, %s8277_s30 }
 0x15f   : > { %1207 = vrot.lane.b32.xlu0 %v8687_v62, %s8278_s2 }
 0x160   : > { %1209 = vrot.lane.b32.xlu1 %v8694_v63, %s8278_s2 }
 0x163   : > { %1213 = vrot.lane.b32.xlu0 %v8687_v62, %s8279_s5 }
 0x164   : > { %1215 = vrot.lane.b32.xlu1 %v8694_v63, %s8279_s5 }
 0x167   : > { %3881 = vrot.lane.b32.xlu0 %v8717_v12, %s8277_s30 }
 0x168   : > { %3879 = vrot.lane.b32.xlu1 %v8711_v4, %s8277_s30 }
 0x16b   : > { %3975 = vrot.lane.b32.xlu0 %v8711_v4, %s8279_s5 }
 0x16c   : > { %3927 = vrot.lane.b32.xlu1 %v8711_v4, %s8278_s2 }
 0x16d   : > { %v1516_v6 = vpop.permute.xlu0 %1515 }
 0x16e   : > { %v1560_v11 = vpop.permute.xlu1 %1559 }
 0x16f   : > { %3883 = vrot.lane.b32.xlu0 %v8724_v20, %s8277_s30  ;;  %v1655_v61 = vcombine.low %v8543_v26, %v1560_v11  ;;  %v1656_v0 = vcombine.high %v8543_v26, %v1560_v11 }
 0x170   : > { %3929 = vrot.lane.b32.xlu1 %v8717_v12, %s8278_s2 }
 0x171   : > { %v1564_v15 = vpop.permute.xlu0 %1563  ;;  %v1663_v14 = vrot.slane %v1655_v61, %v8732_v22  ;;  %v1670_v17 = vrot.slane %v1656_v0, %v8732_v22 }
 0x172   : > { %v1518_v18 = vpop.permute.xlu1 %1517  ;;  %v1791_v19 = vcombine.low %v8540_v24, %v1564_v15  ;;  %v1792_v23 = vcombine.high %v8540_v24, %v1564_v15 }
 0x173   : > { %3931 = vrot.lane.b32.xlu0 %v8724_v20, %s8278_s2 }
 0x174   : > { %3977 = vrot.lane.b32.xlu1 %v8717_v12, %s8279_s5  ;;  %v1799_v32 = vrot.slane %v1791_v19, %v8732_v22  ;;  %v1806_v24 = vrot.slane %v1792_v23, %v8732_v22 }
 0x175   : > { %v1612_v27 = vpop.permute.xlu0 %1611 }
 0x176   : > { %v1807_v28 = vcombine.low %v1516_v6, %v1612_v27  ;;  %v1808_v30 = vcombine.high %v1516_v6, %v1612_v27  ;;  %v1566_v31 = vpop.permute.xlu1 %1565 }
 0x177   : > { %v1859_v35 = vcombine.low %v8550_v29, %v1566_v31  ;;  %v1860_v41 = vcombine.high %v8550_v29, %v1566_v31  ;;  %3979 = vrot.lane.b32.xlu0 %v8724_v20, %s8279_s5 }
 0x178   : > { %v1815_v33 = vrot.slane %v1807_v28, %v8732_v22  ;;  %v1822_v34 = vrot.slane %v1808_v30, %v8732_v22  ;;  %3885 = vrot.lane.b32.xlu1 %v8726_v21, %s8277_s30 }
 0x179   : > { %v1512_v37 = vpop.permute.xlu0 %1511  ;;  %v1867_v1 = vrot.slane %v1859_v35, %v8732_v22  ;;  %v1874_v26 = vrot.slane %v1860_v41, %v8732_v22 }
 0x17a   : > { %v1823_v38 = vcombine.low %v1799_v32, %v1815_v33  ;;  %v1824_v39 = vcombine.high %v1799_v32, %v1815_v33  ;;  %v1614_v42 = vpop.permute.xlu1 %1613  ;;  %v1839_v44 = vcombine.low %v1806_v24, %v1822_v34  ;;  %v1840_v46 = vcombine.high %v1806_v24, %v1822_v34 }
 0x17b   : > { %v1875_v49 = vcombine.low %v1518_v18, %v1614_v42  ;;  %v1876_v51 = vcombine.high %v1518_v18, %v1614_v42 }
 0x17c   : > { %v8753_v2 = vrot.slane %v1823_v38, %v8744_v36  ;;  %v8756_v5 = vrot.slane %v1824_v39, %v8744_v36  ;;  %3933 = vrot.lane.b32.xlu1 %v8726_v21, %s8278_s2  ;;  %v8764_v9 = vrot.slane %v1839_v44, %v8744_v36  ;;  %v8767_v10 = vrot.slane %v1840_v46, %v8744_v36 }
 0x17d   : > { %v1883_v29 = vrot.slane %v1875_v49, %v8732_v22  ;;  %v1890_v6 = vrot.slane %v1876_v51, %v8732_v22  ;;  %v1608_v7 = vpop.permute.xlu0 %1607 }
 0x17e   : > { %v1562_v8 = vpop.permute.xlu1 %1561  ;;  %v1671_v15 = vcombine.low %v1512_v37, %v1608_v7  ;;  %v1672_v16 = vcombine.high %v1512_v37, %v1608_v7  ;;  %v2879_v18 = vcombine.low %v8753_v2, %v8756_v5  ;;  %v7618_v19 = vcombine.high %v8753_v2, %v8756_v5 }
 0x17f   : > { %v1891_v11 = vcombine.low %v1867_v1, %v1883_v29  ;;  %v1892_v13 = vcombine.high %v1867_v1, %v1883_v29  ;;  %v1907_v23 = vcombine.low %v1874_v26, %v1890_v6  ;;  %v1908_v27 = vcombine.high %v1874_v26, %v1890_v6 }
 0x180   : > { %3981 = vrot.lane.b32.xlu1 %v8726_v21, %s8279_s5  ;;  %v1679_v28 = vrot.slane %v1671_v15, %v8732_v22  ;;  %v1686_v30 = vrot.slane %v1672_v16, %v8732_v22  ;;  %v1723_v31 = vcombine.low %v8569_v40, %v1562_v8  ;;  %v2895_v33 = vcombine.low %v8764_v9, %v8767_v10 }
 0x181   : > { %v1514_v25 = vpop.permute.xlu0 %1513  ;;  %v8785_v34 = vrot.slane %v1891_v11, %v8744_v36  ;;  %v8788_v35 = vrot.slane %v1892_v13, %v8744_v36  ;;  %v1724_v24 = vcombine.high %v8569_v40, %v1562_v8  ;;  %v8794_v44 = vrot.slane %v1907_v23, %v8744_v36 }
 0x182   : > { %v1610_v32 = vpop.permute.xlu1 %1609  ;;  %v1687_v37 = vcombine.low %v1663_v14, %v1679_v28  ;;  %v1688_v38 = vcombine.high %v1663_v14, %v1679_v28  ;;  %v1703_v39 = vcombine.low %v1670_v17, %v1686_v30  ;;  %v1704_v41 = vcombine.high %v1670_v17, %v1686_v30 }
 0x183   : > { %v1739_v46 = vcombine.low %v1514_v25, %v1610_v32  ;;  %v1740_v49 = vcombine.high %v1514_v25, %v1610_v32  ;;  %v8797_v61 = vrot.slane %v1908_v27, %v8744_v36  ;;  %v1731_v1 = vrot.slane %v1723_v31, %v8732_v22 }
 0x184   : > { %v1695_v0 = vrot.slane %v1687_v37, %v8744_v36  ;;  %v1702_v40 = vrot.slane %v1688_v38, %v8744_v36  ;;  %v1738_v29 = vrot.slane %v1724_v24, %v8732_v22  ;;  %v1711_v8 = vrot.slane %v1703_v39, %v8744_v36  ;;  %v8822_v39 = vpop.f32.mrb[8].mxu0 }
 0x185   : > { %v1524_v51 = vpop.permute.xlu0 %1523  ;;  %v1747_v6 = vrot.slane %v1739_v46, %v8732_v22  ;;  %v1754_v7 = vrot.slane %v1740_v49, %v8732_v22  ;;  %v1718_v11 = vrot.slane %v1704_v41, %v8744_v36  ;;  %v8820_v38 = vrot.slane %v2879_v18, %v8732_v22 }
 0x186   : > { %v1526_v2 = vpop.permute.xlu1 %1525  ;;  %v2743_v13 = vcombine.low %v1695_v0, %v1702_v40  ;;  %v7614_v14 = vcombine.high %v1695_v0, %v1702_v40  ;;  %v8827_v0 = vrot.slane %v7618_v19, %v8732_v22  ;;  %v8829_v40 = vpop.f32.mrb[9].mxu0 }
 0x187   : > { %v1755_v15 = vcombine.low %v1731_v1, %v1747_v6  ;;  %v1756_v16 = vcombine.high %v1731_v1, %v1747_v6  ;;  %v1771_v17 = vcombine.low %v1738_v29, %v1754_v7  ;;  %v1772_v28 = vcombine.high %v1738_v29, %v1754_v7  ;;  %v8838_v7 = vpop.f32.mrb[10].mxu0 }
 0x188   : > { %v2759_v41 = vcombine.low %v1711_v8, %v1718_v11  ;;  %v7615_v1 = vcombine.high %v1711_v8, %v1718_v11  ;;  %v8836_v18 = vrot.slane %v7614_v14, %v8732_v22  ;;  %10971 = vst [vmem:[#allocation10_spill] sm:$0xff] %v8838_v7 }
 0x189   : > { %v1572_v23 = vpop.permute.xlu0 %1571  ;;  %v1763_v32 = vrot.slane %v1755_v15, %v8744_v36  ;;  %v1770_v24 = vrot.slane %v1756_v16, %v8744_v36  ;;  %v1779_v29 = vrot.slane %v1771_v17, %v8744_v36  ;;  %v1786_v15 = vrot.slane %v1772_v28, %v8744_v36 }
 0x18a   : > { %v2063_v30 = vcombine.low %v8576_v43, %v1572_v23  ;;  %v1574_v31 = vpop.permute.xlu1 %1573  ;;  %v2064_v37 = vcombine.high %v8576_v43, %v1572_v23  ;;  %v8833_v43 = vrot.slane %v2743_v13, %v8732_v22  ;;  %v8852_v26 = vrot.slane %v2759_v41, %v8732_v22 }
 0x18b   : > { %v2131_v46 = vcombine.low %v8586_v47, %v1574_v31  ;;  %v2132_v49 = vcombine.high %v8586_v47, %v1574_v31  ;;  %v8842_v31 = vpop.f32.mrb[11].mxu0  ;;  %v2811_v8 = vcombine.low %v1763_v32, %v1770_v24 }
 0x18c   : > { %v2071_v47 = vrot.slane %v2063_v30, %v8732_v22  ;;  %v2078_v11 = vrot.slane %v2064_v37, %v8732_v22  ;;  %v8855_v37 = vrot.slane %v7615_v1, %v8732_v22  ;;  %v2827_v1 = vcombine.low %v1779_v29, %v1786_v15 }
 0x18d   : > { %v1620_v6 = vpop.permute.xlu0 %1619  ;;  %v2139_v27 = vrot.slane %v2131_v46, %v8732_v22  ;;  %v2146_v14 = vrot.slane %v2132_v49, %v8732_v22 }
 0x18e   : > { %v2079_v19 = vcombine.low %v1524_v51, %v1620_v6  ;;  %v2080_v16 = vcombine.high %v1524_v51, %v1620_v6  ;;  %v1622_v23 = vpop.permute.xlu1 %1621 }
 0x18f   : > { %v2147_v17 = vcombine.low %v1526_v2, %v1622_v23  ;;  %v2148_v13 = vcombine.high %v1526_v2, %v1622_v23 }
 0x190   : > { %v2087_v25 = vrot.slane %v2079_v19, %v8732_v22  ;;  %v2094_v28 = vrot.slane %v2080_v16, %v8732_v22  ;;  %v7616_v19 = vcombine.high %v1763_v32, %v1770_v24  ;;  %v10973_v32 = vcombine.high %v8764_v9, %v8767_v10 }
 0x191   : > { %v2155_v30 = vrot.slane %v2147_v17, %v8732_v22  ;;  %v2162_v51 = vrot.slane %v2148_v13, %v8732_v22  ;;  %v1520_v6 = vpop.permute.xlu0 %1519 }
 0x192   : > { %v2095_v2 = vcombine.low %v2071_v47, %v2087_v25  ;;  %v2096_v23 = vcombine.high %v2071_v47, %v2087_v25  ;;  %v2111_v46 = vcombine.low %v2078_v11, %v2094_v28  ;;  %v2112_v5 = vcombine.high %v2078_v11, %v2094_v28  ;;  %v8857_v49 = vpop.permute.xlu1 %1521 }
 0x193   : > { %v2163_v3 = vcombine.low %v2139_v27, %v2155_v30  ;;  %v2164_v16 = vcombine.high %v2139_v27, %v2155_v30  ;;  %v2179_v42 = vcombine.low %v2146_v14, %v2162_v51  ;;  %v2180_v41 = vcombine.high %v2146_v14, %v2162_v51 }
 0x194   : > { %v8860_v17 = vrot.slane %v2095_v2, %v8744_v36  ;;  %v8863_v13 = vrot.slane %v2096_v23, %v8744_v36  ;;  %v8869_v25 = vrot.slane %v2895_v33, %v8732_v22  ;;  %v7617_v47 = vcombine.high %v1779_v29, %v1786_v15 }
 0x195   : > { %v1568_v11 = vpop.permute.xlu0 %1567  ;;  %v2775_v27 = vcombine.low %v8833_v43, %v8836_v18  ;;  %v8877_v24 = vrot.slane %v10973_v32, %v8732_v22  ;;  %v8880_v14 = vrot.slane %v2111_v46, %v8744_v36  ;;  %v8883_v28 = vrot.slane %v2112_v5, %v8744_v36 }
 0x196   : > { %10972 = vst [vmem:[#allocation11_spill] sm:$0xff] %v8869_v25  ;;  %v1570_v33 = vpop.permute.xlu1 %1569  ;;  %v2791_v29 = vcombine.low %v8852_v26, %v8855_v37  ;;  %v8888_v15 = vrot.slane %v2811_v8, %v8732_v22  ;;  %v8891_v30 = vrot.slane %v2163_v3, %v8744_v36  ;;  %v8894_v9 = vrot.slane %v2164_v16, %v8744_v36 }
 0x197   : > { %10974 = vst [vmem:[#allocation12_spill] sm:$0xff] %v8877_v24  ;;  %v8897_v10 = vrot.slane %v2179_v42, %v8744_v36  ;;  %v8900_v51 = vrot.slane %v7616_v19, %v8732_v22  ;;  %v8907_v8 = vrot.slane %v2180_v41, %v8744_v36  ;;  %v1927_v3 = vcombine.low %v8610_v53, %v1568_v11 }
 0x198   : > { %10975 = vst [vmem:[#allocation13_spill] sm:$0xff] %v8888_v15  ;;  %v1928_v23 = vcombine.high %v8610_v53, %v1568_v11  ;;  %v1995_v46 = vcombine.low %v8613_v56, %v1570_v33  ;;  %v8913_v42 = vrot.slane %v2827_v1, %v8732_v22  ;;  %v8916_v19 = vrot.slane %v7617_v47, %v8732_v22 }
 0x199   : > { %10976 = vst [vmem:[#allocation14_spill] sm:$0xff] %v8900_v51  ;;  %v1616_v16 = vpop.permute.xlu0 %1615  ;;  %v2783_v2 = vrot.slane %v2775_v27, %v8744_v36  ;;  %v2799_v5 = vrot.slane %v2791_v29, %v8744_v36  ;;  %v1935_v11 = vrot.slane %v1927_v3, %v8732_v22  ;;  %v1996_v1 = vcombine.high %v8613_v56, %v1570_v33 }
 0x19a   : > { %10977 = vst [vmem:[#allocation15_spill] sm:$0xff] %v8913_v42  ;;  %10978 = vst [vmem:[#allocation16_spill] sm:$0xff] %v8916_v19  ;;  %v1618_v53 = vpop.permute.xlu1 %1617  ;;  %v2843_v47 = vcombine.low %v8888_v15, %v8900_v51  ;;  %v2859_v55 = vcombine.low %v8913_v42, %v8916_v19  ;;  %v1943_v32 = vcombine.low %v1520_v6, %v1616_v16 }
 0x19b   : > { %v1944_v54 = vcombine.high %v1520_v6, %v1616_v16  ;;  %v2011_v41 = vcombine.low %v8857_v49, %v1618_v53  ;;  %v2012_v27 = vcombine.high %v8857_v49, %v1618_v53  ;;  %v1942_v29 = vrot.slane %v1928_v23, %v8732_v22 }
 0x19c   : > { %v2003_v21 = vrot.slane %v1995_v46, %v8732_v22  ;;  %v2851_v3 = vrot.slane %v2843_v47, %v8744_v36  ;;  %v2867_v56 = vrot.slane %v2859_v55, %v8744_v36  ;;  %v2807_v20 = vcombine.low %v2783_v2, %v2799_v5 }
 0x19d   : > { %v8936_v33 = vpop.permute.xlu0 %1531  ;;  %v1951_v12 = vrot.slane %v1943_v32, %v8732_v22  ;;  %v1958_v4 = vrot.slane %v1944_v54, %v8732_v22  ;;  %v2019_v6 = vrot.slane %v2011_v41, %v8732_v22  ;;  %v2808_v53 = vcombine.high %v2783_v2, %v2799_v5 }
 0x19e   : > { %v8941_v16 = vpop.permute.xlu1 %1533  ;;  %v2875_v49 = vcombine.low %v2851_v3, %v2867_v56  ;;  %v2876_v23 = vcombine.high %v2851_v3, %v2867_v56  ;;  %v2911_v46 = vcombine.low %v8820_v38, %v8827_v0  ;;  %v2026_v55 = vrot.slane %v2012_v27, %v8732_v22 }
 0x19f   : > { %v1959_v47 = vcombine.low %v1935_v11, %v1951_v12  ;;  %v1960_v7 = vcombine.high %v1935_v11, %v1951_v12  ;;  %v2927_v42 = vcombine.low %v8869_v25, %v8877_v24  ;;  %v1975_v54 = vcombine.low %v1942_v29, %v1958_v4 }
 0x1a0   : > { %v3831_v32 = vpack.c.bf16 %v2875_v49, %v2807_v20  ;;  %v3839_v19 = vpack.c.bf16 %v2876_v23, %v2808_v53  ;;  %v1976_v15 = vcombine.high %v1942_v29, %v1958_v4  ;;  %v2027_v12 = vcombine.low %v2003_v21, %v2019_v6  ;;  %v8957_v4 = vpop.f32.mrb[12].mxu0 }
 0x1a1   : > { %v1580_v41 = vpop.permute.xlu0 %1579  ;;  %v2010_v27 = vrot.slane %v1996_v1, %v8732_v22  ;;  %v2028_v56 = vcombine.high %v2003_v21, %v2019_v6  ;;  %10979 = vst [vmem:[#allocation17_spill] sm:$0xff] %v8957_v4  ;;  %v8960_v29 = vrot.slane %v1959_v47, %v8744_v36  ;;  %v8963_v49 = vrot.slane %v1960_v7, %v8744_v36  ;;  %v8966_v23 = vpop.f32.mrb[13].mxu0 }
 0x1a2   : > { %v1582_v11 = vpop.permute.xlu1 %1581  ;;  %v6236_v3 = vsel %vm6231_vm2, %v3831_v32, 0  ;;  %v6304_v20 = vsel %vm6231_vm2, %v3839_v19, 0  ;;  %v2919_v53 = vrot.slane %v2911_v46, %v8744_v36  ;;  %10980 = vst [vmem:[#allocation18_spill] sm:$0xff] %v8966_v23  ;;  %v8969_v1 = vrot.slane %v1975_v54, %v8744_v36 }
 0x1a3   : > { %7962 = vmatpush3.bf16.xpose.msra.mxu1 %v6236_v3  ;;  %7982 = vmatpush3.bf16.xpose.msra.mxu0 %v6304_v20  ;;  %v8972_v19 = vrot.slane %v1976_v15, %v8744_v36  ;;  %v2043_v21 = vcombine.low %v2010_v27, %v2026_v55  ;;  %v10981_v6 = vmov 0.0   ;;  %v2935_v32 = vrot.slane %v2927_v42, %v8744_v36  ;;  %v8976_v3 = vpop.f32.mrb[14].mxu0 }
 0x1a4   : > { %7963 = vmatprep.subr.bf16.mxu1 %v10981_v6  ;;  %10982 = vst [vmem:[#allocation19_spill] sm:$0xff] %v8976_v3  ;;  %v8981_v46 = vrot.slane %v2027_v12, %v8744_v36  ;;  %7983 = vmatprep.subr.bf16.mxu0 %v10981_v6  ;;  %v10983_v15 = vcombine.low %v8785_v34, %v8788_v35 }
 0x1a5   : > { %v1628_v47 = vpop.permute.xlu0 %1627  ;;  %v10985_v42 = vcombine.high %v8785_v34, %v8788_v35  ;;  %v8997_v7 = vrot.slane %v2028_v56, %v8744_v36  ;;  %v2044_v12 = vcombine.high %v2010_v27, %v2026_v55  ;;  %v10987_v5 = vcombine.low %v8794_v44, %v8797_v61 }
 0x1a6   : > { %v8988_v54 = vrot.slane %v10983_v15, %v8732_v22  ;;  %v1630_v2 = vpop.permute.xlu1 %1629  ;;  %v10989_v15 = vcombine.high %v8794_v44, %v8797_v61  ;;  %v2335_v27 = vcombine.low %v8624_v57, %v1580_v41  ;;  %v9021_v56 = vrot.slane %v2043_v21, %v8744_v36 }
 0x1a7   : > { %v8994_v20 = vrot.slane %v10985_v42, %v8732_v22  ;;  %v9003_v51 = vrot.slane %v10987_v5, %v8732_v22  ;;  %v2943_v44 = vcombine.low %v2919_v53, %v2935_v32  ;;  %v2336_v35 = vcombine.high %v8624_v57, %v1580_v41 }
 0x1a8   : > { %10984 = vst [vmem:[#allocation20_spill] sm:$0xff] %v8988_v54  ;;  %v9009_v3 = vrot.slane %v10989_v15, %v8732_v22  ;;  %v2403_v34 = vcombine.low %v8631_v58, %v1582_v11  ;;  %v2404_v23 = vcombine.high %v8631_v58, %v1582_v11  ;;  %v9034_v5 = vrot.slane %v2044_v12, %v8744_v36 }
 0x1a9   : > { %10986 = vst [vmem:[#allocation21_spill] sm:$0xff] %v8994_v20  ;;  %10988 = vst [vmem:[#allocation22_spill] sm:$0xff] %v9003_v51  ;;  %v2979_v55 = vcombine.low %v8988_v54, %v8994_v20  ;;  %v9025_v42 = vpop.permute.xlu0 %1527  ;;  %v2351_v54 = vcombine.low %v8936_v33, %v1628_v47  ;;  %v2419_v57 = vcombine.low %v8941_v16, %v1630_v2 }
 0x1aa   : > { %10990 = vst [vmem:[#allocation23_spill] sm:$0xff] %v9009_v3  ;;  %v2995_v61 = vcombine.low %v9003_v51, %v9009_v3  ;;  %v9031_v4 = vpop.permute.xlu1 %1529  ;;  %v2352_v51 = vcombine.high %v8936_v33, %v1628_v47  ;;  %v2944_v3 = vcombine.high %v2919_v53, %v2935_v32  ;;  %v2420_v41 = vcombine.high %v8941_v16, %v1630_v2 }
 0x1ab   : > { %v2987_v15 = vrot.slane %v2979_v55, %v8744_v36  ;;  %v2343_v55 = vrot.slane %v2335_v27, %v8732_v22  ;;  %v2359_v11 = vrot.slane %v2351_v54, %v8732_v22  ;;  %v2411_v24 = vrot.slane %v2403_v34, %v8732_v22 }
 0x1ac   : > { %v3003_v21 = vrot.slane %v2995_v61, %v8744_v36  ;;  %v2366_v12 = vrot.slane %v2352_v51, %v8732_v22  ;;  %v2350_v61 = vrot.slane %v2336_v35, %v8732_v22  ;;  %v9047_v33 = vrot.slane %v2404_v23, %v8732_v22 }
 0x1ad   : > { %v1576_v25 = vpop.permute.xlu0 %1575  ;;  %v2427_v53 = vrot.slane %v2419_v57, %v8732_v22  ;;  %v2367_v2 = vcombine.low %v2343_v55, %v2359_v11  ;;  %v2368_v27 = vcombine.high %v2343_v55, %v2359_v11  ;;  %v9053_v51 = vrot.slane %v2420_v41, %v8732_v22 }
 0x1ae   : > { %v3011_v20 = vcombine.low %v2987_v15, %v3003_v21  ;;  %v3012_v58 = vcombine.high %v2987_v15, %v3003_v21  ;;  %v9050_v32 = vpop.permute.xlu1 %1577  ;;  %v2383_v15 = vcombine.low %v2350_v61, %v2366_v12  ;;  %v2384_v54 = vcombine.high %v2350_v61, %v2366_v12  ;;  %v9078_v61 = vpop.f32.mrb[15].mxu0 }
 0x1af   : > { %v2435_v21 = vcombine.low %v2411_v24, %v2427_v53  ;;  %v9058_v23 = vrot.slane %v2367_v2, %v8744_v36  ;;  %v9061_v57 = vrot.slane %v2368_v27, %v8744_v36  ;;  %v2436_v55 = vcombine.high %v2411_v24, %v2427_v53  ;;  %10991 = vst [vmem:[#allocation24_spill] sm:$0xff] %v9078_v61 }
 0x1b0   : > { %v3832_v47 = vpack.c.bf16 %v3011_v20, %v2943_v44  ;;  %v3840_v16 = vpack.c.bf16 %v3012_v58, %v2944_v3  ;;  %v9064_v3 = vrot.slane %v2383_v15, %v8744_v36  ;;  %v9067_v44 = vrot.slane %v2384_v54, %v8744_v36 }
 0x1b1   : > { %v1624_v20 = vpop.permute.xlu0 %1623  ;;  %v7623_v41 = vcombine.high %v8969_v1, %v8972_v19  ;;  %v3083_v58 = vcombine.low %v8981_v46, %v8997_v7  ;;  %v7624_v11 = vcombine.high %v8981_v46, %v8997_v7  ;;  %v3099_v12 = vcombine.low %v9021_v56, %v9034_v5 }
 0x1b2   : > { %v6239_v35 = vsel %vm6231_vm2, %v3832_v47, 0  ;;  %v6307_v34 = vsel %vm6231_vm2, %v3840_v16, 0  ;;  %v7625_v47 = vcombine.high %v9021_v56, %v9034_v5  ;;  %v2451_v24 = vcombine.low %v9047_v33, %v9053_v51  ;;  %v1626_v7 = vpop.permute.xlu1 %1625 }
 0x1b3   : > { %7964 = vmatpush3.bf16.xpose.msra.mxu1 %v6239_v35  ;;  %7984 = vmatpush3.bf16.xpose.msra.mxu0 %v6307_v34  ;;  %v2199_v53 = vcombine.low %v8646_v59, %v1576_v25  ;;  %v2200_v16 = vcombine.high %v8646_v59, %v1576_v25  ;;  %v9092_v27 = vrot.slane %v2435_v21, %v8744_v36 }
 0x1b4   : > { %7965 = vmatprep.subr.bf16.mxu1 %v10981_v6  ;;  %7985 = vmatprep.subr.bf16.mxu0 %v10981_v6  ;;  %v10992_v5 = vcombine.low %v8960_v29, %v8963_v49  ;;  %v9103_v25 = vrot.slane %v2436_v55, %v8744_v36  ;;  %v2452_v15 = vcombine.high %v9047_v33, %v9053_v51 }
 0x1b5   : > { %v10994_v54 = vcombine.high %v8960_v29, %v8963_v49  ;;  %v10995_v35 = vcombine.low %v8969_v1, %v8972_v19  ;;  %v9123_v55 = vrot.slane %v3083_v58, %v8732_v22  ;;  %v9126_v33 = vrot.slane %v7624_v11, %v8732_v22  ;;  %v9128_v51 = vpop.permute.xlu0 %1539 }
 0x1b6   : > { %v9098_v56 = vrot.slane %v10992_v5, %v8732_v22  ;;  %v9120_v5 = vrot.slane %v7623_v41, %v8732_v22  ;;  %v9131_v29 = vrot.slane %v2451_v24, %v8744_v36  ;;  %v2207_v49 = vrot.slane %v2199_v53, %v8732_v22  ;;  %v9152_v59 = vpop.permute.xlu1 %1541 }
 0x1b7   : > { %v9111_v21 = vrot.slane %v10994_v54, %v8732_v22  ;;  %v9117_v34 = vrot.slane %v10995_v35, %v8732_v22  ;;  %10998 = vst [vmem:[#allocation28_spill] sm:$0xff] %v9123_v55  ;;  %10999 = vst [vmem:[#allocation29_spill] sm:$0xff] %v9126_v33  ;;  %v2214_v1 = vrot.slane %v2200_v16, %v8732_v22 }
 0x1b8   : > { %10993 = vst [vmem:[#allocation25_spill] sm:$0xff] %v9098_v56  ;;  %10997 = vst [vmem:[#allocation27_spill] sm:$0xff] %v9120_v5  ;;  %v2267_v19 = vcombine.low %v8649_v60, %v9050_v32  ;;  %v9142_v11 = vrot.slane %v3099_v12, %v8732_v22  ;;  %v9145_v54 = vrot.slane %v7625_v47, %v8732_v22 }
 0x1b9   : > { %10996 = vst [vmem:[#allocation26_spill] sm:$0xff] %v9117_v34  ;;  %v3047_v41 = vcombine.low %v9098_v56, %v9111_v21  ;;  %v3063_v58 = vcombine.low %v9117_v34, %v9120_v5  ;;  %v3115_v24 = vcombine.low %v9123_v55, %v9126_v33  ;;  %v2215_v53 = vcombine.low %v9025_v42, %v1624_v20 }
 0x1ba   : > { %11000 = vst [vmem:[#allocation30_spill] sm:$0xff] %v9142_v11  ;;  %11001 = vst [vmem:[#allocation31_spill] sm:$0xff] %v9145_v54  ;;  %v2216_v16 = vcombine.high %v9025_v42, %v1624_v20  ;;  %v2283_v35 = vcombine.low %v9031_v4, %v1626_v7  ;;  %v2268_v2 = vcombine.high %v8649_v60, %v9050_v32  ;;  %v9166_v32 = vpop.permute.xlu0 %1535 }
 0x1bb   : > { %v3055_v12 = vrot.slane %v3047_v41, %v8744_v36  ;;  %v3071_v46 = vrot.slane %v3063_v58, %v8744_v36  ;;  %v3131_v47 = vcombine.low %v9142_v11, %v9145_v54  ;;  %v3123_v61 = vrot.slane %v3115_v24, %v8744_v36 }
 0x1bc   : > { %v2223_v55 = vrot.slane %v2215_v53, %v8732_v22  ;;  %v2230_v42 = vrot.slane %v2216_v16, %v8732_v22  ;;  %v2284_v20 = vcombine.high %v9031_v4, %v1626_v7  ;;  %v2291_v60 = vrot.slane %v2283_v35, %v8732_v22 }
 0x1bd   : > { %v3079_v33 = vcombine.low %v3055_v12, %v3071_v46  ;;  %v3139_v34 = vrot.slane %v3131_v47, %v8744_v36  ;;  %v3080_v5 = vcombine.high %v3055_v12, %v3071_v46  ;;  %v9169_v24 = vrot.slane %v2452_v15, %v8744_v36 }
 0x1be   : > { %v2231_v41 = vcombine.low %v2207_v49, %v2223_v55  ;;  %v2232_v58 = vcombine.high %v2207_v49, %v2223_v55  ;;  %v2247_v56 = vcombine.low %v2214_v1, %v2230_v42  ;;  %v2248_v11 = vcombine.high %v2214_v1, %v2230_v42  ;;  %v9180_v55 = vpop.permute.xlu1 %1537 }
 0x1bf   : > { %v2275_v53 = vrot.slane %v2267_v19, %v8732_v22  ;;  %v3147_v16 = vcombine.low %v3123_v61, %v3139_v34  ;;  %v3148_v54 = vcombine.high %v3123_v61, %v3139_v34  ;;  %v2298_v15 = vrot.slane %v2284_v20, %v8732_v22 }
 0x1c0   : > { %v2239_v4 = vrot.slane %v2231_v41, %v8744_v36  ;;  %v2246_v7 = vrot.slane %v2232_v58, %v8744_v36  ;;  %v9175_v46 = vrot.slane %v2247_v56, %v8744_v36  ;;  %v9178_v35 = vrot.slane %v2248_v11, %v8744_v36 }
 0x1c1   : > { %v3833_v49 = vpack.c.bf16 %v3147_v16, %v3079_v33  ;;  %v3841_v1 = vpack.c.bf16 %v3148_v54, %v3080_v5  ;;  %v2299_v12 = vcombine.low %v2275_v53, %v2291_v60  ;;  %v2282_v19 = vrot.slane %v2268_v2, %v8732_v22  ;;  %v1584_v33 = vpop.permute.xlu0 %1583  ;;  %v9190_v5 = vpop.f32.mrb[16].mxu0 }
 0x1c2   : > { %v2300_v56 = vcombine.high %v2275_v53, %v2291_v60  ;;  %v3287_v42 = vcombine.low %v2239_v4, %v2246_v7  ;;  %v7630_v41 = vcombine.high %v2239_v4, %v2246_v7  ;;  %11002 = vst [vmem:[#allocation32_spill] sm:$0xff] %v9190_v5  ;;  %v3303_v2 = vcombine.low %v9175_v46, %v9178_v35  ;;  %v9198_v60 = vpop.f32.mrb[17].mxu0 }
 0x1c3   : > { %v6242_v47 = vsel %vm6231_vm2, %v3833_v49, 0  ;;  %v6310_v11 = vsel %vm6231_vm2, %v3841_v1, 0  ;;  %11003 = vst [vmem:[#allocation33_spill] sm:$0xff] %v9198_v60  ;;  %v9203_v53 = vrot.slane %v2299_v12, %v8744_v36  ;;  %v2315_v16 = vcombine.low %v2282_v19, %v2298_v15  ;;  %v9288_v60 = vpop.f32.mrb[18].mxu0 }
 0x1c4   : > { %7966 = vmatpush3.bf16.xpose.msra.mxu1 %v6242_v47  ;;  %7986 = vmatpush3.bf16.xpose.msra.mxu0 %v6310_v11  ;;  %v2316_v4 = vcombine.high %v2282_v19, %v2298_v15  ;;  %v9207_v7 = vrot.slane %v2300_v56, %v8744_v36  ;;  %v11004_v49 = vcombine.low %v8860_v17, %v8863_v13  ;;  %v1586_v56 = vpop.permute.xlu1 %1585 }
 0x1c5   : > { %7967 = vmatprep.subr.bf16.mxu1 %v10981_v6  ;;  %7987 = vmatprep.subr.bf16.mxu0 %v10981_v6  ;;  %v11006_v12 = vcombine.high %v8860_v17, %v8863_v13  ;;  %v11008_v15 = vcombine.low %v8880_v14, %v8883_v28  ;;  %v9229_v11 = vrot.slane %v3287_v42, %v8732_v22  ;;  %v1632_v34 = vpop.permute.xlu0 %1631 }
 0x1c6   : > { %v9214_v1 = vrot.slane %v11004_v49, %v8732_v22  ;;  %v9232_v58 = vrot.slane %v7630_v41, %v8732_v22  ;;  %v11010_v17 = vcombine.high %v8880_v14, %v8883_v28  ;;  %v11012_v42 = vcombine.low %v8891_v30, %v8894_v9  ;;  %11020 = vst [vmem:[#allocation42_spill] sm:$0xff] %v9288_v60 }
 0x1c7   : > { %v9220_v47 = vrot.slane %v11006_v12, %v8732_v22  ;;  %v9226_v19 = vrot.slane %v11008_v15, %v8732_v22  ;;  %v9243_v12 = vrot.slane %v3303_v2, %v8732_v22  ;;  %v11014_v20 = vcombine.high %v8891_v30, %v8894_v9 }
 0x1c8   : > { %11005 = vst [vmem:[#allocation34_spill] sm:$0xff] %v9214_v1  ;;  %v9240_v13 = vrot.slane %v11010_v17, %v8732_v22  ;;  %v9251_v41 = vrot.slane %v11012_v42, %v8732_v22  ;;  %v9260_v14 = vrot.slane %v2315_v16, %v8744_v36  ;;  %v9263_v28 = vrot.slane %v2316_v4, %v8744_v36 }
 0x1c9   : > { %11007 = vst [vmem:[#allocation35_spill] sm:$0xff] %v9220_v47  ;;  %11009 = vst [vmem:[#allocation36_spill] sm:$0xff] %v9226_v19  ;;  %v3183_v15 = vcombine.low %v9214_v1, %v9220_v47  ;;  %v9257_v54 = vrot.slane %v11014_v20, %v8732_v22  ;;  %v11016_v17 = vcombine.low %v8897_v10, %v8907_v8 }
 0x1ca   : > { %11011 = vst [vmem:[#allocation37_spill] sm:$0xff] %v9240_v13  ;;  %11013 = vst [vmem:[#allocation38_spill] sm:$0xff] %v9251_v41  ;;  %v3199_v2 = vcombine.low %v9226_v19, %v9240_v13  ;;  %v11018_v9 = vcombine.high %v8897_v10, %v8907_v8  ;;  %v2471_v4 = vcombine.low %v8589_v48, %v1584_v33 }
 0x1cb   : > { %11015 = vst [vmem:[#allocation39_spill] sm:$0xff] %v9257_v54  ;;  %v9271_v42 = vrot.slane %v11016_v17, %v8732_v22  ;;  %v3191_v30 = vrot.slane %v3183_v15, %v8744_v36  ;;  %v3251_v16 = vcombine.low %v9251_v41, %v9257_v54  ;;  %v3355_v61 = vcombine.low %v9203_v53, %v9207_v7  ;;  %v1634_v41 = vpop.permute.xlu1 %1633 }
 0x1cc   : > { %v9278_v20 = vrot.slane %v11018_v9, %v8732_v22  ;;  %v3207_v17 = vrot.slane %v3199_v2, %v8744_v36  ;;  %v2472_v49 = vcombine.high %v8589_v48, %v1584_v33  ;;  %v2539_v15 = vcombine.low %v8599_v52, %v1586_v56 }
 0x1cd   : > { %11017 = vst [vmem:[#allocation40_spill] sm:$0xff] %v9271_v42  ;;  %v7632_v10 = vcombine.high %v9203_v53, %v9207_v7  ;;  %v3259_v8 = vrot.slane %v3251_v16, %v8744_v36  ;;  %v2487_v5 = vcombine.low %v9166_v32, %v1632_v34  ;;  %v3371_v2 = vcombine.low %v9260_v14, %v9263_v28 }
 0x1ce   : > { %11019 = vst [vmem:[#allocation41_spill] sm:$0xff] %v9278_v20  ;;  %v3267_v9 = vcombine.low %v9271_v42, %v9278_v20  ;;  %v3215_v54 = vcombine.low %v3191_v30, %v3207_v17  ;;  %v2479_v48 = vrot.slane %v2471_v4, %v8732_v22  ;;  %v2540_v33 = vcombine.high %v8599_v52, %v1586_v56 }
 0x1cf   : > { %v3216_v19 = vcombine.high %v3191_v30, %v3207_v17  ;;  %v2488_v53 = vcombine.high %v9166_v32, %v1632_v34  ;;  %v2495_v7 = vrot.slane %v2487_v5, %v8732_v22  ;;  %v2486_v16 = vrot.slane %v2472_v49, %v8732_v22 }
 0x1d0   : > { %v3275_v60 = vrot.slane %v3267_v9, %v8744_v36  ;;  %v2547_v42 = vrot.slane %v2539_v15, %v8732_v22  ;;  %v2555_v20 = vcombine.low %v9180_v55, %v1634_v41  ;;  %v2556_v13 = vcombine.high %v9180_v55, %v1634_v41  ;;  %v1588_v9 = vpop.permute.xlu0 %1587 }
 0x1d1   : > { %v2502_v4 = vrot.slane %v2488_v53, %v8732_v22  ;;  %v2503_v52 = vcombine.low %v2479_v48, %v2495_v7  ;;  %v2554_v56 = vrot.slane %v2540_v33, %v8732_v22  ;;  %v2504_v30 = vcombine.high %v2479_v48, %v2495_v7  ;;  %v9317_v53 = vpop.f32.mrb[19].mxu0  ;;  %v1590_v48 = vpop.permute.xlu1 %1589 }
 0x1d2   : > { %v3283_v1 = vcombine.low %v3259_v8, %v3275_v60  ;;  %v3284_v47 = vcombine.high %v3259_v8, %v3275_v60  ;;  %v2563_v32 = vrot.slane %v2555_v20, %v8732_v22  ;;  %v2570_v34 = vrot.slane %v2556_v13, %v8732_v22  ;;  %11021 = vst [vmem:[#allocation43_spill] sm:$0xff] %v9317_v53 }
 0x1d3   : > { %v9312_v17 = vrot.slane %v2503_v52, %v8744_v36  ;;  %v2519_v15 = vcombine.low %v2486_v16, %v2502_v4  ;;  %v9315_v55 = vrot.slane %v2504_v30, %v8744_v36  ;;  %v2520_v60 = vcombine.high %v2486_v16, %v2502_v4 }
 0x1d4   : > { %v3834_v5 = vpack.c.bf16 %v3283_v1, %v3215_v54  ;;  %v3842_v49 = vpack.c.bf16 %v3284_v47, %v3216_v19  ;;  %v2571_v41 = vcombine.low %v2547_v42, %v2563_v32  ;;  %v2572_v8 = vcombine.high %v2547_v42, %v2563_v32 }
 0x1d5   : > { %v7633_v20 = vcombine.high %v9260_v14, %v9263_v28  ;;  %v2587_v1 = vcombine.low %v2554_v56, %v2570_v34  ;;  %v9324_v47 = vrot.slane %v2519_v15, %v8744_v36  ;;  %v3559_v19 = vcombine.low %v9312_v17, %v9315_v55 }
 0x1d6   : > { %v6245_v13 = vsel %vm6231_vm2, %v3834_v5, 0  ;;  %v6313_v54 = vsel %vm6231_vm2, %v3842_v49, 0  ;;  %v2607_v42 = vcombine.low %v8583_v45, %v1588_v9  ;;  %v9330_v33 = vrot.slane %v2520_v60, %v8744_v36  ;;  %v1636_v60 = vpop.permute.xlu0 %1635 }
 0x1d7   : > { %7968 = vmatpush3.bf16.xpose.msra.mxu1 %v6245_v13  ;;  %7988 = vmatpush3.bf16.xpose.msra.mxu0 %v6313_v54  ;;  %v9333_v14 = vrot.slane %v2571_v41, %v8744_v36  ;;  %v9336_v28 = vrot.slane %v2572_v8, %v8744_v36  ;;  %v2588_v7 = vcombine.high %v2554_v56, %v2570_v34 }
 0x1d8   : > { %7969 = vmatprep.subr.bf16.mxu1 %v10981_v6  ;;  %v11022_v16 = vcombine.high %v9175_v46, %v9178_v35  ;;  %v9346_v52 = vrot.slane %v3355_v61, %v8732_v22  ;;  %v9349_v30 = vrot.slane %v7632_v10, %v8732_v22  ;;  %v2608_v32 = vcombine.high %v8583_v45, %v1588_v9 }
 0x1d9   : > { %7989 = vmatprep.subr.bf16.mxu0 %v10981_v6  ;;  %v9354_v56 = vrot.slane %v3371_v2, %v8732_v22  ;;  %v9357_v34 = vrot.slane %v7633_v20, %v8732_v22  ;;  %v9360_v46 = vrot.slane %v2587_v1, %v8744_v36  ;;  %v9363_v35 = vrot.slane %v2588_v7, %v8744_v36  ;;  %v1638_v20 = vpop.permute.xlu1 %1637 }
 0x1da   : > { %v9343_v4 = vrot.slane %v11022_v16, %v8732_v22  ;;  %11023 = vst [vmem:[#allocation44_spill] sm:$0xff] %v9346_v52  ;;  %11024 = vst [vmem:[#allocation45_spill] sm:$0xff] %v9349_v30  ;;  %v9366_v61 = vrot.slane %v3559_v19, %v8732_v22  ;;  %v7638_v45 = vcombine.high %v9312_v17, %v9315_v55 }
 0x1db   : > { %11025 = vst [vmem:[#allocation46_spill] sm:$0xff] %v9354_v56  ;;  %11026 = vst [vmem:[#allocation47_spill] sm:$0xff] %v9357_v34  ;;  %v2615_v10 = vrot.slane %v2607_v42, %v8732_v22  ;;  %v2675_v2 = vcombine.low %v8594_v50, %v1590_v48  ;;  %v3575_v5 = vcombine.low %v9324_v47, %v9330_v33 }
 0x1dc   : > { %v7639_v49 = vcombine.high %v9324_v47, %v9330_v33  ;;  %v3627_v15 = vcombine.low %v9333_v14, %v9336_v28  ;;  %v7640_v9 = vcombine.high %v9333_v14, %v9336_v28  ;;  %v2622_v41 = vrot.slane %v2608_v32, %v8732_v22 }
 0x1dd   : > { %v2676_v17 = vcombine.high %v8594_v50, %v1590_v48  ;;  %v3319_v55 = vcombine.low %v9229_v11, %v9232_v58  ;;  %v3335_v8 = vcombine.low %v9243_v12, %v9343_v4  ;;  %v3643_v13 = vcombine.low %v9360_v46, %v9363_v35 }
 0x1de   : > { %v2683_v54 = vrot.slane %v2675_v2, %v8732_v22  ;;  %v3387_v1 = vcombine.low %v9346_v52, %v9349_v30  ;;  %v3403_v47 = vcombine.low %v9354_v56, %v9357_v34  ;;  %v2623_v42 = vcombine.low %v9128_v51, %v1636_v60 }
 0x1df   : > { %v3327_v50 = vrot.slane %v3319_v55, %v8744_v36  ;;  %v3343_v19 = vrot.slane %v3335_v8, %v8744_v36  ;;  %v2624_v48 = vcombine.high %v9128_v51, %v1636_v60  ;;  %v2691_v28 = vcombine.low %v9152_v59, %v1638_v20  ;;  %v9405_v60 = vpop.permute.xlu0 %1201 }
 0x1e0   : > { %v3395_v33 = vrot.slane %v3387_v1, %v8744_v36  ;;  %v3411_v14 = vrot.slane %v3403_v47, %v8744_v36  ;;  %v2692_v7 = vcombine.high %v9152_v59, %v1638_v20  ;;  %v2631_v2 = vrot.slane %v2623_v42, %v8732_v22 }
 0x1e1   : > { %v3351_v16 = vcombine.low %v3327_v50, %v3343_v19  ;;  %v3352_v32 = vcombine.high %v3327_v50, %v3343_v19  ;;  %v2638_v55 = vrot.slane %v2624_v48, %v8732_v22  ;;  %v2699_v56 = vrot.slane %v2691_v28, %v8732_v22 }
 0x1e2   : > { %v3419_v53 = vcombine.low %v3395_v33, %v3411_v14  ;;  %v3420_v8 = vcombine.high %v3395_v33, %v3411_v14  ;;  %v2706_v51 = vrot.slane %v2692_v7, %v8732_v22  ;;  %v2639_v1 = vcombine.low %v2615_v10, %v2631_v2  ;;  %v9416_v14 = vpop.permute.xlu1 %1203 }
 0x1e3   : > { %v2640_v47 = vcombine.high %v2615_v10, %v2631_v2  ;;  %v2655_v34 = vcombine.low %v2622_v41, %v2638_v55  ;;  %v2656_v52 = vcombine.high %v2622_v41, %v2638_v55  ;;  %v2707_v20 = vcombine.low %v2683_v54, %v2699_v56 }
 0x1e4   : > { %v3835_v30 = vpack.c.bf16 %v3419_v53, %v3351_v16  ;;  %v3843_v59 = vpack.c.bf16 %v3420_v8, %v3352_v32  ;;  %v2708_v50 = vcombine.high %v2683_v54, %v2699_v56  ;;  %v7641_v19 = vcombine.high %v9360_v46, %v9363_v35 }
 0x1e5   : > { %v2690_v42 = vrot.slane %v2676_v17, %v8732_v22  ;;  %v9411_v48 = vrot.slane %v2639_v1, %v8744_v36  ;;  %v9414_v33 = vrot.slane %v2640_v47, %v8744_v36  ;;  %v9421_v41 = vrot.slane %v2655_v34, %v8744_v36 }
 0x1e6   : > { %v6248_v10 = vsel %vm6231_vm2, %v3835_v30, 0  ;;  %v6316_v53 = vsel %vm6231_vm2, %v3843_v59, 0  ;;  %v9424_v56 = vrot.slane %v2656_v52, %v8744_v36  ;;  %v9427_v46 = vrot.slane %v7638_v45, %v8732_v22  ;;  %v1208_v45 = vpop.permute.xlu0 %1207  ;;  %v1210_v59 = vpop.permute.xlu1 %1209 }
 0x1e7   : > { %7970 = vmatpush3.bf16.xpose.msra.mxu1 %v6248_v10  ;;  %7990 = vmatpush3.bf16.xpose.msra.mxu0 %v6316_v53  ;;  %v9430_v35 = vrot.slane %v2707_v20, %v8744_v36  ;;  %v9433_v17 = vrot.slane %v2708_v50, %v8744_v36  ;;  %v9436_v30 = vrot.slane %v3575_v5, %v8732_v22 }
 0x1e8   : > { %v9439_v34 = vrot.slane %v7639_v49, %v8732_v22  ;;  %v2723_v54 = vcombine.low %v2690_v42, %v2706_v51  ;;  %v2724_v52 = vcombine.high %v2690_v42, %v2706_v51  ;;  %7971 = vmatprep.subr.bf16.mxu1 %v10981_v6  ;;  %v9443_v28 = vrot.slane %v3627_v15, %v8732_v22 }
 0x1e9   : > { %v9446_v7 = vrot.slane %v7640_v9, %v8732_v22  ;;  %v9449_v16 = vrot.slane %v3643_v13, %v8732_v22  ;;  %v9452_v5 = vrot.slane %v7641_v19, %v8732_v22  ;;  %7991 = vmatprep.subr.bf16.mxu0 %v10981_v6  ;;  %v3695_v49 = vcombine.low %v9411_v48, %v9414_v33 }
 0x1ea   : > { %v11027_v2 = vcombine.low %v9058_v23, %v9061_v57  ;;  %v11028_v8 = vcombine.high %v9058_v23, %v9061_v57  ;;  %v11029_v1 = vcombine.low %v9064_v3, %v9067_v44  ;;  %v9484_v20 = vrot.slane %v2723_v54, %v8744_v36  ;;  %v1216_v32 = vpop.permute.xlu1 %1215 }
 0x1eb   : > { %v9487_v50 = vrot.slane %v2724_v52, %v8744_v36  ;;  %v11030_v19 = vcombine.high %v9064_v3, %v9067_v44  ;;  %v11031_v57 = vcombine.low %v9092_v27, %v9103_v25  ;;  %v11033_v53 = vcombine.high %v9092_v27, %v9103_v25 }
 0x1ec   : > { %v9469_v55 = vrot.slane %v11027_v2, %v8732_v22  ;;  %v9475_v51 = vrot.slane %v11028_v8, %v8732_v22  ;;  %v9481_v47 = vrot.slane %v11029_v1, %v8732_v22  ;;  %v11035_v3 = vcombine.low %v9131_v29, %v9169_v24 }
 0x1ed   : > { %v9493_v23 = vrot.slane %v11030_v19, %v8732_v22  ;;  %v9499_v42 = vrot.slane %v11031_v57, %v8732_v22  ;;  %v9507_v54 = vrot.slane %v11033_v53, %v8732_v22  ;;  %v11037_v52 = vcombine.high %v9131_v29, %v9169_v24  ;;  %v1214_v19 = vpop.permute.xlu0 %1213 }
 0x1ee   : > { %v3455_v10 = vcombine.low %v9469_v55, %v9475_v51  ;;  %v9513_v44 = vrot.slane %v11035_v3, %v8732_v22  ;;  %v9522_v8 = vrot.slane %v3695_v49, %v8732_v22  ;;  %v1219_v1 = vcombine.low %v8687_v62, %v1208_v45 }
 0x1ef   : > { %11032 = vst [vmem:[#allocation48_spill] sm:$0xff] %v9499_v42  ;;  %11034 = vst [vmem:[#allocation49_spill] sm:$0xff] %v9507_v54  ;;  %v9519_v2 = vrot.slane %v11037_v52, %v8732_v22  ;;  %v3471_v25 = vcombine.low %v9481_v47, %v9493_v23  ;;  %v3523_v53 = vcombine.low %v9499_v42, %v9507_v54 }
 0x1f0   : > { %11036 = vst [vmem:[#allocation50_spill] sm:$0xff] %v9513_v44  ;;  %v3463_v57 = vrot.slane %v3455_v10, %v8744_v36  ;;  %v1220_v24 = vcombine.high %v8687_v62, %v1208_v45  ;;  %v1287_v52 = vcombine.low %v8694_v63, %v1210_v59  ;;  %v1288_v27 = vcombine.high %v8694_v63, %v1210_v59 }
 0x1f1   : > { %11038 = vst [vmem:[#allocation51_spill] sm:$0xff] %v9519_v2  ;;  %v3539_v29 = vcombine.low %v9513_v44, %v9519_v2  ;;  %v3479_v3 = vrot.slane %v3471_v25, %v8744_v36  ;;  %v3531_v13 = vrot.slane %v3523_v53, %v8744_v36  ;;  %v1235_v15 = vcombine.low %v9405_v60, %v1214_v19 }
 0x1f2   : > { %v1227_v49 = vrot.slane %v1219_v1, %v8732_v22  ;;  %v1234_v25 = vrot.slane %v1220_v24, %v8732_v22  ;;  %v1236_v63 = vcombine.high %v9405_v60, %v1214_v19  ;;  %v1295_v10 = vrot.slane %v1287_v52, %v8732_v22 }
 0x1f3   : > { %v3547_v9 = vrot.slane %v3539_v29, %v8744_v36  ;;  %v3487_v62 = vcombine.low %v3463_v57, %v3479_v3  ;;  %v3488_v45 = vcombine.high %v3463_v57, %v3479_v3  ;;  %v1243_v59 = vrot.slane %v1235_v15, %v8732_v22 }
 0x1f4   : > { %v1302_v53 = vrot.slane %v1288_v27, %v8732_v22  ;;  %v1303_v29 = vcombine.low %v9416_v14, %v1216_v32  ;;  %v1304_v42 = vcombine.high %v9416_v14, %v1216_v32  ;;  %v1250_v1 = vrot.slane %v1236_v63, %v8732_v22 }
 0x1f5   : > { %v3555_v44 = vcombine.low %v3531_v13, %v3547_v9  ;;  %v3556_v2 = vcombine.high %v3531_v13, %v3547_v9  ;;  %v1251_v3 = vcombine.low %v1227_v49, %v1243_v59  ;;  %v1252_v24 = vcombine.high %v1227_v49, %v1243_v59 }
 0x1f6   : > { %v1311_v9 = vrot.slane %v1303_v29, %v8732_v22  ;;  %v1318_v60 = vrot.slane %v1304_v42, %v8732_v22  ;;  %v3591_v15 = vcombine.low %v9366_v61, %v9427_v46  ;;  %v1267_v14 = vcombine.low %v1234_v25, %v1250_v1 }
 0x1f7   : > { %v3836_v54 = vpack.c.bf16 %v3555_v44, %v3487_v62  ;;  %v3844_v57 = vpack.c.bf16 %v3556_v2, %v3488_v45  ;;  %v1259_v19 = vrot.slane %v1251_v3, %v8744_v36  ;;  %v1266_v32 = vrot.slane %v1252_v24, %v8744_v36 }
 0x1f8   : > { %v1268_v44 = vcombine.high %v1234_v25, %v1250_v1  ;;  %v1319_v2 = vcombine.low %v1295_v10, %v1311_v9  ;;  %v1275_v49 = vrot.slane %v1267_v14, %v8744_v36  ;;  %v1320_v52 = vcombine.high %v1295_v10, %v1311_v9 }
 0x1f9   : > { %v6251_v13 = vsel %vm6231_vm2, %v3836_v54, 0  ;;  %v6319_v27 = vsel %vm6231_vm2, %v3844_v57, 0  ;;  %v1335_v42 = vcombine.low %v1302_v53, %v1318_v60  ;;  %v1336_v62 = vcombine.high %v1302_v53, %v1318_v60 }
 0x1fa   : > { %7972 = vmatpush3.bf16.xpose.msra.mxu1 %v6251_v13  ;;  %7992 = vmatpush3.bf16.xpose.msra.mxu0 %v6319_v27  ;;  %v1282_v54 = vrot.slane %v1268_v44, %v8744_v36  ;;  %v1355_v45 = vcombine.low %v1259_v19, %v1266_v32  ;;  %v7610_v63 = vcombine.high %v1259_v19, %v1266_v32 }
 0x1fb   : > { %7973 = vmatprep.subr.bf16.mxu1 %v10981_v6  ;;  %v1327_v59 = vrot.slane %v1319_v2, %v8744_v36  ;;  %7993 = vmatprep.subr.bf16.mxu0 %v10981_v6  ;;  %v1334_v29 = vrot.slane %v1320_v52, %v8744_v36  ;;  %v1343_v25 = vrot.slane %v1335_v42, %v8744_v36 }
 0x1fc   : > { %v1350_v57 = vrot.slane %v1336_v62, %v8744_v36  ;;  %v3607_v10 = vcombine.low %v9436_v30, %v9439_v34  ;;  %v1362_v53 = vrot.slane %v1355_v45, %v8732_v22  ;;  %v1370_v1 = vrot.slane %v7610_v63, %v8732_v22 }
 0x1fd   : > { %v1371_v3 = vcombine.low %v1275_v49, %v1282_v54  ;;  %v7611_v24 = vcombine.high %v1275_v49, %v1282_v54  ;;  %v1423_v9 = vcombine.low %v1327_v59, %v1334_v29  ;;  %v7612_v60 = vcombine.high %v1327_v59, %v1334_v29 }
 0x1fe   : > { %v1439_v13 = vcombine.low %v1343_v25, %v1350_v57  ;;  %v7613_v27 = vcombine.high %v1343_v25, %v1350_v57  ;;  %v1388_v32 = vcombine.high %v1362_v53, %v1370_v1  ;;  %v3599_v44 = vrot.slane %v3591_v15, %v8744_v36 }
 0x1ff   : > { %v9575_v19 = vrot.slane %v1371_v3, %v8732_v22  ;;  %v9578_v14 = vrot.slane %v7611_v24, %v8732_v22  ;;  %v9582_v2 = vrot.slane %v1423_v9, %v8732_v22  ;;  %v9585_v52 = vrot.slane %v7612_v60, %v8732_v22 }
 0x200   : > { %v9588_v49 = vrot.slane %v1439_v13, %v8732_v22  ;;  %v9591_v42 = vrot.slane %v7613_v27, %v8732_v22  ;;  %v1387_v62 = vcombine.low %v1362_v53, %v1370_v1  ;;  %v3615_v15 = vrot.slane %v3607_v10, %v8744_v36 }
 0x201   : > { %v1403_v54 = vcombine.low %v9575_v19, %v9578_v14  ;;  %v1455_v63 = vcombine.low %v9582_v2, %v9585_v52  ;;  %v11039_v57 = vcombine.high %v9411_v48, %v9414_v33  ;;  %v11040_v10 = vcombine.low %v9421_v41, %v9424_v56 }
 0x202   : > { %v1471_v29 = vcombine.low %v9588_v49, %v9591_v42  ;;  %v11041_v3 = vcombine.high %v9421_v41, %v9424_v56  ;;  %v3659_v9 = vcombine.low %v9443_v28, %v9446_v7  ;;  %v11042_v48 = vcombine.low %v9430_v35, %v9433_v17 }
 0x203   : > { %v9610_v53 = vrot.slane %v11039_v57, %v8732_v22  ;;  %v9616_v1 = vrot.slane %v11040_v10, %v8732_v22  ;;  %v11044_v60 = vcombine.high %v9430_v35, %v9433_v17  ;;  %v11046_v41 = vcombine.low %v9484_v20, %v9487_v50 }
 0x204   : > { %v9622_v24 = vrot.slane %v11041_v3, %v8732_v22  ;;  %v9630_v33 = vrot.slane %v11042_v48, %v8732_v22  ;;  %v11048_v27 = vcombine.high %v9484_v20, %v9487_v50  ;;  %v9651_v10 = vrot.slane %v1387_v62, %v8744_v36 }
 0x205   : > { %v9636_v13 = vrot.slane %v11044_v60, %v8732_v22  ;;  %v9642_v56 = vrot.slane %v11046_v41, %v8732_v22  ;;  %v9654_v3 = vrot.slane %v1403_v54, %v8744_v36  ;;  %v3667_v35 = vrot.slane %v3659_v9, %v8744_v36  ;;  %v9670_v54 = vld [vmem:[%s10883_s10] ss:$0 sm:$0xff] }
 0x206   : > { %11043 = vst [vmem:[#allocation52_spill] sm:$0xff] %v9630_v33  ;;  %v9648_v57 = vrot.slane %v11048_v27, %v8732_v22  ;;  %v3675_v17 = vcombine.low %v9449_v16, %v9452_v5  ;;  %v9660_v48 = vrot.slane %v1388_v32, %v8744_v36  ;;  %v9663_v60 = vrot.slane %v1455_v63, %v8744_v36 }
 0x207   : > { %11045 = vst [vmem:[#allocation53_spill] sm:$0xff] %v9636_v13  ;;  %11047 = vst [vmem:[#allocation54_spill] sm:$0xff] %v9642_v56  ;;  %v1479_v20 = vrot.slane %v1471_v29, %v8744_v36  ;;  %v3623_v50 = vcombine.low %v3599_v44, %v3615_v15  ;;  %v3624_v41 = vcombine.high %v3599_v44, %v3615_v15 }
 0x208   : > { %11049 = vst [vmem:[#allocation55_spill] sm:$0xff] %v9648_v57  ;;  %11050 = vst [vmem:[#allocation56_spill] sm:$0xff] %v9660_v48  ;;  %v3683_v62 = vrot.slane %v3675_v17, %v8744_v36  ;;  %v9674_v9 = vadd.f32 %v9670_v54, %v8829_v40  ;;  %v9678_v32 = vadd.f32 %v9670_v54, %v8842_v31 }
 0x209   : > { %v3727_v63 = vcombine.low %v9522_v8, %v9610_v53  ;;  %v3743_v29 = vcombine.low %v9616_v1, %v9622_v24  ;;  %v3795_v44 = vcombine.low %v9630_v33, %v9636_v13  ;;  %v3811_v15 = vcombine.low %v9642_v56, %v9648_v57 }
 0x20a   : > { %v1419_v40 = vcombine.low %v9651_v10, %v9654_v3  ;;  %v3691_v27 = vcombine.low %v3667_v35, %v3683_v62  ;;  %v3692_v17 = vcombine.high %v3667_v35, %v3683_v62  ;;  %3887 = vrot.lane.b32.xlu0 %v9674_v9, %s8277_s30  ;;  %3889 = vrot.lane.b32.xlu1 %v9678_v32, %s8277_s30 }
 0x20b   : > { %v3735_v31 = vrot.slane %v3727_v63, %v8744_v36  ;;  %v3751_v25 = vrot.slane %v3743_v29, %v8744_v36  ;;  %v3803_v59 = vrot.slane %v3795_v44, %v8744_v36  ;;  %v3819_v45 = vrot.slane %v3811_v15, %v8744_v36 }
 0x20c   : > { %v1420_v22 = vcombine.high %v9651_v10, %v9654_v3  ;;  %v3837_v48 = vpack.c.bf16 %v3691_v27, %v3623_v50  ;;  %v3845_v56 = vpack.c.bf16 %v3692_v17, %v3624_v41  ;;  %v2776_v35 = vcombine.high %v8833_v43, %v8836_v18  ;;  %v11054_v50 = vld [vmem:[#allocation15_spill] sm:$0xff] }
 0x20d   : > { %v3759_v62 = vcombine.low %v3735_v31, %v3751_v25  ;;  %v3827_v57 = vcombine.low %v3803_v59, %v3819_v45  ;;  %v3760_v33 = vcombine.high %v3735_v31, %v3751_v25  ;;  %v3828_v13 = vcombine.high %v3803_v59, %v3819_v45  ;;  %v11051_v45 = vld [vmem:[#allocation14_spill] sm:$0xff]  ;;  %v11052_v59 = vld [vmem:[#allocation13_spill] sm:$0xff] }
 0x20e   : > { %v1487_v63 = vcombine.low %v9663_v60, %v1479_v20  ;;  %v6254_v29 = vsel %vm6231_vm2, %v3837_v48, 0  ;;  %v6322_v44 = vsel %vm6231_vm2, %v3845_v56, 0  ;;  %3935 = vrot.lane.b32.xlu0 %v9674_v9, %s8278_s2  ;;  %3937 = vrot.lane.b32.xlu1 %v9678_v32, %s8278_s2  ;;  %v2792_v10 = vcombine.high %v8852_v26, %v8855_v37  ;;  %v11053_v48 = vld [vmem:[#allocation16_spill] sm:$0xff]  ;;  %v11055_v37 = vld [vmem:[#allocation10_spill] sm:$0xff] }
 0x20f   : > { %v1488_v43 = vcombine.high %v9663_v60, %v1479_v20  ;;  %7974 = vmatpush3.bf16.xpose.msra.mxu1 %v6254_v29  ;;  %7994 = vmatpush3.bf16.xpose.msra.mxu0 %v6322_v44  ;;  %v9714_v18 = vadd.f32 %v9670_v54, %v8822_v39  ;;  %v2844_v25 = vcombine.high %v11052_v59, %v11051_v45  ;;  %v11060_v29 = vld [vmem:[#allocation21_spill] sm:$0xff]  ;;  %v11061_v44 = vld [vmem:[#allocation20_spill] sm:$0xff]  ;;  %v11062_v45 = vld [vmem:[#allocation23_spill] sm:$0xff] }
 0x210   : > { %7975 = vmatprep.subr.bf16.mxu1 %v10981_v6  ;;  %7995 = vmatprep.subr.bf16.mxu0 %v10981_v6  ;;  %v3838_v56 = vpack.c.bf16 %v3827_v57, %v3759_v62  ;;  %v3846_v3 = vpack.c.bf16 %v3828_v13, %v3760_v33  ;;  %v2860_v26 = vcombine.high %v11054_v50, %v11053_v48  ;;  %v11056_v13 = vld [vmem:[#allocation12_spill] sm:$0xff]  ;;  %v11057_v57 = vld [vmem:[#allocation11_spill] sm:$0xff] }
 0x211   : > { %v9724_v60 = vadd.f32 %v9670_v54, %v11055_v37  ;;  %v2790_v20 = vrot.slane %v2776_v35, %v8744_v36  ;;  %v2806_v39 = vrot.slane %v2792_v10, %v8744_v36  ;;  %v2858_v41 = vrot.slane %v2844_v25, %v8744_v36 }
 0x212   : > { %v2874_v15 = vrot.slane %v2860_v26, %v8744_v36  ;;  %3983 = vrot.lane.b32.xlu0 %v9674_v9, %s8279_s5  ;;  %3985 = vrot.lane.b32.xlu1 %v9678_v32, %s8279_s5  ;;  %v2912_v33 = vcombine.high %v8820_v38, %v8827_v0  ;;  %v2928_v27 = vcombine.high %v11057_v57, %v11056_v13  ;;  %v11063_v38 = vld [vmem:[#allocation22_spill] sm:$0xff] }
 0x213   : > { %v11058_v17 = vcombine.high %v9575_v19, %v9578_v14  ;;  %v11059_v35 = vcombine.high %v9582_v2, %v9585_v52  ;;  %v2980_v10 = vcombine.high %v11061_v44, %v11060_v29  ;;  %v2996_v0 = vcombine.high %v11063_v38, %v11062_v45  ;;  %v11073_v45 = vld [vmem:[#allocation35_spill] sm:$0xff]  ;;  %v11074_v38 = vld [vmem:[#allocation34_spill] sm:$0xff] }
 0x214   : > { %v11064_v59 = vcombine.high %v9588_v49, %v9591_v42  ;;  %v6257_v19 = vsel %vm6231_vm2, %v3838_v56, 0  ;;  %v6325_v14 = vsel %vm6231_vm2, %v3846_v3, 0  ;;  %v1491_v48 = vpack.c.bf16 %v1487_v63, %v1419_v40  ;;  %v11065_v40 = vld [vmem:[#allocation25_spill] sm:$0xff] }
 0x215   : > { %v9742_v31 = vrot.slane %v11058_v17, %v8744_v36  ;;  %v9748_v62 = vrot.slane %v11059_v35, %v8744_v36  ;;  %v1492_v2 = vpack.c.bf16 %v1488_v43, %v1420_v22  ;;  %v2809_v52 = vcombine.low %v2790_v20, %v2806_v39  ;;  %v11066_v43 = vld [vmem:[#allocation17_spill] sm:$0xff]  ;;  %v11072_v35 = vld [vmem:[#allocation30_spill] sm:$0xff] }
 0x216   : > { %v9758_v25 = vrot.slane %v11064_v59, %v8744_v36  ;;  %v2877_v50 = vcombine.low %v2858_v41, %v2874_v15  ;;  %v2878_v26 = vcombine.high %v2858_v41, %v2874_v15  ;;  %v2810_v37 = vcombine.high %v2790_v20, %v2806_v39  ;;  %3891 = vrot.lane.b32.xlu0 %v9714_v18, %s8277_s30  ;;  %v11067_v20 = vld [vmem:[#allocation27_spill] sm:$0xff]  ;;  %v11068_v39 = vld [vmem:[#allocation26_spill] sm:$0xff]  ;;  %v11069_v15 = vld [vmem:[#allocation29_spill] sm:$0xff] }
 0x217   : > { %3893 = vrot.lane.b32.xlu1 %v9724_v60, %s8277_s30  ;;  %v2926_v49 = vrot.slane %v2912_v33, %v8744_v36  ;;  %v2942_v42 = vrot.slane %v2928_v27, %v8744_v36  ;;  %7976 = vmatpush3.bf16.xpose.msra.mxu1 %v6257_v19  ;;  %v2994_v56 = vrot.slane %v2980_v10, %v8744_v36  ;;  %v11070_v33 = vld [vmem:[#allocation28_spill] sm:$0xff] }
 0x218   : > { %7996 = vmatpush3.bf16.xpose.msra.mxu0 %v6325_v14  ;;  %v3010_v22 = vrot.slane %v2996_v0, %v8744_v36  ;;  %v3048_v63 = vcombine.high %v11065_v40, %v9111_v21  ;;  %8001 = vmatprep.subr.bf16.mxu1 %v10981_v6  ;;  %v9776_v3 = vadd.f32 %v9670_v54, %v11066_v43  ;;  %v11071_v21 = vld [vmem:[#allocation31_spill] sm:$0xff] }
 0x219   : > { %8021 = vmatprep.subr.bf16.mxu0 %v10981_v6  ;;  %v3064_v41 = vcombine.high %v11068_v39, %v11067_v20  ;;  %v3116_v13 = vcombine.high %v11070_v33, %v11069_v15  ;;  %v3847_v57 = vpack.c.bf16 %v2877_v50, %v2809_v52  ;;  %v3855_v27 = vpack.c.bf16 %v2878_v26, %v2810_v37  ;;  %v11075_v52 = vld [vmem:[#allocation37_spill] sm:$0xff]  ;;  %v11076_v50 = vld [vmem:[#allocation36_spill] sm:$0xff]  ;;  %v11078_v20 = vld [vmem:[#allocation39_spill] sm:$0xff]  ;;  %v9804_v15 = vpop.permute.xlu1 %3879 }
 0x21a   : > { %v9783_v17 = vrot.slane %v3048_v63, %v8744_v36  ;;  %v3132_v29 = vcombine.high %v11072_v35, %v11071_v21  ;;  %3939 = vrot.lane.b32.xlu0 %v9714_v18, %s8278_s2  ;;  %v3184_v0 = vcombine.high %v11074_v38, %v11073_v45  ;;  %v3013_v59 = vcombine.low %v2994_v56, %v3010_v22  ;;  %v11077_v63 = vld [vmem:[#allocation18_spill] sm:$0xff]  ;;  %v11081_v21 = vld [vmem:[#allocation40_spill] sm:$0xff] }
 0x21b   : > { %3941 = vrot.lane.b32.xlu1 %v9724_v60, %s8278_s2  ;;  %v3078_v44 = vrot.slane %v3064_v41, %v8744_v36  ;;  %v3130_v10 = vrot.slane %v3116_v13, %v8744_v36  ;;  %v3014_v19 = vcombine.high %v2994_v56, %v3010_v22  ;;  %v3200_v26 = vcombine.high %v11076_v50, %v11075_v52  ;;  %v11079_v39 = vld [vmem:[#allocation38_spill] sm:$0xff]  ;;  %v11080_v13 = vld [vmem:[#allocation41_spill] sm:$0xff] }
 0x21c   : > { %v3146_v14 = vrot.slane %v3132_v29, %v8744_v36  ;;  %v2945_v37 = vcombine.low %v2926_v49, %v2942_v42  ;;  %v2946_v40 = vcombine.high %v2926_v49, %v2942_v42  ;;  %v9800_v43 = vadd.f32 %v9670_v54, %v11077_v63 }
 0x21d   : > { %v3252_v41 = vcombine.high %v11079_v39, %v11078_v20  ;;  %v6372_v33 = vsel %vm6231_vm2, %v3847_v57, 0  ;;  %v3081_v56 = vcombine.low %v9783_v17, %v3078_v44  ;;  %v9809_v22 = vrot.slane %v3184_v0, %v8744_v36  ;;  %v11082_v0 = vld [vmem:[#allocation19_spill] sm:$0xff]  ;;  %v11087_v20 = vld [vmem:[#allocation49_spill] sm:$0xff]  ;;  %v11088_v39 = vld [vmem:[#allocation48_spill] sm:$0xff] }
 0x21e   : > { %v3268_v35 = vcombine.high %v11081_v21, %v11080_v13  ;;  %7978 = vmatmul.mubr.msk.bf16.vlgmr.msra.gmra.mrb[16].mxu1 %vm6231_vm2, %v1491_v48  ;;  %v6440_v49 = vsel %vm6231_vm2, %v3855_v27, 0  ;;  %v3149_v42 = vcombine.low %v3130_v10, %v3146_v14  ;;  %v3214_v29 = vrot.slane %v3200_v26, %v8744_v36  ;;  %3987 = vrot.lane.b32.xlu0 %v9714_v18, %s8279_s5 }
 0x21f   : > { %7998 = vmatmul.mubr.msk.bf16.vlgmr.msra.gmra.mrb[20].mxu0 %vm6231_vm2, %v1492_v2  ;;  %v3320_v57 = vcombine.high %v9229_v11, %v9232_v58  ;;  %8002 = vmatpush3.bf16.xpose.msra.mxu1 %v6372_v33  ;;  %v3848_v45 = vpack.c.bf16 %v3013_v59, %v2945_v37  ;;  %v3856_v38 = vpack.c.bf16 %v3014_v19, %v2946_v40  ;;  %v11083_v59 = vld [vmem:[#allocation45_spill] sm:$0xff]  ;;  %v11084_v19 = vld [vmem:[#allocation44_spill] sm:$0xff]  ;;  %v9843_v40 = vpop.permute.xlu1 %3927 }
 0x220   : > { %8022 = vmatpush3.bf16.xpose.msra.mxu0 %v6440_v49  ;;  %v9821_v52 = vadd.f32 %v9670_v54, %v11082_v0  ;;  %8003 = vmatprep.subr.bf16.mxu1 %v10981_v6  ;;  %v3082_v48 = vcombine.high %v9783_v17, %v3078_v44  ;;  %v3150_v2 = vcombine.high %v3130_v10, %v3146_v14  ;;  %v11085_v44 = vld [vmem:[#allocation47_spill] sm:$0xff]  ;;  %v11086_v10 = vld [vmem:[#allocation46_spill] sm:$0xff]  ;;  %v11089_v49 = vld [vmem:[#allocation24_spill] sm:$0xff] }
 0x221   : > { %8023 = vmatprep.subr.bf16.mxu0 %v10981_v6  ;;  %v3266_v27 = vrot.slane %v3252_v41, %v8744_v36  ;;  %3989 = vrot.lane.b32.xlu1 %v9724_v60, %s8279_s5  ;;  %v3282_v58 = vrot.slane %v3268_v35, %v8744_v36  ;;  %v3336_v11 = vcombine.high %v9243_v12, %v9343_v4  ;;  %v6375_v13 = vsel %vm6231_vm2, %v3848_v45, 0  ;;  %v11090_v0 = vld [vmem:[#allocation51_spill] sm:$0xff] }
 0x222   : > { %v3388_v50 = vcombine.high %v11084_v19, %v11083_v59  ;;  %v3849_v26 = vpack.c.bf16 %v3149_v42, %v3081_v56  ;;  %v3217_v17 = vcombine.low %v9809_v22, %v3214_v29  ;;  %v3404_v14 = vcombine.high %v11086_v10, %v11085_v44  ;;  %8017 = vmatprep.mubr.msk.bf16.mxu1 %vm8276_vm0, %v10981_v6 }
 0x223   : > { %v3456_v37 = vcombine.high %v9469_v55, %v9475_v51  ;;  %v3218_v63 = vcombine.high %v9809_v22, %v3214_v29  ;;  %v3334_v12 = vrot.slane %v3320_v57, %v8744_v36  ;;  %v3472_v4 = vcombine.high %v9481_v47, %v9493_v23  ;;  %8037 = vmatprep.mubr.msk.bf16.mxu0 %vm8276_vm0, %v10981_v6 }
 0x224   : > { %v3524_v41 = vcombine.high %v11088_v39, %v11087_v20  ;;  %v3350_v55 = vrot.slane %v3336_v11, %v8744_v36  ;;  %v3402_v51 = vrot.slane %v3388_v50, %v8744_v36  ;;  %v3418_v33 = vrot.slane %v3404_v14, %v8744_v36  ;;  %3899 = vrot.lane.b32.xlu0 %v9776_v3, %s8277_s30  ;;  %v11091_v11 = vld [vmem:[#allocation50_spill] sm:$0xff] }
 0x225   : > { %v3470_v56 = vrot.slane %v3456_v37, %v8744_v36  ;;  %3901 = vrot.lane.b32.xlu1 %v9821_v52, %s8277_s30  ;;  %v3285_v47 = vcombine.low %v3266_v27, %v3282_v58  ;;  %v3286_v23 = vcombine.high %v3266_v27, %v3282_v58  ;;  %v3486_v22 = vrot.slane %v3472_v4, %v8744_v36  ;;  %v9871_v27 = vpop.permute.xlu0 %3881 }
 0x226   : > { %v6443_v21 = vsel %vm6231_vm2, %v3856_v38, 0  ;;  %v3857_v35 = vpack.c.bf16 %v3150_v2, %v3082_v48  ;;  %v9866_v42 = vadd.f32 %v9670_v54, %v11089_v49  ;;  %v3538_v57 = vrot.slane %v3524_v41, %v8744_v36  ;;  %v9875_v2 = vpop.permute.xlu1 %3929 }
 0x227   : > { %8004 = vmatpush3.bf16.xpose.msra.mxu1 %v6375_v13  ;;  %v3489_v29 = vcombine.low %v3470_v56, %v3486_v22  ;;  %v3540_v59 = vcombine.high %v11091_v11, %v11090_v0  ;;  %v3353_v45 = vcombine.low %v3334_v12, %v3350_v55  ;;  %v3421_v38 = vcombine.low %v3402_v51, %v3418_v33 }
 0x228   : > { %8024 = vmatpush3.bf16.xpose.msra.mxu0 %v6443_v21  ;;  %8005 = vmatprep.subr.bf16.mxu1 %v10981_v6  ;;  %v3490_v48 = vcombine.high %v3470_v56, %v3486_v22  ;;  %v6378_v58 = vsel %vm6231_vm2, %v3849_v26, 0  ;;  %v3850_v19 = vpack.c.bf16 %v3285_v47, %v3217_v17  ;;  %v3858_v50 = vpack.c.bf16 %v3286_v23, %v3218_v63  ;;  %v11092_v56 = vld [vmem:[#allocation53_spill] sm:$0xff]  ;;  %v11093_v47 = vld [vmem:[#allocation52_spill] sm:$0xff]  ;;  %v11094_v21 = vld [vmem:[#allocation55_spill] sm:$0xff] }
 0x229   : > { %8025 = vmatprep.subr.bf16.mxu0 %v10981_v6  ;;  %3947 = vrot.lane.b32.xlu0 %v9776_v3, %s8278_s2  ;;  %v3554_v44 = vrot.slane %v3540_v59, %v8744_v36  ;;  %v3354_v10 = vcombine.high %v3334_v12, %v3350_v55  ;;  %v3422_v14 = vcombine.high %v3402_v51, %v3418_v33 }
 0x22a   : > { %3949 = vrot.lane.b32.xlu1 %v9821_v52, %s8278_s2  ;;  %v3592_v37 = vcombine.high %v9366_v61, %v9427_v46  ;;  %v3608_v4 = vcombine.high %v9436_v30, %v9439_v34  ;;  %v3660_v39 = vcombine.high %v9443_v28, %v9446_v7  ;;  %v3676_v41 = vcombine.high %v9449_v16, %v9452_v5  ;;  %v9907_v7 = vpop.permute.xlu0 %3975  ;;  %v9912_v55 = vpop.permute.xlu1 %3977 }
 0x22b   : > { %v3557_v20 = vcombine.low %v3538_v57, %v3554_v44  ;;  %v3558_v26 = vcombine.high %v3538_v57, %v3554_v44  ;;  %v9891_v17 = vpack.c.bf16 %v3421_v38, %v3353_v45  ;;  %v3728_v61 = vcombine.high %v9522_v8, %v9610_v53  ;;  %v11097_v38 = vld [vmem:[#allocation56_spill] sm:$0xff] }
 0x22c   : > { %v3606_v63 = vrot.slane %v3592_v37, %v8744_v36  ;;  %v3622_v12 = vrot.slane %v3608_v4, %v8744_v36  ;;  %v6446_v46 = vsel %vm6231_vm2, %v3857_v35, 0  ;;  %v3674_v28 = vrot.slane %v3660_v39, %v8744_v36  ;;  %v11095_v35 = vld [vmem:[#allocation54_spill] sm:$0xff]  ;;  %v11098_v37 = vld [vmem:[#allocation33_spill] sm:$0xff] }
 0x22d   : > { %3995 = vrot.lane.b32.xlu0 %v9776_v3, %s8279_s5  ;;  %v9902_v30 = vpack.c.bf16 %v3557_v20, %v3489_v29  ;;  %v9904_v34 = vpack.c.bf16 %v3558_v26, %v3490_v48  ;;  %v9909_v16 = vpack.c.bf16 %v3422_v14, %v3354_v10  ;;  %v3690_v8 = vrot.slane %v3676_v41, %v8744_v36  ;;  %v11099_v20 = vld [vmem:[#allocation42_spill] sm:$0xff] }
 0x22e   : > { %3997 = vrot.lane.b32.xlu1 %v9821_v52, %s8279_s5  ;;  %v3625_v5 = vcombine.low %v3606_v63, %v3622_v12  ;;  %v3626_v53 = vcombine.high %v3606_v63, %v3622_v12  ;;  %v3742_v51 = vrot.slane %v3728_v61, %v8744_v36  ;;  %v3744_v33 = vcombine.high %v9616_v1, %v9622_v24  ;;  %v11096_v1 = vld [vmem:[#allocation32_spill] sm:$0xff]  ;;  %v9945_v14 = vpop.permute.xlu0 %3883  ;;  %v9955_v63 = vpop.permute.xlu1 %3885 }
 0x22f   : > { %8006 = vmatpush3.bf16.xpose.msra.mxu1 %v6378_v58  ;;  %v3796_v23 = vcombine.high %v11093_v47, %v11092_v56  ;;  %v3693_v22 = vcombine.low %v3674_v28, %v3690_v8  ;;  %v3694_v13 = vcombine.high %v3674_v28, %v3690_v8  ;;  %v3812_v49 = vcombine.high %v11095_v35, %v11094_v21  ;;  %v11103_v47 = vld [vmem:[#allocation9_spill] sm:$0xff] }
 0x230   : > { %8026 = vmatpush3.bf16.xpose.msra.mxu0 %v6446_v46  ;;  %8007 = vmatprep.subr.bf16.mxu1 %v10981_v6  ;;  %v6381_v29 = vsel %vm6231_vm2, %v3850_v19, 0  ;;  %v9930_v24 = vadd.f32 %v9670_v54, %v11096_v1  ;;  %v3758_v57 = vrot.slane %v3744_v33, %v8744_v36  ;;  %v1421_v48 = vcombine.low %v11097_v38, %v9742_v31  ;;  %v11100_v46 = vld [vmem:[#allocation5_spill] sm:$0xff]  ;;  %v11102_v33 = vld [vmem:[#allocation43_spill] sm:$0xff] }
 0x231   : > { %8027 = vmatprep.subr.bf16.mxu0 %v10981_v6  ;;  %3895 = vrot.lane.b32.xlu0 %v9800_v43, %s8277_s30  ;;  %v3810_v0 = vrot.slane %v3796_v23, %v8744_v36  ;;  %v9934_v11 = vpack.c.bf16 %v3693_v22, %v3625_v5  ;;  %v9936_v59 = vpack.c.bf16 %v3694_v13, %v3626_v53  ;;  %v6449_v12 = vsel %vm6231_vm2, %v3858_v50, 0  ;;  %v11101_v53 = vld [vmem:[#allocation6_spill] sm:$0xff] }
 0x232   : > { %3897 = vrot.lane.b32.xlu1 %v9866_v42, %s8277_s30  ;;  %v3826_v45 = vrot.slane %v3812_v49, %v8744_v36  ;;  %v3761_v58 = vcombine.low %v3742_v51, %v3758_v57  ;;  %v3762_v19 = vcombine.high %v3742_v51, %v3758_v57  ;;  %v1489_v44 = vcombine.low %v9748_v62, %v9758_v25  ;;  %v3932_v35 = vpop.permute.xlu0 %3931 }
 0x233   : > { %v1422_v10 = vcombine.high %v11097_v38, %v9742_v31  ;;  %v9949_v4 = vadd.f32 %v9670_v54, %v11098_v37  ;;  %v9953_v26 = vadd.f32 %v9670_v54, %v11099_v20  ;;  %v1490_v61 = vcombine.high %v9748_v62, %v9758_v25 }
 0x234   : > { %v3829_v39 = vcombine.low %v3810_v0, %v3826_v45  ;;  %v3830_v41 = vcombine.high %v3810_v0, %v3826_v45  ;;  %v9962_v31 = vpack.c.bf16 %v1489_v44, %v1421_v48  ;;  %v4023_v28 = vcombine.low %v11100_v46, %v9843_v40  ;;  %v3934_v0 = vpop.permute.xlu1 %3933  ;;  %v11105_v48 = vld [vmem:[#allocation8_spill] sm:$0xff] }
 0x235   : > { %3943 = vrot.lane.b32.xlu0 %v9800_v43, %s8278_s2  ;;  %v4024_v50 = vcombine.high %v11100_v46, %v9843_v40  ;;  %v4091_v51 = vcombine.low %v11101_v53, %v9875_v2  ;;  %v9978_v56 = vadd.f32 %v9670_v54, %v11102_v33  ;;  %v9980_v62 = vpack.c.bf16 %v1490_v61, %v1422_v10 }
 0x236   : > { %3945 = vrot.lane.b32.xlu1 %v9866_v42, %s8278_s2  ;;  %v9968_v5 = vpack.c.bf16 %v3829_v39, %v3761_v58  ;;  %v9970_v8 = vpack.c.bf16 %v3830_v41, %v3762_v19  ;;  %v4092_v25 = vcombine.high %v11101_v53, %v9875_v2  ;;  %v4031_v40 = vrot.slane %v4023_v28, %v11103_v47 }
 0x237   : > { %8008 = vmatpush3.bf16.xpose.msra.mxu1 %v6381_v29  ;;  %v4038_v23 = vrot.slane %v4024_v50, %v11103_v47  ;;  %v4099_v22 = vrot.slane %v4091_v51, %v11103_v47  ;;  %v6384_v13 = vsel %vm6231_vm2, %v9891_v17, 0  ;;  %v4039_v2 = vcombine.low %v9804_v15, %v9907_v7  ;;  %v11104_v29 = vld [vmem:[#allocation7_spill] sm:$0xff] }
 0x238   : > { %8028 = vmatpush3.bf16.xpose.msra.mxu0 %v6449_v12  ;;  %8009 = vmatprep.subr.bf16.mxu1 %v10981_v6  ;;  %v4106_v54 = vrot.slane %v4092_v25, %v11103_v47  ;;  %v4040_v21 = vcombine.high %v9804_v15, %v9907_v7  ;;  %v4107_v49 = vcombine.low %v9871_v27, %v9912_v55  ;;  %v6387_v33 = vsel %vm6231_vm2, %v9902_v30, 0 }
 0x239   : > { %8029 = vmatprep.subr.bf16.mxu0 %v10981_v6  ;;  %3991 = vrot.lane.b32.xlu0 %v9800_v43, %s8279_s5  ;;  %v4108_v17 = vcombine.high %v9871_v27, %v9912_v55  ;;  %v4159_v1 = vcombine.low %v11104_v29, %v3932_v35  ;;  %v4160_v57 = vcombine.high %v11104_v29, %v3932_v35  ;;  %v6452_v55 = vsel %vm6231_vm2, %v9909_v16, 0 }
 0x23a   : > { %3993 = vrot.lane.b32.xlu1 %v9866_v42, %s8279_s5  ;;  %v4047_v45 = vrot.slane %v4039_v2, %v11103_v47  ;;  %v4054_v38 = vrot.slane %v4040_v21, %v11103_v47  ;;  %v4227_v58 = vcombine.low %v11105_v48, %v3934_v0  ;;  %v4228_v15 = vcombine.high %v11105_v48, %v3934_v0 }
 0x23b   : > { %v4115_v7 = vrot.slane %v4107_v49, %v11103_v47  ;;  %v4122_v19 = vrot.slane %v4108_v17, %v11103_v47  ;;  %v10013_v44 = vrot.slane %v4159_v1, %v11103_v47  ;;  %v10016_v27 = vrot.slane %v4160_v57, %v11103_v47 }
 0x23c   : > { %v4055_v10 = vcombine.low %v4031_v40, %v4047_v45  ;;  %v4056_v37 = vcombine.high %v4031_v40, %v4047_v45  ;;  %v4071_v20 = vcombine.low %v4038_v23, %v4054_v38  ;;  %v4072_v39 = vcombine.high %v4038_v23, %v4054_v38 }
 0x23d   : > { %3907 = vrot.lane.b32.xlu0 %v9930_v24, %s8277_s30  ;;  %v4123_v41 = vcombine.low %v4099_v22, %v4115_v7  ;;  %v4124_v12 = vcombine.high %v4099_v22, %v4115_v7  ;;  %v4139_v61 = vcombine.low %v4106_v54, %v4122_v19  ;;  %v4140_v23 = vcombine.high %v4106_v54, %v4122_v19  ;;  %v3980_v7 = vpop.permute.xlu0 %3979  ;;  %v3982_v19 = vpop.permute.xlu1 %3981 }
 0x23e   : > { %3903 = vrot.lane.b32.xlu1 %v9949_v4, %s8277_s30  ;;  %v4063_v46 = vrot.slane %v4055_v10, %v8744_v36  ;;  %v4070_v28 = vrot.slane %v4056_v37, %v8744_v36  ;;  %v4079_v16 = vrot.slane %v4071_v20, %v8744_v36  ;;  %v4086_v50 = vrot.slane %v4072_v39, %v8744_v36 }
 0x23f   : > { %8010 = vmatpush3.bf16.xpose.msra.mxu1 %v6384_v13  ;;  %v4131_v53 = vrot.slane %v4123_v41, %v8744_v36  ;;  %v4138_v51 = vrot.slane %v4124_v12, %v8744_v36  ;;  %v4147_v2 = vrot.slane %v4139_v61, %v8744_v36  ;;  %v4154_v30 = vrot.slane %v4140_v23, %v8744_v36 }
 0x240   : > { %8030 = vmatpush3.bf16.xpose.msra.mxu0 %v6452_v55  ;;  %8011 = vmatprep.subr.bf16.mxu1 %v10981_v6  ;;  %v5111_v25 = vcombine.low %v4063_v46, %v4070_v28  ;;  %v7646_v40 = vcombine.high %v4063_v46, %v4070_v28  ;;  %v5127_v22 = vcombine.low %v4079_v16, %v4086_v50  ;;  %v6455_v0 = vsel %vm6231_vm2, %v9904_v34, 0 }
 0x241   : > { %8031 = vmatprep.subr.bf16.mxu0 %v10981_v6  ;;  %3999 = vrot.lane.b32.xlu0 %v9949_v4, %s8279_s5  ;;  %v7647_v13 = vcombine.high %v4079_v16, %v4086_v50  ;;  %v5179_v21 = vcombine.low %v4131_v53, %v4138_v51  ;;  %v7648_v17 = vcombine.high %v4131_v53, %v4138_v51  ;;  %v6390_v37 = vsel %vm6231_vm2, %v9934_v11, 0 }
 0x242   : > { %3951 = vrot.lane.b32.xlu1 %v9949_v4, %s8278_s2  ;;  %v10040_v35 = vrot.slane %v5111_v25, %v11103_v47  ;;  %v10043_v49 = vrot.slane %v7646_v40, %v11103_v47  ;;  %v10047_v29 = vrot.slane %v5127_v22, %v11103_v47  ;;  %v4235_v57 = vrot.slane %v4227_v58, %v11103_v47 }
 0x243   : > { %v10050_v1 = vrot.slane %v7647_v13, %v11103_v47  ;;  %v10053_v54 = vrot.slane %v5179_v21, %v11103_v47  ;;  %v10063_v45 = vrot.slane %v7648_v17, %v11103_v47  ;;  %v5195_v38 = vcombine.low %v4147_v2, %v4154_v30 }
 0x244   : > { %v7649_v48 = vcombine.high %v4147_v2, %v4154_v30  ;;  %v4242_v55 = vrot.slane %v4228_v15, %v11103_v47  ;;  %v4175_v58 = vcombine.low %v9945_v14, %v3980_v7  ;;  %v4176_v10 = vcombine.high %v9945_v14, %v3980_v7 }
 0x245   : > { %3905 = vrot.lane.b32.xlu0 %v9978_v56, %s8277_s30  ;;  %v4243_v34 = vcombine.low %v9955_v63, %v3982_v19  ;;  %v10072_v20 = vrot.slane %v5195_v38, %v11103_v47  ;;  %v4244_v41 = vcombine.high %v9955_v63, %v3982_v19  ;;  %v6458_v14 = vsel %vm6231_vm2, %v9936_v59, 0 }
 0x246   : > { %3909 = vrot.lane.b32.xlu1 %v9953_v26, %s8277_s30  ;;  %v10075_v39 = vrot.slane %v7649_v48, %v11103_v47  ;;  %v4183_v15 = vrot.slane %v4175_v58, %v11103_v47  ;;  %v4190_v12 = vrot.slane %v4176_v10, %v11103_v47  ;;  %v5143_v63 = vcombine.low %v10040_v35, %v10043_v49  ;;  %s731_s30 = scalar_lea.vmem %s11112_s4, %s7717_s3  ;;  %s8282_s3 = smov 32  }
 0x247   : > { %8012 = vmatpush3.bf16.xpose.msra.mxu1 %v6387_v33  ;;  %v4251_v11 = vrot.slane %v4243_v34, %v11103_v47  ;;  %v4258_v61 = vrot.slane %v4244_v41, %v11103_v47  ;;  %v5159_v46 = vcombine.low %v10047_v29, %v10050_v1  ;;  %v5211_v59 = vcombine.low %v10053_v54, %v10063_v45 }
 0x248   : > { %8032 = vmatpush3.bf16.xpose.msra.mxu0 %v6455_v0  ;;  %8013 = vmatprep.subr.bf16.mxu1 %v10981_v6  ;;  %v4191_v28 = vcombine.low %v10013_v44, %v4183_v15  ;;  %v4192_v16 = vcombine.high %v10013_v44, %v4183_v15  ;;  %v4207_v50 = vcombine.low %v10016_v27, %v4190_v12 }
 0x249   : > { %8033 = vmatprep.subr.bf16.mxu0 %v10981_v6  ;;  %v4208_v53 = vcombine.high %v10016_v27, %v4190_v12  ;;  %v4259_v51 = vcombine.low %v4235_v57, %v4251_v11  ;;  %v4260_v33 = vcombine.high %v4235_v57, %v4251_v11  ;;  %v4275_v25 = vcombine.low %v4242_v55, %v4258_v61 }
 0x24a   : > { %3953 = vrot.lane.b32.xlu1 %v9978_v56, %s8278_s2  ;;  %v4276_v40 = vcombine.high %v4242_v55, %v4258_v61  ;;  %v4199_v23 = vrot.slane %v4191_v28, %v8744_v36  ;;  %v4206_v22 = vrot.slane %v4192_v16, %v8744_v36  ;;  %v4215_v13 = vrot.slane %v4207_v50, %v8744_v36 }
 0x24b   : > { %v4222_v2 = vrot.slane %v4208_v53, %v8744_v36  ;;  %v4267_v44 = vrot.slane %v4259_v51, %v8744_v36  ;;  %v4274_v21 = vrot.slane %v4260_v33, %v8744_v36  ;;  %v4283_v27 = vrot.slane %v4275_v25, %v8744_v36 }
 0x24c   : > { %v4290_v30 = vrot.slane %v4276_v40, %v8744_v36  ;;  %v5247_v17 = vcombine.low %v4199_v23, %v4206_v22  ;;  %v7650_v57 = vcombine.high %v4199_v23, %v4206_v22  ;;  %v5151_v12 = vrot.slane %v5143_v63, %v8744_v36 }
 0x24d   : > { %v5263_v0 = vcombine.low %v4215_v13, %v4222_v2  ;;  %v7651_v38 = vcombine.high %v4215_v13, %v4222_v2  ;;  %v5315_v48 = vcombine.low %v4267_v44, %v4274_v21  ;;  %v7652_v7 = vcombine.high %v4267_v44, %v4274_v21 }
 0x24e   : > { %4001 = vrot.lane.b32.xlu1 %v9978_v56, %s8279_s5  ;;  %v5331_v19 = vcombine.low %v4283_v27, %v4290_v30  ;;  %v10111_v55 = vrot.slane %v5247_v17, %v11103_v47  ;;  %v10114_v58 = vrot.slane %v7650_v57, %v11103_v47  ;;  %v7653_v15 = vcombine.high %v4283_v27, %v4290_v30 }
 0x24f   : > { %8014 = vmatpush3.bf16.xpose.msra.mxu1 %v6390_v37  ;;  %v10117_v10 = vrot.slane %v5263_v0, %v11103_v47  ;;  %v10120_v34 = vrot.slane %v7651_v38, %v11103_v47  ;;  %v10123_v37 = vrot.slane %v5315_v48, %v11103_v47  ;;  %v5330_v41 = vrot.slane %v7652_v7, %v11103_v47 }
 0x250   : > { %8034 = vmatpush3.bf16.xpose.msra.mxu0 %v6458_v14  ;;  %8015 = vmatprep.subr.bf16.mxu1 %v10981_v6  ;;  %v5338_v14 = vrot.slane %v5331_v19, %v11103_v47  ;;  %v5167_v11 = vrot.slane %v5159_v46, %v8744_v36  ;;  %v5219_v61 = vrot.slane %v5211_v59, %v8744_v36  ;;  %v6393_v63 = vsel %vm6231_vm2, %v9968_v5, 0 }
 0x251   : > { %8035 = vmatprep.subr.bf16.mxu0 %v10981_v6  ;;  %v5227_v28 = vcombine.low %v10072_v20, %v10075_v39  ;;  %v5279_v16 = vcombine.low %v10111_v55, %v10114_v58  ;;  %v5295_v50 = vcombine.low %v10117_v10, %v10120_v34  ;;  %v5347_v53 = vcombine.low %v10123_v37, %v5330_v41 }
 0x252   : > { %v5346_v51 = vrot.slane %v7653_v15, %v11103_v47  ;;  %v6461_v46 = vsel %vm6231_vm2, %v9970_v8, 0  ;;  %v5175_v59 = vcombine.low %v5151_v12, %v5167_v11  ;;  %v5176_v25 = vcombine.high %v5151_v12, %v5167_v11 }
 0x253   : > { %v5235_v33 = vrot.slane %v5227_v28, %v8744_v36  ;;  %v5287_v40 = vrot.slane %v5279_v16, %v8744_v36  ;;  %v5303_v23 = vrot.slane %v5295_v50, %v8744_v36  ;;  %v5355_v44 = vrot.slane %v5347_v53, %v8744_v36 }
 0x254   : > { %v5363_v22 = vcombine.low %v5338_v14, %v5346_v51  ;;  %v5212_v48 = vcombine.high %v10053_v54, %v10063_v45  ;;  %v5228_v7 = vcombine.high %v10072_v20, %v10075_v39  ;;  %v5280_v19 = vcombine.high %v10111_v55, %v10114_v58 }
 0x255   : > { %v5243_v13 = vcombine.low %v5219_v61, %v5235_v33  ;;  %v5244_v2 = vcombine.high %v5219_v61, %v5235_v33  ;;  %v5311_v8 = vcombine.low %v5287_v40, %v5303_v23  ;;  %v5312_v21 = vcombine.high %v5287_v40, %v5303_v23 }
 0x256   : > { %v5371_v5 = vrot.slane %v5363_v22, %v8744_v36  ;;  %v5296_v15 = vcombine.high %v10117_v10, %v10120_v34  ;;  %v5348_v12 = vcombine.high %v10123_v37, %v5330_v41  ;;  %v5364_v11 = vcombine.high %v5338_v14, %v5346_v51 }
 0x257   : > { %8016 = vmatpush3.bf16.xpose.msra.mxu1 %v6393_v63  ;;  %v6199_v27 = vpack.c.bf16 %v5243_v13, %v5175_v59  ;;  %v6207_v30 = vpack.c.bf16 %v5244_v2, %v5176_v25  ;;  %v5294_v54 = vrot.slane %v5280_v19, %v8744_v36 }
 0x258   : > { %8036 = vmatpush3.bf16.xpose.msra.mxu0 %v6461_v46  ;;  %8041 = vmatprep.subr.bf16.mxu1 %v10981_v6  ;;  %v5379_v17 = vcombine.low %v5355_v44, %v5371_v5  ;;  %v5380_v57 = vcombine.high %v5355_v44, %v5371_v5  ;;  %v5310_v45 = vrot.slane %v5296_v15, %v8744_v36 }
 0x259   : > { %8061 = vmatprep.subr.bf16.mxu0 %v10981_v6  ;;  %v5362_v20 = vrot.slane %v5348_v12, %v8744_v36  ;;  %v5378_v39 = vrot.slane %v5364_v11, %v8744_v36 }
 0x25a   : > { %v6200_v0 = vpack.c.bf16 %v5379_v17, %v5311_v8  ;;  %v6208_v38 = vpack.c.bf16 %v5380_v57, %v5312_v21  ;;  %v5313_v37 = vcombine.low %v5294_v54, %v5310_v45  ;;  %v5314_v14 = vcombine.high %v5294_v54, %v5310_v45 }
 0x25b   : > { %v5381_v41 = vcombine.low %v5362_v20, %v5378_v39  ;;  %v5382_v61 = vcombine.high %v5362_v20, %v5378_v39 }
 0x25d   : > { %v10186_v50 = vpack.c.bf16 %v5381_v41, %v5313_v37  ;;  %v10188_v53 = vpack.c.bf16 %v5382_v61, %v5314_v14 }
 0x25e   : > { %8018 = vmatmul.mubr.msk.bf16.vlgmr.msra.gmra.mrb[20].mxu1 %vm6231_vm2, %v9962_v31  ;;  %v5144_v31 = vcombine.high %v10040_v35, %v10043_v49 }
 0x25f   : > { %8038 = vmatmul.mubr.msk.bf16.vlgmr.msra.gmra.mrb[24].mxu0 %vm6231_vm2, %v9980_v62  ;;  %8042 = vmatpush3.bf16.msra.mxu1 %v6199_v27  ;;  %v5160_v62 = vcombine.high %v10047_v29, %v10050_v1  ;;  %v5226_v29 = vrot.slane %v5212_v48, %v8744_v36  ;;  %v5242_v1 = vrot.slane %v5228_v7, %v8744_v36 }
 0x260   : > { %8062 = vmatpush3.bf16.msra.mxu0 %v6207_v30  ;;  %8043 = vmatprep.subr.bf16.mxu1 %v10981_v6  ;;  %v5158_v35 = vrot.slane %v5144_v31, %v8744_v36  ;;  %11108 = vst [vmem:[#allocation16_spill] sm:$0xff] %v10186_v50  ;;  %11109 = vst [vmem:[#allocation15_spill] sm:$0xff] %v10188_v53 }
 0x261   : > { %8063 = vmatprep.subr.bf16.mxu0 %v10981_v6  ;;  %8057 = vmatprep.mubr.msk.bf16.mxu1 %vm8276_vm0, %v10981_v6  ;;  %v5174_v49 = vrot.slane %v5160_v62, %v8744_v36  ;;  %v5245_v58 = vcombine.low %v5226_v29, %v5242_v1  ;;  %v5246_v34 = vcombine.high %v5226_v29, %v5242_v1 }
 0x262   : > { %8077 = vmatprep.mubr.msk.bf16.mxu0 %vm8276_vm0, %v10981_v6 }
 0x263   : > { %8044 = vmatpush3.bf16.msra.mxu1 %v6200_v0  ;;  %v5177_v55 = vcombine.low %v5158_v35, %v5174_v49  ;;  %v5178_v10 = vcombine.high %v5158_v35, %v5174_v49 }
 0x264   : > { %8064 = vmatpush3.bf16.msra.mxu0 %v6208_v38  ;;  %8045 = vmatprep.subr.bf16.mxu1 %v10981_v6 }
 0x265   : > { %8065 = vmatprep.subr.bf16.mxu0 %v10981_v6  ;;  %v10182_v28 = vpack.c.bf16 %v5245_v58, %v5177_v55  ;;  %v10184_v16 = vpack.c.bf16 %v5246_v34, %v5178_v10 }
 0x267   : > { %11106 = vst [vmem:[#allocation14_spill] sm:$0xff] %v10182_v28  ;;  %11107 = vst [vmem:[#allocation13_spill] sm:$0xff] %v10184_v16 }
 0x27c   : > { %v3888_v51 = vpop.permute.xlu0 %3887  ;;  %v3890_v63 = vpop.permute.xlu1 %3889 }
 0x280   : > { %v3936_v46 = vpop.permute.xlu0 %3935  ;;  %v3938_v59 = vpop.permute.xlu1 %3937 }
 0x281   : > { %v4295_v33 = vcombine.low %v9674_v9, %v3936_v46  ;;  %v4296_v25 = vcombine.high %v9674_v9, %v3936_v46  ;;  %v4363_v40 = vcombine.low %v9678_v32, %v3938_v59  ;;  %v4364_v23 = vcombine.high %v9678_v32, %v3938_v59 }
 0x283   : > { %v4303_v22 = vrot.slane %v4295_v33, %v11103_v47  ;;  %v4310_v13 = vrot.slane %v4296_v25, %v11103_v47  ;;  %v4371_v30 = vrot.slane %v4363_v40, %v11103_v47  ;;  %v4378_v17 = vrot.slane %v4364_v23, %v11103_v47 }
 0x284   : > { %v3984_v2 = vpop.permute.xlu0 %3983  ;;  %v3986_v44 = vpop.permute.xlu1 %3985 }
 0x285   : > { %v4311_v5 = vcombine.low %v3888_v51, %v3984_v2  ;;  %v4312_v8 = vcombine.high %v3888_v51, %v3984_v2  ;;  %v4379_v21 = vcombine.low %v3890_v63, %v3986_v44  ;;  %v4380_v27 = vcombine.high %v3890_v63, %v3986_v44 }
 0x287   : > { %v4319_v9 = vrot.slane %v4311_v5, %v11103_v47  ;;  %v4326_v57 = vrot.slane %v4312_v8, %v11103_v47  ;;  %v4387_v32 = vrot.slane %v4379_v21, %v11103_v47  ;;  %v4394_v0 = vrot.slane %v4380_v27, %v11103_v47 }
 0x288   : > { %v3892_v38 = vpop.permute.xlu0 %3891 }
 0x289   : > { %v3894_v31 = vpop.permute.xlu1 %3893  ;;  %v4327_v62 = vcombine.low %v4303_v22, %v4319_v9  ;;  %v4328_v48 = vcombine.high %v4303_v22, %v4319_v9  ;;  %v4343_v7 = vcombine.low %v4310_v13, %v4326_v57  ;;  %v4344_v19 = vcombine.high %v4310_v13, %v4326_v57 }
 0x28a   : > { %v4395_v15 = vcombine.low %v4371_v30, %v4387_v32  ;;  %v4396_v12 = vcombine.high %v4371_v30, %v4387_v32  ;;  %v4411_v11 = vcombine.low %v4378_v17, %v4394_v0  ;;  %v4412_v35 = vcombine.high %v4378_v17, %v4394_v0 }
 0x28b   : > { %v4335_v49 = vrot.slane %v4327_v62, %v8744_v36  ;;  %v4342_v29 = vrot.slane %v4328_v48, %v8744_v36  ;;  %v4351_v1 = vrot.slane %v4343_v7, %v8744_v36  ;;  %v4358_v54 = vrot.slane %v4344_v19, %v8744_v36 }
 0x28c   : > { %v4403_v45 = vrot.slane %v4395_v15, %v8744_v36  ;;  %v4410_v20 = vrot.slane %v4396_v12, %v8744_v36  ;;  %v4419_v39 = vrot.slane %v4411_v11, %v8744_v36  ;;  %v4426_v55 = vrot.slane %v4412_v35, %v8744_v36  ;;  %v3940_v41 = vpop.permute.xlu0 %3939 }
 0x28d   : > { %v5383_v58 = vcombine.low %v4335_v49, %v4342_v29  ;;  %v7654_v10 = vcombine.high %v4335_v49, %v4342_v29  ;;  %v5399_v34 = vcombine.low %v4351_v1, %v4358_v54  ;;  %v7655_v37 = vcombine.high %v4351_v1, %v4358_v54  ;;  %v3942_v14 = vpop.permute.xlu1 %3941 }
 0x28e   : > { %v5451_v61 = vcombine.low %v4403_v45, %v4410_v20  ;;  %v7656_v51 = vcombine.high %v4403_v45, %v4410_v20  ;;  %v5467_v63 = vcombine.low %v4419_v39, %v4426_v55  ;;  %v7657_v46 = vcombine.high %v4419_v39, %v4426_v55 }
 0x28f   : > { %v10211_v59 = vrot.slane %v5383_v58, %v11103_v47  ;;  %v10214_v33 = vrot.slane %v7654_v10, %v11103_v47  ;;  %v10217_v25 = vrot.slane %v5399_v34, %v11103_v47  ;;  %v10220_v40 = vrot.slane %v7655_v37, %v11103_v47 }
 0x290   : > { %v10223_v23 = vrot.slane %v5451_v61, %v11103_v47  ;;  %v10226_v22 = vrot.slane %v7656_v51, %v11103_v47  ;;  %v10229_v13 = vrot.slane %v5467_v63, %v11103_v47  ;;  %v10232_v2 = vrot.slane %v7657_v46, %v11103_v47  ;;  %v3988_v0 = vpop.permute.xlu0 %3987 }
 0x291   : > { %v4431_v44 = vcombine.low %v9714_v18, %v3940_v41  ;;  %v4432_v5 = vcombine.high %v9714_v18, %v3940_v41  ;;  %v4499_v8 = vcombine.low %v9724_v60, %v3942_v14  ;;  %v4500_v21 = vcombine.high %v9724_v60, %v3942_v14 }
 0x292   : > { %v5415_v27 = vcombine.low %v10211_v59, %v10214_v33  ;;  %v5431_v30 = vcombine.low %v10217_v25, %v10220_v40  ;;  %v5483_v17 = vcombine.low %v10223_v23, %v10226_v22  ;;  %v5499_v9 = vcombine.low %v10229_v13, %v10232_v2 }
 0x293   : > { %v4439_v57 = vrot.slane %v4431_v44, %v11103_v47  ;;  %v4446_v18 = vrot.slane %v4432_v5, %v11103_v47  ;;  %v4507_v32 = vrot.slane %v4499_v8, %v11103_v47  ;;  %v4514_v60 = vrot.slane %v4500_v21, %v11103_v47  ;;  %v3990_v62 = vpop.permute.xlu1 %3989 }
 0x294   : > { %v4447_v48 = vcombine.low %v3892_v38, %v3988_v0  ;;  %v4448_v7 = vcombine.high %v3892_v38, %v3988_v0  ;;  %v4515_v19 = vcombine.low %v3894_v31, %v3990_v62  ;;  %v4516_v15 = vcombine.high %v3894_v31, %v3990_v62 }
 0x295   : > { %v10251_v12 = vrot.slane %v5415_v27, %v8744_v36  ;;  %v10254_v11 = vrot.slane %v5431_v30, %v8744_v36  ;;  %v10257_v35 = vrot.slane %v5483_v17, %v8744_v36  ;;  %v10260_v49 = vrot.slane %v5499_v9, %v8744_v36 }
 0x296   : > { %v4455_v29 = vrot.slane %v4447_v48, %v11103_v47  ;;  %v4462_v1 = vrot.slane %v4448_v7, %v11103_v47  ;;  %v4523_v38 = vrot.slane %v4515_v19, %v11103_v47  ;;  %v4530_v31 = vrot.slane %v4516_v15, %v11103_v47  ;;  %v3900_v54 = vpop.permute.xlu0 %3899 }
 0x297   : > { %v3902_v45 = vpop.permute.xlu1 %3901  ;;  %v5447_v20 = vcombine.low %v10251_v12, %v10254_v11  ;;  %v5515_v39 = vcombine.low %v10257_v35, %v10260_v49  ;;  %v5448_v55 = vcombine.high %v10251_v12, %v10254_v11  ;;  %v5516_v58 = vcombine.high %v10257_v35, %v10260_v49 }
 0x298   : > { %v4463_v10 = vcombine.low %v4439_v57, %v4455_v29  ;;  %v4464_v34 = vcombine.high %v4439_v57, %v4455_v29  ;;  %v4479_v37 = vcombine.low %v4446_v18, %v4462_v1  ;;  %v4480_v41 = vcombine.high %v4446_v18, %v4462_v1 }
 0x299   : > { %v4531_v14 = vcombine.low %v4507_v32, %v4523_v38  ;;  %v4532_v61 = vcombine.high %v4507_v32, %v4523_v38  ;;  %v4547_v51 = vcombine.low %v4514_v60, %v4530_v31  ;;  %v4548_v63 = vcombine.high %v4514_v60, %v4530_v31 }
 0x29a   : > { %v4471_v46 = vrot.slane %v4463_v10, %v8744_v36  ;;  %v4478_v44 = vrot.slane %v4464_v34, %v8744_v36  ;;  %v4487_v5 = vrot.slane %v4479_v37, %v8744_v36  ;;  %v4494_v8 = vrot.slane %v4480_v41, %v8744_v36 }
 0x29b   : > { %v4539_v21 = vrot.slane %v4531_v14, %v8744_v36  ;;  %v4546_v27 = vrot.slane %v4532_v61, %v8744_v36  ;;  %v4555_v30 = vrot.slane %v4547_v51, %v8744_v36  ;;  %v4562_v17 = vrot.slane %v4548_v63, %v8744_v36  ;;  %v3948_v9 = vpop.permute.xlu0 %3947 }
 0x29c   : > { %v3950_v57 = vpop.permute.xlu1 %3949  ;;  %v5519_v18 = vcombine.low %v4471_v46, %v4478_v44  ;;  %v7658_v32 = vcombine.high %v4471_v46, %v4478_v44  ;;  %v5535_v60 = vcombine.low %v4487_v5, %v4494_v8  ;;  %v7659_v0 = vcombine.high %v4487_v5, %v4494_v8 }
 0x29d   : > { %v5587_v62 = vcombine.low %v4539_v21, %v4546_v27  ;;  %v7660_v48 = vcombine.high %v4539_v21, %v4546_v27  ;;  %v5603_v7 = vcombine.low %v4555_v30, %v4562_v17  ;;  %v7661_v19 = vcombine.high %v4555_v30, %v4562_v17 }
 0x29e   : > { %v10283_v15 = vrot.slane %v5519_v18, %v11103_v47  ;;  %v10286_v12 = vrot.slane %v7658_v32, %v11103_v47  ;;  %v10289_v11 = vrot.slane %v5535_v60, %v11103_v47  ;;  %v10292_v35 = vrot.slane %v7659_v0, %v11103_v47 }
 0x29f   : > { %v10295_v49 = vrot.slane %v5587_v62, %v11103_v47  ;;  %v10298_v29 = vrot.slane %v7660_v48, %v11103_v47  ;;  %v10301_v1 = vrot.slane %v5603_v7, %v11103_v47  ;;  %v10304_v38 = vrot.slane %v7661_v19, %v11103_v47  ;;  %v3996_v31 = vpop.permute.xlu0 %3995 }
 0x2a0   : > { %v3998_v10 = vpop.permute.xlu1 %3997  ;;  %v4703_v34 = vcombine.low %v9776_v3, %v3948_v9  ;;  %v4704_v37 = vcombine.high %v9776_v3, %v3948_v9  ;;  %v4771_v41 = vcombine.low %v9821_v52, %v3950_v57  ;;  %v4772_v14 = vcombine.high %v9821_v52, %v3950_v57 }
 0x2a1   : > { %v4719_v61 = vcombine.low %v3900_v54, %v3996_v31  ;;  %v4720_v51 = vcombine.high %v3900_v54, %v3996_v31  ;;  %v4787_v63 = vcombine.low %v3902_v45, %v3998_v10  ;;  %v4788_v46 = vcombine.high %v3902_v45, %v3998_v10 }
 0x2a2   : > { %v4711_v44 = vrot.slane %v4703_v34, %v11103_v47  ;;  %v4718_v5 = vrot.slane %v4704_v37, %v11103_v47  ;;  %v4779_v8 = vrot.slane %v4771_v41, %v11103_v47  ;;  %v4786_v21 = vrot.slane %v4772_v14, %v11103_v47 }
 0x2a3   : > { %v4727_v27 = vrot.slane %v4719_v61, %v11103_v47  ;;  %v4734_v3 = vrot.slane %v4720_v51, %v11103_v47  ;;  %v4795_v30 = vrot.slane %v4787_v63, %v11103_v47  ;;  %v4802_v52 = vrot.slane %v4788_v46, %v11103_v47  ;;  %v3896_v17 = vpop.permute.xlu0 %3895 }
 0x2a4   : > { %v10318_v54 = vpop.permute.xlu1 %3897  ;;  %v6201_v45 = vpack.c.bf16 %v5515_v39, %v5447_v20  ;;  %v6209_v9 = vpack.c.bf16 %v5516_v58, %v5448_v55  ;;  %v5551_v57 = vcombine.low %v10283_v15, %v10286_v12  ;;  %v5567_v18 = vcombine.low %v10289_v11, %v10292_v35 }
 0x2a5   : > { %v4735_v32 = vcombine.low %v4711_v44, %v4727_v27  ;;  %v4736_v60 = vcombine.high %v4711_v44, %v4727_v27  ;;  %v4751_v0 = vcombine.low %v4718_v5, %v4734_v3  ;;  %v4752_v62 = vcombine.high %v4718_v5, %v4734_v3 }
 0x2a6   : > { %v4803_v48 = vcombine.low %v4779_v8, %v4795_v30  ;;  %v4804_v7 = vcombine.high %v4779_v8, %v4795_v30  ;;  %v4819_v19 = vcombine.low %v4786_v21, %v4802_v52  ;;  %v4820_v31 = vcombine.high %v4786_v21, %v4802_v52  ;;  %8046 = vmatpush3.bf16.msra.mxu1 %v6201_v45 }
 0x2a7   : > { %v4743_v10 = vrot.slane %v4735_v32, %v8744_v36  ;;  %v4750_v20 = vrot.slane %v4736_v60, %v8744_v36  ;;  %v4759_v39 = vrot.slane %v4751_v0, %v8744_v36  ;;  %v4766_v55 = vrot.slane %v4752_v62, %v8744_v36  ;;  %v3944_v58 = vpop.permute.xlu0 %3943  ;;  %8066 = vmatpush3.bf16.msra.mxu0 %v6209_v9 }
 0x2a8   : > { %v3946_v34 = vpop.permute.xlu1 %3945  ;;  %v4811_v37 = vrot.slane %v4803_v48, %v8744_v36  ;;  %v4818_v41 = vrot.slane %v4804_v7, %v8744_v36  ;;  %v4827_v14 = vrot.slane %v4819_v19, %v8744_v36  ;;  %v4834_v61 = vrot.slane %v4820_v31, %v8744_v36  ;;  %8047 = vmatprep.subr.bf16.mxu1 %v10981_v6 }
 0x2a9   : > { %v5791_v51 = vcombine.low %v4743_v10, %v4750_v20  ;;  %v7666_v63 = vcombine.high %v4743_v10, %v4750_v20  ;;  %v5807_v46 = vcombine.low %v4759_v39, %v4766_v55  ;;  %v7667_v44 = vcombine.high %v4759_v39, %v4766_v55  ;;  %8067 = vmatprep.subr.bf16.mxu0 %v10981_v6 }
 0x2aa   : > { %v5859_v5 = vcombine.low %v4811_v37, %v4818_v41  ;;  %v7668_v8 = vcombine.high %v4811_v37, %v4818_v41  ;;  %v5875_v21 = vcombine.low %v4827_v14, %v4834_v61  ;;  %v7669_v27 = vcombine.high %v4827_v14, %v4834_v61 }
 0x2ab   : > { %v10335_v3 = vrot.slane %v5791_v51, %v11103_v47  ;;  %v10338_v30 = vrot.slane %v7666_v63, %v11103_v47  ;;  %v10341_v52 = vrot.slane %v5807_v46, %v11103_v47  ;;  %v10344_v45 = vrot.slane %v7667_v44, %v11103_v47  ;;  %v3992_v9 = vpop.permute.xlu0 %3991 }
 0x2ac   : > { %v3994_v32 = vpop.permute.xlu1 %3993  ;;  %v10347_v60 = vrot.slane %v5859_v5, %v11103_v47  ;;  %v10350_v0 = vrot.slane %v7668_v8, %v11103_v47  ;;  %v10353_v62 = vrot.slane %v5875_v21, %v11103_v47  ;;  %v10356_v48 = vrot.slane %v7669_v27, %v11103_v47 }
 0x2ad   : > { %v4567_v7 = vcombine.low %v9800_v43, %v3944_v58  ;;  %v4568_v19 = vcombine.high %v9800_v43, %v3944_v58  ;;  %v4635_v31 = vcombine.low %v9866_v42, %v3946_v34  ;;  %v4636_v10 = vcombine.high %v9866_v42, %v3946_v34 }
 0x2ae   : > { %v4583_v20 = vcombine.low %v3896_v17, %v3992_v9  ;;  %v4584_v39 = vcombine.high %v3896_v17, %v3992_v9  ;;  %v5559_v55 = vrot.slane %v5551_v57, %v8744_v36  ;;  %v5575_v37 = vrot.slane %v5567_v18, %v8744_v36 }
 0x2af   : > { %v4575_v41 = vrot.slane %v4567_v7, %v11103_v47  ;;  %v4582_v14 = vrot.slane %v4568_v19, %v11103_v47  ;;  %v4643_v61 = vrot.slane %v4635_v31, %v11103_v47  ;;  %v4650_v51 = vrot.slane %v4636_v10, %v11103_v47 }
 0x2b0   : > { %v10368_v63 = vpop.permute.xlu1 %3903  ;;  %v4591_v43 = vrot.slane %v4583_v20, %v11103_v47  ;;  %v4598_v42 = vrot.slane %v4584_v39, %v11103_v47  ;;  %v5583_v58 = vcombine.low %v5559_v55, %v5575_v37  ;;  %v5619_v17 = vcombine.low %v10295_v49, %v10298_v29 }
 0x2b1   : > { %v5635_v57 = vcombine.low %v10301_v1, %v10304_v38  ;;  %v5584_v18 = vcombine.high %v5559_v55, %v5575_v37  ;;  %v4651_v34 = vcombine.low %v10318_v54, %v3994_v32  ;;  %v4652_v46 = vcombine.high %v10318_v54, %v3994_v32 }
 0x2b2   : > { %v4599_v44 = vcombine.low %v4575_v41, %v4591_v43  ;;  %v4600_v5 = vcombine.high %v4575_v41, %v4591_v43  ;;  %v4615_v8 = vcombine.low %v4582_v14, %v4598_v42  ;;  %v4616_v21 = vcombine.high %v4582_v14, %v4598_v42 }
 0x2b3   : > { %v5627_v27 = vrot.slane %v5619_v17, %v8744_v36  ;;  %v5643_v9 = vrot.slane %v5635_v57, %v8744_v36  ;;  %v4659_v7 = vrot.slane %v4651_v34, %v11103_v47  ;;  %v4666_v19 = vrot.slane %v4652_v46, %v11103_v47  ;;  %v10386_v57 = vpop.permute.xlu0 %3907 }
 0x2b4   : > { %v3952_v31 = vpop.permute.xlu1 %3951  ;;  %v4607_v10 = vrot.slane %v4599_v44, %v8744_v36  ;;  %v4614_v20 = vrot.slane %v4600_v5, %v8744_v36  ;;  %v4623_v39 = vrot.slane %v4615_v8, %v8744_v36  ;;  %v4630_v54 = vrot.slane %v4616_v21, %v8744_v36  ;;  %11110 = vst [vmem:[#allocation10_spill] sm:$0xff] %v10386_v57 }
 0x2b5   : > { %v5651_v32 = vcombine.low %v5627_v27, %v5643_v9  ;;  %v5652_v55 = vcombine.high %v5627_v27, %v5643_v9  ;;  %v4667_v37 = vcombine.low %v4643_v61, %v4659_v7  ;;  %v4668_v41 = vcombine.high %v4643_v61, %v4659_v7 }
 0x2b6   : > { %v5655_v14 = vcombine.low %v4607_v10, %v4614_v20  ;;  %v7662_v43 = vcombine.high %v4607_v10, %v4614_v20  ;;  %v5671_v42 = vcombine.low %v4623_v39, %v4630_v54  ;;  %v7663_v17 = vcombine.high %v4623_v39, %v4630_v54 }
 0x2b7   : > { %v6202_v34 = vpack.c.bf16 %v5651_v32, %v5583_v58  ;;  %v6210_v46 = vpack.c.bf16 %v5652_v55, %v5584_v18  ;;  %v4675_v44 = vrot.slane %v4667_v37, %v8744_v36  ;;  %v4682_v5 = vrot.slane %v4668_v41, %v8744_v36  ;;  %v4000_v37 = vpop.permute.xlu0 %3999 }
 0x2b8   : > { %v10390_v53 = vpop.permute.xlu1 %3909  ;;  %v10393_v8 = vrot.slane %v5655_v14, %v11103_v47  ;;  %v10396_v21 = vrot.slane %v7662_v43, %v11103_v47  ;;  %v10399_v61 = vrot.slane %v5671_v42, %v11103_v47  ;;  %v10402_v27 = vrot.slane %v7663_v17, %v11103_v47 }
 0x2b9   : > { %11111 = vst [vmem:[#allocation12_spill] sm:$0xff] %v10390_v53  ;;  %8048 = vmatpush3.bf16.msra.mxu1 %v6202_v34  ;;  %8068 = vmatpush3.bf16.msra.mxu0 %v6210_v46  ;;  %v4683_v58 = vcombine.low %v4650_v51, %v4666_v19  ;;  %v4684_v18 = vcombine.high %v4650_v51, %v4666_v19 }
 0x2ba   : > { %v5723_v9 = vcombine.low %v4675_v44, %v4682_v5  ;;  %v7664_v7 = vcombine.high %v4675_v44, %v4682_v5  ;;  %v4839_v10 = vcombine.low %v9949_v4, %v3952_v31  ;;  %v4840_v20 = vcombine.high %v9949_v4, %v3952_v31  ;;  %8049 = vmatprep.subr.bf16.mxu1 %v10981_v6 }
 0x2bb   : > { %8069 = vmatprep.subr.bf16.mxu0 %v10981_v6  ;;  %v4691_v39 = vrot.slane %v4683_v58, %v8744_v36  ;;  %v4698_v54 = vrot.slane %v4684_v18, %v8744_v36  ;;  %v5687_v51 = vcombine.low %v10393_v8, %v10396_v21  ;;  %v5703_v31 = vcombine.low %v10399_v61, %v10402_v27  ;;  %v3906_v28 = vpop.permute.xlu0 %3905 }
 0x2bc   : > { %v10411_v32 = vrot.slane %v5723_v9, %v11103_v47  ;;  %v10416_v19 = vrot.slane %v7664_v7, %v11103_v47  ;;  %v4847_v55 = vrot.slane %v4839_v10, %v11103_v47  ;;  %v4854_v4 = vrot.slane %v4840_v20, %v11103_v47  ;;  %v3954_v17 = vpop.permute.xlu1 %3953 }
 0x2bd   : > { %v5739_v41 = vcombine.low %v4691_v39, %v4698_v54  ;;  %v7665_v14 = vcombine.high %v4691_v39, %v4698_v54  ;;  %v5695_v43 = vrot.slane %v5687_v51, %v8744_v36  ;;  %v4855_v42 = vcombine.low %v10368_v63, %v4000_v37 }
 0x2be   : > { %v5711_v34 = vrot.slane %v5703_v31, %v8744_v36  ;;  %v5755_v46 = vcombine.low %v10411_v32, %v10416_v19  ;;  %v4856_v44 = vcombine.high %v10368_v63, %v4000_v37  ;;  %v4907_v5 = vcombine.low %v9978_v56, %v3954_v17 }
 0x2bf   : > { %v10430_v58 = vrot.slane %v5739_v41, %v11103_v47  ;;  %v10433_v18 = vrot.slane %v7665_v14, %v11103_v47  ;;  %v4863_v9 = vrot.slane %v4855_v42, %v11103_v47  ;;  %v4908_v7 = vcombine.high %v9978_v56, %v3954_v17 }
 0x2c0   : > { %v5719_v10 = vcombine.low %v5695_v43, %v5711_v34  ;;  %v5763_v20 = vrot.slane %v5755_v46, %v8744_v36  ;;  %v5720_v39 = vcombine.high %v5695_v43, %v5711_v34  ;;  %v4870_v54 = vrot.slane %v4856_v44, %v11103_v47  ;;  %v4002_v57 = vpop.permute.xlu1 %4001 }
 0x2c1   : > { %v5771_v63 = vcombine.low %v10430_v58, %v10433_v18  ;;  %v4871_v51 = vcombine.low %v4847_v55, %v4863_v9  ;;  %v4872_v31 = vcombine.high %v4847_v55, %v4863_v9  ;;  %v4915_v37 = vrot.slane %v4907_v5, %v11103_v47 }
 0x2c2   : > { %v4887_v41 = vcombine.low %v4854_v4, %v4870_v54  ;;  %v4888_v14 = vcombine.high %v4854_v4, %v4870_v54  ;;  %v4922_v50 = vrot.slane %v4908_v7, %v11103_v47  ;;  %v5823_v56 = vcombine.low %v10335_v3, %v10338_v30 }
 0x2c3   : > { %v5779_v42 = vrot.slane %v5771_v63, %v8744_v36  ;;  %v4879_v43 = vrot.slane %v4871_v51, %v8744_v36  ;;  %v4886_v17 = vrot.slane %v4872_v31, %v8744_v36  ;;  %v5839_v34 = vcombine.low %v10341_v52, %v10344_v45 }
 0x2c4   : > { %v4895_v55 = vrot.slane %v4887_v41, %v8744_v36  ;;  %v4902_v46 = vrot.slane %v4888_v14, %v8744_v36  ;;  %v5831_v4 = vrot.slane %v5823_v56, %v8744_v36  ;;  %v5891_v44 = vcombine.low %v10347_v60, %v10350_v0 }
 0x2c5   : > { %v5787_v5 = vcombine.low %v5763_v20, %v5779_v42  ;;  %v5788_v9 = vcombine.high %v5763_v20, %v5779_v42  ;;  %v5927_v7 = vcombine.low %v4879_v43, %v4886_v17  ;;  %v7670_v54 = vcombine.high %v4879_v43, %v4886_v17 }
 0x2c6   : > { %v5943_v63 = vcombine.low %v4895_v55, %v4902_v46  ;;  %v7671_v51 = vcombine.high %v4895_v55, %v4902_v46  ;;  %v5847_v31 = vrot.slane %v5839_v34, %v8744_v36  ;;  %v5899_v16 = vrot.slane %v5891_v44, %v8744_v36 }
 0x2c7   : > { %v6203_v41 = vpack.c.bf16 %v5787_v5, %v5719_v10  ;;  %v6211_v53 = vpack.c.bf16 %v5788_v9, %v5720_v39  ;;  %v10458_v14 = vrot.slane %v5927_v7, %v11103_v47  ;;  %v10461_v56 = vrot.slane %v7670_v54, %v11103_v47 }
 0x2c8   : > { %v10464_v20 = vrot.slane %v5943_v63, %v11103_v47  ;;  %v10467_v42 = vrot.slane %v7671_v51, %v11103_v47  ;;  %v5855_v43 = vcombine.low %v5831_v4, %v5847_v31  ;;  %v5907_v17 = vcombine.low %v10353_v62, %v10356_v48 }
 0x2c9   : > { %8050 = vmatpush3.bf16.msra.mxu1 %v6203_v41  ;;  %8070 = vmatpush3.bf16.msra.mxu0 %v6211_v53  ;;  %v5856_v10 = vcombine.high %v5831_v4, %v5847_v31  ;;  %v4923_v39 = vcombine.low %v3906_v28, %v4002_v57  ;;  %v4924_v34 = vcombine.high %v3906_v28, %v4002_v57 }
 0x2ca   : > { %8051 = vmatprep.subr.bf16.mxu1 %v10981_v6  ;;  %8071 = vmatprep.subr.bf16.mxu0 %v10981_v6  ;;  %v5915_v55 = vrot.slane %v5907_v17, %v8744_v36  ;;  %v5959_v46 = vcombine.low %v10458_v14, %v10461_v56  ;;  %v5975_v44 = vcombine.low %v10464_v20, %v10467_v42 }
 0x2cb   : > { %v4931_v5 = vrot.slane %v4923_v39, %v11103_v47  ;;  %v4938_v9 = vrot.slane %v4924_v34, %v11103_v47  ;;  %v5416_v53 = vcombine.high %v10211_v59, %v10214_v33  ;;  %v5432_v28 = vcombine.high %v10217_v25, %v10220_v40 }
 0x2cc   : > { %v5923_v57 = vcombine.low %v5899_v16, %v5915_v55  ;;  %v5924_v4 = vcombine.high %v5899_v16, %v5915_v55  ;;  %v10485_v7 = vrot.slane %v5959_v46, %v8744_v36  ;;  %v5983_v54 = vrot.slane %v5975_v44, %v8744_v36 }
 0x2cd   : > { %v4939_v63 = vcombine.low %v4915_v37, %v4931_v5  ;;  %v4940_v51 = vcombine.high %v4915_v37, %v4931_v5  ;;  %v4955_v31 = vcombine.low %v4922_v50, %v4938_v9  ;;  %v4956_v41 = vcombine.high %v4922_v50, %v4938_v9 }
 0x2ce   : > { %v6204_v17 = vpack.c.bf16 %v5923_v57, %v5855_v43  ;;  %v6212_v39 = vpack.c.bf16 %v5924_v4, %v5856_v10  ;;  %v5991_v34 = vcombine.low %v10485_v7, %v5983_v54  ;;  %v5992_v59 = vcombine.high %v10485_v7, %v5983_v54 }
 0x2cf   : > { %v4947_v33 = vrot.slane %v4939_v63, %v8744_v36  ;;  %v4954_v25 = vrot.slane %v4940_v51, %v8744_v36  ;;  %v4963_v16 = vrot.slane %v4955_v31, %v8744_v36  ;;  %v4970_v40 = vrot.slane %v4956_v41, %v8744_v36 }
 0x2d0   : > { %8052 = vmatpush3.bf16.msra.mxu1 %v6204_v17  ;;  %8072 = vmatpush3.bf16.msra.mxu0 %v6212_v39  ;;  %v5430_v37 = vrot.slane %v5416_v53, %v8744_v36  ;;  %v5446_v50 = vrot.slane %v5432_v28, %v8744_v36  ;;  %v5484_v43 = vcombine.high %v10223_v23, %v10226_v22 }
 0x2d1   : > { %v5995_v10 = vcombine.low %v4947_v33, %v4954_v25  ;;  %v7672_v55 = vcombine.high %v4947_v33, %v4954_v25  ;;  %v6011_v46 = vcombine.low %v4963_v16, %v4970_v40  ;;  %v7673_v44 = vcombine.high %v4963_v16, %v4970_v40  ;;  %8053 = vmatprep.subr.bf16.mxu1 %v10981_v6 }
 0x2d2   : > { %8073 = vmatprep.subr.bf16.mxu0 %v10981_v6  ;;  %v5449_v5 = vcombine.low %v5430_v37, %v5446_v50  ;;  %v5498_v9 = vrot.slane %v5484_v43, %v8744_v36  ;;  %v5500_v57 = vcombine.high %v10229_v13, %v10232_v2  ;;  %v5450_v53 = vcombine.high %v5430_v37, %v5446_v50 }
 0x2d3   : > { %v10504_v28 = vrot.slane %v5995_v10, %v11103_v47  ;;  %v10507_v23 = vrot.slane %v7672_v55, %v11103_v47  ;;  %v10510_v22 = vrot.slane %v6011_v46, %v11103_v47  ;;  %v10513_v4 = vrot.slane %v7673_v44, %v11103_v47 }
 0x2d4   : > { %v5514_v7 = vrot.slane %v5500_v57, %v8744_v36  ;;  %v5552_v54 = vcombine.high %v10283_v15, %v10286_v12  ;;  %v5568_v13 = vcombine.high %v10289_v11, %v10292_v35  ;;  %v5620_v2 = vcombine.high %v10295_v49, %v10298_v29 }
 0x2d5   : > { %v6027_v63 = vcombine.low %v10504_v28, %v10507_v23  ;;  %v6043_v51 = vcombine.low %v10510_v22, %v10513_v4  ;;  %v5636_v31 = vcombine.high %v10301_v1, %v10304_v38  ;;  %v5688_v41 = vcombine.high %v10393_v8, %v10396_v21 }
 0x2d6   : > { %v5517_v17 = vcombine.low %v5498_v9, %v5514_v7  ;;  %v5518_v15 = vcombine.high %v5498_v9, %v5514_v7  ;;  %v5566_v12 = vrot.slane %v5552_v54, %v8744_v36  ;;  %v5582_v11 = vrot.slane %v5568_v13, %v8744_v36 }
 0x2d7   : > { %v6035_v35 = vrot.slane %v6027_v63, %v8744_v36  ;;  %v6051_v49 = vrot.slane %v6043_v51, %v8744_v36  ;;  %v5634_v29 = vrot.slane %v5620_v2, %v8744_v36  ;;  %v5650_v39 = vrot.slane %v5636_v31, %v8744_v36 }
 0x2d8   : > { %v10536_v33 = vpack.c.bf16 %v5517_v17, %v5449_v5  ;;  %v10538_v1 = vpack.c.bf16 %v5518_v15, %v5450_v53  ;;  %v5585_v38 = vcombine.low %v5566_v12, %v5582_v11  ;;  %v5586_v8 = vcombine.high %v5566_v12, %v5582_v11 }
 0x2d9   : > { %v6059_v21 = vcombine.low %v6035_v35, %v6051_v49  ;;  %v6060_v25 = vcombine.high %v6035_v35, %v6051_v49  ;;  %v5653_v16 = vcombine.low %v5634_v29, %v5650_v39  ;;  %v5654_v40 = vcombine.high %v5634_v29, %v5650_v39  ;;  %v7778_v29 = vld [vmem:[%s731_s30 + $0x8] sm:$0xff]  }
 0x2da   : > { %v5702_v37 = vrot.slane %v5688_v41, %v8744_v36  ;;  %v5704_v50 = vcombine.high %v10399_v61, %v10402_v27  ;;  %v5756_v43 = vcombine.high %v10411_v32, %v10416_v19  ;;  %v5772_v10 = vcombine.high %v10430_v58, %v10433_v18 }
 0x2db   : > { %v6205_v55 = vpack.c.bf16 %v6059_v21, %v5991_v34  ;;  %v6213_v46 = vpack.c.bf16 %v6060_v25, %v5992_v59  ;;  %v10547_v44 = vpack.c.bf16 %v5653_v16, %v5585_v38  ;;  %v10549_v5 = vpack.c.bf16 %v5654_v40, %v5586_v8 }
 0x2dc   : > { %v5718_v9 = vrot.slane %v5704_v50, %v8744_v36  ;;  %v5770_v57 = vrot.slane %v5756_v43, %v8744_v36  ;;  %v5786_v53 = vrot.slane %v5772_v10, %v8744_v36  ;;  %v5824_v61 = vcombine.high %v10335_v3, %v10338_v30 }
 0x2dd   : > { %8054 = vmatpush3.bf16.msra.mxu1 %v6205_v55  ;;  %8074 = vmatpush3.bf16.msra.mxu0 %v6213_v46  ;;  %v5840_v27 = vcombine.high %v10341_v52, %v10344_v45  ;;  %v5892_v32 = vcombine.high %v10347_v60, %v10350_v0  ;;  %v5908_v19 = vcombine.high %v10353_v62, %v10356_v48  ;;  %v7761_v55 = vunpack.c.l.bf16 %v7778_v29 }
 0x2de   : > { %8055 = vmatprep.subr.bf16.mxu1 %v10981_v6  ;;  %8075 = vmatprep.subr.bf16.mxu0 %v10981_v6  ;;  %v5721_v58 = vcombine.low %v5702_v37, %v5718_v9  ;;  %v5789_v18 = vcombine.low %v5770_v57, %v5786_v53  ;;  %v5722_v34 = vcombine.high %v5702_v37, %v5718_v9 }
 0x2df   : > { %v5790_v59 = vcombine.high %v5770_v57, %v5786_v53  ;;  %v5838_v3 = vrot.slane %v5824_v61, %v8744_v36  ;;  %v5854_v30 = vrot.slane %v5840_v27, %v8744_v36  ;;  %v5906_v52 = vrot.slane %v5892_v32, %v8744_v36  ;;  %v7779_v27 = vld [vmem:[%s731_s30 + $0x10] sm:$0xff]   ;;  %v7780_v32 = vld [vmem:[%s731_s30 + $0x18] sm:$0xff]  }
 0x2e0   : > { %v10567_v45 = vpack.c.bf16 %v5789_v18, %v5721_v58  ;;  %v5922_v60 = vrot.slane %v5908_v19, %v8744_v36  ;;  %v5960_v0 = vcombine.high %v10458_v14, %v10461_v56  ;;  %v5976_v62 = vcombine.high %v10464_v20, %v10467_v42 }
 0x2e1   : > { %v10574_v48 = vpack.c.bf16 %v5790_v59, %v5722_v34  ;;  %v5857_v7 = vcombine.low %v5838_v3, %v5854_v30  ;;  %v5858_v54 = vcombine.high %v5838_v3, %v5854_v30  ;;  %v6028_v13 = vcombine.high %v10504_v28, %v10507_v23 }
 0x2e2   : > { %v5925_v2 = vcombine.low %v5906_v52, %v5922_v60  ;;  %v5926_v63 = vcombine.high %v5906_v52, %v5922_v60  ;;  %v5974_v51 = vrot.slane %v5960_v0, %v8744_v36  ;;  %v5990_v31 = vrot.slane %v5976_v62, %v8744_v36 }
 0x2e3   : > { %v6042_v41 = vrot.slane %v6028_v13, %v8744_v36  ;;  %v6044_v14 = vcombine.high %v10510_v22, %v10513_v4  ;;  %v7756_v22 = vld [vmem:[%s731_s30] sm:$0xff]   ;;  %v7762_v57 = vunpack.c.h.bf16 %v7778_v29  ;;  %v7765_v19 = vunpack.c.l.bf16 %v7779_v27  ;;  %s11121_s30 = sld [smem:[#allocation63_spill]] }
 0x2e4   : > { %v10583_v56 = vpack.c.bf16 %v5925_v2, %v5857_v7  ;;  %v10585_v20 = vpack.c.bf16 %v5926_v63, %v5858_v54  ;;  %v5993_v42 = vcombine.low %v5974_v51, %v5990_v31  ;;  %v5994_v17 = vcombine.high %v5974_v51, %v5990_v31 }
 0x2e5   : > { %v6058_v15 = vrot.slane %v6044_v14, %v8744_v36  ;;  %v7757_v4 = vunpack.c.l.bf16 %v7756_v22  ;;  %v7758_v21 = vunpack.c.h.bf16 %v7756_v22  ;;  %v7769_v58 = vunpack.c.l.bf16 %v7780_v32 }
 0x2e6   : > { %v7766_v60 = vunpack.c.h.bf16 %v7779_v27  ;;  %v7770_v0 = vunpack.c.h.bf16 %v7780_v32 }
 0x2e7   : > { %v6061_v28 = vcombine.low %v6042_v41, %v6058_v15  ;;  %v6062_v23 = vcombine.high %v6042_v41, %v6058_v15 }
 0x2e9   : > { %v10589_v12 = vpack.c.bf16 %v6061_v28, %v5993_v42  ;;  %v10591_v11 = vpack.c.bf16 %v6062_v23, %v5994_v17 }
 0x2f1   : > { %v6293_v35 = vpop.f32.mrb[16].mxu1 }
 0x2f2   : > { %v6361_v49 = vpop.f32.mrb[20].mxu0  ;;  %v6504_v39 = vmul.f32 0.25, %v6293_v35  ;;  %v7979_v38 = vpop.f32.mrb[17].mxu1 }
 0x2f3   : > { %v7999_v8 = vpop.f32.mrb[21].mxu0  ;;  %v6296_v25 = vpop.f32.mrb[18].mxu1  ;;  %v6506_v40 = vmul.f32 0.25, %v6361_v49 }
 0x2f4   : > { %v6364_v16 = vpop.f32.mrb[22].mxu0  ;;  %v6505_v37 = vmul.f32 0.25, %v6296_v25  ;;  %v7980_v50 = vpop.f32.mrb[19].mxu1  ;;  %v6528_v10 = vadd.f32 %v7757_v4, %v6504_v39 }
 0x2f5   : > { %v8000_v43 = vpop.f32.mrb[23].mxu0  ;;  %v6507_v9 = vmul.f32 0.25, %v6364_v16  ;;  %v6530_v53 = vadd.f32 %v7761_v55, %v6506_v40 }
 0x2f6   : > { %v6529_v46 = vadd.f32 %v7758_v21, %v6505_v37  ;;  %6536 = vmax.xlane.f32.xlu0 %v6528_v10 }
 0x2f7   : > { %v6531_v61 = vadd.f32 %v7762_v57, %v6507_v9 }
 0x2f8   : > { %6538 = vmax.xlane.f32.xlu1 %v6529_v46 }
 0x2fa   : > { %6540 = vmax.xlane.f32.xlu0 %v6530_v53 }
 0x2fe   : > { %6542 = vmax.xlane.f32.xlu0 %v6531_v61 }
 0x331   : > { %v6429_v18 = vpop.f32.mrb[20].mxu1 }
 0x332   : > { %v6497_v34 = vpop.f32.mrb[24].mxu0  ;;  %v6508_v59 = vmul.f32 0.25, %v6429_v18  ;;  %v8019_v30 = vpop.f32.mrb[21].mxu1 }
 0x333   : > { %v6510_v3 = vmul.f32 0.25, %v6497_v34  ;;  %v8039_v52 = vpop.f32.mrb[25].mxu0  ;;  %v6432_v62 = vpop.f32.mrb[22].mxu1 }
 0x334   : > { %v6500_v7 = vpop.f32.mrb[26].mxu0  ;;  %v6532_v54 = vadd.f32 %v7765_v19, %v6508_v59  ;;  %v6509_v2 = vmul.f32 0.25, %v6432_v62  ;;  %v8020_v51 = vpop.f32.mrb[23].mxu1 }
 0x335   : > { %v6534_v13 = vadd.f32 %v7769_v58, %v6510_v3  ;;  %v6511_v63 = vmul.f32 0.25, %v6500_v7  ;;  %v8040_v31 = vpop.f32.mrb[27].mxu0  ;;  %v11113_v7 = vld [vmem:[#allocation12_spill] sm:$0xff] }
 0x336   : > { %v6533_v41 = vadd.f32 %v7766_v60, %v6509_v2  ;;  %6544 = vmax.xlane.f32.xlu1 %v6532_v54 }
 0x337   : > { %v6535_v14 = vadd.f32 %v7770_v0, %v6511_v63 }
 0x338   : > { %6546 = vmax.xlane.f32.xlu0 %v6533_v41 }
 0x33a   : > { %6548 = vmax.xlane.f32.xlu1 %v6534_v13 }
 0x33c   : > { %6550 = vmax.xlane.f32.xlu0 %v6535_v14 }
 0x34b   : > { %3957 = vrot.lane.b32.xlu1 %v9953_v26, %s8278_s2 }
 0x352   : > { %3955 = vrot.lane.b32.xlu0 %v9930_v24, %s8278_s2  ;;  %s736_s2 = scalar_lea.vmem %s11121_s30, %s7713_s21 }
 0x383   : > { %v6537_v42 = vpop.xlane.xlu0 %6536 }
 0x384   : > { %v6552_v17 = vsub.f32 %v6528_v10, %v6537_v42 }
 0x385   : > { %v6539_v15 = vpop.xlane.xlu1 %6538 }
 0x386   : > { %v6560_v28 = vmul.f32 1.442695, %v6552_v17  ;;  %v6553_v23 = vsub.f32 %v6529_v46, %v6539_v15 }
 0x387   : > { %v6541_v22 = vpop.xlane.xlu0 %6540 }
 0x388   : > { %8226 = vpow2.f32 %v6560_v28  ;;  %v6562_v4 = vmul.f32 1.442695, %v6553_v23  ;;  %v6554_v35 = vsub.f32 %v6530_v53, %v6541_v22 }
 0x38a   : > { %8228 = vpow2.f32 %v6562_v4  ;;  %v6564_v49 = vmul.f32 1.442695, %v6554_v35 }
 0x38b   : > { %v6543_v29 = vpop.xlane.xlu0 %6542 }
 0x38c   : > { %8230 = vpow2.f32 %v6564_v49  ;;  %v6555_v39 = vsub.f32 %v6531_v61, %v6543_v29 }
 0x38e   : > { %v6566_v38 = vmul.f32 1.442695, %v6555_v39  ;;  %v11114_v39 = vld [vmem:[#allocation10_spill] sm:$0xff] }
 0x390   : > { %8232 = vpow2.f32 %v6566_v38 }
 0x392   : > { %v10600_v8 = vpop.eup %8226 }
 0x393   : > { %6576 = vadd.xlane.f32.xlu0 %v10600_v8 }
 0x394   : > { %v10603_v21 = vpop.eup %8228 }
 0x395   : > { %6578 = vadd.xlane.f32.xlu1 %v10603_v21 }
 0x396   : > { %v10606_v25 = vpop.eup %8230 }
 0x397   : > { %6580 = vadd.xlane.f32.xlu0 %v10606_v25 }
 0x39a   : > { %v10609_v16 = vpop.eup %8232 }
 0x39b   : > { %6582 = vadd.xlane.f32.xlu0 %v10609_v16 }
 0x3a6   : > { %4005 = vrot.lane.b32.xlu1 %v9953_v26, %s8279_s5 }
 0x3b1   : > { %4003 = vrot.lane.b32.xlu0 %v9930_v24, %s8279_s5 }
 0x3c3   : > { %v6545_v40 = vpop.xlane.xlu1 %6544 }
 0x3c4   : > { %v6556_v37 = vsub.f32 %v6532_v54, %v6545_v40 }
 0x3c5   : > { %v6547_v50 = vpop.xlane.xlu0 %6546 }
 0x3c6   : > { %v6568_v43 = vmul.f32 1.442695, %v6556_v37  ;;  %v6557_v10 = vsub.f32 %v6533_v41, %v6547_v50 }
 0x3c7   : > { %v6549_v55 = vpop.xlane.xlu1 %6548 }
 0x3c8   : > { %8234 = vpow2.f32 %v6568_v43  ;;  %v6570_v46 = vmul.f32 1.442695, %v6557_v10  ;;  %v6558_v9 = vsub.f32 %v6534_v13, %v6549_v55 }
 0x3c9   : > { %v6551_v57 = vpop.xlane.xlu0 %6550 }
 0x3ca   : > { %8236 = vpow2.f32 %v6570_v46  ;;  %v6572_v53 = vmul.f32 1.442695, %v6558_v9  ;;  %v6559_v61 = vsub.f32 %v6535_v14, %v6551_v57 }
 0x3cb   : > { %v3958_v59 = vpop.permute.xlu1 %3957 }
 0x3cc   : > { %8238 = vpow2.f32 %v6572_v53  ;;  %v6574_v27 = vmul.f32 1.442695, %v6559_v61  ;;  %v5043_v60 = vcombine.low %v9953_v26, %v3958_v59  ;;  %v5044_v0 = vcombine.high %v9953_v26, %v3958_v59 }
 0x3cd   : > { %v3956_v34 = vpop.permute.xlu0 %3955 }
 0x3ce   : > { %8240 = vpow2.f32 %v6574_v27  ;;  %v5051_v63 = vrot.slane %v5043_v60, %v11103_v47  ;;  %v5058_v51 = vrot.slane %v5044_v0, %v11103_v47  ;;  %v4975_v14 = vcombine.low %v9930_v24, %v3956_v34 }
 0x3cf   : > { %v4976_v28 = vcombine.high %v9930_v24, %v3956_v34 }
 0x3d0   : > { %v4983_v29 = vrot.slane %v4975_v14, %v11103_v47 }
 0x3d1   : > { %v4990_v10 = vrot.slane %v4976_v28, %v11103_v47 }
 0x3d2   : > { %v10616_v32 = vpop.eup %8234 }
 0x3d3   : > { %6584 = vadd.xlane.f32.xlu0 %v10616_v32 }
 0x3d4   : > { %v10619_v19 = vpop.eup %8236 }
 0x3d5   : > { %6586 = vadd.xlane.f32.xlu1 %v10619_v19 }
 0x3d6   : > { %v10622_v58 = vpop.eup %8238 }
 0x3d7   : > { %6588 = vadd.xlane.f32.xlu0 %v10622_v58 }
 0x3d8   : > { %v10625_v18 = vpop.eup %8240 }
 0x3db   : > { %6590 = vadd.xlane.f32.xlu0 %v10625_v18 }
 0x420   : > { %v6577_v3 = vpop.xlane.xlu0 %6576 }
 0x421   : > { %8242 = vrcp.f32 %v6577_v3 }
 0x422   : > { %v6579_v30 = vpop.xlane.xlu1 %6578 }
 0x423   : > { %8244 = vrcp.f32 %v6579_v30 }
 0x424   : > { %v6581_v52 = vpop.xlane.xlu0 %6580 }
 0x426   : > { %v4006_v62 = vpop.permute.xlu1 %4005 }
 0x427   : > { %v5059_v54 = vcombine.low %v11113_v7, %v4006_v62  ;;  %v5060_v13 = vcombine.high %v11113_v7, %v4006_v62 }
 0x428   : > { %v6583_v2 = vpop.xlane.xlu0 %6582 }
 0x429   : > { %v5067_v31 = vrot.slane %v5059_v54, %v11103_v47  ;;  %v5074_v41 = vrot.slane %v5060_v13, %v11103_v47  ;;  %8246 = vrcp.f32 %v6583_v2 }
 0x42a   : > { %8248 = vrcp.f32 %v6581_v52 }
 0x42b   : > { %v5075_v42 = vcombine.low %v5051_v63, %v5067_v31  ;;  %v5076_v17 = vcombine.high %v5051_v63, %v5067_v31  ;;  %v5091_v15 = vcombine.low %v5058_v51, %v5074_v41  ;;  %v5092_v26 = vcombine.high %v5058_v51, %v5074_v41  ;;  %v8243_v13 = vpop.eup %8242 }
 0x42c   : > { %v4004_v23 = vpop.permute.xlu0 %4003 }
 0x42d   : > { %v5083_v22 = vrot.slane %v5075_v42, %v8744_v36  ;;  %v5090_v4 = vrot.slane %v5076_v17, %v8744_v36  ;;  %v5099_v35 = vrot.slane %v5091_v15, %v8744_v36  ;;  %v5106_v49 = vrot.slane %v5092_v26, %v8744_v36  ;;  %v8245_v52 = vpop.eup %8244 }
 0x42e   : > { %v4991_v38 = vcombine.low %v11114_v39, %v4004_v23  ;;  %v4992_v40 = vcombine.high %v11114_v39, %v4004_v23 }
 0x42f   : > { %v6131_v37 = vcombine.low %v5083_v22, %v5090_v4  ;;  %v7676_v50 = vcombine.high %v5083_v22, %v5090_v4  ;;  %v6147_v24 = vcombine.low %v5099_v35, %v5106_v49  ;;  %v7677_v43 = vcombine.high %v5099_v35, %v5106_v49 }
 0x430   : > { %v4999_v55 = vrot.slane %v4991_v38, %v11103_v47  ;;  %v5006_v46 = vrot.slane %v4992_v40, %v11103_v47 }
 0x431   : > { %v10649_v9 = vrot.slane %v6131_v37, %v11103_v47  ;;  %v10652_v57 = vrot.slane %v7676_v50, %v11103_v47  ;;  %v10655_v53 = vrot.slane %v6147_v24, %v11103_v47  ;;  %v10658_v61 = vrot.slane %v7677_v43, %v11103_v47 }
 0x432   : > { %v5007_v27 = vcombine.low %v4983_v29, %v4999_v55  ;;  %v5008_v34 = vcombine.high %v4983_v29, %v4999_v55  ;;  %v5023_v59 = vcombine.low %v4990_v10, %v5006_v46  ;;  %v5024_v3 = vcombine.high %v4990_v10, %v5006_v46 }
 0x433   : > { %v6163_v7 = vcombine.low %v10649_v9, %v10652_v57  ;;  %v6179_v54 = vcombine.low %v10655_v53, %v10658_v61  ;;  %v8247_v15 = vpop.eup %8246  ;;  %v6601_v37 = vmul.f32 %v8245_v52, %v10603_v21  ;;  %v6600_v10 = vmul.f32 %v8243_v13, %v10600_v8  ;;  %v11116_v21 = vld [vmem:[#allocation13_spill] sm:$0xff]  ;;  %v11117_v8 = vld [vmem:[#allocation16_spill] sm:$0xff] }
 0x434   : > { %v5015_v30 = vrot.slane %v5007_v27, %v8744_v36  ;;  %v5022_v60 = vrot.slane %v5008_v34, %v8744_v36  ;;  %v5031_v0 = vrot.slane %v5023_v59, %v8744_v36  ;;  %v5038_v62 = vrot.slane %v5024_v3, %v8744_v36  ;;  %v8249_v49 = vpop.eup %8248  ;;  %v11115_v34 = vld [vmem:[#allocation14_spill] sm:$0xff] }
 0x435   : > { %v6171_v23 = vrot.slane %v6163_v7, %v8744_v36  ;;  %v6187_v22 = vrot.slane %v6179_v54, %v8744_v36  ;;  %v6603_v50 = vmul.f32 %v8247_v15, %v10609_v16  ;;  %v6602_v55 = vmul.f32 %v8249_v49, %v10606_v25  ;;  %v11118_v25 = vld [vmem:[#allocation15_spill] sm:$0xff] }
 0x436   : > { %v6063_v2 = vcombine.low %v5015_v30, %v5022_v60  ;;  %v7674_v63 = vcombine.high %v5015_v30, %v5022_v60  ;;  %v6079_v51 = vcombine.low %v5031_v0, %v5038_v62  ;;  %v7675_v31 = vcombine.high %v5031_v0, %v5038_v62 }
 0x437   : > { %v6195_v39 = vcombine.low %v6171_v23, %v6187_v22  ;;  %v6196_v40 = vcombine.high %v6171_v23, %v6187_v22  ;;  %v6608_v46 = vpack.c.bf16 %v6601_v37, %v6600_v10  ;;  %v6609_v27 = vpack.c.bf16 %v6603_v50, %v6602_v55 }
 0x438   : > { %v6070_v41 = vrot.slane %v6063_v2, %v11103_v47  ;;  %v6078_v14 = vrot.slane %v7674_v63, %v11103_v47  ;;  %v6086_v42 = vrot.slane %v6079_v51, %v11103_v47  ;;  %v6094_v17 = vrot.slane %v7675_v31, %v11103_v47 }
 0x43a   : > { %v6095_v26 = vcombine.low %v6070_v41, %v6078_v14  ;;  %v6111_v28 = vcombine.low %v6086_v42, %v6094_v17  ;;  %v6096_v16 = vcombine.high %v6070_v41, %v6078_v14  ;;  %v6112_v59 = vcombine.high %v6086_v42, %v6094_v17 }
 0x43c   : > { %v6103_v4 = vrot.slane %v6095_v26, %v8744_v36  ;;  %v6119_v35 = vrot.slane %v6111_v28, %v8744_v36 }
 0x43e   : > { %v6127_v29 = vcombine.low %v6103_v4, %v6119_v35  ;;  %v6128_v38 = vcombine.high %v6103_v4, %v6119_v35 }
 0x440   : > { %v6206_v24 = vpack.c.bf16 %v6195_v39, %v6127_v29  ;;  %v6214_v43 = vpack.c.bf16 %v6196_v40, %v6128_v38 }
 0x442   : > { %8056 = vmatpush3.bf16.msra.mxu1 %v6206_v24  ;;  %8076 = vmatpush3.bf16.msra.mxu0 %v6214_v43 }
 0x443   : > { %8081 = vmatprep.subr.bf16.mxu1 %v10981_v6  ;;  %8101 = vmatprep.subr.bf16.mxu0 %v10981_v6 }
 0x445   : > { %8058 = vmatmul.mubr.bf16.vlgmr.msra.gmra.mrb[24].mxu1 %v6608_v46  ;;  %8078 = vmatmul.mubr.bf16.vlgmr.msra.gmra.mrb[28].mxu0 %v6609_v27 }
 0x446   : > { %8082 = vmatpush3.bf16.msra.mxu1 %v11115_v34  ;;  %8102 = vmatpush3.bf16.msra.mxu0 %v11116_v21 }
 0x447   : > { %8083 = vmatprep.subr.bf16.mxu1 %v10981_v6  ;;  %8103 = vmatprep.subr.bf16.mxu0 %v10981_v6 }
 0x448   : > { %8097 = vmatprep.mubr.msk.bf16.mxu1 %vm8276_vm0, %v10981_v6  ;;  %8117 = vmatprep.mubr.msk.bf16.mxu0 %vm8276_vm0, %v10981_v6 }
 0x44a   : > { %8084 = vmatpush3.bf16.msra.mxu1 %v11117_v8  ;;  %8104 = vmatpush3.bf16.msra.mxu0 %v11118_v25 }
 0x44b   : > { %8085 = vmatprep.subr.bf16.mxu1 %v10981_v6  ;;  %8105 = vmatprep.subr.bf16.mxu0 %v10981_v6 }
 0x44e   : > { %8086 = vmatpush3.bf16.msra.mxu1 %v10536_v33  ;;  %8106 = vmatpush3.bf16.msra.mxu0 %v10538_v1  ;;  %v6164_v33 = vcombine.high %v10649_v9, %v10652_v57  ;;  %v6180_v1 = vcombine.high %v10655_v53, %v10658_v61 }
 0x44f   : > { %8087 = vmatprep.subr.bf16.mxu1 %v10981_v6  ;;  %8107 = vmatprep.subr.bf16.mxu0 %v10981_v6 }
 0x452   : > { %8088 = vmatpush3.bf16.msra.mxu1 %v10547_v44  ;;  %8108 = vmatpush3.bf16.msra.mxu0 %v10549_v5  ;;  %v6110_v44 = vrot.slane %v6096_v16, %v8744_v36  ;;  %v6126_v5 = vrot.slane %v6112_v59, %v8744_v36 }
 0x453   : > { %8089 = vmatprep.subr.bf16.mxu1 %v10981_v6  ;;  %8109 = vmatprep.subr.bf16.mxu0 %v10981_v6 }
 0x454   : > { %v6129_v9 = vcombine.low %v6110_v44, %v6126_v5  ;;  %v6130_v57 = vcombine.high %v6110_v44, %v6126_v5 }
 0x456   : > { %8090 = vmatpush3.bf16.msra.mxu1 %v10567_v45  ;;  %8110 = vmatpush3.bf16.msra.mxu0 %v10574_v48  ;;  %v6178_v45 = vrot.slane %v6164_v33, %v8744_v36  ;;  %v6194_v48 = vrot.slane %v6180_v1, %v8744_v36 }
 0x457   : > { %8091 = vmatprep.subr.bf16.mxu1 %v10981_v6  ;;  %8111 = vmatprep.subr.bf16.mxu0 %v10981_v6 }
 0x458   : > { %v6197_v53 = vcombine.low %v6178_v45, %v6194_v48  ;;  %v6198_v61 = vcombine.high %v6178_v45, %v6194_v48 }
 0x45a   : > { %8092 = vmatpush3.bf16.msra.mxu1 %v10583_v56  ;;  %8112 = vmatpush3.bf16.msra.mxu0 %v10585_v20  ;;  %v6222_v20 = vpack.c.bf16 %v6197_v53, %v6129_v9  ;;  %v6230_v3 = vpack.c.bf16 %v6198_v61, %v6130_v57 }
 0x45b   : > { %8093 = vmatprep.subr.bf16.mxu1 %v10981_v6  ;;  %8113 = vmatprep.subr.bf16.mxu0 %v10981_v6 }
 0x45e   : > { %8094 = vmatpush3.bf16.msra.mxu1 %v10589_v12  ;;  %8114 = vmatpush3.bf16.msra.mxu0 %v10591_v11 }
 0x45f   : > { %8095 = vmatprep.subr.bf16.mxu1 %v10981_v6  ;;  %8115 = vmatprep.subr.bf16.mxu0 %v10981_v6 }
 0x460   : > { %v6585_v56 = vpop.xlane.xlu0 %6584 }
 0x461   : > { %8250 = vrcp.f32 %v6585_v56 }
 0x462   : > { %8096 = vmatpush3.bf16.msra.mxu1 %v6222_v20  ;;  %8116 = vmatpush3.bf16.msra.mxu0 %v6230_v3  ;;  %v6587_v30 = vpop.xlane.xlu1 %6586 }
 0x463   : > { %8252 = vrcp.f32 %v6587_v30  ;;  %8121 = vmatprep.subr.bf16.mxu1 %v10981_v6  ;;  %8133 = vmatprep.subr.bf16.mxu0 %v10981_v6 }
 0x464   : > { %v6589_v12 = vpop.xlane.xlu0 %6588 }
 0x465   : > { %8254 = vrcp.f32 %v6589_v12 }
 0x468   : > { %v6591_v11 = vpop.xlane.xlu0 %6590 }
 0x469   : > { %8256 = vrcp.f32 %v6591_v11 }
 0x46b   : > { %v8251_v60 = vpop.eup %8250 }
 0x46c   : > { %v6604_v62 = vmul.f32 %v8251_v60, %v10616_v32  ;;  %v8210_v32 = vld [vmem:[%s10884_s11] sm:$0xff]  }
 0x46d   : > { %v8253_v0 = vpop.eup %8252 }
 0x46e   : > { %v6605_v7 = vmul.f32 %v8253_v0, %v10619_v19  ;;  %v8211_v19 = vld [vmem:[%s10884_s11 + $0x8] sm:$0xff]  }
 0x46f   : > { %v8255_v13 = vpop.eup %8254 }
 0x470   : > { %v6610_v54 = vpack.c.bf16 %v6605_v7, %v6604_v62  ;;  %v6606_v63 = vmul.f32 %v8255_v13, %v10622_v58 }
 0x472   : > { %8098 = vmatmul.mubr.bf16.vlgmr.msra.gmra.mrb[28].mxu1 %v6610_v54 }
 0x473   : > { %v8257_v2 = vpop.eup %8256  ;;  %8129 = vmatprep.mubr.msk.bf16.mxu1 %vm8276_vm0, %v10981_v6  ;;  %8122 = vmatpush3.bf16.msra.mxu1 %v8210_v32 }
 0x474   : > { %v6607_v51 = vmul.f32 %v8257_v2, %v10625_v18  ;;  %8123 = vmatprep.subr.bf16.mxu1 %v10981_v6 }
 0x476   : > { %v6611_v31 = vpack.c.bf16 %v6607_v51, %v6606_v63 }
 0x477   : > { %8124 = vmatpush3.bf16.msra.mxu1 %v8211_v19 }
 0x478   : > { %8118 = vmatmul.mubr.bf16.vlgmr.msra.gmra.mrb[32].mxu0 %v6611_v31  ;;  %8125 = vmatprep.subr.bf16.mxu1 %v10981_v6 }
 0x479   : > { %8141 = vmatprep.mubr.msk.bf16.mxu0 %vm8276_vm0, %v10981_v6 }
 0x518   : > { %v6646_v58 = vpop.f32.mrb[24].mxu1  ;;  %v6687_v18 = vpop.f32.mrb[28].mxu0 }
 0x519   : > { %v8059_v52 = vpop.f32.mrb[25].mxu1  ;;  %v8079_v41 = vpop.f32.mrb[29].mxu0 }
 0x51a   : > { %v6649_v14 = vpop.f32.mrb[26].mxu1  ;;  %v6690_v42 = vpop.f32.mrb[30].mxu0  ;;  %v8212_v41 = vld [vmem:[%s10884_s11 + $0x10] sm:$0xff]  }
 0x51b   : > { %v8060_v17 = vpop.f32.mrb[27].mxu1  ;;  %v8080_v15 = vpop.f32.mrb[31].mxu0  ;;  %8126 = vmatpush3.bf16.msra.mxu1 %v8212_v41 }
 0x51c   : > { %8127 = vmatprep.subr.bf16.mxu1 %v10981_v6 }
 0x545   : > { %v6728_v26 = vpop.f32.mrb[28].mxu1 }
 0x546   : > { %v6776_v28 = vcombine.low %v6646_v58, %v6728_v26  ;;  %v6777_v23 = vcombine.high %v6646_v58, %v6728_v26  ;;  %v8099_v22 = vpop.f32.mrb[29].mxu1 }
 0x547   : > { %v6731_v4 = vpop.f32.mrb[30].mxu1 }
 0x548   : > { %v6844_v35 = vcombine.low %v6649_v14, %v6731_v4  ;;  %v6845_v49 = vcombine.high %v6649_v14, %v6731_v4  ;;  %v8100_v29 = vpop.f32.mrb[31].mxu1  ;;  %v6784_v50 = vrot.slane %v6776_v28, %v11103_v47  ;;  %v6791_v24 = vrot.slane %v6777_v23, %v11103_v47 }
 0x54a   : > { %v6852_v59 = vrot.slane %v6844_v35, %v11103_v47  ;;  %v6859_v33 = vrot.slane %v6845_v49, %v11103_v47 }
 0x54b   : > { %v6769_v39 = vpop.f32.mrb[32].mxu0 }
 0x54c   : > { %v6792_v38 = vcombine.low %v6687_v18, %v6769_v39  ;;  %v6793_v40 = vcombine.high %v6687_v18, %v6769_v39  ;;  %v8119_v37 = vpop.f32.mrb[33].mxu0 }
 0x54d   : > { %v6772_v43 = vpop.f32.mrb[34].mxu0 }
 0x54e   : > { %v6800_v10 = vrot.slane %v6792_v38, %v11103_v47  ;;  %v6807_v55 = vrot.slane %v6793_v40, %v11103_v47  ;;  %v6860_v46 = vcombine.low %v6690_v42, %v6772_v43  ;;  %v6861_v27 = vcombine.high %v6690_v42, %v6772_v43  ;;  %v8120_v34 = vpop.f32.mrb[35].mxu0 }
 0x550   : > { %v6808_v21 = vcombine.low %v6784_v50, %v6800_v10  ;;  %v6809_v8 = vcombine.high %v6784_v50, %v6800_v10  ;;  %v6824_v25 = vcombine.low %v6791_v24, %v6807_v55  ;;  %v6825_v16 = vcombine.high %v6791_v24, %v6807_v55  ;;  %v8213_v10 = vld [vmem:[%s10884_s11 + $0x18] sm:$0xff]  }
 0x551   : > { %v6868_v1 = vrot.slane %v6860_v46, %v11103_v47  ;;  %v6875_v44 = vrot.slane %v6861_v27, %v11103_v47  ;;  %8128 = vmatpush3.bf16.msra.mxu1 %v8213_v10 }
 0x552   : > { %v6816_v5 = vrot.slane %v6808_v21, %v8744_v36  ;;  %v6823_v45 = vrot.slane %v6809_v8, %v8744_v36  ;;  %v6832_v48 = vrot.slane %v6824_v25, %v8744_v36  ;;  %v6839_v9 = vrot.slane %v6825_v16, %v8744_v36  ;;  %8145 = vmatprep.subr.bf16.mxu1 %v10981_v6 }
 0x553   : > { %v6876_v57 = vcombine.low %v6852_v59, %v6868_v1  ;;  %v6877_v53 = vcombine.high %v6852_v59, %v6868_v1  ;;  %v6892_v61 = vcombine.low %v6859_v33, %v6875_v44  ;;  %v6893_v56 = vcombine.high %v6859_v33, %v6875_v44 }
 0x554   : > { %v6912_v20 = vcombine.low %v6816_v5, %v6823_v45  ;;  %v7682_v3 = vcombine.high %v6816_v5, %v6823_v45  ;;  %v6928_v30 = vcombine.low %v6832_v48, %v6839_v9  ;;  %v7683_v12 = vcombine.high %v6832_v48, %v6839_v9 }
 0x555   : > { %v6884_v11 = vrot.slane %v6876_v57, %v8744_v36  ;;  %v6891_v60 = vrot.slane %v6877_v53, %v8744_v36  ;;  %v6900_v0 = vrot.slane %v6892_v61, %v8744_v36  ;;  %v6907_v62 = vrot.slane %v6893_v56, %v8744_v36 }
 0x556   : > { %v6919_v7 = vrot.slane %v6912_v20, %v11103_v47  ;;  %v6927_v54 = vrot.slane %v7682_v3, %v11103_v47  ;;  %v6935_v13 = vrot.slane %v6928_v30, %v11103_v47  ;;  %v6943_v2 = vrot.slane %v7683_v12, %v11103_v47  ;;  %v7686_v30 = vld [vmem:[%s10885_s12] ss:$0 sm:$0xff] }
 0x557   : > { %v6980_v63 = vcombine.low %v6884_v11, %v6891_v60  ;;  %v7684_v51 = vcombine.high %v6884_v11, %v6891_v60  ;;  %v6996_v31 = vcombine.low %v6900_v0, %v6907_v62  ;;  %v7685_v32 = vcombine.high %v6900_v0, %v6907_v62  ;;  %v11119_v62 = vld [vmem:[#allocation3_spill] sm:$0xff] }
 0x558   : > { %v6945_v19 = vcombine.high %v6919_v7, %v6927_v54  ;;  %v6961_v58 = vcombine.high %v6935_v13, %v6943_v2  ;;  %v6944_v18 = vcombine.low %v6919_v7, %v6927_v54  ;;  %v6960_v52 = vcombine.low %v6935_v13, %v6943_v2  ;;  %v11120_v2 = vld [vmem:[#allocation4_spill] sm:$0xff] }
 0x559   : > { %v6987_v14 = vrot.slane %v6980_v63, %v11103_v47  ;;  %v6995_v42 = vrot.slane %v7684_v51, %v11103_v47  ;;  %v7003_v17 = vrot.slane %v6996_v31, %v11103_v47  ;;  %v7011_v15 = vrot.slane %v7685_v32, %v11103_v47 }
 0x55a   : > { %v6959_v26 = vrot.slane %v6945_v19, %v8744_v36  ;;  %v6975_v28 = vrot.slane %v6961_v58, %v8744_v36  ;;  %v6952_v23 = vrot.slane %v6944_v18, %v8744_v36  ;;  %v6968_v22 = vrot.slane %v6960_v52, %v8744_v36 }
 0x55b   : > { %v7013_v4 = vcombine.high %v6987_v14, %v6995_v42  ;;  %v7029_v35 = vcombine.high %v7003_v17, %v7011_v15  ;;  %v7012_v49 = vcombine.low %v6987_v14, %v6995_v42  ;;  %v7028_v29 = vcombine.low %v7003_v17, %v7011_v15 }
 0x55c   : > { %v6978_v39 = vcombine.low %v6959_v26, %v6975_v28  ;;  %v6977_v38 = vcombine.high %v6952_v23, %v6968_v22  ;;  %v6979_v40 = vcombine.high %v6959_v26, %v6975_v28  ;;  %v6976_v37 = vcombine.low %v6952_v23, %v6968_v22  ;;  %v8214_v26 = vld [vmem:[%s10888_s15] sm:$0xff]   ;;  %v8215_v28 = vld [vmem:[%s10888_s15 + $0x8] sm:$0xff]   ;;  %v8216_v23 = vld [vmem:[%s10888_s15 + $0x10] sm:$0xff]  }
 0x55d   : > { %v7027_v47 = vrot.slane %v7013_v4, %v8744_v36  ;;  %v7043_v50 = vrot.slane %v7029_v35, %v8744_v36  ;;  %v7020_v24 = vrot.slane %v7012_v49, %v8744_v36  ;;  %v7036_v43 = vrot.slane %v7028_v29, %v8744_v36  ;;  %8134 = vmatpush3.bf16.msra.mxu0 %v8214_v26  ;;  %v8218_v22 = vld [vmem:[%s10890_s17] sm:$0xff]   ;;  %v8219_v4 = vld [vmem:[%s10890_s17 + $0x8] sm:$0xff]   ;;  %v8217_v35 = vld [vmem:[%s10888_s15 + $0x18] sm:$0xff]  }
 0x55e   : > { %8135 = vmatprep.subr.bf16.mxu0 %v10981_v6  ;;  %v8220_v49 = vld [vmem:[%s10890_s17 + $0x10] sm:$0xff]   ;;  %v8221_v29 = vld [vmem:[%s10890_s17 + $0x18] sm:$0xff]  }
 0x55f   : > { %v7046_v55 = vcombine.low %v7027_v47, %v7043_v50  ;;  %v7045_v46 = vcombine.high %v7020_v24, %v7036_v43  ;;  %v7047_v27 = vcombine.high %v7027_v47, %v7043_v50  ;;  %v7044_v34 = vcombine.low %v7020_v24, %v7036_v43 }
 0x561   : > { %v8188_v21 = vpack.i.bf16 %v7046_v55, %v6978_v39  ;;  %v8183_v8 = vpack.i.bf16 %v7045_v46, %v6977_v38  ;;  %v8193_v25 = vpack.i.bf16 %v7047_v27, %v6979_v40  ;;  %8136 = vmatpush3.bf16.msra.mxu0 %v8215_v28  ;;  %v8222_v39 = vld [vmem:[%s10890_s17 + $0x20] sm:$0xff]   ;;  %v8223_v38 = vld [vmem:[%s10890_s17 + $0x28] sm:$0xff]  }
 0x562   : > { %8137 = vmatprep.subr.bf16.mxu0 %v10981_v6  ;;  %v7692_v55 = vld [vmem:[%s10886_s13] ss:$0 sm:$0xff] }
 0x563   : > { %8189 = vrot.lane.b32.xlu0 %v8188_v21, %s8282_s3  ;;  %8184 = vrot.lane.b32.xlu1 %v8183_v8, %s8283_s29  ;;  %v7693_v8 = vld [vmem:[%s10887_s14] ss:$0 sm:$0xff] }
 0x565   : > { %8138 = vmatpush3.bf16.msra.mxu0 %v8216_v23 }
 0x566   : > { %8139 = vmatprep.subr.bf16.mxu0 %v10981_v6 }
 0x567   : > { %8194 = vrot.lane.b32.xlu1 %v8193_v25, %s8284_s1 }
 0x569   : > { %8140 = vmatpush3.bf16.msra.mxu0 %v8217_v35 }
 0x5d5   : > { %v8190_v36 = vpop.permute.xlu0 %8189  ;;  %v8185_v16 = vpop.permute.xlu1 %8184 }
 0x5d6   : > { %v8187_v59 = vunpack.i.h.bf16 %v8185_v16  ;;  %v8186_v33 = vunpack.i.l.bf16 %v8185_v16  ;;  %v8192_v1 = vunpack.i.h.bf16 %v8190_v36  ;;  %v8191_v44 = vunpack.i.l.bf16 %v8190_v36 }
 0x5d8   : > { %v7072_v5 = vsel %vm6231_vm2, %v6976_v37, %v8186_v33  ;;  %v7073_v45 = vsel %vm6231_vm2, %v7044_v34, %v8187_v59  ;;  %v8224_v33 = vld [vmem:[%s10890_s17 + $0x30] sm:$0xff]  }
 0x5d9   : > { %v8195_v48 = vpop.permute.xlu1 %8194  ;;  %v7075_v53 = vsel %vm7074_vm3, %v7072_v5, %v8191_v44  ;;  %v7076_v61 = vsel %vm7074_vm3, %v7073_v45, %v8192_v1  ;;  %v8225_v1 = vld [vmem:[%s10890_s17 + $0x38] sm:$0xff]   ;;  %v7694_v44 = vld [vmem:[%s10889_s16] ss:$0 sm:$0xff] }
 0x5da   : > { %v8197_v9 = vunpack.i.h.bf16 %v8195_v48  ;;  %v8196_v57 = vunpack.i.l.bf16 %v8195_v48 }
 0x5dc   : > { %v7078_v56 = vsel %vm7077_vm4, %v7075_v53, %v8196_v57  ;;  %v7079_v20 = vsel %vm7077_vm4, %v7076_v61, %v8197_v9 }
 0x5dd   : > { %v7080_v3 = vpack.c.bf16 %v7079_v20, %v7078_v56 }
 0x5df   : > { %8130 = vmatmul.mubr.msk.bf16.vlgmr.msra.gmra.mrb[32].mxu1 %vm858_vm1, %v7080_v3  ;;  %v7700_v3 = vld [vmem:[%s10891_s18] ss:$0 sm:$0xff] }
 0x5e0   : > { %8161 = vmatprep.mubr.msk.bf16.mxu1 %vm8276_vm0, %v10981_v6  ;;  %8146 = vmatpush3.bf16.msra.mxu1 %v8218_v22  ;;  %v7709_v22 = vld [vmem:[%s10892_s19] ss:$0 sm:$0xff] }
 0x5e1   : > { %8147 = vmatprep.subr.bf16.mxu1 %v10981_v6 }
 0x5e4   : > { %8148 = vmatpush3.bf16.msra.mxu1 %v8219_v4 }
 0x5e5   : > { %8149 = vmatprep.subr.bf16.mxu1 %v10981_v6 }
 0x5e8   : > { %8150 = vmatpush3.bf16.msra.mxu1 %v8220_v49  ;;  %v7710_v49 = vld [vmem:[%s10893_s20] ss:$0 sm:$0xff] }
 0x5e9   : > { %8151 = vmatprep.subr.bf16.mxu1 %v10981_v6 }
 0x5ec   : > { %8152 = vmatpush3.bf16.msra.mxu1 %v8221_v29 }
 0x5ed   : > { %8153 = vmatprep.subr.bf16.mxu1 %v10981_v6 }
 0x5f0   : > { %8154 = vmatpush3.bf16.msra.mxu1 %v8222_v39 }
 0x5f1   : > { %8155 = vmatprep.subr.bf16.mxu1 %v10981_v6 }
 0x5f4   : > { %8156 = vmatpush3.bf16.msra.mxu1 %v8223_v38 }
 0x5f5   : > { %8157 = vmatprep.subr.bf16.mxu1 %v10981_v6 }
 0x5f8   : > { %8158 = vmatpush3.bf16.msra.mxu1 %v8224_v33 }
 0x5f9   : > { %8159 = vmatprep.subr.bf16.mxu1 %v10981_v6 }
 0x5fc   : > { %8160 = vmatpush3.bf16.msra.mxu1 %v8225_v1 }
 0x6b2   : > { %v7157_v12 = vpop.f32.mrb[32].mxu1 }
 0x6b3   : > { %v7158_v11 = vadd.f32 %v7686_v30, %v7157_v12  ;;  %v8131_v60 = vpop.f32.mrb[33].mxu1 }
 0x6b4   : > { %v7160_v0 = vpop.f32.mrb[34].mxu1 }
 0x6b5   : > { %v7164_v7 = vadd.f32 %v7158_v11, %v11119_v62  ;;  %v7161_v54 = vadd.f32 %v7686_v30, %v7160_v0  ;;  %v8132_v13 = vpop.f32.mrb[35].mxu1 }
 0x6b7   : > { %v7165_v63 = vadd.f32 %v7161_v54, %v11120_v2  ;;  %v7168_v51 = vsel %vm858_vm1, %v7164_v7, 0.0 }
 0x6b8   : > { %7169 = vadd.xlane.f32.xlu1 %v7168_v51 }
 0x6b9   : > { %v7171_v31 = vsel %vm858_vm1, %v7165_v63, 0.0 }
 0x6ba   : > { %7172 = vadd.xlane.f32.xlu0 %v7171_v31 }
 0x745   : > { %v7170_v32 = vpop.xlane.xlu1 %7169 }
 0x746   : > { %v7175_v19 = vmul.f32 0.015625, %v7170_v32 }
 0x747   : > { %v7173_v58 = vpop.xlane.xlu0 %7172 }
 0x748   : > { %v7177_v18 = vsub.f32 %v7164_v7, %v7175_v19  ;;  %v7176_v52 = vmul.f32 0.015625, %v7173_v58 }
 0x74a   : > { %v7178_v41 = vsub.f32 %v7165_v63, %v7176_v52  ;;  %v7179_v14 = vmul.f32 %v7177_v18, %v7177_v18 }
 0x74c   : > { %v7181_v42 = vsel %vm858_vm1, %v7179_v14, 0.0  ;;  %v7180_v17 = vmul.f32 %v7178_v41, %v7178_v41 }
 0x74d   : > { %7182 = vadd.xlane.f32.xlu0 %v7181_v42 }
 0x74e   : > { %v7184_v15 = vsel %vm858_vm1, %v7180_v17, 0.0 }
 0x74f   : > { %7185 = vadd.xlane.f32.xlu1 %v7184_v15 }
 0x7da   : > { %v7183_v40 = vpop.xlane.xlu0 %7182 }
 0x7db   : > { %v7187_v37 = vmul.f32 0.015625, %v7183_v40 }
 0x7dc   : > { %v7186_v47 = vpop.xlane.xlu1 %7185 }
 0x7dd   : > { %v7189_v50 = vadd.f32 1e-05, %v7187_v37  ;;  %v7188_v24 = vmul.f32 0.015625, %v7186_v47 }
 0x7df   : > { %8258 = vrsqrt.f32 %v7189_v50  ;;  %v7190_v43 = vadd.f32 1e-05, %v7188_v24 }
 0x7e1   : > { %8260 = vrsqrt.f32 %v7190_v43 }
 0x7e9   : > { %v8259_v10 = vpop.eup %8258 }
 0x7ea   : > { %v7193_v46 = vmul.f32 %v8259_v10, %v7177_v18 }
 0x7eb   : > { %v8261_v27 = vpop.eup %8260 }
 0x7ec   : > { %v7201_v34 = vmul.f32 %v7692_v55, %v7193_v46  ;;  %v7194_v21 = vmul.f32 %v8261_v27, %v7178_v41 }
 0x7ee   : > { %v7202_v25 = vmul.f32 %v7692_v55, %v7194_v21  ;;  %v7209_v36 = vadd.f32 %v7693_v8, %v7201_v34 }
 0x7f0   : > { %v7210_v16 = vadd.f32 %v7693_v8, %v7202_v25 }
 0x7f2   : > { %v7211_v59 = vpack.c.bf16 %v7210_v16, %v7209_v36 }
 0x7f4   : > { %8142 = vmatmul.mubr.msk.bf16.vlgmr.msra.gmra.mrb[36].mxu0 %vm858_vm1, %v7211_v59 }
 0x8c7   : > { %v7288_v5 = vpop.f32.mrb[36].mxu0 }
 0x8c8   : > { %v7289_v45 = vadd.f32 %v7694_v44, %v7288_v5  ;;  %v8143_v48 = vpop.f32.mrb[37].mxu0 }
 0x8c9   : > { %v7291_v9 = vpop.f32.mrb[38].mxu0 }
 0x8ca   : > { %v7292_v57 = vadd.f32 %v7694_v44, %v7291_v9  ;;  %v8144_v53 = vpop.f32.mrb[39].mxu0  ;;  %v7295_v61 = vmax.f32 %v7289_v45, 0.0 }
 0x8cc   : > { %v7296_v56 = vmax.f32 %v7292_v57, 0.0 }
 0x8ce   : > { %v7297_v20 = vpack.c.bf16 %v7296_v56, %v7295_v61 }
 0x8d0   : > { %8162 = vmatmul.mubr.bf16.vlgmr.msra.gmra.mrb[36].mxu1 %v7297_v20 }
 0x9a3   : > { %v7403_v6 = vpop.f32.mrb[36].mxu1 }
 0x9a4   : > { %v7404_v30 = vadd.f32 %v7700_v3, %v7403_v6  ;;  %v8163_v12 = vpop.f32.mrb[37].mxu1 }
 0x9a5   : > { %v7406_v11 = vpop.f32.mrb[38].mxu1 }
 0x9a6   : > { %v7410_v60 = vadd.f32 %v7404_v30, %v7209_v36  ;;  %v7407_v0 = vadd.f32 %v7700_v3, %v7406_v11  ;;  %v8164_v62 = vpop.f32.mrb[39].mxu1 }
 0x9a8   : > { %v7411_v7 = vadd.f32 %v7407_v0, %v7210_v16  ;;  %v7414_v54 = vsel %vm858_vm1, %v7410_v60, 0.0 }
 0x9a9   : > { %7415 = vadd.xlane.f32.xlu0 %v7414_v54 }
 0x9aa   : > { %v7417_v13 = vsel %vm858_vm1, %v7411_v7, 0.0 }
 0x9ab   : > { %7418 = vadd.xlane.f32.xlu1 %v7417_v13 }
 0xa36   : > { %v7416_v2 = vpop.xlane.xlu0 %7415 }
 0xa37   : > { %v7420_v63 = vmul.f32 0.015625, %v7416_v2 }
 0xa38   : > { %v7419_v51 = vpop.xlane.xlu1 %7418 }
 0xa39   : > { %v7422_v31 = vsub.f32 %v7410_v60, %v7420_v63  ;;  %v7421_v32 = vmul.f32 0.015625, %v7419_v51 }
 0xa3b   : > { %v7423_v19 = vsub.f32 %v7411_v7, %v7421_v32  ;;  %v7424_v58 = vmul.f32 %v7422_v31, %v7422_v31 }
 0xa3d   : > { %v7426_v18 = vsel %vm858_vm1, %v7424_v58, 0.0  ;;  %v7425_v52 = vmul.f32 %v7423_v19, %v7423_v19 }
 0xa3e   : > { %7427 = vadd.xlane.f32.xlu0 %v7426_v18 }
 0xa3f   : > { %v7429_v41 = vsel %vm858_vm1, %v7425_v52, 0.0 }
 0xa40   : > { %7430 = vadd.xlane.f32.xlu1 %v7429_v41 }
 0xacb   : > { %v7428_v14 = vpop.xlane.xlu0 %7427 }
 0xacc   : > { %v7432_v42 = vmul.f32 0.015625, %v7428_v14 }
 0xacd   : > { %v7431_v17 = vpop.xlane.xlu1 %7430 }
 0xace   : > { %v7434_v15 = vadd.f32 1e-05, %v7432_v42  ;;  %v7433_v26 = vmul.f32 0.015625, %v7431_v17 }
 0xad0   : > { %8262 = vrsqrt.f32 %v7434_v15  ;;  %v7435_v28 = vadd.f32 1e-05, %v7433_v26 }
 0xad2   : > { %8264 = vrsqrt.f32 %v7435_v28 }
 0xada   : > { %v8263_v23 = vpop.eup %8262 }
 0xadb   : > { %v7438_v4 = vmul.f32 %v8263_v23, %v7422_v31 }
 0xadc   : > { %v8265_v35 = vpop.eup %8264 }
 0xadd   : > { %v7446_v29 = vmul.f32 %v7709_v22, %v7438_v4  ;;  %v7439_v39 = vmul.f32 %v8265_v35, %v7423_v19 }
 0xadf   : > { %v7454_v38 = vadd.f32 %v7710_v49, %v7446_v29  ;;  %v7447_v40 = vmul.f32 %v7709_v22, %v7439_v39 }
 0xae1   : > { %7456 = vst.msk [vmem:[%s736_s2] sm:$0xff] %vm858_vm1, %v7454_v38  ;;  %v7455_v37 = vadd.f32 %v7710_v49, %v7447_v40 }
 0xae3   : > { %7457 = vst.msk [vmem:[%s736_s2 + $0x8] sm:$0xff] %vm858_vm1, %v7455_v37 }
 0xae4 PF: > { %s11122_s5 = sld [smem:[#allocation2_spill]] }
 0xaea   : > { %s31_s2 = sadd.s32 1, %s11122_s5  }
 0xaeb   : > { %p28_p4 = scmp.ge.s32.totalorder %s31_s2, 4  }
 0xaed   :  { %30 = sbr.rel (!%p28_p4) target bundleno = 8 (0x8), region = 146 }

</bundles_post_ra>
